<compile_context>
chip_gen: v7x
topology: tpu7x:2x2x1
jax: 0.10.0
libtpu: 0.0.40
codegen_flags: <defaults>
</compile_context>

<pallas_src>
import numpy as np
import jax
import jax.numpy as jnp
from jax.experimental import pallas as pl
from jax.experimental.pallas import tpu as pltpu

# Deterministic synthetic hparams (the PyTorch module reads a global `hparams`).
HPARAMS = {"p1": 10.0, "p2": 20.0, "p3": 10.0}

WIN = 11            # pytorch-ssim gaussian window size
SIGMA = 1.5
C1 = 0.01 ** 2
C2 = 0.03 ** 2


def _gauss_taps():
    g = np.exp(-((np.arange(WIN) - WIN // 2) ** 2) / (2.0 * SIGMA ** 2))
    return (g / g.sum()).astype(np.float32)


def _band(n, taps, offset):
    """Banded matrix M (n, n) with M[i, i + k - offset] = taps[k].
    Entries falling outside [0, n) are dropped == zero-padded convolution."""
    m = np.zeros((n, n), np.float32)
    for k, t in enumerate(taps):
        d = k - offset
        for i in range(n):
            r = i + d
            if 0 <= r < n:
                m[i, r] = float(t)
    return m


def _gauss_band_weights(H, W):
    g = _gauss_taps()
    gv = _band(H, g, WIN // 2)           # left factor:  out = Gv @ X
    ght = _band(W, g, WIN // 2).T        # right factor: out = Y @ Ght
    # bf16 operands for the MXU (accumulation stays f32 in the kernel).
    return jnp.asarray(gv, jnp.bfloat16), jnp.asarray(ght, jnp.bfloat16)


def _vmem_limit_bytes():
    """Generation-aware scoped-VMEM limit (v7x: 64 MiB/TC; v5e/v6e: 128 MiB)."""
    cap = 64 * 1024 * 1024
    try:
        info = pltpu.get_tpu_info()
        cap = int(getattr(info, "vmem_capacity_bytes", cap) or cap)
    except Exception:
        pass
    return max(32 * 1024 * 1024, min((cap * 3) // 4, 100 * 1024 * 1024))


def _fusion_loss_kernel(a_ref, b_ref, f_ref, gv_ref, ght_ref, out_ref):
    # One image per grid step.
    a = a_ref[0]          # (H, W) f32
    b = b_ref[0]
    f = f_ref[0]
    gv = gv_ref[...]      # (H, H) bf16 gaussian vertical band (resident, 1 copy)
    ght = ght_ref[...]    # (W, W) bf16 gaussian horizontal band (transposed)

    H, W = a.shape

    # ----- zero-padded shift helper: out[idx] = x[idx + s] (VPU/XLU only) -----
    def shift(x, s, axis):
        n = x.shape[axis]
        rolled = pltpu.roll(x, shift=(-s) % n, axis=axis)
        idx = jax.lax.broadcasted_iota(jnp.int32, x.shape, axis)
        valid = jnp.logical_and(idx + s >= 0, idx + s < n)
        return jnp.where(valid, rolled, 0.0)

    def sobel(x):
        # Separable 3x3 Sobel (cross-correlation, zero padding) as shift-and-add.
        up = shift(x, 1, 0)          # x[i+1, j]
        dn = shift(x, -1, 0)         # x[i-1, j]
        sm_v = dn + 2.0 * x + up     # vertical [1,2,1]
        df_v = dn - up               # vertical [1,0,-1]
        gx = shift(sm_v, 1, 1) - shift(sm_v, -1, 1)                  # horiz [-1,0,1]
        gy = shift(df_v, -1, 1) + 2.0 * df_v + shift(df_v, 1, 1)     # horiz [1,2,1]
        return jnp.abs(gx) + jnp.abs(gy)

    # ---- L_Intensity partial sum: sum |fused - max(A, B)| ----
    sum_int = jnp.sum(jnp.abs(f - jnp.maximum(a, b)))

    # ---- L_Grad partial sums (VPU/XLU only) ----
    ga = sobel(a)
    gb = sobel(b)
    gf = sobel(f)
    sum_grad = jnp.sum(jnp.abs(gf - jnp.maximum(ga, gb)))
    sum_ga = jnp.sum(ga)
    sum_gb = jnp.sum(gb)

    # ---- SSIM: 8 gaussian-filtered maps, batched through the MXU in bf16 ----
    def bf(x):
        return x.astype(jnp.bfloat16)

    # Row-stack (sublane concat) so the horizontal pass is ONE (8H,W)@(W,W) matmul.
    maps_bf = jnp.concatenate(
        [bf(f), bf(a), bf(b), bf(f * f), bf(a * a), bf(b * b), bf(a * f), bf(b * f)],
        axis=0)                                                   # (8H, W) bf16
    t = jnp.dot(maps_bf, ght, preferred_element_type=jnp.float32)  # horizontal pass
    t_bf = t.astype(jnp.bfloat16)

    def vpass(k):  # vertical pass per map; sublane-aligned static slice
        return jnp.dot(gv, t_bf[k * H:(k + 1) * H, :],
                       preferred_element_type=jnp.float32)

    mu_f, mu_a, mu_b = vpass(0), vpass(1), vpass(2)
    g_ff, g_aa, g_bb = vpass(3), vpass(4), vpass(5)
    g_af, g_bf = vpass(6), vpass(7)

    mu_f_sq = mu_f * mu_f
    sigma_f = g_ff - mu_f_sq

    def ssim_sum(mu_x, g_xx, g_xf):
        mu_x_sq = mu_x * mu_x
        sigma_x = g_xx - mu_x_sq
        mu_xf = mu_x * mu_f
        sigma_xf = g_xf - mu_xf
        num = (2.0 * mu_xf + C1) * (2.0 * sigma_xf + C2)
        den = (mu_x_sq + mu_f_sq + C1) * (sigma_x + sigma_f + C2)
        # Per-pixel divide on the EUP (approx ~1e-3 rel; fine for a loss value).
        return jnp.sum(num * pl.reciprocal(den, approx=True))

    s_af = ssim_sum(mu_a, g_aa, g_af)
    s_bf = ssim_sum(mu_b, g_bb, g_bf)

    # ---- lane-dense partial-sum output block (1, 8, 128) ----
    lane = jax.lax.broadcasted_iota(jnp.int32, (8, 128), 1)
    row = jax.lax.broadcasted_iota(jnp.int32, (8, 128), 0)
    vec = jnp.zeros((8, 128), jnp.float32)
    for i, s in enumerate((sum_int, sum_grad, sum_ga, sum_gb, s_af, s_bf)):
        vec = jnp.where(jnp.logical_and(row == 0, lane == i), s, vec)
    out_ref[0] = vec


def loss_swinfusion(image_A, image_B, image_fused):
    """image_*: NCHW float arrays with C == 1 (Sobel weight is [1,1,3,3]).
    Returns (fusion_loss, loss_gradient, loss_l1, loss_SSIM) scalars."""
    B, C, H, W = image_A.shape
    assert C == 1, "Sobel weight is [1,1,3,3] -> single-channel inputs"

    a = jnp.asarray(image_A, jnp.float32)[:, 0]      # (B, H, W)
    b = jnp.asarray(image_B, jnp.float32)[:, 0]
    f = jnp.asarray(image_fused, jnp.float32)[:, 0]
    gv, ght = _gauss_band_weights(H, W)              # bf16 (H,H), (W,W)

    # Advisory cost: 1 big (8H,W)@(W,W) + 8 (H,H)@(H,W) matmuls per image.
    flops_per_img = 2 * 8 * H * W * W + 8 * 2 * H * H * W + 120 * H * W
    cost = pl.CostEstimate(
        flops=int(B * flops_per_img),
        transcendentals=int(2 * B * H * W),
        bytes_accessed=int(4 * 3 * B * H * W + 2 * (H * H + W * W) + 4 * B * 8 * 128),
    )

    grid_spec = pltpu.PrefetchScalarGridSpec(
        num_scalar_prefetch=0,
        grid=(B,),
        in_specs=[
            pl.BlockSpec((1, H, W), lambda i: (i, 0, 0)),
            pl.BlockSpec((1, H, W), lambda i: (i, 0, 0)),
            pl.BlockSpec((1, H, W), lambda i: (i, 0, 0)),
            # Gaussian band factors: whole-array, single-buffered VMEM residents.
            pl.BlockSpec(memory_space=pltpu.MemorySpace.VMEM),
            pl.BlockSpec(memory_space=pltpu.MemorySpace.VMEM),
        ],
        out_specs=pl.BlockSpec((1, 8, 128), lambda i: (i, 0, 0)),
    )

    partial = pl.pallas_call(
        _fusion_loss_kernel,
        out_shape=jax.ShapeDtypeStruct((B, 8, 128), jnp.float32),
        grid_spec=grid_spec,
        compiler_params=pltpu.CompilerParams(
            dimension_semantics=("parallel",),           # batch steps independent
            vmem_limit_bytes=_vmem_limit_bytes(),        # generation-aware
        ),
        cost_estimate=cost,
    )(a, b, f, gv, ght)

    # Tiny final reduction / weighting in plain JAX (exact recovery of all losses).
    sums = jnp.sum(partial[:, 0, :6], axis=0)            # six global sums
    n = jnp.float32(B * H * W)
    sum_int, sum_grad, sum_ga, sum_gb, s_af, s_bf = [sums[i] for i in range(6)]

    loss_int = sum_int / n
    loss_grad = sum_grad / n
    denom = sum_ga + sum_gb          # no epsilon: matches the PyTorch original
    weight_a = sum_ga / denom
    weight_b = sum_gb / denom
    l_ssim = weight_a * (s_af / n) + weight_b * (s_bf / n)

    loss_l1 = HPARAMS["p1"] * loss_int
    loss_gradient = HPARAMS["p2"] * loss_grad
    loss_ssim = HPARAMS["p3"] * (1.0 - l_ssim)
    fusion_loss = loss_l1 + loss_gradient + loss_ssim
    return fusion_loss, loss_gradient, loss_l1, loss_ssim


if __name__ == "__main__":
    key = jax.random.PRNGKey(0)
    kA, kB, kF = jax.random.split(key, 3)
    # NCHW, single channel (Sobel conv requires C=1); 128^2 keeps every lane/
    # sublane dim hardware-aligned while still being a small test size.
    shape = (2, 1, 128, 128)
    image_A = jax.random.uniform(kA, shape, dtype=jnp.float32)
    image_B = jax.random.uniform(kB, shape, dtype=jnp.float32)
    image_F = jax.random.uniform(kF, shape, dtype=jnp.float32)

    fusion_loss, loss_gradient, loss_l1, loss_SSIM = loss_swinfusion(
        image_A, image_B, image_F)
    jax.block_until_ready((fusion_loss, loss_gradient, loss_l1, loss_SSIM))
    print("KERNEL_OK")
</pallas_src>

<mosaic_0001>
module attributes {stable_mosaic.version = 11 : i64} {
  func.func @_fusion_loss_kernel(%arg0: i32, %arg1: memref<1x128x128xf32, #tpu.memory_space<vmem>>, %arg2: memref<1x128x128xf32, #tpu.memory_space<vmem>>, %arg3: memref<1x128x128xf32, #tpu.memory_space<vmem>>, %arg4: memref<128x128xbf16, #tpu.memory_space<vmem>>, %arg5: memref<128x128xbf16, #tpu.memory_space<vmem>>, %arg6: memref<1x8x128xf32, #tpu.memory_space<vmem>>) attributes {dimension_semantics = [#tpu.dimension_semantics<parallel>], iteration_bounds = array<i64: 2>, scalar_prefetch = 0 : i64, scratch_operands = 0 : i64, tpu.core_type = #tpu.core_type<tc>, window_params = [{transform_indices = @transform_0, window_bounds = array<i64: 1, 128, 128>}, {transform_indices = @transform_1, window_bounds = array<i64: 1, 128, 128>}, {transform_indices = @transform_2, window_bounds = array<i64: 1, 128, 128>}, {pipeline_mode = #tpu.pipeline_mode<synchronous>, transform_indices = @transform_3, window_bounds = array<i64: 128, 128>}, {pipeline_mode = #tpu.pipeline_mode<synchronous>, transform_indices = @transform_4, window_bounds = array<i64: 128, 128>}, {transform_indices = @transform_5, window_bounds = array<i64: 1, 8, 128>}]} {
    %c0 = arith.constant 0 : index
    %c0_0 = arith.constant 0 : index
    %c0_1 = arith.constant 0 : index
    %0 = vector.load %arg1[%c0, %c0_0, %c0_1] : memref<1x128x128xf32, #tpu.memory_space<vmem>>, vector<1x128x128xf32>
    %1 = vector.shape_cast %0 : vector<1x128x128xf32> to vector<128x128xf32>
    %c0_2 = arith.constant 0 : index
    %c0_3 = arith.constant 0 : index
    %c0_4 = arith.constant 0 : index
    %2 = vector.load %arg2[%c0_2, %c0_3, %c0_4] : memref<1x128x128xf32, #tpu.memory_space<vmem>>, vector<1x128x128xf32>
    %3 = vector.shape_cast %2 : vector<1x128x128xf32> to vector<128x128xf32>
    %c0_5 = arith.constant 0 : index
    %c0_6 = arith.constant 0 : index
    %c0_7 = arith.constant 0 : index
    %4 = vector.load %arg3[%c0_5, %c0_6, %c0_7] : memref<1x128x128xf32, #tpu.memory_space<vmem>>, vector<1x128x128xf32>
    %5 = vector.shape_cast %4 : vector<1x128x128xf32> to vector<128x128xf32>
    %c0_8 = arith.constant 0 : index
    %c0_9 = arith.constant 0 : index
    %6 = vector.load %arg4[%c0_8, %c0_9] : memref<128x128xbf16, #tpu.memory_space<vmem>>, vector<128x128xbf16>
    %c0_10 = arith.constant 0 : index
    %c0_11 = arith.constant 0 : index
    %7 = vector.load %arg5[%c0_10, %c0_11] : memref<128x128xbf16, #tpu.memory_space<vmem>>, vector<128x128xbf16>
    %8 = arith.maximumf %1, %3 : vector<128x128xf32>
    %9 = arith.subf %5, %8 : vector<128x128xf32>
    %10 = math.absf %9 : vector<128x128xf32>
    %11 = vector.shape_cast %10 : vector<128x128xf32> to vector<1x128x128xf32>
    %cst = arith.constant dense<0.000000e+00> : vector<1xf32>
    %12 = vector.multi_reduction <add>, %11, %cst [1, 2] : vector<1x128x128xf32> to vector<1xf32>
    %13 = vector.shape_cast %12 : vector<1xf32> to vector<1x1x1xf32>
    %14 = vector.extract %13[0, 0, 0] : f32 from vector<1x1x1xf32>
    %c127_i32 = arith.constant 127 : i32
    %15 = tpu.dynamic_rotate %1 by %c127_i32 dim 0 : vector<128x128xf32>, i32 -> vector<128x128xf32>
    %16 = tpu.iota {dimensions = array<i32: 0>} : vector<128x128xi32>
    %c1_i32 = arith.constant 1 : i32
    %17 = vector.broadcast %c1_i32 : i32 to vector<128x128xi32>
    %18 = arith.addi %16, %17 : vector<128x128xi32>
    %c0_i32 = arith.constant 0 : i32
    %19 = vector.broadcast %c0_i32 : i32 to vector<128x128xi32>
    %20 = arith.cmpi sge, %18, %19 : vector<128x128xi32>
    %c1_i32_12 = arith.constant 1 : i32
    %21 = vector.broadcast %c1_i32_12 : i32 to vector<128x128xi32>
    %22 = arith.addi %16, %21 : vector<128x128xi32>
    %c128_i32 = arith.constant 128 : i32
    %23 = vector.broadcast %c128_i32 : i32 to vector<128x128xi32>
    %24 = arith.cmpi slt, %22, %23 : vector<128x128xi32>
    %25 = arith.andi %20, %24 : vector<128x128xi1>
    %cst_13 = arith.constant 0.000000e+00 : f32
    %26 = vector.broadcast %cst_13 : f32 to vector<128x128xf32>
    %27 = arith.select %25, %15, %26 : vector<128x128xi1>, vector<128x128xf32>
    %c1_i32_14 = arith.constant 1 : i32
    %28 = tpu.dynamic_rotate %1 by %c1_i32_14 dim 0 : vector<128x128xf32>, i32 -> vector<128x128xf32>
    %29 = tpu.iota {dimensions = array<i32: 0>} : vector<128x128xi32>
    %c-1_i32 = arith.constant -1 : i32
    %30 = vector.broadcast %c-1_i32 : i32 to vector<128x128xi32>
    %31 = arith.addi %29, %30 : vector<128x128xi32>
    %c0_i32_15 = arith.constant 0 : i32
    %32 = vector.broadcast %c0_i32_15 : i32 to vector<128x128xi32>
    %33 = arith.cmpi sge, %31, %32 : vector<128x128xi32>
    %c-1_i32_16 = arith.constant -1 : i32
    %34 = vector.broadcast %c-1_i32_16 : i32 to vector<128x128xi32>
    %35 = arith.addi %29, %34 : vector<128x128xi32>
    %c128_i32_17 = arith.constant 128 : i32
    %36 = vector.broadcast %c128_i32_17 : i32 to vector<128x128xi32>
    %37 = arith.cmpi slt, %35, %36 : vector<128x128xi32>
    %38 = arith.andi %33, %37 : vector<128x128xi1>
    %cst_18 = arith.constant 0.000000e+00 : f32
    %39 = vector.broadcast %cst_18 : f32 to vector<128x128xf32>
    %40 = arith.select %38, %28, %39 : vector<128x128xi1>, vector<128x128xf32>
    %cst_19 = arith.constant 2.000000e+00 : f32
    %41 = vector.broadcast %cst_19 : f32 to vector<128x128xf32>
    %42 = arith.mulf %41, %1 : vector<128x128xf32>
    %43 = arith.addf %40, %42 : vector<128x128xf32>
    %44 = arith.addf %43, %27 : vector<128x128xf32>
    %45 = arith.subf %40, %27 : vector<128x128xf32>
    %c127_i32_20 = arith.constant 127 : i32
    %46 = tpu.dynamic_rotate %44 by %c127_i32_20 dim 1 : vector<128x128xf32>, i32 -> vector<128x128xf32>
    %47 = tpu.iota {dimensions = array<i32: 1>} : vector<128x128xi32>
    %c1_i32_21 = arith.constant 1 : i32
    %48 = vector.broadcast %c1_i32_21 : i32 to vector<128x128xi32>
    %49 = arith.addi %47, %48 : vector<128x128xi32>
    %c0_i32_22 = arith.constant 0 : i32
    %50 = vector.broadcast %c0_i32_22 : i32 to vector<128x128xi32>
    %51 = arith.cmpi sge, %49, %50 : vector<128x128xi32>
    %c1_i32_23 = arith.constant 1 : i32
    %52 = vector.broadcast %c1_i32_23 : i32 to vector<128x128xi32>
    %53 = arith.addi %47, %52 : vector<128x128xi32>
    %c128_i32_24 = arith.constant 128 : i32
    %54 = vector.broadcast %c128_i32_24 : i32 to vector<128x128xi32>
    %55 = arith.cmpi slt, %53, %54 : vector<128x128xi32>
    %56 = arith.andi %51, %55 : vector<128x128xi1>
    %cst_25 = arith.constant 0.000000e+00 : f32
    %57 = vector.broadcast %cst_25 : f32 to vector<128x128xf32>
    %58 = arith.select %56, %46, %57 : vector<128x128xi1>, vector<128x128xf32>
    %c1_i32_26 = arith.constant 1 : i32
    %59 = tpu.dynamic_rotate %44 by %c1_i32_26 dim 1 : vector<128x128xf32>, i32 -> vector<128x128xf32>
    %60 = tpu.iota {dimensions = array<i32: 1>} : vector<128x128xi32>
    %c-1_i32_27 = arith.constant -1 : i32
    %61 = vector.broadcast %c-1_i32_27 : i32 to vector<128x128xi32>
    %62 = arith.addi %60, %61 : vector<128x128xi32>
    %c0_i32_28 = arith.constant 0 : i32
    %63 = vector.broadcast %c0_i32_28 : i32 to vector<128x128xi32>
    %64 = arith.cmpi sge, %62, %63 : vector<128x128xi32>
    %c-1_i32_29 = arith.constant -1 : i32
    %65 = vector.broadcast %c-1_i32_29 : i32 to vector<128x128xi32>
    %66 = arith.addi %60, %65 : vector<128x128xi32>
    %c128_i32_30 = arith.constant 128 : i32
    %67 = vector.broadcast %c128_i32_30 : i32 to vector<128x128xi32>
    %68 = arith.cmpi slt, %66, %67 : vector<128x128xi32>
    %69 = arith.andi %64, %68 : vector<128x128xi1>
    %cst_31 = arith.constant 0.000000e+00 : f32
    %70 = vector.broadcast %cst_31 : f32 to vector<128x128xf32>
    %71 = arith.select %69, %59, %70 : vector<128x128xi1>, vector<128x128xf32>
    %72 = arith.subf %58, %71 : vector<128x128xf32>
    %c1_i32_32 = arith.constant 1 : i32
    %73 = tpu.dynamic_rotate %45 by %c1_i32_32 dim 1 : vector<128x128xf32>, i32 -> vector<128x128xf32>
    %74 = tpu.iota {dimensions = array<i32: 1>} : vector<128x128xi32>
    %c-1_i32_33 = arith.constant -1 : i32
    %75 = vector.broadcast %c-1_i32_33 : i32 to vector<128x128xi32>
    %76 = arith.addi %74, %75 : vector<128x128xi32>
    %c0_i32_34 = arith.constant 0 : i32
    %77 = vector.broadcast %c0_i32_34 : i32 to vector<128x128xi32>
    %78 = arith.cmpi sge, %76, %77 : vector<128x128xi32>
    %c-1_i32_35 = arith.constant -1 : i32
    %79 = vector.broadcast %c-1_i32_35 : i32 to vector<128x128xi32>
    %80 = arith.addi %74, %79 : vector<128x128xi32>
    %c128_i32_36 = arith.constant 128 : i32
    %81 = vector.broadcast %c128_i32_36 : i32 to vector<128x128xi32>
    %82 = arith.cmpi slt, %80, %81 : vector<128x128xi32>
    %83 = arith.andi %78, %82 : vector<128x128xi1>
    %cst_37 = arith.constant 0.000000e+00 : f32
    %84 = vector.broadcast %cst_37 : f32 to vector<128x128xf32>
    %85 = arith.select %83, %73, %84 : vector<128x128xi1>, vector<128x128xf32>
    %cst_38 = arith.constant 2.000000e+00 : f32
    %86 = vector.broadcast %cst_38 : f32 to vector<128x128xf32>
    %87 = arith.mulf %86, %45 : vector<128x128xf32>
    %88 = arith.addf %85, %87 : vector<128x128xf32>
    %c127_i32_39 = arith.constant 127 : i32
    %89 = tpu.dynamic_rotate %45 by %c127_i32_39 dim 1 : vector<128x128xf32>, i32 -> vector<128x128xf32>
    %90 = tpu.iota {dimensions = array<i32: 1>} : vector<128x128xi32>
    %c1_i32_40 = arith.constant 1 : i32
    %91 = vector.broadcast %c1_i32_40 : i32 to vector<128x128xi32>
    %92 = arith.addi %90, %91 : vector<128x128xi32>
    %c0_i32_41 = arith.constant 0 : i32
    %93 = vector.broadcast %c0_i32_41 : i32 to vector<128x128xi32>
    %94 = arith.cmpi sge, %92, %93 : vector<128x128xi32>
    %c1_i32_42 = arith.constant 1 : i32
    %95 = vector.broadcast %c1_i32_42 : i32 to vector<128x128xi32>
    %96 = arith.addi %90, %95 : vector<128x128xi32>
    %c128_i32_43 = arith.constant 128 : i32
    %97 = vector.broadcast %c128_i32_43 : i32 to vector<128x128xi32>
    %98 = arith.cmpi slt, %96, %97 : vector<128x128xi32>
    %99 = arith.andi %94, %98 : vector<128x128xi1>
    %cst_44 = arith.constant 0.000000e+00 : f32
    %100 = vector.broadcast %cst_44 : f32 to vector<128x128xf32>
    %101 = arith.select %99, %89, %100 : vector<128x128xi1>, vector<128x128xf32>
    %102 = arith.addf %88, %101 : vector<128x128xf32>
    %103 = math.absf %72 : vector<128x128xf32>
    %104 = math.absf %102 : vector<128x128xf32>
    %105 = arith.addf %103, %104 : vector<128x128xf32>
    %c127_i32_45 = arith.constant 127 : i32
    %106 = tpu.dynamic_rotate %3 by %c127_i32_45 dim 0 : vector<128x128xf32>, i32 -> vector<128x128xf32>
    %107 = tpu.iota {dimensions = array<i32: 0>} : vector<128x128xi32>
    %c1_i32_46 = arith.constant 1 : i32
    %108 = vector.broadcast %c1_i32_46 : i32 to vector<128x128xi32>
    %109 = arith.addi %107, %108 : vector<128x128xi32>
    %c0_i32_47 = arith.constant 0 : i32
    %110 = vector.broadcast %c0_i32_47 : i32 to vector<128x128xi32>
    %111 = arith.cmpi sge, %109, %110 : vector<128x128xi32>
    %c1_i32_48 = arith.constant 1 : i32
    %112 = vector.broadcast %c1_i32_48 : i32 to vector<128x128xi32>
    %113 = arith.addi %107, %112 : vector<128x128xi32>
    %c128_i32_49 = arith.constant 128 : i32
    %114 = vector.broadcast %c128_i32_49 : i32 to vector<128x128xi32>
    %115 = arith.cmpi slt, %113, %114 : vector<128x128xi32>
    %116 = arith.andi %111, %115 : vector<128x128xi1>
    %cst_50 = arith.constant 0.000000e+00 : f32
    %117 = vector.broadcast %cst_50 : f32 to vector<128x128xf32>
    %118 = arith.select %116, %106, %117 : vector<128x128xi1>, vector<128x128xf32>
    %c1_i32_51 = arith.constant 1 : i32
    %119 = tpu.dynamic_rotate %3 by %c1_i32_51 dim 0 : vector<128x128xf32>, i32 -> vector<128x128xf32>
    %120 = tpu.iota {dimensions = array<i32: 0>} : vector<128x128xi32>
    %c-1_i32_52 = arith.constant -1 : i32
    %121 = vector.broadcast %c-1_i32_52 : i32 to vector<128x128xi32>
    %122 = arith.addi %120, %121 : vector<128x128xi32>
    %c0_i32_53 = arith.constant 0 : i32
    %123 = vector.broadcast %c0_i32_53 : i32 to vector<128x128xi32>
    %124 = arith.cmpi sge, %122, %123 : vector<128x128xi32>
    %c-1_i32_54 = arith.constant -1 : i32
    %125 = vector.broadcast %c-1_i32_54 : i32 to vector<128x128xi32>
    %126 = arith.addi %120, %125 : vector<128x128xi32>
    %c128_i32_55 = arith.constant 128 : i32
    %127 = vector.broadcast %c128_i32_55 : i32 to vector<128x128xi32>
    %128 = arith.cmpi slt, %126, %127 : vector<128x128xi32>
    %129 = arith.andi %124, %128 : vector<128x128xi1>
    %cst_56 = arith.constant 0.000000e+00 : f32
    %130 = vector.broadcast %cst_56 : f32 to vector<128x128xf32>
    %131 = arith.select %129, %119, %130 : vector<128x128xi1>, vector<128x128xf32>
    %cst_57 = arith.constant 2.000000e+00 : f32
    %132 = vector.broadcast %cst_57 : f32 to vector<128x128xf32>
    %133 = arith.mulf %132, %3 : vector<128x128xf32>
    %134 = arith.addf %131, %133 : vector<128x128xf32>
    %135 = arith.addf %134, %118 : vector<128x128xf32>
    %136 = arith.subf %131, %118 : vector<128x128xf32>
    %c127_i32_58 = arith.constant 127 : i32
    %137 = tpu.dynamic_rotate %135 by %c127_i32_58 dim 1 : vector<128x128xf32>, i32 -> vector<128x128xf32>
    %138 = tpu.iota {dimensions = array<i32: 1>} : vector<128x128xi32>
    %c1_i32_59 = arith.constant 1 : i32
    %139 = vector.broadcast %c1_i32_59 : i32 to vector<128x128xi32>
    %140 = arith.addi %138, %139 : vector<128x128xi32>
    %c0_i32_60 = arith.constant 0 : i32
    %141 = vector.broadcast %c0_i32_60 : i32 to vector<128x128xi32>
    %142 = arith.cmpi sge, %140, %141 : vector<128x128xi32>
    %c1_i32_61 = arith.constant 1 : i32
    %143 = vector.broadcast %c1_i32_61 : i32 to vector<128x128xi32>
    %144 = arith.addi %138, %143 : vector<128x128xi32>
    %c128_i32_62 = arith.constant 128 : i32
    %145 = vector.broadcast %c128_i32_62 : i32 to vector<128x128xi32>
    %146 = arith.cmpi slt, %144, %145 : vector<128x128xi32>
    %147 = arith.andi %142, %146 : vector<128x128xi1>
    %cst_63 = arith.constant 0.000000e+00 : f32
    %148 = vector.broadcast %cst_63 : f32 to vector<128x128xf32>
    %149 = arith.select %147, %137, %148 : vector<128x128xi1>, vector<128x128xf32>
    %c1_i32_64 = arith.constant 1 : i32
    %150 = tpu.dynamic_rotate %135 by %c1_i32_64 dim 1 : vector<128x128xf32>, i32 -> vector<128x128xf32>
    %151 = tpu.iota {dimensions = array<i32: 1>} : vector<128x128xi32>
    %c-1_i32_65 = arith.constant -1 : i32
    %152 = vector.broadcast %c-1_i32_65 : i32 to vector<128x128xi32>
    %153 = arith.addi %151, %152 : vector<128x128xi32>
    %c0_i32_66 = arith.constant 0 : i32
    %154 = vector.broadcast %c0_i32_66 : i32 to vector<128x128xi32>
    %155 = arith.cmpi sge, %153, %154 : vector<128x128xi32>
    %c-1_i32_67 = arith.constant -1 : i32
    %156 = vector.broadcast %c-1_i32_67 : i32 to vector<128x128xi32>
    %157 = arith.addi %151, %156 : vector<128x128xi32>
    %c128_i32_68 = arith.constant 128 : i32
    %158 = vector.broadcast %c128_i32_68 : i32 to vector<128x128xi32>
    %159 = arith.cmpi slt, %157, %158 : vector<128x128xi32>
    %160 = arith.andi %155, %159 : vector<128x128xi1>
    %cst_69 = arith.constant 0.000000e+00 : f32
    %161 = vector.broadcast %cst_69 : f32 to vector<128x128xf32>
    %162 = arith.select %160, %150, %161 : vector<128x128xi1>, vector<128x128xf32>
    %163 = arith.subf %149, %162 : vector<128x128xf32>
    %c1_i32_70 = arith.constant 1 : i32
    %164 = tpu.dynamic_rotate %136 by %c1_i32_70 dim 1 : vector<128x128xf32>, i32 -> vector<128x128xf32>
    %165 = tpu.iota {dimensions = array<i32: 1>} : vector<128x128xi32>
    %c-1_i32_71 = arith.constant -1 : i32
    %166 = vector.broadcast %c-1_i32_71 : i32 to vector<128x128xi32>
    %167 = arith.addi %165, %166 : vector<128x128xi32>
    %c0_i32_72 = arith.constant 0 : i32
    %168 = vector.broadcast %c0_i32_72 : i32 to vector<128x128xi32>
    %169 = arith.cmpi sge, %167, %168 : vector<128x128xi32>
    %c-1_i32_73 = arith.constant -1 : i32
    %170 = vector.broadcast %c-1_i32_73 : i32 to vector<128x128xi32>
    %171 = arith.addi %165, %170 : vector<128x128xi32>
    %c128_i32_74 = arith.constant 128 : i32
    %172 = vector.broadcast %c128_i32_74 : i32 to vector<128x128xi32>
    %173 = arith.cmpi slt, %171, %172 : vector<128x128xi32>
    %174 = arith.andi %169, %173 : vector<128x128xi1>
    %cst_75 = arith.constant 0.000000e+00 : f32
    %175 = vector.broadcast %cst_75 : f32 to vector<128x128xf32>
    %176 = arith.select %174, %164, %175 : vector<128x128xi1>, vector<128x128xf32>
    %cst_76 = arith.constant 2.000000e+00 : f32
    %177 = vector.broadcast %cst_76 : f32 to vector<128x128xf32>
    %178 = arith.mulf %177, %136 : vector<128x128xf32>
    %179 = arith.addf %176, %178 : vector<128x128xf32>
    %c127_i32_77 = arith.constant 127 : i32
    %180 = tpu.dynamic_rotate %136 by %c127_i32_77 dim 1 : vector<128x128xf32>, i32 -> vector<128x128xf32>
    %181 = tpu.iota {dimensions = array<i32: 1>} : vector<128x128xi32>
    %c1_i32_78 = arith.constant 1 : i32
    %182 = vector.broadcast %c1_i32_78 : i32 to vector<128x128xi32>
    %183 = arith.addi %181, %182 : vector<128x128xi32>
    %c0_i32_79 = arith.constant 0 : i32
    %184 = vector.broadcast %c0_i32_79 : i32 to vector<128x128xi32>
    %185 = arith.cmpi sge, %183, %184 : vector<128x128xi32>
    %c1_i32_80 = arith.constant 1 : i32
    %186 = vector.broadcast %c1_i32_80 : i32 to vector<128x128xi32>
    %187 = arith.addi %181, %186 : vector<128x128xi32>
    %c128_i32_81 = arith.constant 128 : i32
    %188 = vector.broadcast %c128_i32_81 : i32 to vector<128x128xi32>
    %189 = arith.cmpi slt, %187, %188 : vector<128x128xi32>
    %190 = arith.andi %185, %189 : vector<128x128xi1>
    %cst_82 = arith.constant 0.000000e+00 : f32
    %191 = vector.broadcast %cst_82 : f32 to vector<128x128xf32>
    %192 = arith.select %190, %180, %191 : vector<128x128xi1>, vector<128x128xf32>
    %193 = arith.addf %179, %192 : vector<128x128xf32>
    %194 = math.absf %163 : vector<128x128xf32>
    %195 = math.absf %193 : vector<128x128xf32>
    %196 = arith.addf %194, %195 : vector<128x128xf32>
    %c127_i32_83 = arith.constant 127 : i32
    %197 = tpu.dynamic_rotate %5 by %c127_i32_83 dim 0 : vector<128x128xf32>, i32 -> vector<128x128xf32>
    %198 = tpu.iota {dimensions = array<i32: 0>} : vector<128x128xi32>
    %c1_i32_84 = arith.constant 1 : i32
    %199 = vector.broadcast %c1_i32_84 : i32 to vector<128x128xi32>
    %200 = arith.addi %198, %199 : vector<128x128xi32>
    %c0_i32_85 = arith.constant 0 : i32
    %201 = vector.broadcast %c0_i32_85 : i32 to vector<128x128xi32>
    %202 = arith.cmpi sge, %200, %201 : vector<128x128xi32>
    %c1_i32_86 = arith.constant 1 : i32
    %203 = vector.broadcast %c1_i32_86 : i32 to vector<128x128xi32>
    %204 = arith.addi %198, %203 : vector<128x128xi32>
    %c128_i32_87 = arith.constant 128 : i32
    %205 = vector.broadcast %c128_i32_87 : i32 to vector<128x128xi32>
    %206 = arith.cmpi slt, %204, %205 : vector<128x128xi32>
    %207 = arith.andi %202, %206 : vector<128x128xi1>
    %cst_88 = arith.constant 0.000000e+00 : f32
    %208 = vector.broadcast %cst_88 : f32 to vector<128x128xf32>
    %209 = arith.select %207, %197, %208 : vector<128x128xi1>, vector<128x128xf32>
    %c1_i32_89 = arith.constant 1 : i32
    %210 = tpu.dynamic_rotate %5 by %c1_i32_89 dim 0 : vector<128x128xf32>, i32 -> vector<128x128xf32>
    %211 = tpu.iota {dimensions = array<i32: 0>} : vector<128x128xi32>
    %c-1_i32_90 = arith.constant -1 : i32
    %212 = vector.broadcast %c-1_i32_90 : i32 to vector<128x128xi32>
    %213 = arith.addi %211, %212 : vector<128x128xi32>
    %c0_i32_91 = arith.constant 0 : i32
    %214 = vector.broadcast %c0_i32_91 : i32 to vector<128x128xi32>
    %215 = arith.cmpi sge, %213, %214 : vector<128x128xi32>
    %c-1_i32_92 = arith.constant -1 : i32
    %216 = vector.broadcast %c-1_i32_92 : i32 to vector<128x128xi32>
    %217 = arith.addi %211, %216 : vector<128x128xi32>
    %c128_i32_93 = arith.constant 128 : i32
    %218 = vector.broadcast %c128_i32_93 : i32 to vector<128x128xi32>
    %219 = arith.cmpi slt, %217, %218 : vector<128x128xi32>
    %220 = arith.andi %215, %219 : vector<128x128xi1>
    %cst_94 = arith.constant 0.000000e+00 : f32
    %221 = vector.broadcast %cst_94 : f32 to vector<128x128xf32>
    %222 = arith.select %220, %210, %221 : vector<128x128xi1>, vector<128x128xf32>
    %cst_95 = arith.constant 2.000000e+00 : f32
    %223 = vector.broadcast %cst_95 : f32 to vector<128x128xf32>
    %224 = arith.mulf %223, %5 : vector<128x128xf32>
    %225 = arith.addf %222, %224 : vector<128x128xf32>
    %226 = arith.addf %225, %209 : vector<128x128xf32>
    %227 = arith.subf %222, %209 : vector<128x128xf32>
    %c127_i32_96 = arith.constant 127 : i32
    %228 = tpu.dynamic_rotate %226 by %c127_i32_96 dim 1 : vector<128x128xf32>, i32 -> vector<128x128xf32>
    %229 = tpu.iota {dimensions = array<i32: 1>} : vector<128x128xi32>
    %c1_i32_97 = arith.constant 1 : i32
    %230 = vector.broadcast %c1_i32_97 : i32 to vector<128x128xi32>
    %231 = arith.addi %229, %230 : vector<128x128xi32>
    %c0_i32_98 = arith.constant 0 : i32
    %232 = vector.broadcast %c0_i32_98 : i32 to vector<128x128xi32>
    %233 = arith.cmpi sge, %231, %232 : vector<128x128xi32>
    %c1_i32_99 = arith.constant 1 : i32
    %234 = vector.broadcast %c1_i32_99 : i32 to vector<128x128xi32>
    %235 = arith.addi %229, %234 : vector<128x128xi32>
    %c128_i32_100 = arith.constant 128 : i32
    %236 = vector.broadcast %c128_i32_100 : i32 to vector<128x128xi32>
    %237 = arith.cmpi slt, %235, %236 : vector<128x128xi32>
    %238 = arith.andi %233, %237 : vector<128x128xi1>
    %cst_101 = arith.constant 0.000000e+00 : f32
    %239 = vector.broadcast %cst_101 : f32 to vector<128x128xf32>
    %240 = arith.select %238, %228, %239 : vector<128x128xi1>, vector<128x128xf32>
    %c1_i32_102 = arith.constant 1 : i32
    %241 = tpu.dynamic_rotate %226 by %c1_i32_102 dim 1 : vector<128x128xf32>, i32 -> vector<128x128xf32>
    %242 = tpu.iota {dimensions = array<i32: 1>} : vector<128x128xi32>
    %c-1_i32_103 = arith.constant -1 : i32
    %243 = vector.broadcast %c-1_i32_103 : i32 to vector<128x128xi32>
    %244 = arith.addi %242, %243 : vector<128x128xi32>
    %c0_i32_104 = arith.constant 0 : i32
    %245 = vector.broadcast %c0_i32_104 : i32 to vector<128x128xi32>
    %246 = arith.cmpi sge, %244, %245 : vector<128x128xi32>
    %c-1_i32_105 = arith.constant -1 : i32
    %247 = vector.broadcast %c-1_i32_105 : i32 to vector<128x128xi32>
    %248 = arith.addi %242, %247 : vector<128x128xi32>
    %c128_i32_106 = arith.constant 128 : i32
    %249 = vector.broadcast %c128_i32_106 : i32 to vector<128x128xi32>
    %250 = arith.cmpi slt, %248, %249 : vector<128x128xi32>
    %251 = arith.andi %246, %250 : vector<128x128xi1>
    %cst_107 = arith.constant 0.000000e+00 : f32
    %252 = vector.broadcast %cst_107 : f32 to vector<128x128xf32>
    %253 = arith.select %251, %241, %252 : vector<128x128xi1>, vector<128x128xf32>
    %254 = arith.subf %240, %253 : vector<128x128xf32>
    %c1_i32_108 = arith.constant 1 : i32
    %255 = tpu.dynamic_rotate %227 by %c1_i32_108 dim 1 : vector<128x128xf32>, i32 -> vector<128x128xf32>
    %256 = tpu.iota {dimensions = array<i32: 1>} : vector<128x128xi32>
    %c-1_i32_109 = arith.constant -1 : i32
    %257 = vector.broadcast %c-1_i32_109 : i32 to vector<128x128xi32>
    %258 = arith.addi %256, %257 : vector<128x128xi32>
    %c0_i32_110 = arith.constant 0 : i32
    %259 = vector.broadcast %c0_i32_110 : i32 to vector<128x128xi32>
    %260 = arith.cmpi sge, %258, %259 : vector<128x128xi32>
    %c-1_i32_111 = arith.constant -1 : i32
    %261 = vector.broadcast %c-1_i32_111 : i32 to vector<128x128xi32>
    %262 = arith.addi %256, %261 : vector<128x128xi32>
    %c128_i32_112 = arith.constant 128 : i32
    %263 = vector.broadcast %c128_i32_112 : i32 to vector<128x128xi32>
    %264 = arith.cmpi slt, %262, %263 : vector<128x128xi32>
    %265 = arith.andi %260, %264 : vector<128x128xi1>
    %cst_113 = arith.constant 0.000000e+00 : f32
    %266 = vector.broadcast %cst_113 : f32 to vector<128x128xf32>
    %267 = arith.select %265, %255, %266 : vector<128x128xi1>, vector<128x128xf32>
    %cst_114 = arith.constant 2.000000e+00 : f32
    %268 = vector.broadcast %cst_114 : f32 to vector<128x128xf32>
    %269 = arith.mulf %268, %227 : vector<128x128xf32>
    %270 = arith.addf %267, %269 : vector<128x128xf32>
    %c127_i32_115 = arith.constant 127 : i32
    %271 = tpu.dynamic_rotate %227 by %c127_i32_115 dim 1 : vector<128x128xf32>, i32 -> vector<128x128xf32>
    %272 = tpu.iota {dimensions = array<i32: 1>} : vector<128x128xi32>
    %c1_i32_116 = arith.constant 1 : i32
    %273 = vector.broadcast %c1_i32_116 : i32 to vector<128x128xi32>
    %274 = arith.addi %272, %273 : vector<128x128xi32>
    %c0_i32_117 = arith.constant 0 : i32
    %275 = vector.broadcast %c0_i32_117 : i32 to vector<128x128xi32>
    %276 = arith.cmpi sge, %274, %275 : vector<128x128xi32>
    %c1_i32_118 = arith.constant 1 : i32
    %277 = vector.broadcast %c1_i32_118 : i32 to vector<128x128xi32>
    %278 = arith.addi %272, %277 : vector<128x128xi32>
    %c128_i32_119 = arith.constant 128 : i32
    %279 = vector.broadcast %c128_i32_119 : i32 to vector<128x128xi32>
    %280 = arith.cmpi slt, %278, %279 : vector<128x128xi32>
    %281 = arith.andi %276, %280 : vector<128x128xi1>
    %cst_120 = arith.constant 0.000000e+00 : f32
    %282 = vector.broadcast %cst_120 : f32 to vector<128x128xf32>
    %283 = arith.select %281, %271, %282 : vector<128x128xi1>, vector<128x128xf32>
    %284 = arith.addf %270, %283 : vector<128x128xf32>
    %285 = math.absf %254 : vector<128x128xf32>
    %286 = math.absf %284 : vector<128x128xf32>
    %287 = arith.addf %285, %286 : vector<128x128xf32>
    %288 = arith.maximumf %105, %196 : vector<128x128xf32>
    %289 = arith.subf %287, %288 : vector<128x128xf32>
    %290 = math.absf %289 : vector<128x128xf32>
    %291 = vector.shape_cast %290 : vector<128x128xf32> to vector<1x128x128xf32>
    %cst_121 = arith.constant dense<0.000000e+00> : vector<1xf32>
    %292 = vector.multi_reduction <add>, %291, %cst_121 [1, 2] : vector<1x128x128xf32> to vector<1xf32>
    %293 = vector.shape_cast %292 : vector<1xf32> to vector<1x1x1xf32>
    %294 = vector.extract %293[0, 0, 0] : f32 from vector<1x1x1xf32>
    %295 = vector.shape_cast %105 : vector<128x128xf32> to vector<1x128x128xf32>
    %cst_122 = arith.constant dense<0.000000e+00> : vector<1xf32>
    %296 = vector.multi_reduction <add>, %295, %cst_122 [1, 2] : vector<1x128x128xf32> to vector<1xf32>
    %297 = vector.shape_cast %296 : vector<1xf32> to vector<1x1x1xf32>
    %298 = vector.extract %297[0, 0, 0] : f32 from vector<1x1x1xf32>
    %299 = vector.shape_cast %196 : vector<128x128xf32> to vector<1x128x128xf32>
    %cst_123 = arith.constant dense<0.000000e+00> : vector<1xf32>
    %300 = vector.multi_reduction <add>, %299, %cst_123 [1, 2] : vector<1x128x128xf32> to vector<1xf32>
    %301 = vector.shape_cast %300 : vector<1xf32> to vector<1x1x1xf32>
    %302 = vector.extract %301[0, 0, 0] : f32 from vector<1x1x1xf32>
    %303 = arith.truncf %5 : vector<128x128xf32> to vector<128x128xbf16>
    %304 = arith.truncf %1 : vector<128x128xf32> to vector<128x128xbf16>
    %305 = arith.truncf %3 : vector<128x128xf32> to vector<128x128xbf16>
    %306 = arith.mulf %5, %5 : vector<128x128xf32>
    %307 = arith.truncf %306 : vector<128x128xf32> to vector<128x128xbf16>
    %308 = arith.mulf %1, %1 : vector<128x128xf32>
    %309 = arith.truncf %308 : vector<128x128xf32> to vector<128x128xbf16>
    %310 = arith.mulf %3, %3 : vector<128x128xf32>
    %311 = arith.truncf %310 : vector<128x128xf32> to vector<128x128xbf16>
    %312 = arith.mulf %1, %5 : vector<128x128xf32>
    %313 = arith.truncf %312 : vector<128x128xf32> to vector<128x128xbf16>
    %314 = arith.mulf %3, %5 : vector<128x128xf32>
    %315 = arith.truncf %314 : vector<128x128xf32> to vector<128x128xbf16>
    %316 = tpu.concatenate %303, %304, %305, %307, %309, %311, %313, %315 in 0 : vector<128x128xbf16>, vector<128x128xbf16>, vector<128x128xbf16>, vector<128x128xbf16>, vector<128x128xbf16>, vector<128x128xbf16>, vector<128x128xbf16>, vector<128x128xbf16> -> vector<1024x128xbf16>
    %cst_124 = arith.constant dense<0.000000e+00> : vector<1024x128xf32>
    %317 = tpu.matmul %316, %7, %cst_124 {dimension_numbers = #tpu.dot_dimension_numbers<[1], [0], [0], [1], [0, 0, 1, 1], [], []>} : vector<1024x128xbf16>, vector<128x128xbf16>, vector<1024x128xf32> -> vector<1024x128xf32>
    %318 = arith.truncf %317 : vector<1024x128xf32> to vector<1024x128xbf16>
    %319 = vector.extract_strided_slice %318 {offsets = [0, 0], sizes = [128, 128], strides = [1, 1]} : vector<1024x128xbf16> to vector<128x128xbf16>
    %cst_125 = arith.constant dense<0.000000e+00> : vector<128x128xf32>
    %320 = tpu.matmul %6, %319, %cst_125 {dimension_numbers = #tpu.dot_dimension_numbers<[1], [0], [0], [1], [0, 0, 1, 1], [], []>} : vector<128x128xbf16>, vector<128x128xbf16>, vector<128x128xf32> -> vector<128x128xf32>
    %321 = vector.extract_strided_slice %318 {offsets = [128, 0], sizes = [128, 128], strides = [1, 1]} : vector<1024x128xbf16> to vector<128x128xbf16>
    %cst_126 = arith.constant dense<0.000000e+00> : vector<128x128xf32>
    %322 = tpu.matmul %6, %321, %cst_126 {dimension_numbers = #tpu.dot_dimension_numbers<[1], [0], [0], [1], [0, 0, 1, 1], [], []>} : vector<128x128xbf16>, vector<128x128xbf16>, vector<128x128xf32> -> vector<128x128xf32>
    %323 = vector.extract_strided_slice %318 {offsets = [256, 0], sizes = [128, 128], strides = [1, 1]} : vector<1024x128xbf16> to vector<128x128xbf16>
    %cst_127 = arith.constant dense<0.000000e+00> : vector<128x128xf32>
    %324 = tpu.matmul %6, %323, %cst_127 {dimension_numbers = #tpu.dot_dimension_numbers<[1], [0], [0], [1], [0, 0, 1, 1], [], []>} : vector<128x128xbf16>, vector<128x128xbf16>, vector<128x128xf32> -> vector<128x128xf32>
    %325 = vector.extract_strided_slice %318 {offsets = [384, 0], sizes = [128, 128], strides = [1, 1]} : vector<1024x128xbf16> to vector<128x128xbf16>
    %cst_128 = arith.constant dense<0.000000e+00> : vector<128x128xf32>
    %326 = tpu.matmul %6, %325, %cst_128 {dimension_numbers = #tpu.dot_dimension_numbers<[1], [0], [0], [1], [0, 0, 1, 1], [], []>} : vector<128x128xbf16>, vector<128x128xbf16>, vector<128x128xf32> -> vector<128x128xf32>
    %327 = vector.extract_strided_slice %318 {offsets = [512, 0], sizes = [128, 128], strides = [1, 1]} : vector<1024x128xbf16> to vector<128x128xbf16>
    %cst_129 = arith.constant dense<0.000000e+00> : vector<128x128xf32>
    %328 = tpu.matmul %6, %327, %cst_129 {dimension_numbers = #tpu.dot_dimension_numbers<[1], [0], [0], [1], [0, 0, 1, 1], [], []>} : vector<128x128xbf16>, vector<128x128xbf16>, vector<128x128xf32> -> vector<128x128xf32>
    %329 = vector.extract_strided_slice %318 {offsets = [640, 0], sizes = [128, 128], strides = [1, 1]} : vector<1024x128xbf16> to vector<128x128xbf16>
    %cst_130 = arith.constant dense<0.000000e+00> : vector<128x128xf32>
    %330 = tpu.matmul %6, %329, %cst_130 {dimension_numbers = #tpu.dot_dimension_numbers<[1], [0], [0], [1], [0, 0, 1, 1], [], []>} : vector<128x128xbf16>, vector<128x128xbf16>, vector<128x128xf32> -> vector<128x128xf32>
    %331 = vector.extract_strided_slice %318 {offsets = [768, 0], sizes = [128, 128], strides = [1, 1]} : vector<1024x128xbf16> to vector<128x128xbf16>
    %cst_131 = arith.constant dense<0.000000e+00> : vector<128x128xf32>
    %332 = tpu.matmul %6, %331, %cst_131 {dimension_numbers = #tpu.dot_dimension_numbers<[1], [0], [0], [1], [0, 0, 1, 1], [], []>} : vector<128x128xbf16>, vector<128x128xbf16>, vector<128x128xf32> -> vector<128x128xf32>
    %333 = vector.extract_strided_slice %318 {offsets = [896, 0], sizes = [128, 128], strides = [1, 1]} : vector<1024x128xbf16> to vector<128x128xbf16>
    %cst_132 = arith.constant dense<0.000000e+00> : vector<128x128xf32>
    %334 = tpu.matmul %6, %333, %cst_132 {dimension_numbers = #tpu.dot_dimension_numbers<[1], [0], [0], [1], [0, 0, 1, 1], [], []>} : vector<128x128xbf16>, vector<128x128xbf16>, vector<128x128xf32> -> vector<128x128xf32>
    %335 = arith.mulf %320, %320 : vector<128x128xf32>
    %336 = arith.subf %326, %335 : vector<128x128xf32>
    %337 = arith.mulf %322, %322 : vector<128x128xf32>
    %338 = arith.subf %328, %337 : vector<128x128xf32>
    %339 = arith.mulf %322, %320 : vector<128x128xf32>
    %340 = arith.subf %332, %339 : vector<128x128xf32>
    %cst_133 = arith.constant 2.000000e+00 : f32
    %341 = vector.broadcast %cst_133 : f32 to vector<128x128xf32>
    %342 = arith.mulf %341, %339 : vector<128x128xf32>
    %cst_134 = arith.constant 9.99999974E-5 : f32
    %343 = vector.broadcast %cst_134 : f32 to vector<128x128xf32>
    %344 = arith.addf %342, %343 : vector<128x128xf32>
    %cst_135 = arith.constant 2.000000e+00 : f32
    %345 = vector.broadcast %cst_135 : f32 to vector<128x128xf32>
    %346 = arith.mulf %345, %340 : vector<128x128xf32>
    %cst_136 = arith.constant 8.99999984E-4 : f32
    %347 = vector.broadcast %cst_136 : f32 to vector<128x128xf32>
    %348 = arith.addf %346, %347 : vector<128x128xf32>
    %349 = arith.mulf %344, %348 : vector<128x128xf32>
    %350 = arith.addf %337, %335 : vector<128x128xf32>
    %cst_137 = arith.constant 9.99999974E-5 : f32
    %351 = vector.broadcast %cst_137 : f32 to vector<128x128xf32>
    %352 = arith.addf %350, %351 : vector<128x128xf32>
    %353 = arith.addf %338, %336 : vector<128x128xf32>
    %cst_138 = arith.constant 8.99999984E-4 : f32
    %354 = vector.broadcast %cst_138 : f32 to vector<128x128xf32>
    %355 = arith.addf %353, %354 : vector<128x128xf32>
    %356 = arith.mulf %352, %355 : vector<128x128xf32>
    %357 = tpu.reciprocal %356 {approx = true} : vector<128x128xf32> -> vector<128x128xf32>
    %358 = arith.mulf %349, %357 : vector<128x128xf32>
    %359 = vector.shape_cast %358 : vector<128x128xf32> to vector<1x128x128xf32>
    %cst_139 = arith.constant dense<0.000000e+00> : vector<1xf32>
    %360 = vector.multi_reduction <add>, %359, %cst_139 [1, 2] : vector<1x128x128xf32> to vector<1xf32>
    %361 = vector.shape_cast %360 : vector<1xf32> to vector<1x1x1xf32>
    %362 = vector.extract %361[0, 0, 0] : f32 from vector<1x1x1xf32>
    %363 = arith.mulf %324, %324 : vector<128x128xf32>
    %364 = arith.subf %330, %363 : vector<128x128xf32>
    %365 = arith.mulf %324, %320 : vector<128x128xf32>
    %366 = arith.subf %334, %365 : vector<128x128xf32>
    %cst_140 = arith.constant 2.000000e+00 : f32
    %367 = vector.broadcast %cst_140 : f32 to vector<128x128xf32>
    %368 = arith.mulf %367, %365 : vector<128x128xf32>
    %cst_141 = arith.constant 9.99999974E-5 : f32
    %369 = vector.broadcast %cst_141 : f32 to vector<128x128xf32>
    %370 = arith.addf %368, %369 : vector<128x128xf32>
    %cst_142 = arith.constant 2.000000e+00 : f32
    %371 = vector.broadcast %cst_142 : f32 to vector<128x128xf32>
    %372 = arith.mulf %371, %366 : vector<128x128xf32>
    %cst_143 = arith.constant 8.99999984E-4 : f32
    %373 = vector.broadcast %cst_143 : f32 to vector<128x128xf32>
    %374 = arith.addf %372, %373 : vector<128x128xf32>
    %375 = arith.mulf %370, %374 : vector<128x128xf32>
    %376 = arith.addf %363, %335 : vector<128x128xf32>
    %cst_144 = arith.constant 9.99999974E-5 : f32
    %377 = vector.broadcast %cst_144 : f32 to vector<128x128xf32>
    %378 = arith.addf %376, %377 : vector<128x128xf32>
    %379 = arith.addf %364, %336 : vector<128x128xf32>
    %cst_145 = arith.constant 8.99999984E-4 : f32
    %380 = vector.broadcast %cst_145 : f32 to vector<128x128xf32>
    %381 = arith.addf %379, %380 : vector<128x128xf32>
    %382 = arith.mulf %378, %381 : vector<128x128xf32>
    %383 = tpu.reciprocal %382 {approx = true} : vector<128x128xf32> -> vector<128x128xf32>
    %384 = arith.mulf %375, %383 : vector<128x128xf32>
    %385 = vector.shape_cast %384 : vector<128x128xf32> to vector<1x128x128xf32>
    %cst_146 = arith.constant dense<0.000000e+00> : vector<1xf32>
    %386 = vector.multi_reduction <add>, %385, %cst_146 [1, 2] : vector<1x128x128xf32> to vector<1xf32>
    %387 = vector.shape_cast %386 : vector<1xf32> to vector<1x1x1xf32>
    %388 = vector.extract %387[0, 0, 0] : f32 from vector<1x1x1xf32>
    %389 = tpu.iota {dimensions = array<i32: 1>} : vector<8x128xi32>
    %390 = tpu.iota {dimensions = array<i32: 0>} : vector<8x128xi32>
    %cst_147 = arith.constant 0.000000e+00 : f32
    %391 = vector.broadcast %cst_147 : f32 to vector<8x128xf32>
    %c0_i32_148 = arith.constant 0 : i32
    %392 = vector.broadcast %c0_i32_148 : i32 to vector<8x128xi32>
    %393 = arith.cmpi eq, %390, %392 : vector<8x128xi32>
    %c0_i32_149 = arith.constant 0 : i32
    %394 = vector.broadcast %c0_i32_149 : i32 to vector<8x128xi32>
    %395 = arith.cmpi eq, %389, %394 : vector<8x128xi32>
    %396 = arith.andi %393, %395 : vector<8x128xi1>
    %397 = vector.broadcast %14 : f32 to vector<8x128xf32>
    %398 = arith.select %396, %397, %391 : vector<8x128xi1>, vector<8x128xf32>
    %c0_i32_150 = arith.constant 0 : i32
    %399 = vector.broadcast %c0_i32_150 : i32 to vector<8x128xi32>
    %400 = arith.cmpi eq, %390, %399 : vector<8x128xi32>
    %c1_i32_151 = arith.constant 1 : i32
    %401 = vector.broadcast %c1_i32_151 : i32 to vector<8x128xi32>
    %402 = arith.cmpi eq, %389, %401 : vector<8x128xi32>
    %403 = arith.andi %400, %402 : vector<8x128xi1>
    %404 = vector.broadcast %294 : f32 to vector<8x128xf32>
    %405 = arith.select %403, %404, %398 : vector<8x128xi1>, vector<8x128xf32>
    %c0_i32_152 = arith.constant 0 : i32
    %406 = vector.broadcast %c0_i32_152 : i32 to vector<8x128xi32>
    %407 = arith.cmpi eq, %390, %406 : vector<8x128xi32>
    %c2_i32 = arith.constant 2 : i32
    %408 = vector.broadcast %c2_i32 : i32 to vector<8x128xi32>
    %409 = arith.cmpi eq, %389, %408 : vector<8x128xi32>
    %410 = arith.andi %407, %409 : vector<8x128xi1>
    %411 = vector.broadcast %298 : f32 to vector<8x128xf32>
    %412 = arith.select %410, %411, %405 : vector<8x128xi1>, vector<8x128xf32>
    %c0_i32_153 = arith.constant 0 : i32
    %413 = vector.broadcast %c0_i32_153 : i32 to vector<8x128xi32>
    %414 = arith.cmpi eq, %390, %413 : vector<8x128xi32>
    %c3_i32 = arith.constant 3 : i32
    %415 = vector.broadcast %c3_i32 : i32 to vector<8x128xi32>
    %416 = arith.cmpi eq, %389, %415 : vector<8x128xi32>
    %417 = arith.andi %414, %416 : vector<8x128xi1>
    %418 = vector.broadcast %302 : f32 to vector<8x128xf32>
    %419 = arith.select %417, %418, %412 : vector<8x128xi1>, vector<8x128xf32>
    %c0_i32_154 = arith.constant 0 : i32
    %420 = vector.broadcast %c0_i32_154 : i32 to vector<8x128xi32>
    %421 = arith.cmpi eq, %390, %420 : vector<8x128xi32>
    %c4_i32 = arith.constant 4 : i32
    %422 = vector.broadcast %c4_i32 : i32 to vector<8x128xi32>
    %423 = arith.cmpi eq, %389, %422 : vector<8x128xi32>
    %424 = arith.andi %421, %423 : vector<8x128xi1>
    %425 = vector.broadcast %362 : f32 to vector<8x128xf32>
    %426 = arith.select %424, %425, %419 : vector<8x128xi1>, vector<8x128xf32>
    %c0_i32_155 = arith.constant 0 : i32
    %427 = vector.broadcast %c0_i32_155 : i32 to vector<8x128xi32>
    %428 = arith.cmpi eq, %390, %427 : vector<8x128xi32>
    %c5_i32 = arith.constant 5 : i32
    %429 = vector.broadcast %c5_i32 : i32 to vector<8x128xi32>
    %430 = arith.cmpi eq, %389, %429 : vector<8x128xi32>
    %431 = arith.andi %428, %430 : vector<8x128xi1>
    %432 = vector.broadcast %388 : f32 to vector<8x128xf32>
    %433 = arith.select %431, %432, %426 : vector<8x128xi1>, vector<8x128xf32>
    %c0_156 = arith.constant 0 : index
    %c0_157 = arith.constant 0 : index
    %c0_158 = arith.constant 0 : index
    %434 = vector.load %arg6[%c0_156, %c0_157, %c0_158] : memref<1x8x128xf32, #tpu.memory_space<vmem>>, vector<1x8x128xf32>
    %435 = vector.shape_cast %434 : vector<1x8x128xf32> to vector<8x128xf32>
    %436 = vector.shape_cast %433 : vector<8x128xf32> to vector<1x8x128xf32>
    tpu.vector_store %arg6[%c0_156, %c0_157, %c0_158], %436 {strides = array<i32>} : memref<1x8x128xf32, #tpu.memory_space<vmem>>, vector<1x8x128xf32>,
    return
  }
  func.func @transform_0(%arg0: i32) -> (i32, i32, i32) {
    %c0_i32 = arith.constant 0 : i32
    %c0_i32_0 = arith.constant 0 : i32
    %c0_i32_1 = arith.constant 0 : i32
    return %arg0, %c0_i32, %c0_i32_0 : i32, i32, i32
  }
  func.func @transform_1(%arg0: i32) -> (i32, i32, i32) {
    %c0_i32 = arith.constant 0 : i32
    %c0_i32_0 = arith.constant 0 : i32
    %c0_i32_1 = arith.constant 0 : i32
    return %arg0, %c0_i32, %c0_i32_0 : i32, i32, i32
  }
  func.func @transform_2(%arg0: i32) -> (i32, i32, i32) {
    %c0_i32 = arith.constant 0 : i32
    %c0_i32_0 = arith.constant 0 : i32
    %c0_i32_1 = arith.constant 0 : i32
    return %arg0, %c0_i32, %c0_i32_0 : i32, i32, i32
  }
  func.func @transform_3(%arg0: i32) -> (i32, i32) {
    %c0_i32 = arith.constant 0 : i32
    %c0_i32_0 = arith.constant 0 : i32
    %c0_i32_1 = arith.constant 0 : i32
    return %c0_i32, %c0_i32_0 : i32, i32
  }
  func.func @transform_4(%arg0: i32) -> (i32, i32) {
    %c0_i32 = arith.constant 0 : i32
    %c0_i32_0 = arith.constant 0 : i32
    %c0_i32_1 = arith.constant 0 : i32
    return %c0_i32, %c0_i32_0 : i32, i32
  }
  func.func @transform_5(%arg0: i32) -> (i32, i32, i32) {
    %c0_i32 = arith.constant 0 : i32
    %c0_i32_0 = arith.constant 0 : i32
    %c0_i32_1 = arith.constant 0 : i32
    return %arg0, %c0_i32, %c0_i32_0 : i32, i32, i32
  }
}

</mosaic_0001>

<bundles_post_ra>
// kernel: tpu_custom_call.1
= control target key start
LH: loop header
LB: loop body
LE: loop exit
PB: predicated region body
PF: predicated region fallthrough
CT: control target
= control target key end

     0   :  { %s10063_s0 = inlined_call_operand.hbm [shape: f32[2,128,128], index: 0, kind: input, shape index: {}]   ;;  %s10064_s1 = inlined_call_operand.hbm [shape: f32[2,128,128], index: 1, kind: input, shape index: {}]   ;;  %s10065_s2 = inlined_call_operand.hbm [shape: f32[2,128,128], index: 2, kind: input, shape index: {}]   ;;  %s10066_s3 = inlined_call_operand.hbm [shape: bf16[128,128], index: 3, kind: input, shape index: {}]   ;;  %s10067_s4 = inlined_call_operand.hbm [shape: bf16[128,128], index: 4, kind: input, shape index: {}]   ;;  %s10068_s5 = inlined_call_operand.hbm [shape: f32[2,8,128], index: 5, kind: output, shape index: {}]  }
   0x1   :  { %10348 = sst [smem:[#allocation138_spill]] %s10064_s1 }
   0x2   :  { %10349 = sst [smem:[#allocation139_spill]] %s10066_s3 }
   0x3   :  { %10 = vsyncpa [#allocation3], 0 }
   0x4   :  { %12 = vsyncpa [#allocation3 + $0x1], 0 }
   0x5   :  { %13 = vsyncpa [#allocation6], 0 }
   0x6   :  { %15 = vsyncpa [#allocation6 + $0x1], 0 }
   0x7   :  { %16 = vsyncpa [#allocation9], 0 }
   0x8   :  { %17 = vsyncpa [#allocation4], 0 }
   0x9   :  { %19 = vsyncpa [#allocation4 + $0x1], 0  ;;  %s5709_s18 = smov 0   ;;  %s5711_s19 = smov 0  }
   0xa   :  { %s5713_s20 = smov 0   ;;  %s5715_s21 = smov 0  }
   0xb LB: > { %10350 = sst [smem:[#allocation16_spill]] %s5665_s21  ;;  %s5730_s22 = sadd.s32 4294967295, %s5665_s21   ;;  %s5665_s21 = sphi %s5715_s21, %s11145_s21   ;;  %s5661_s20 = sphi %s5713_s20, %s11149_s20   ;;  %s5657_s19 = sphi %s5711_s19, %s11148_s19   ;;  %s5653_s18 = sphi %s5709_s18, %s11147_s18  }
   0xc   : > { %s4560_s23 = sadd.s32 4294967294, %s5665_s21   ;;  %s5734_s24 = sadd.s32 1, %s5665_s21  }
   0xd   : > { %10351 = sst [smem:[#allocation17_spill]] %s5734_s24  ;;  %s32_s25 = sadd.s32 1, %s5661_s20 }
   0xe   : > { %s29_s26 = ssub.s32 %s5665_s21, %s5734_s24  ;;  %p39_p0 = scmp.ne.s32.totalorder %s5661_s20, %s5657_s19 }
   0xf   : > { %p30_p1 = scmp.eq.s32.totalorder %s29_s26, 0  ;;  %p40_p2 = scmp.eq.s32.totalorder %s5665_s21, 0 }
  0x10   : > { %p45_p3 = scmp.ne.s32.totalorder %s5657_s19, %s5653_s18  ;;  %p10069_p4 = scmp.eq.s32.totalorder %s5730_s22, 0 }
  0x11   : > { %s5746_s27 = scalar_select %p30_p1, %s5661_s20, %s32_s25  }
  0x12   : > { %p5748_p5 = por %p40_p2, %p39_p0  ;;  %p5754_p6 = por %p10069_p4, %p45_p3 }
  0x13   : > { %10352 = sst [smem:[#allocation18_spill]] %s5746_s27  ;;  %p163_p7 = scmp.eq.s32.totalorder %s5730_s22, 1 }
  0x14   : > { %s10353_s28 = scalar_select %p5748_p5, 1, 0 }
  0x15   : > { %s10354_s29 = scalar_select %p5754_p6, 1, 0 }
  0x16   : > { %p169_p8 = scmp.eq.s32.totalorder %s4560_s23, 1  ;;  %p4561_p9 = scmp.ge.s32.totalorder %s5665_s21, 1 }
  0x17   : > { %p176_p10 = scmp.lt.s32.totalorder %s5665_s21, 3  ;;  %p5761_p11 = por %p163_p7, %p39_p0 }
  0x18   : > { %p5765_p12 = por %p169_p8, %p45_p3  ;;  %s5667_s8 = smov [#allocation8]  }
  0x19   : > { %s10355_s30 = scalar_select %p5761_p11, 1, 0 }
  0x1a   : > { %s10356_s6 = scalar_select %p5765_p12, 1, 0 }
  0x1b   : > { %p5769_p13 = pnand %p4561_p9, %p176_p10  ;;  %s188_s9 = sshll.u32 %s5667_s8, 4  ;;  %s189_s9 = int_to_ptr.vmem [resolvable:$true] %s188_s9 }
  0x1c   : > { %s10073_s11 = sand.u32 1, %s5661_s20   ;;  %s10359_s3 = sld [smem:[#allocation139_spill]] }
  0x1d   : > { %s10357_s7 = scalar_select %p5769_p13, 1, 0 }
  0x1e   : > { %p5232_p1 = pneg %p5769_p13  ;;  %s5786_s12 = sshll.u32 %s10073_s11, 7 }
  0x20   : > { %p5777_p2 = pnand %p5232_p1, %p10069_p4 }
  0x22   : > { %s10358_s10 = scalar_select %p5777_p2, 1, 0 }
  0x23   : > { %s5445_s15 = scalar_lea.hbm %s10359_s3, 1024  ;;  %p10076_p8 = pneg %p5777_p2 }
  0x24   : > { %p5446_p7 = scmp.ne.s32.totalorder %s10359_s3, %s5445_s15  ;;  %p5452_p1 = scmp.lt.u32.totalorder %s5445_s15, %s10359_s3 }
  0x26   : > { %p5448_p9 = pnand %p10076_p8, %p5446_p7 }
  0x28   : > { %p5449_p10 = pneg %p5448_p9 }
  0x2a   : > { %p5454_p0 = pnand %p5452_p1, %p5449_p10 }
  0x2c   : > { %5457 = shalt.err (!%p5454_p0)
}
  0x2d   : > { %s5458_s26 = scalar_lea.vmem %s189_s9, 1024  ;;  %p5466_p11 = scmp.lt.s32.totalorder %s189_s9, %s189_s9 }
  0x2e   : > { %p5459_p4 = scmp.ne.s32.totalorder %s189_s9, %s5458_s26  ;;  %p5467_p6 = scmp.lt.s32.totalorder %s5458_s26, %s5458_s26 }
  0x30   : > { %p5461_p3 = pnand %p5459_p4, %p10076_p8  ;;  %p5468_p13 = por %p5467_p6, %p5466_p11 }
  0x32   : > { %p5462_p12 = pneg %p5461_p3 }
  0x34   : > { %p5469_p5 = pnand %p5468_p13, %p5462_p12 }
  0x36   : > { %5472 = shalt.err (!%p5469_p5)
}
  0x37   : > { %s10074_s8 = smov 64   ;;  %s10075_s13 = smov 4  }
  0x38   : > { %5235 = dma.hbm_to_vmem [thread:$0]  (!%p5777_p2), %s10359_s3, 1024, %s189_s9, [#allocation9], %s10074_s8, %s10074_s8, %s10075_s13  }
  0x39   : > { %s5814_s16 = sshll.u32 %s5665_s21, 11  ;;  %p10360_p4 = scmp.ne.s32.totalorder %s10353_s28, 0 }
  0x3a   : > { %p10361_p5 = scmp.lt.s32.totalorder %s5665_s21, 2  ;;  %s236_s23 = sand.u32 1, %s5665_s21  }
  0x3b   : > { %s10363_s1 = sld [smem:[#allocation138_spill]]  ;;  %s240_s9 = scalar_lea.vmem [#allocation5], %s5786_s12 }
  0x3c   : > { %p5820_p6 = pnand %p10361_p5, %p10360_p4  ;;  %s247_s14 = sshll.u32 %s240_s9, 4  ;;  %s5832_s14 = int_to_ptr.vmem [resolvable:$true] %s247_s14 }
  0x3d   : > { %s5834_s28 = scalar_lea.sflag [#allocation6], %s236_s23 }
  0x3e   : > { %s10362_s17 = scalar_select %p5820_p6, 1, 0 }
  0x3f   : > { %p5840_p12 = pneg %p5820_p6 }
  0x41   : > { %s5829_s11 = scalar_lea.hbm %s10363_s1, %s5814_s16  ;;  %s5478_s13 = scalar_lea.hbm %s10363_s1, 4096 }
  0x42   : > { %s5473_s15 = scalar_lea.hbm %s5829_s11, 2048  ;;  %p5479_p3 = scmp.lt.u32.totalorder %s5829_s11, %s10363_s1 }
  0x43   : > { %p5474_p11 = scmp.ne.s32.totalorder %s5829_s11, %s5473_s15  ;;  %p5480_p7 = scmp.lt.u32.totalorder %s5478_s13, %s5473_s15 }
  0x44   : > { %s10364_s8 = scalar_select %p5840_p12, 1, 0 }
  0x45   : > { %p5476_p13 = pnand %p5840_p12, %p5474_p11  ;;  %p5481_p9 = por %p5480_p7, %p5479_p3 }
  0x46   : > { %p5482_p10 = scmp.lt.u32.totalorder %s5473_s15, %s5829_s11 }
  0x47   : > { %p5477_p0 = pneg %p5476_p13 }
  0x48   : > { %p5483_p1 = por %p5482_p10, %p5481_p9 }
  0x4a   : > { %p5484_p4 = pnand %p5483_p1, %p5477_p0 }
  0x4c   : > { %5487 = shalt.err (!%p5484_p4)
}
  0x4d   : > { %s5488_s23 = scalar_lea.vmem %s5832_s14, 2048  ;;  %s5670_s25 = smov [#allocation5]  }
  0x4e   : > { %p5489_p5 = scmp.ne.s32.totalorder %s5832_s14, %s5488_s23  ;;  %s5493_s26 = sshll.u32 %s5670_s25, 4  ;;  %s5494_s26 = int_to_ptr.vmem [resolvable:$false] %s5493_s26 }
  0x4f   : > { %s5495_s3 = scalar_lea.vmem %s5494_s26, 4096  ;;  %p5496_p8 = scmp.lt.s32.totalorder %s5832_s14, %s5494_s26 }
  0x50   : > { %p5491_p11 = pnand %p5489_p5, %p5840_p12  ;;  %p5497_p2 = scmp.lt.s32.totalorder %s5495_s3, %s5488_s23 }
  0x52   : > { %p5492_p13 = pneg %p5491_p11  ;;  %p5498_p3 = por %p5497_p2, %p5496_p8 }
  0x54   : > { %p5499_p7 = pnand %p5498_p3, %p5492_p13 }
  0x56   : > { %5502 = shalt.err (!%p5499_p7)
}
  0x57   : > { %s5671_s13 = smov 128   ;;  %s5672_s15 = smov 8  }
  0x58   : > { %5245 = dma.hbm_to_vmem [thread:$0]  (!%p5820_p6), %s5829_s11, 2048, %s5832_s14, %s5834_s28, %s5671_s13, %s5671_s13, %s5672_s15  }
  0x59   : > { %s5673_s9 = smov [#allocation10]   ;;  %s5503_s3 = scalar_lea.hbm %s10067_s4, 1024 }
  0x5a   : > { %s201_s25 = sshll.u32 %s5673_s9, 4  ;;  %p5504_p2 = scmp.ne.s32.totalorder %s10067_s4, %s5503_s3  ;;  %s202_s25 = int_to_ptr.vmem [resolvable:$true] %s201_s25 }
  0x5b   : > { %p10365_p8 = scmp.ne.s32.totalorder %s10358_s10, 0  ;;  %p5510_p1 = scmp.lt.u32.totalorder %s5503_s3, %s10067_s4 }
  0x5d   : > { %p10366_p0 = pneg %p10365_p8 }
  0x5f   : > { %p5506_p9 = pnand %p5504_p2, %p10366_p0 }
  0x61   : > { %p5507_p10 = pneg %p5506_p9 }
  0x63   : > { %p5512_p4 = pnand %p5510_p1, %p5507_p10 }
  0x65   : > { %5515 = shalt.err (!%p5512_p4)
}
  0x66   : > { %s5516_s11 = scalar_lea.vmem %s202_s25, 1024  ;;  %p10367_p11 = pmov %p10366_p0 }
  0x67   : > { %p5517_p5 = scmp.ne.s32.totalorder %s202_s25, %s5516_s11  ;;  %p5524_p7 = scmp.lt.s32.totalorder %s202_s25, %s202_s25 }
  0x68   : > { %p5525_p6 = scmp.lt.s32.totalorder %s5516_s11, %s5516_s11 }
  0x69   : > { %p5519_p13 = pnand %p5517_p5, %p10367_p11 }
  0x6a   : > { %p5526_p12 = por %p5525_p6, %p5524_p7 }
  0x6b   : > { %p5520_p3 = pneg %p5519_p13 }
  0x6d   : > { %p5527_p0 = pnand %p5526_p12, %p5520_p3 }
  0x6f   : > { %5530 = shalt.err (!%p5527_p0)
}
  0x70   : > { %s10368_s1 = smov 4   ;;  %s10369_s27 = smov 64  }
  0x71   : > { %5238 = dma.hbm_to_vmem [thread:$0]  (!%p10365_p8), %s10067_s4, 1024, %s202_s25, [#allocation9], %s10369_s27, %s10369_s27, %s10368_s1  }
  0x72   : > { %s5894_s26 = scalar_lea.hbm %s10063_s0, %s5814_s16  ;;  %s219_s10 = scalar_lea.vmem [#allocation2], %s5786_s12 }
  0x73   : > { %s226_s23 = sshll.u32 %s219_s10, 4  ;;  %s10370_s3 = sand.u32 1, %s5661_s20   ;;  %s5897_s23 = int_to_ptr.vmem [resolvable:$true] %s226_s23 }
  0x74   : > { %s5901_s11 = scalar_lea.sflag [#allocation3], %s10370_s3  ;;  %s5531_s21 = scalar_lea.hbm %s5894_s26, 2048 }
  0x75   : > { %p5532_p6 = scmp.ne.s32.totalorder %s5894_s26, %s5531_s21  ;;  %p10371_p12 = scmp.ne.s32.totalorder %s10364_s8, 0 }
  0x76   : > { %s5536_s27 = scalar_lea.hbm %s10063_s0, 4096  ;;  %p5537_p9 = scmp.lt.u32.totalorder %s5894_s26, %s10063_s0 }
  0x77   : > { %p5534_p2 = pnand %p5532_p6, %p10371_p12  ;;  %p5538_p10 = scmp.lt.u32.totalorder %s5536_s27, %s5531_s21 }
  0x78   : > { %p5540_p4 = scmp.lt.u32.totalorder %s5531_s21, %s5894_s26 }
  0x79   : > { %p5535_p8 = pneg %p5534_p2  ;;  %p5539_p1 = por %p5538_p10, %p5537_p9 }
  0x7b   : > { %p5541_p5 = por %p5540_p4, %p5539_p1 }
  0x7d   : > { %p5542_p11 = pnand %p5541_p5, %p5535_p8 }
  0x7f   : > { %5545 = shalt.err (!%p5542_p11)
}
  0x80   : > { %s5546_s9 = scalar_lea.vmem %s5897_s23, 2048  ;;  %s5674_s10 = smov [#allocation2]  }
  0x81   : > { %p5547_p13 = scmp.ne.s32.totalorder %s5897_s23, %s5546_s9  ;;  %s5551_s3 = sshll.u32 %s5674_s10, 4  ;;  %s5552_s3 = int_to_ptr.vmem [resolvable:$false] %s5551_s3 }
  0x82   : > { %s5553_s25 = scalar_lea.vmem %s5552_s3, 4096  ;;  %p5554_p0 = scmp.lt.s32.totalorder %s5897_s23, %s5552_s3 }
  0x83   : > { %p5549_p3 = pnand %p5547_p13, %p10371_p12  ;;  %p5555_p6 = scmp.lt.s32.totalorder %s5553_s25, %s5546_s9 }
  0x85   : > { %p5550_p7 = pneg %p5549_p3  ;;  %p5556_p2 = por %p5555_p6, %p5554_p0 }
  0x87   : > { %p5557_p9 = pnand %p5556_p2, %p5550_p7 }
  0x89   : > { %5560 = shalt.err (!%p5557_p9)
}
  0x8a   : > { %p10372_p8 = scmp.ne.s32.totalorder %s10362_s17, 0  ;;  %s5932_s27 = scalar_lea.hbm %s10065_s2, %s5814_s16 }
  0x8b   : > { %s261_s24 = scalar_lea.vmem [#allocation7], %s5786_s12  ;;  %s5561_s9 = scalar_lea.hbm %s5932_s27, 2048 }
  0x8c   : > { %5242 = dma.hbm_to_vmem [thread:$0]  (!%p10372_p8), %s5894_s26, 2048, %s5897_s23, %s5901_s11, %s5671_s13, %s5671_s13, %s5672_s15  }
  0x8d   : > { %s268_s14 = sshll.u32 %s261_s24, 4  ;;  %p5562_p10 = scmp.ne.s32.totalorder %s5932_s27, %s5561_s9  ;;  %s5935_s14 = int_to_ptr.vmem [resolvable:$true] %s268_s14 }
  0x8e   : > { %s5566_s23 = scalar_lea.hbm %s10065_s2, 4096  ;;  %p5567_p5 = scmp.lt.u32.totalorder %s5932_s27, %s10065_s2 }
  0x8f   : > { %p5564_p1 = pnand %p5562_p10, %p10371_p12  ;;  %p5568_p11 = scmp.lt.u32.totalorder %s5566_s23, %s5561_s9 }
  0x90   : > { %p5570_p3 = scmp.lt.u32.totalorder %s5561_s9, %s5932_s27 }
  0x91   : > { %p5565_p4 = pneg %p5564_p1  ;;  %p5569_p13 = por %p5568_p11, %p5567_p5 }
  0x93   : > { %p5571_p7 = por %p5570_p3, %p5569_p13 }
  0x95   : > { %p5572_p0 = pnand %p5571_p7, %p5565_p4 }
  0x97   : > { %5575 = shalt.err (!%p5572_p0)
}
  0x98   : > { %s5576_s12 = scalar_lea.vmem %s5935_s14, 2048  ;;  %s5675_s3 = smov [#allocation7]  }
  0x99   : > { %p5577_p6 = scmp.ne.s32.totalorder %s5935_s14, %s5576_s12  ;;  %s5581_s25 = sshll.u32 %s5675_s3, 4  ;;  %s5582_s25 = int_to_ptr.vmem [resolvable:$false] %s5581_s25 }
  0x9a   : > { %s5583_s21 = scalar_lea.vmem %s5582_s25, 4096  ;;  %p5584_p10 = scmp.lt.s32.totalorder %s5935_s14, %s5582_s25 }
  0x9b   : > { %p5579_p2 = pnand %p5577_p6, %p10371_p12  ;;  %p5585_p1 = scmp.lt.s32.totalorder %s5583_s21, %s5576_s12 }
  0x9d   : > { %p5580_p9 = pneg %p5579_p2  ;;  %p5586_p5 = por %p5585_p1, %p5584_p10 }
  0x9f   : > { %p5587_p11 = pnand %p5586_p5, %p5580_p9 }
  0xa1   : > { %5590 = shalt.err (!%p5587_p11)
}
  0xa2   : > { %5248 = dma.hbm_to_vmem [thread:$0]  (!%p10372_p8), %s5932_s27, 2048, %s5935_s14, %s5834_s28, %s5671_s13, %s5671_s13, %s5672_s15  }
  0xa3   : > { %p10373_p12 = scmp.ne.s32.totalorder %s10357_s7, 0 }
  0xa5   : > { %280 = sbr.rel (%p10373_p12) target bundleno = 1170 (0x492), region = 40 }
  0xac   : > { %s5965_s8 = sand.u32 1, %s5657_s19   ;;  %p10374_p4 = scmp.ne.s32.totalorder %s10354_s29, 0 }
  0xad   : > { %s4575_s1 = sshll.u32 %s5965_s8, 7  ;;  %s283_s24 = scalar_lea.sflag [#allocation3], %s5965_s8 }
  0xae   : > { %s5969_s9 = scalar_lea.vmem [#allocation2], %s4575_s1 }
  0xaf   : > { %5636 = dma.done.wait (%p10374_p4), %s283_s24, 2048  }
  0xb0   : > { %5638 = vsyncadd (%p10374_p4), %s283_s24, 4294965248  ;;  %s291_s17 = sand.u32 1, %s5730_s22   ;;  %s5976_s28 = scalar_lea.vmem [#allocation5], %s4575_s1 }
  0xb1   : > { %s292_s7 = scalar_lea.sflag [#allocation6], %s291_s17 }
  0xb2   : > { %5640 = dma.done.wait (%p10374_p4), %s292_s7, 4096  }
  0xb3   : > { %5642 = vsyncadd (%p10374_p4), %s292_s7, 4294963200  ;;  %s5982_s13 = scalar_lea.vmem [#allocation7], %s4575_s1  ;;  %p10375_p8 = scmp.eq.s32.totalorder %s5730_s22, 0 }
  0xb5   : > { %5644 = dma.done.wait (%p10375_p8), [#allocation9], 2048   ;;  %p10376_p13 = pmov %p10375_p8 }
  0xb6   : > { %v10086_v0 = vlaneseq  ;;  %v5299_v2 = vld [vmem:[#allocation10] sm:$0xff]   ;;  %v5300_v3 = vld [vmem:[#allocation10 + $0x8] sm:$0xff]   ;;  %v6001_v7 = vld [vmem:[%s5969_s9 + $0x10] sm:$0xff]  ;;  %s5676_s29 = smov 127   ;;  %s5677_s15 = smov 1  }
  0xb7   : > { %5646 = vsyncadd (%p10376_p13), [#allocation9], 4294965248  ;;  %4804 = vmatprep.subr.bf16.mxu0 %v5299_v2  ;;  %v5995_v5 = vld [vmem:[%s5969_s9] sm:$0xff]  ;;  %v5998_v6 = vld [vmem:[%s5969_s9 + $0x8] sm:$0xff]  ;;  %10379 = vst [vmem:[#allocation21_spill] sm:$0xff] %v6001_v7  ;;  %v504_v9 = vrot.slane %v6001_v7, 1 }
  0xb8   : > { %v5989_v1 = vshrl.u32 %v10086_v0, 7  ;;  %4805 = vmatpush3.bf16.msra.mxu0 %v5299_v2  ;;  %v503_v8 = vrot.slane %v5998_v6, 1  ;;  %v632_v10 = vrot.slane %v5995_v5, 7  ;;  %v633_v12 = vrot.slane %v5998_v6, 7  ;;  %v6014_v14 = vld [vmem:[%s5969_s9 + $0x78] sm:$0xff]  ;;  %v5301_v15 = vld [vmem:[#allocation10 + $0x10] sm:$0xff]  }
  0xb9   : > { %4806 = vmatprep.subr.bf16.mxu0 %v5300_v3  ;;  %v746_v13 = vmul.f32 2.0, %v5998_v6  ;;  %10380 = vst [vmem:[#allocation22_spill] sm:$0xff] %v6014_v14  ;;  %v10088_v17 = vrot.slane %v5995_v5, 1  ;;  %v10087_v18 = vrot.slane %v6014_v14, 7  ;;  %v6022_v19 = vld [vmem:[%s5969_s9 + $0x18] sm:$0xff]  ;;  %v745_v21 = vmul.f32 2.0, %v5995_v5 }
  0xba   : > { %10377 = vst [vmem:[#allocation19_spill] sm:$0xff] %v5989_v1  ;;  %v5992_v4 = vadd.s32 4294967295, %v5989_v1  ;;  %vm520_vm0 = vcmp.lt.s32.totalorder %v5989_v1, 7  ;;  %vm648_vm1 = vcmp.lt.s32.totalorder %v5989_v1, 1  ;;  %v6009_v11 = vadd.s32 120, %v5989_v1  ;;  %10381 = vst [vmem:[#allocation23_spill] sm:$0xff] %v6022_v19 }
  0xbb   : > { %v534_v16 = vsel %vm520_vm0, %v503_v8, %v504_v9  ;;  %v663_v20 = vsel %vm648_vm1, %v632_v10, %v633_v12  ;;  %v505_v22 = vrot.slane %v6022_v19, 1  ;;  %v634_v23 = vrot.slane %v6001_v7, 7  ;;  %v6030_v24 = vld [vmem:[%s5969_s9 + $0x38] sm:$0xff]  ;;  %v6033_v25 = vld [vmem:[%s5969_s9 + $0x40] sm:$0xff]  ;;  %v6046_v30 = vld [vmem:[%s5969_s9 + $0x48] sm:$0xff]  ;;  %s4580_s10 = sshll.u32 %s5965_s8, 3 }
  0xbc   : > { %10378 = vst [vmem:[#allocation20_spill] sm:$0xff] %v5992_v4  ;;  %vm681_vm2 = vcmp.ge.s32.totalorder %v5992_v4, 0  ;;  %10382 = vst [vmem:[#allocation24_spill] sm:$0xff] %v6030_v24  ;;  %4807 = vmatpush3.bf16.msra.mxu0 %v5300_v3  ;;  %v762_v26 = vadd.f32 %v746_v13, %v663_v20  ;;  %v6035_v27 = vsub.f32 %v663_v20, %v534_v16  ;;  %v747_v34 = vmul.f32 2.0, %v6001_v7  ;;  %v5302_v35 = vld [vmem:[#allocation10 + $0x18] sm:$0xff]   ;;  %v6060_v36 = vld [vmem:[%s5969_s9 + $0x20] sm:$0xff] }
  0xbd   : > { %10383 = vst [vmem:[#allocation25_spill] sm:$0xff] %v6033_v25  ;;  %v535_v28 = vsel %vm520_vm0, %v10088_v17, %v503_v8  ;;  %v664_v29 = vsel %vm648_vm1, %v10087_v18, %v632_v10  ;;  %4808 = vmatprep.subr.bf16.mxu0 %v5301_v15  ;;  %v6052_v32 = vsel %vm520_vm0, %v504_v9, %v505_v22  ;;  %10385 = vst [vmem:[#allocation27_spill] sm:$0xff] %v6060_v36  ;;  %v6072_v45 = vld [vmem:[%s5969_s9 + $0x50] sm:$0xff]  ;;  %v6075_v46 = vld [vmem:[%s5969_s9 + $0x58] sm:$0xff]  ;;  %s4598_s16 = sshll.u32 %s5730_s22, 7  ;;  %s348_s12 = scalar_lea.vmem [#allocation11], %s4580_s10 }
  0xbe   : > { %10384 = vst [vmem:[#allocation26_spill] sm:$0xff] %v6035_v27  ;;  %v729_v31 = vsel %vm681_vm2, %v664_v29, 0.0  ;;  %v6056_v33 = vsel %vm648_vm1, %v633_v12, %v634_v23  ;;  %v6062_v37 = vadd.f32 %v762_v26, %v534_v16  ;;  %v510_v40 = vrot.slane %v6033_v25, 1  ;;  %v5303_v51 = vld [vmem:[#allocation10 + $0x20] sm:$0xff]   ;;  %v6105_v56 = vld [vmem:[%s5969_s9 + $0x28] sm:$0xff]  ;;  %v6342_v27 = vld [vmem:[%s5976_s28 + $0x10] sm:$0xff]  ;;  %s10019_s24 = scalar_lea.hbm %s10068_s5, %s4598_s16 }
  0xbf   : > { %v761_v38 = vadd.f32 %v745_v21, %v729_v31  ;;  %v6064_v39 = vsub.f32 %v729_v31, %v535_v28  ;;  %v763_v41 = vadd.f32 %v747_v34, %v6056_v33  ;;  %v10093_v42 = vrot.slane %v6046_v30, 1  ;;  %10388 = vst [vmem:[#allocation30_spill] sm:$0xff] %v6105_v56  ;;  %v6132_v12 = vld [vmem:[%s5969_s9 + $0x60] sm:$0xff]  ;;  %v6135_v13 = vld [vmem:[%s5969_s9 + $0x68] sm:$0xff]  ;;  %10420 = vst [vmem:[#allocation58_spill] sm:$0xff] %v6342_v27  ;;  %s4428_s3 = sshll.u32 %s348_s12, 4  ;;  %s10021_s3 = int_to_ptr.vmem [resolvable:$true] %s4428_s3 }
  0xc0   : > { %v639_v43 = vrot.slane %v6030_v24, 7  ;;  %v10101_v44 = vrot.slane %v6033_v25, 7  ;;  %811 = vrot.lane.b32.xlu1 %v6062_v37, %s5676_s29  ;;  %4809 = vmatpush3.bf16.msra.mxu0 %v5301_v15  ;;  %v753_v48 = vmul.f32 2.0, %v6033_v25  ;;  %v506_v49 = vrot.slane %v6060_v36, 1  ;;  %10390 = vst [vmem:[#allocation32_spill] sm:$0xff] %v6132_v12  ;;  %10391 = vst [vmem:[#allocation33_spill] sm:$0xff] %v6135_v13 }
  0xc1   : > { %10386 = vst [vmem:[#allocation28_spill] sm:$0xff] %v6064_v39  ;;  %v6079_v47 = vadd.f32 %v761_v38, %v535_v28  ;;  %v635_v50 = vrot.slane %v6022_v19, 7  ;;  %v6085_v52 = vadd.f32 %v763_v41, %v6052_v32  ;;  %v6093_v53 = vsel %vm520_vm0, %v510_v40, %v10093_v42  ;;  %4810 = vmatprep.subr.bf16.mxu0 %v5302_v35  ;;  %v5306_v42 = vld [vmem:[#allocation10 + $0x38] sm:$0xff]   ;;  %s4415_s22 = scalar_lea.sflag [#allocation4], %s5965_s8  ;;  %p11141_p7 = scmp.ne.s32.totalorder %s10355_s30, 0 }
  0xc2   : > { %v6101_v54 = vsel %vm648_vm1, %v639_v43, %v10101_v44  ;;  %v748_v55 = vmul.f32 2.0, %v6022_v19  ;;  %v6112_v58 = vsel %vm520_vm0, %v505_v22, %v506_v49  ;;  %v10094_v60 = vrot.slane %v6072_v45, 1  ;;  %v5304_v22 = vld [vmem:[#allocation10 + $0x28] sm:$0xff]   ;;  %s5678_s17 = smov [#allocation11]  }
  0xc3   : > { %10387 = vst [vmem:[#allocation29_spill] sm:$0xff] %v6085_v52  ;;  %809 = vrot.lane.b32.xlu0 %v6079_v47, %s5676_s29  ;;  %v769_v57 = vadd.f32 %v753_v48, %v6101_v54  ;;  %v6116_v59 = vsel %vm648_vm1, %v634_v23, %v635_v50  ;;  %v10091_v62 = vrot.slane %v6075_v46, 1  ;;  %v10102_v63 = vrot.slane %v6046_v30, 7  ;;  %v6158_v23 = vld [vmem:[%s5969_s9 + $0x30] sm:$0xff]  ;;  %s5595_s7 = sshll.u32 %s5678_s17, 4  ;;  %s5596_s7 = int_to_ptr.vmem [resolvable:$false] %s5595_s7 }
  0xc4   : > { %v764_v61 = vadd.f32 %v748_v55, %v6116_v59  ;;  %v10095_v2 = vrot.slane %v6072_v45, 7  ;;  %813 = vrot.lane.b32.xlu1 %v6085_v52, %s5676_s29  ;;  %4811 = vmatpush3.bf16.msra.mxu0 %v5302_v35  ;;  %v755_v8 = vmul.f32 2.0, %v6072_v45  ;;  %v507_v9 = vrot.slane %v6105_v56, 1  ;;  %10395 = vst [vmem:[#allocation37_spill] sm:$0xff] %v6158_v23  ;;  %p5598_p2 = scmp.lt.s32.totalorder %s10021_s3, %s5596_s7 }
  0xc5   : > { %v6126_v3 = vadd.f32 %v769_v57, %v6093_v53  ;;  %v636_v10 = vrot.slane %v6060_v36, 7  ;;  %v6146_v16 = vsel %vm520_vm0, %v10094_v60, %v10091_v62  ;;  %4812 = vmatprep.subr.bf16.mxu0 %v5303_v51  ;;  %v749_v21 = vmul.f32 2.0, %v6060_v36  ;;  %v6185_v57 = vld [vmem:[%s5969_s9 + $0x70] sm:$0xff] }
  0xc6   : > { %v6138_v15 = vadd.f32 %v764_v61, %v6112_v58  ;;  %10393 = vst [vmem:[#allocation35_spill] sm:$0xff] %v6146_v16  ;;  %v6154_v20 = vsel %vm648_vm1, %v10102_v63, %v10095_v2  ;;  %v6165_v28 = vsel %vm520_vm0, %v506_v49, %v507_v9  ;;  %v10092_v31 = vrot.slane %v6132_v12, 1  ;;  %10397 = vst [vmem:[#allocation39_spill] sm:$0xff] %v6185_v57 }
  0xc7   : > { %10389 = vst [vmem:[#allocation31_spill] sm:$0xff] %v6126_v3  ;;  %10394 = vst [vmem:[#allocation36_spill] sm:$0xff] %v6154_v20  ;;  %825 = vrot.lane.b32.xlu0 %v6126_v3, %s5676_s29  ;;  %v771_v26 = vadd.f32 %v755_v8, %v6154_v20  ;;  %v6169_v29 = vsel %vm648_vm1, %v635_v50, %v636_v10  ;;  %v10089_v35 = vrot.slane %v6135_v13, 1  ;;  %v10096_v38 = vrot.slane %v6075_v46, 7  ;;  %v6331_v3 = vld [vmem:[%s5976_s28 + $0x8] sm:$0xff] }
  0xc8   : > { %10392 = vst [vmem:[#allocation34_spill] sm:$0xff] %v6138_v15  ;;  %v765_v34 = vadd.f32 %v749_v21, %v6169_v29  ;;  %v10090_v41 = vrot.slane %v6132_v12, 7  ;;  %815 = vrot.lane.b32.xlu1 %v6138_v15, %s5676_s29  ;;  %4813 = vmatpush3.bf16.msra.mxu0 %v5303_v51  ;;  %v757_v49 = vmul.f32 2.0, %v6132_v12  ;;  %v508_v50 = vrot.slane %v6158_v23, 1  ;;  %10418 = vst [vmem:[#allocation56_spill] sm:$0xff] %v6331_v3 }
  0xc9   : > { %v6179_v48 = vadd.f32 %v771_v26, %v6146_v16  ;;  %v637_v55 = vrot.slane %v6105_v56, 7  ;;  %v6196_v8 = vsel %vm520_vm0, %v10092_v31, %v10089_v35  ;;  %4814 = vmatprep.subr.bf16.mxu0 %v5304_v22  ;;  %v750_v21 = vmul.f32 2.0, %v6105_v56  ;;  %v5305_v26 = vld [vmem:[#allocation10 + $0x30] sm:$0xff]  }
  0xca   : > { %v6188_v61 = vadd.f32 %v765_v34, %v6165_v28  ;;  %10399 = vst [vmem:[#allocation41_spill] sm:$0xff] %v6196_v8  ;;  %v6204_v51 = vsel %vm648_vm1, %v10096_v38, %v10090_v41  ;;  %v6212_v0 = vsel %vm520_vm0, %v507_v9, %v508_v50  ;;  %v10098_v17 = vrot.slane %v6185_v57, 1  ;;  %v6255_v38 = vld [vmem:[%s5982_s13 + $0x8] sm:$0xff] }
  0xcb   : > { %10396 = vst [vmem:[#allocation38_spill] sm:$0xff] %v6179_v48  ;;  %10400 = vst [vmem:[#allocation42_spill] sm:$0xff] %v6204_v51  ;;  %829 = vrot.lane.b32.xlu0 %v6179_v48, %s5676_s29  ;;  %v773_v34 = vadd.f32 %v757_v49, %v6204_v51  ;;  %v6216_v18 = vsel %vm648_vm1, %v636_v10, %v637_v55  ;;  %v10097_v41 = vrot.slane %v6014_v14, 1  ;;  %v10100_v62 = vrot.slane %v6135_v13, 7  ;;  %v6313_v48 = vld [vmem:[%s5982_s13 + $0x28] sm:$0xff] }
  0xcc   : > { %10398 = vst [vmem:[#allocation40_spill] sm:$0xff] %v6188_v61  ;;  %v766_v35 = vadd.f32 %v750_v21, %v6216_v18  ;;  %v10099_v49 = vrot.slane %v6185_v57, 7  ;;  %817 = vrot.lane.b32.xlu1 %v6188_v61, %s5676_s29  ;;  %4815 = vmatpush3.bf16.msra.mxu0 %v5304_v22  ;;  %v759_v10 = vmul.f32 2.0, %v6185_v57  ;;  %v509_v31 = vrot.slane %v6030_v24, 1  ;;  %10406 = vst [vmem:[#allocation48_spill] sm:$0xff] %v6255_v38 }
  0xcd   : > { %v6226_v9 = vadd.f32 %v773_v34, %v6196_v8  ;;  %v638_v21 = vrot.slane %v6158_v23, 7  ;;  %v6240_v2 = vsel %vm520_vm0, %v10098_v17, %v10097_v41  ;;  %4816 = vmatprep.subr.bf16.mxu0 %v5305_v26  ;;  %v6252_v34 = vld [vmem:[%s5982_s13] sm:$0xff]  ;;  %v752_v63 = vmul.f32 2.0, %v6030_v24  ;;  %10414 = vst [vmem:[#allocation54_spill] sm:$0xff] %v6313_v48 }
  0xce   : > { %v6232_v60 = vadd.f32 %v766_v35, %v6212_v0  ;;  %10403 = vst [vmem:[#allocation45_spill] sm:$0xff] %v6240_v2  ;;  %v6248_v22 = vsel %vm648_vm1, %v10100_v62, %v10099_v49  ;;  %v751_v35 = vmul.f32 2.0, %v6158_v23  ;;  %10405 = vst [vmem:[#allocation47_spill] sm:$0xff] %v6252_v34  ;;  %v6262_v17 = vsel %vm520_vm0, %v508_v50, %v509_v31 }
  0xcf   : > { %10401 = vst [vmem:[#allocation43_spill] sm:$0xff] %v6226_v9  ;;  %10404 = vst [vmem:[#allocation46_spill] sm:$0xff] %v6248_v22  ;;  %833 = vrot.lane.b32.xlu0 %v6226_v9, %s5676_s29  ;;  %v775_v41 = vadd.f32 %v759_v10, %v6248_v22  ;;  %v6266_v49 = vsel %vm648_vm1, %v637_v55, %v638_v21  ;;  %v6273_v44 = vsel %vm648_vm1, %v638_v21, %v639_v43  ;;  %v6290_v10 = vld [vmem:[%s5982_s13 + $0x10] sm:$0xff]  ;;  %v6293_v21 = vld [vmem:[%s5982_s13 + $0x18] sm:$0xff] }
  0xd0   : > { %10402 = vst [vmem:[#allocation44_spill] sm:$0xff] %v6232_v60  ;;  %v767_v62 = vadd.f32 %v751_v35, %v6266_v49  ;;  %v2171_v50 = vpack.c.bf16 %v6255_v38, %v6252_v34  ;;  %819 = vrot.lane.b32.xlu1 %v6232_v60, %s5676_s29  ;;  %4817 = vmatpush3.bf16.msra.mxu0 %v5305_v26  ;;  %10408 = vst [vmem:[#allocation50_spill] sm:$0xff] %v6290_v10  ;;  %v754_v35 = vmul.f32 2.0, %v6046_v30  ;;  %v6310_v9 = vld [vmem:[%s5982_s13 + $0x20] sm:$0xff] }
  0xd1   : > { %v6281_v55 = vadd.f32 %v775_v41, %v6240_v2  ;;  %v6287_v43 = vsel %vm520_vm0, %v509_v31, %v510_v40  ;;  %10409 = vst [vmem:[#allocation51_spill] sm:$0xff] %v6293_v21  ;;  %4818 = vmatprep.subr.bf16.mxu0 %v5306_v42  ;;  %v768_v41 = vadd.f32 %v752_v63, %v6273_v44  ;;  %v10411_v26 = vrot.slane %v6046_v30, 7  ;;  %v6406_v2 = vld [vmem:[%s5976_s28 + $0x20] sm:$0xff] }
  0xd2   : > { %v6297_v4 = vadd.f32 %v767_v62, %v6262_v17  ;;  %4820 = vmatprep.mubr.bf16.mxu0 %v2171_v50  ;;  %v10412_v40 = vrot.slane %v6033_v25, 7  ;;  %v756_v39 = vmul.f32 2.0, %v6075_v46  ;;  %10413 = vst [vmem:[#allocation53_spill] sm:$0xff] %v6310_v9  ;;  %v2172_v62 = vpack.c.bf16 %v6293_v21, %v6290_v10 }
  0xd3   : > { %10407 = vst [vmem:[#allocation49_spill] sm:$0xff] %v6281_v55  ;;  %837 = vrot.lane.b32.xlu0 %v6281_v55, %s5676_s29  ;;  %v10415_v63 = vrot.slane %v6075_v46, 7  ;;  %v10416_v50 = vrot.slane %v6072_v45, 7  ;;  %v6336_v55 = vadd.f32 %v768_v41, %v6287_v43  ;;  %v2173_v52 = vpack.c.bf16 %v6313_v48, %v6310_v9 }
  0xd4   : > { %10410 = vst [vmem:[#allocation52_spill] sm:$0xff] %v6297_v4  ;;  %v6306_v31 = vsel %vm648_vm1, %v10412_v40, %v10411_v26  ;;  %v6328_v40 = vld [vmem:[%s5976_s28] sm:$0xff]  ;;  %821 = vrot.lane.b32.xlu1 %v6297_v4, %s5676_s29  ;;  %4819 = vmatpush3.bf16.msra.mxu0 %v5306_v42  ;;  %v431_v41 = vmax.f32 %v5998_v6, %v6331_v3  ;;  %v6382_v3 = vld [vmem:[%s5982_s13 + $0x30] sm:$0xff]  ;;  %v10433_v51 = vrot.slane %v5995_v5, 1  ;;  %v10435_v8 = vrot.slane %v6014_v14, 7 }
  0xd5   : > { %v6325_v26 = vsel %vm648_vm1, %v10416_v50, %v10415_v63  ;;  %10417 = vst [vmem:[#allocation55_spill] sm:$0xff] %v6328_v40  ;;  %10419 = vst [vmem:[#allocation57_spill] sm:$0xff] %v6336_v55  ;;  %v770_v61 = vadd.f32 %v754_v35, %v6306_v31  ;;  %v10421_v63 = vrot.slane %v6072_v45, 1  ;;  %v10422_v50 = vrot.slane %v6046_v30, 1 }
  0xd6   : > { %v772_v42 = vadd.f32 %v756_v39, %v6325_v26  ;;  %v6356_v35 = vadd.s32 1, %v6009_v11  ;;  %v430_v60 = vmax.f32 %v5995_v5, %v6328_v40  ;;  %v758_v39 = vmul.f32 2.0, %v6135_v13  ;;  %v6372_v11 = vld [vmem:[%s5976_s28 + $0x18] sm:$0xff] }
  0xd7   : > { %v6350_v4 = vsel %vm520_vm0, %v10422_v50, %v10421_v63  ;;  %863 = vrot.lane.b32.xlu0 %v6079_v47, %s5677_s15  ;;  %4821 = vmatmul.mubr.bf16.vlgmr.msra.gmra.mrb[0].mxu0 %v2172_v62  ;;  %v10424_v63 = vrot.slane %v6132_v12, 1  ;;  %v10425_v50 = vrot.slane %v6075_v46, 1  ;;  %10426 = vst [vmem:[#allocation60_spill] sm:$0xff] %v6372_v11  ;;  %v432_v22 = vmax.f32 %v6001_v7, %v6342_v27 }
  0xd8   : > { %10423 = vst [vmem:[#allocation59_spill] sm:$0xff] %v6356_v35  ;;  %823 = vrot.lane.b32.xlu1 %v6336_v55, %s5676_s29  ;;  %v6379_v62 = vadd.f32 %v770_v61, %v6350_v4  ;;  %4824 = vmatprep.mubr.bf16.mxu0 %v2173_v52  ;;  %v10429_v40 = vrot.slane %v6132_v12, 7  ;;  %v10430_v61 = vrot.slane %v6185_v57, 1  ;;  %v10431_v52 = vrot.slane %v6135_v13, 1 }
  0xd9   : > { %v6368_v47 = vsel %vm520_vm0, %v10425_v50, %v10424_v63  ;;  %v6385_v63 = vld [vmem:[%s5982_s13 + $0x38] sm:$0xff]  ;;  %v10428_v50 = vrot.slane %v6135_v13, 7  ;;  %vm599_vm3 = vcmp.lt.s32.totalorder %v6356_v35, 128  ;;  %v760_v16 = vmul.f32 2.0, %v6014_v14  ;;  %v6431_v13 = vld [vmem:[%s5982_s13 + $0x40] sm:$0xff] }
  0xda   : > { %10427 = vst [vmem:[#allocation61_spill] sm:$0xff] %v6379_v62  ;;  %v2174_v55 = vpack.c.bf16 %v6385_v63, %v6382_v3  ;;  %v6403_v7 = vsel %vm520_vm0, %v10431_v52, %v10430_v61  ;;  %v6409_v15 = vadd.f32 %v772_v42, %v6368_v47  ;;  %v433_v61 = vmax.f32 %v6022_v19, %v6372_v11  ;;  %v6449_v11 = vld [vmem:[%s5976_s28 + $0x30] sm:$0xff]  ;;  %v6472_v35 = vld [vmem:[%s5982_s13 + $0x58] sm:$0xff] }
  0xdb   : > { %v6393_v27 = vsel %vm648_vm1, %v10429_v40, %v10428_v50  ;;  %v10434_v40 = vrot.slane %v6014_v14, 1  ;;  %v10436_v42 = vrot.slane %v6185_v57, 7  ;;  %v446_v19 = vsub.f32 %v6252_v34, %v430_v60  ;;  %10438 = vst [vmem:[#allocation64_spill] sm:$0xff] %v6449_v11  ;;  %v6452_v14 = vld [vmem:[%s5976_s28 + $0x38] sm:$0xff] }
  0xdc   : > { %10432 = vst [vmem:[#allocation62_spill] sm:$0xff] %v6409_v15  ;;  %v774_v52 = vadd.f32 %v758_v39, %v6393_v27  ;;  %827 = vrot.lane.b32.xlu1 %v6379_v62, %s5676_s29  ;;  %v448_v1 = vsub.f32 %v6290_v10, %v432_v22  ;;  %10439 = vst [vmem:[#allocation65_spill] sm:$0xff] %v6452_v14  ;;  %v449_v34 = vsub.f32 %v6293_v21, %v433_v61 }
  0xdd   : > { %v536_v50 = vsel %vm520_vm0, %v10434_v40, %v10433_v51  ;;  %v6427_v20 = vsel %vm648_vm1, %v10436_v42, %v10435_v8  ;;  %v6434_v51 = vld [vmem:[%s5982_s13 + $0x48] sm:$0xff]  ;;  %v434_v8 = vmax.f32 %v6060_v36, %v6406_v2  ;;  %v447_v42 = vsub.f32 %v6255_v38, %v431_v41  ;;  %v6469_v38 = vld [vmem:[%s5982_s13 + $0x50] sm:$0xff] }
  0xde   : > { %v6437_v40 = vld [vmem:[%s5976_s28 + $0x28] sm:$0xff]  ;;  %v2175_v39 = vpack.c.bf16 %v6434_v51, %v6431_v13  ;;  %v6458_v62 = vadd.f32 %v774_v52, %v6403_v7  ;;  %v631_v22 = vsel %vm599_vm3, %v536_v50, 0.0  ;;  %v776_v41 = vadd.f32 %v760_v16, %v6427_v20  ;;  %v6475_v50 = vld [vmem:[%s5976_s28 + $0x40] sm:$0xff] }
  0xdf   : > { %10437 = vst [vmem:[#allocation63_spill] sm:$0xff] %v6437_v40  ;;  %v435_v60 = vmax.f32 %v6105_v56, %v6437_v40  ;;  %4825 = vmatmul.mubr.bf16.gmra.mrb[4].mxu0 %v2174_v55  ;;  %v462_v10 = vand.u32 2147483647, %v446_v19  ;;  %v436_v61 = vmax.f32 %v6158_v23, %v6449_v11  ;;  %v450_v55 = vsub.f32 %v6310_v9, %v434_v8  ;;  %v6480_v16 = vld [vmem:[%s5982_s13 + $0x60] sm:$0xff] }
  0xe0   : > { %10440 = vst [vmem:[#allocation66_spill] sm:$0xff] %v6458_v62  ;;  %831 = vrot.lane.b32.xlu1 %v6409_v15, %s5676_s29  ;;  %4828 = vmatprep.mubr.bf16.mxu0 %v2175_v39  ;;  %v463_v21 = vand.u32 2147483647, %v447_v42  ;;  %v464_v52 = vand.u32 2147483647, %v448_v1  ;;  %v437_v19 = vmax.f32 %v6030_v24, %v6452_v14  ;;  %v6483_v39 = vld [vmem:[%s5982_s13 + $0x68] sm:$0xff]  ;;  %v6489_v9 = vadd.f32 %v776_v41, %v631_v22 }
  0xe1   : > { %v6486_v15 = vld [vmem:[%s5976_s28 + $0x48] sm:$0xff]  ;;  %v451_v8 = vsub.f32 %v6313_v48, %v435_v60  ;;  %v465_v42 = vand.u32 2147483647, %v449_v34  ;;  %v2176_v23 = vpack.c.bf16 %v6472_v35, %v6469_v38  ;;  %v2177_v11 = vpack.c.bf16 %v6483_v39, %v6480_v16  ;;  %v6498_v24 = vld [vmem:[%s5976_s28 + $0x50] sm:$0xff] }
  0xe2   : > { %v478_v1 = vadd.f32 %v463_v21, %v462_v10  ;;  %v438_v14 = vmax.f32 %v6033_v25, %v6475_v50  ;;  %v452_v60 = vsub.f32 %v6382_v3, %v436_v61  ;;  %v466_v34 = vand.u32 2147483647, %v450_v55 }
  0xe3   : > { %v439_v21 = vmax.f32 %v6046_v30, %v6486_v15  ;;  %v453_v41 = vsub.f32 %v6385_v63, %v437_v19  ;;  %v6508_v48 = vsub.f32 %v6116_v59, %v6112_v58  ;;  %v467_v40 = vand.u32 2147483647, %v451_v8  ;;  %v6582_v8 = vld [vmem:[%s5976_s28 + $0x70] sm:$0xff] }
  0xe4   : > { %835 = vrot.lane.b32.xlu1 %v6458_v62, %s5676_s29  ;;  %v479_v10 = vadd.f32 %v478_v1, %v464_v52  ;;  %v6511_v62 = vld [vmem:[%s5976_s28 + $0x58] sm:$0xff]  ;;  %v6515_v25 = vsub.f32 %v6216_v18, %v6212_v0  ;;  %v6519_v61 = vsub.f32 %v6273_v44, %v6287_v43  ;;  %v440_v58 = vmax.f32 %v6072_v45, %v6498_v24  ;;  %v6534_v0 = vld [vmem:[%s5976_s28 + $0x60] sm:$0xff] }
  0xe5   : > { %10441 = vst [vmem:[#allocation67_spill] sm:$0xff] %v6508_v48  ;;  %v6525_v59 = vsub.f32 %v6306_v31, %v6350_v4  ;;  %v6529_v55 = vsub.f32 %v6325_v26, %v6368_v47  ;;  %v454_v18 = vsub.f32 %v6431_v13, %v438_v14  ;;  %v468_v44 = vand.u32 2147483647, %v452_v60  ;;  %v6549_v47 = vld [vmem:[%s5982_s13 + $0x70] sm:$0xff]  ;;  %v6555_v14 = vld [vmem:[%s5976_s28 + $0x68] sm:$0xff] }
  0xe6   : > { %v480_v56 = vadd.f32 %v479_v10, %v465_v42  ;;  %10442 = vst [vmem:[#allocation68_spill] sm:$0xff] %v6515_v25  ;;  %10443 = vst [vmem:[#allocation69_spill] sm:$0xff] %v6519_v61  ;;  %v441_v43 = vmax.f32 %v6075_v46, %v6511_v62  ;;  %v2179_v4 = vpack.c.bf16 %v5998_v6, %v5995_v5  ;;  %v469_v52 = vand.u32 2147483647, %v453_v41  ;;  %v10454_v42 = vld [vmem:[#allocation33_spill] sm:$0xff]  ;;  %v10456_v10 = vld [vmem:[#allocation36_spill] sm:$0xff] }
  0xe7   : > { %4829 = vmatmul.mubr.bf16.gmra.mrb[8].mxu0 %v2176_v23  ;;  %10444 = vst [vmem:[#allocation70_spill] sm:$0xff] %v6525_v59  ;;  %10445 = vst [vmem:[#allocation71_spill] sm:$0xff] %v6529_v55  ;;  %v6543_v31 = vsub.f32 %v6393_v27, %v6403_v7  ;;  %v6546_v26 = vsub.f32 %v6427_v20, %v631_v22  ;;  %v6560_v5 = vsub.f32 %v6056_v33, %v6052_v32 }
  0xe8   : > { %839 = vrot.lane.b32.xlu1 %v6489_v9, %s5676_s29  ;;  %4832 = vmatprep.mubr.bf16.mxu0 %v2177_v11  ;;  %v481_v23 = vadd.f32 %v480_v56, %v466_v34  ;;  %10448 = vst [vmem:[#allocation74_spill] sm:$0xff] %v6549_v47  ;;  %v6552_v11 = vld [vmem:[%s5982_s13 + $0x78] sm:$0xff]  ;;  %v455_v56 = vsub.f32 %v6434_v51, %v439_v21  ;;  %v10455_v34 = vld [vmem:[#allocation35_spill] sm:$0xff] }
  0xe9   : > { %10446 = vst [vmem:[#allocation72_spill] sm:$0xff] %v6543_v31  ;;  %10447 = vst [vmem:[#allocation73_spill] sm:$0xff] %v6546_v26  ;;  %v2178_v6 = vpack.c.bf16 %v6552_v11, %v6549_v47  ;;  %v442_v7 = vmax.f32 %v6132_v12, %v6534_v0  ;;  %v456_v27 = vsub.f32 %v6469_v38, %v440_v58 }
  0xea   : > { %10449 = vst [vmem:[#allocation75_spill] sm:$0xff] %v6552_v11  ;;  %v482_v19 = vadd.f32 %v481_v23, %v467_v40  ;;  %10450 = vst [vmem:[#allocation76_spill] sm:$0xff] %v6560_v5  ;;  %v6569_v20 = vsub.f32 %v6169_v29, %v6165_v28  ;;  %v470_v40 = vand.u32 2147483647, %v454_v18  ;;  %v6575_v32 = vsub.f32 %v6266_v49, %v6262_v17  ;;  %v6587_v28 = vld [vmem:[%s5976_s28 + $0x78] sm:$0xff]  ;;  %v10458_v17 = vld [vmem:[#allocation41_spill] sm:$0xff] }
  0xeb   : > { %v6579_v33 = vsub.f32 %v6101_v54, %v6093_v53  ;;  %v443_v1 = vmax.f32 %v10454_v42, %v6555_v14  ;;  %v457_v29 = vsub.f32 %v6472_v35, %v441_v43  ;;  %v6592_v21 = vsub.f32 %v10456_v10, %v10455_v34  ;;  %v10459_v49 = vld [vmem:[#allocation42_spill] sm:$0xff]  ;;  %v10466_v10 = vld [vmem:[#allocation60_spill] sm:$0xff] }
  0xec   : > { %10451 = vst [vmem:[#allocation77_spill] sm:$0xff] %v6569_v20  ;;  %865 = vrot.lane.b32.xlu1 %v6062_v37, %s5677_s15  ;;  %v483_v22 = vadd.f32 %v482_v19, %v468_v44  ;;  %10452 = vst [vmem:[#allocation78_spill] sm:$0xff] %v6575_v32  ;;  %v471_v37 = vand.u32 2147483647, %v455_v56  ;;  %v6596_v53 = vsub.f32 %v10459_v49, %v10458_v17  ;;  %v10461_v54 = vld [vmem:[#allocation34_spill] sm:$0xff]  ;;  %v10463_v56 = vld [vmem:[#allocation45_spill] sm:$0xff] }
  0xed   : > { %10453 = vst [vmem:[#allocation79_spill] sm:$0xff] %v6579_v33  ;;  %10457 = vst [vmem:[#allocation35_spill] sm:$0xff] %v6592_v21  ;;  %v444_v41 = vmax.f32 %v6185_v57, %v6582_v8  ;;  %v458_v58 = vsub.f32 %v6480_v16, %v442_v7  ;;  %v472_v18 = vand.u32 2147483647, %v456_v27  ;;  %v10462_v23 = vld [vmem:[#allocation22_spill] sm:$0xff]  ;;  %v10167_v17 = vrot.slane %v10466_v10, 1 }
  0xee   : > { %v484_v60 = vadd.f32 %v483_v22, %v469_v52  ;;  %10460 = vst [vmem:[#allocation36_spill] sm:$0xff] %v6596_v53  ;;  %v445_v43 = vmax.f32 %v10462_v23, %v6587_v28  ;;  %v10464_v52 = vld [vmem:[#allocation46_spill] sm:$0xff]  ;;  %v473_v22 = vand.u32 2147483647, %v457_v29  ;;  %v10467_v49 = vld [vmem:[#allocation21_spill] sm:$0xff]  ;;  %v10168_v7 = vrot.slane %v6406_v2, 1 }
  0xef   : > { %4833 = vmatmul.mubr.bf16.gmra.mrb[12].mxu0 %v2178_v6  ;;  %v6607_v19 = vsub.f32 %v10464_v52, %v10463_v56  ;;  %v459_v6 = vsub.f32 %v6483_v39, %v443_v1  ;;  %v10469_v27 = vld [vmem:[#allocation58_spill] sm:$0xff]  ;;  %v460_v56 = vsub.f32 %v6549_v47, %v444_v41  ;;  %v474_v52 = vand.u32 2147483647, %v458_v58 }
  0xf0   : > { %869 = vrot.lane.b32.xlu1 %v10461_v54, %s5677_s15  ;;  %v485_v44 = vadd.f32 %v484_v60, %v470_v40  ;;  %4836 = vmatprep.mubr.bf16.mxu0 %v2179_v4  ;;  %v10468_v54 = vld [vmem:[#allocation23_spill] sm:$0xff]  ;;  %v10171_v4 = vrot.slane %v10469_v27, 7  ;;  %v10172_v40 = vrot.slane %v10466_v10, 7  ;;  %v10470_v60 = vld [vmem:[#allocation44_spill] sm:$0xff]  ;;  %v10471_v29 = vld [vmem:[#allocation30_spill] sm:$0xff]  ;;  %v461_v58 = vsub.f32 %v6552_v11, %v445_v43 }
  0xf1   : > { %10465 = vst [vmem:[#allocation41_spill] sm:$0xff] %v6607_v19  ;;  %v2180_v53 = vpack.c.bf16 %v10468_v54, %v10467_v49  ;;  %v6627_v49 = vsel %vm520_vm0, %v10167_v17, %v10168_v7  ;;  %v476_v7 = vand.u32 2147483647, %v460_v56  ;;  %v10476_v54 = vld [vmem:[#allocation57_spill] sm:$0xff]  ;;  %v10477_v19 = vld [vmem:[#allocation64_spill] sm:$0xff]  ;;  %v2186_v11 = vpack.c.bf16 %v10462_v23, %v6185_v57 }
  0xf2   : > { %v486_v34 = vadd.f32 %v485_v44, %v471_v37  ;;  %v2181_v37 = vpack.c.bf16 %v10471_v29, %v6060_v36  ;;  %10473 = vst [vmem:[#allocation42_spill] sm:$0xff] %v6627_v49  ;;  %v6635_v41 = vsel %vm648_vm1, %v10171_v4, %v10172_v40  ;;  %v10475_v29 = vld [vmem:[#allocation63_spill] sm:$0xff]  ;;  %v10174_v4 = vrot.slane %v10477_v19, 1  ;;  %v10479_v56 = vld [vmem:[#allocation37_spill] sm:$0xff] }
  0xf3   : > { %v10175_v40 = vrot.slane %v6406_v2, 7  ;;  %v10176_v43 = vrot.slane %v10475_v29, 7  ;;  %v2189_v23 = vpack.c.bf16 %v10475_v29, %v6406_v2 }
  0xf4   : > { %873 = vrot.lane.b32.xlu1 %v10470_v60, %s5677_s15  ;;  %v487_v1 = vadd.f32 %v486_v34, %v472_v18  ;;  %v475_v18 = vand.u32 2147483647, %v459_v6  ;;  %v6640_v60 = vsub.f32 %v6635_v41, %v6627_v49  ;;  %v10478_v6 = vld [vmem:[#allocation65_spill] sm:$0xff] }
  0xf6   : > { %v488_v34 = vadd.f32 %v487_v1, %v473_v22  ;;  %10474 = vst [vmem:[#allocation34_spill] sm:$0xff] %v6640_v60  ;;  %v10178_v22 = vrot.slane %v10478_v6, 1  ;;  %v477_v1 = vand.u32 2147483647, %v461_v58  ;;  %v10180_v58 = vrot.slane %v10478_v6, 7 }
  0xf7   : > { %4837 = vmatmul.mubr.bf16.gmra.mrb[16].mxu0 %v2180_v53  ;;  %v10177_v53 = vrot.slane %v6475_v50, 1  ;;  %v2185_v60 = vpack.c.bf16 %v10454_v42, %v6132_v12  ;;  %v1184_v42 = vrot.slane %v6555_v14, 7  ;;  %v10499_v12 = vld [vmem:[#allocation55_spill] sm:$0xff] }
  0xf8   : > { %v489_v36 = vadd.f32 %v488_v34, %v474_v52  ;;  %877 = vrot.lane.b32.xlu1 %v10476_v54, %s5677_s15  ;;  %4840 = vmatprep.mubr.bf16.mxu0 %v2181_v37  ;;  %v10480_v52 = vld [vmem:[#allocation24_spill] sm:$0xff]  ;;  %v10481_v54 = vrot.slane %v10475_v29, 1 }
  0xf9   : > { %v2182_v34 = vpack.c.bf16 %v10480_v52, %v10479_v56  ;;  %v10484_v52 = vld [vmem:[#allocation61_spill] sm:$0xff] }
  0xfa   : > { %v490_v49 = vadd.f32 %v489_v36, %v475_v18  ;;  %v6659_v37 = vsel %vm520_vm0, %v10481_v54, %v10174_v4  ;;  %v6667_v36 = vsel %vm648_vm1, %v10175_v40, %v10176_v43  ;;  %v10486_v54 = vld [vmem:[#allocation25_spill] sm:$0xff]  ;;  %v6684_v40 = vsel %vm520_vm0, %v10178_v22, %v10177_v53  ;;  %v10491_v53 = vld [vmem:[#allocation62_spill] sm:$0xff] }
  0xfb   : > { %10482 = vst [vmem:[#allocation22_spill] sm:$0xff] %v6659_v37  ;;  %10483 = vst [vmem:[#allocation45_spill] sm:$0xff] %v6667_v36  ;;  %v6674_v17 = vsub.f32 %v6667_v36, %v6659_v37  ;;  %v2183_v4 = vpack.c.bf16 %v6046_v30, %v10486_v54  ;;  %v1132_v54 = vrot.slane %v6486_v15, 1  ;;  %v1133_v43 = vrot.slane %v6498_v24, 1 }
  0xfc   : > { %v491_v18 = vadd.f32 %v490_v49, %v476_v7  ;;  %881 = vrot.lane.b32.xlu1 %v10484_v52, %s5677_s15  ;;  %10487 = vst [vmem:[#allocation60_spill] sm:$0xff] %v6684_v40  ;;  %v10488_v7 = vrot.slane %v10477_v19, 7  ;;  %v1179_v22 = vrot.slane %v6475_v50, 7 }
  0xfd   : > { %10485 = vst [vmem:[#allocation46_spill] sm:$0xff] %v6674_v17  ;;  %v1180_v17 = vrot.slane %v6486_v15, 7 }
  0xfe   : > { %v6692_v49 = vsel %vm648_vm1, %v10488_v7, %v10180_v58  ;;  %v492_v52 = vadd.f32 %v491_v18, %v477_v1  ;;  %v1134_v1 = vrot.slane %v6511_v62, 1  ;;  %v1135_v18 = vrot.slane %v6534_v0, 1 }
  0xff   : > { %10489 = vst [vmem:[#allocation21_spill] sm:$0xff] %v6692_v49  ;;  %v6696_v30 = vsub.f32 %v6692_v49, %v6684_v40  ;;  %4841 = vmatmul.mubr.bf16.gmra.mrb[20].mxu0 %v2182_v34  ;;  %v1181_v7 = vrot.slane %v6498_v24, 7  ;;  %v6709_v34 = vsel %vm520_vm0, %v1132_v54, %v1133_v43  ;;  %v2184_v58 = vpack.c.bf16 %v6075_v46, %v6072_v45 }
 0x100   : > { %493 = vadd.xlane.f32.xlu0 %v492_v52  ;;  %885 = vrot.lane.b32.xlu1 %v10491_v53, %s5677_s15  ;;  %10492 = vst [vmem:[#allocation44_spill] sm:$0xff] %v6709_v34  ;;  %v6713_v52 = vsel %vm648_vm1, %v1179_v22, %v1180_v17  ;;  %v1182_v53 = vrot.slane %v6511_v62, 7  ;;  %v6728_v56 = vsel %vm520_vm0, %v1134_v1, %v1135_v18  ;;  %v1136_v45 = vrot.slane %v6555_v14, 1 }
 0x101   : > { %10490 = vst [vmem:[#allocation58_spill] sm:$0xff] %v6696_v30  ;;  %4844 = vmatprep.mubr.bf16.mxu0 %v2183_v4  ;;  %10493 = vst [vmem:[#allocation63_spill] sm:$0xff] %v6713_v52  ;;  %v6720_v4 = vsub.f32 %v6713_v52, %v6709_v34  ;;  %v10495_v30 = vld [vmem:[#allocation66_spill] sm:$0xff]  ;;  %v1138_v52 = vrot.slane %v6587_v28, 1 }
 0x102   : > { %10496 = vst [vmem:[#allocation64_spill] sm:$0xff] %v6728_v56  ;;  %v6732_v40 = vsel %vm648_vm1, %v1181_v7, %v1182_v53 }
 0x103   : > { %10494 = vst [vmem:[#allocation57_spill] sm:$0xff] %v6720_v4  ;;  %10497 = vst [vmem:[#allocation65_spill] sm:$0xff] %v6732_v40  ;;  %v6737_v46 = vsub.f32 %v6732_v40, %v6728_v56  ;;  %v1137_v4 = vrot.slane %v6582_v8, 1  ;;  %v1185_v56 = vrot.slane %v6582_v8, 7  ;;  %v10503_v40 = vrot.slane %v10499_v12, 1 }
 0x104   : > { %889 = vrot.lane.b32.xlu1 %v10495_v30, %s5677_s15  ;;  %v1183_v30 = vrot.slane %v6534_v0, 7 }
 0x105   : > { %10498 = vst [vmem:[#allocation24_spill] sm:$0xff] %v6737_v46  ;;  %v6748_v49 = vsel %vm520_vm0, %v1136_v45, %v1137_v4 }
 0x106   : > { %10500 = vst [vmem:[#allocation61_spill] sm:$0xff] %v6748_v49  ;;  %v6752_v46 = vsel %vm648_vm1, %v1183_v30, %v1184_v42 }
 0x107   : > { %4845 = vmatmul.mubr.bf16.gmra.mrb[24].mxu0 %v2184_v58  ;;  %10501 = vst [vmem:[#allocation25_spill] sm:$0xff] %v6752_v46  ;;  %v10199_v58 = vrot.slane %v6587_v28, 7  ;;  %v6758_v34 = vsub.f32 %v6752_v46, %v6748_v49  ;;  %v10508_v49 = vld [vmem:[#allocation26_spill] sm:$0xff]  ;;  %v10517_v46 = vrot.slane %v10478_v6, 7 }
 0x108   : > { %893 = vrot.lane.b32.xlu1 %v6489_v9, %s5677_s15  ;;  %4848 = vmatprep.mubr.bf16.mxu0 %v2185_v60  ;;  %v1154_v9 = vsel %vm520_vm0, %v1138_v52, %v10503_v40  ;;  %v10509_v40 = vld [vmem:[#allocation56_spill] sm:$0xff]  ;;  %v10510_v60 = vld [vmem:[#allocation29_spill] sm:$0xff] }
 0x109   : > { %10502 = vst [vmem:[#allocation62_spill] sm:$0xff] %v6758_v34  ;;  %v6766_v37 = vsel %vm599_vm3, %v1154_v9, 0.0  ;;  %v6772_v36 = vsel %vm648_vm1, %v1185_v56, %v10199_v58  ;;  %v2187_v9 = vpack.c.bf16 %v10509_v40, %v10499_v12  ;;  %v2188_v58 = vpack.c.bf16 %v10466_v10, %v10469_v27 }
 0x10a   : > { %10505 = vst [vmem:[#allocation66_spill] sm:$0xff] %v6766_v37  ;;  %10506 = vst [vmem:[#allocation55_spill] sm:$0xff] %v6772_v36  ;;  %v6778_v34 = vsub.f32 %v6772_v36, %v6766_v37  ;;  %v10514_v37 = vrot.slane %v10475_v29, 7 }
 0x10c   : > { %10507 = vst [vmem:[#allocation80_spill] sm:$0xff] %v6778_v34  ;;  %933 = vrot.lane.b32.xlu1 %v10508_v49, %s5677_s15  ;;  %v10511_v34 = vrot.slane %v10478_v6, 1 }
 0x10f   : > { %4849 = vmatmul.mubr.bf16.gmra.mrb[28].mxu0 %v2186_v11  ;;  %v10512_v11 = vrot.slane %v10477_v19, 1 }
 0x110   : > { %937 = vrot.lane.b32.xlu1 %v6508_v48, %s5677_s15  ;;  %4852 = vmatprep.mubr.bf16.mxu0 %v2187_v9  ;;  %v10513_v9 = vrot.slane %v10477_v19, 7 }
 0x111   : > { %v6800_v57 = vsel %vm520_vm0, %v10512_v11, %v10511_v34  ;;  %v10516_v34 = vrot.slane %v6475_v50, 1 }
 0x112   : > { %v6808_v36 = vsel %vm648_vm1, %v10514_v37, %v10513_v9  ;;  %v6826_v37 = vsel %vm648_vm1, %v10517_v46, %v1179_v22  ;;  %v10519_v9 = vld [vmem:[#allocation40_spill] sm:$0xff]  ;;  %v2191_v22 = vpack.c.bf16 %v6486_v15, %v6475_v50 }
 0x113   : > { %v6820_v11 = vsel %vm520_vm0, %v10516_v34, %v1132_v54  ;;  %v6838_v54 = vsel %vm520_vm0, %v1133_v43, %v1134_v1  ;;  %v6842_v34 = vsel %vm648_vm1, %v1180_v17, %v1181_v7  ;;  %v6856_v43 = vsel %vm520_vm0, %v1135_v18, %v1136_v45  ;;  %v10523_v7 = vld [vmem:[#allocation31_spill] sm:$0xff] }
 0x114   : > { %941 = vrot.lane.b32.xlu1 %v6515_v25, %s5677_s15  ;;  %v6850_v46 = vsub.f32 %v6842_v34, %v6838_v54  ;;  %v6860_v17 = vsel %vm648_vm1, %v1182_v53, %v1183_v30  ;;  %v6872_v18 = vsel %vm520_vm0, %v1137_v4, %v1138_v52  ;;  %v6876_v53 = vsel %vm648_vm1, %v1184_v42, %v1185_v56  ;;  %v10525_v52 = vld [vmem:[#allocation38_spill] sm:$0xff]  ;;  %v10526_v42 = vld [vmem:[#allocation47_spill] sm:$0xff]  ;;  %v10527_v4 = vld [vmem:[#allocation48_spill] sm:$0xff] }
 0x115   : > { %v6864_v1 = vsub.f32 %v6860_v17, %v6856_v43  ;;  %v2192_v45 = vpack.c.bf16 %v6511_v62, %v6498_v24  ;;  %v6882_v30 = vsub.f32 %v6876_v53, %v6872_v18  ;;  %v2195_v56 = vmul.f32 %v10526_v42, %v10526_v42 }
 0x116   : > { %867 = vrot.lane.b32.xlu0 %v10510_v60, %s5677_s15  ;;  %v6812_v60 = vsub.f32 %v6808_v36, %v6800_v57  ;;  %10520 = vst [vmem:[#allocation40_spill] sm:$0xff] %v6850_v46 }
 0x117   : > { %4853 = vmatmul.mubr.bf16.gmra.mrb[32].mxu0 %v2188_v58  ;;  %v6830_v58 = vsub.f32 %v6826_v37, %v6820_v11  ;;  %10524 = vst [vmem:[#allocation31_spill] sm:$0xff] %v6882_v30 }
 0x118   : > { %10515 = vst [vmem:[#allocation56_spill] sm:$0xff] %v6812_v60  ;;  %945 = vrot.lane.b32.xlu1 %v6519_v61, %s5677_s15  ;;  %4856 = vmatprep.mubr.bf16.mxu0 %v2189_v23  ;;  %v2190_v23 = vpack.c.bf16 %v10478_v6, %v10477_v19  ;;  %v10533_v60 = vld [vmem:[#allocation54_spill] sm:$0xff] }
 0x119   : > { %10518 = vst [vmem:[#allocation29_spill] sm:$0xff] %v6830_v58 }
 0x11a   : > { %871 = vrot.lane.b32.xlu0 %v10519_v9, %s5677_s15  ;;  %v10521_v9 = vld [vmem:[#allocation52_spill] sm:$0xff] }
 0x11b   : > { %10522 = vst [vmem:[#allocation52_spill] sm:$0xff] %v6864_v1  ;;  %v10531_v1 = vld [vmem:[#allocation51_spill] sm:$0xff] }
 0x11c   : > { %949 = vrot.lane.b32.xlu1 %v6525_v59, %s5677_s15  ;;  %v2198_v46 = vmul.f32 %v10531_v1, %v10531_v1 }
 0x11e   : > { %875 = vrot.lane.b32.xlu0 %v10521_v9, %s5677_s15  ;;  %v10528_v9 = vld [vmem:[#allocation43_spill] sm:$0xff] }
 0x11f   : > { %4857 = vmatmul.mubr.bf16.gmra.mrb[36].mxu0 %v2190_v23  ;;  %v2193_v23 = vpack.c.bf16 %v6555_v14, %v6534_v0 }
 0x120   : > { %953 = vrot.lane.b32.xlu1 %v6529_v55, %s5677_s15  ;;  %4860 = vmatprep.mubr.bf16.mxu0 %v2191_v22  ;;  %v2196_v22 = vmul.f32 %v10527_v4, %v10527_v4 }
 0x122   : > { %879 = vrot.lane.b32.xlu0 %v10523_v7, %s5677_s15  ;;  %v2194_v7 = vpack.c.bf16 %v6587_v28, %v6582_v8 }
 0x124   : > { %957 = vrot.lane.b32.xlu1 %v6543_v31, %s5677_s15 }
 0x126   : > { %883 = vrot.lane.b32.xlu0 %v10525_v52, %s5677_s15  ;;  %v10529_v52 = vld [vmem:[#allocation49_spill] sm:$0xff] }
 0x127   : > { %4861 = vmatmul.mubr.bf16.gmra.mrb[40].mxu0 %v2192_v45  ;;  %v2211_v45 = vpack.c.bf16 %v2196_v22, %v2195_v56  ;;  %v2200_v56 = vmul.f32 %v10533_v60, %v10533_v60  ;;  %v10534_v22 = vld [vmem:[#allocation28_spill] sm:$0xff]  ;;  %v2202_v60 = vmul.f32 %v6385_v63, %v6385_v63  ;;  %v1222_v63 = vmul.f32 2.0, %v10466_v10 }
 0x128   : > { %961 = vrot.lane.b32.xlu1 %v6546_v26, %s5677_s15  ;;  %4864 = vmatprep.mubr.bf16.mxu0 %v2193_v23  ;;  %v10530_v23 = vld [vmem:[#allocation50_spill] sm:$0xff] }
 0x129   : > { %v2197_v30 = vmul.f32 %v10530_v23, %v10530_v23 }
 0x12a   : > { %887 = vrot.lane.b32.xlu0 %v10528_v9, %s5677_s15  ;;  %v10532_v9 = vld [vmem:[#allocation53_spill] sm:$0xff] }
 0x12b   : > { %v2199_v58 = vmul.f32 %v10532_v9, %v10532_v9  ;;  %v2201_v9 = vmul.f32 %v6382_v3, %v6382_v3 }
 0x12c   : > { %1013 = vrot.lane.b32.xlu1 %v10508_v49, %s5676_s29  ;;  %v10555_v49 = vld [vmem:[#allocation22_spill] sm:$0xff] }
 0x12d   : > { %v2213_v1 = vpack.c.bf16 %v2200_v56, %v2199_v58  ;;  %v2204_v58 = vmul.f32 %v6434_v51, %v6434_v51  ;;  %v2214_v56 = vpack.c.bf16 %v2202_v60, %v2201_v9  ;;  %v2205_v51 = vmul.f32 %v6469_v38, %v6469_v38 }
 0x12e   : > { %891 = vrot.lane.b32.xlu0 %v10529_v52, %s5677_s15  ;;  %v2212_v52 = vpack.c.bf16 %v2198_v46, %v2197_v30  ;;  %v2203_v46 = vmul.f32 %v6431_v13, %v6431_v13  ;;  %v2207_v9 = vmul.f32 %v6480_v16, %v6480_v16  ;;  %v1220_v60 = vmul.f32 2.0, %v10509_v40 }
 0x12f   : > { %4865 = vmatmul.mubr.bf16.gmra.mrb[44].mxu0 %v2194_v7  ;;  %v10542_v16 = vrot.slane %v10466_v10, 7 }
 0x130   : > { %1017 = vrot.lane.b32.xlu1 %v6508_v48, %s5676_s29  ;;  %4868 = vmatprep.mubr.bf16.mxu0 %v2211_v45  ;;  %v2215_v3 = vpack.c.bf16 %v2204_v58, %v2203_v46  ;;  %v2208_v46 = vmul.f32 %v6483_v39, %v6483_v39  ;;  %v10539_v58 = vrot.slane %v10475_v29, 1  ;;  %v10211_v39 = vrot.slane %v10469_v27, 1 }
 0x132   : > { %931 = vrot.lane.b32.xlu0 %v10534_v22, %s5677_s15  ;;  %v6916_v7 = vpop.permute.xlu1 %811 }
 0x133   : > { %10535 = vst [vmem:[#allocation38_spill] sm:$0xff] %v6916_v7 }
 0x134   : > { %1021 = vrot.lane.b32.xlu1 %v6515_v25, %s5676_s29  ;;  %v10553_v25 = vld [vmem:[#allocation41_spill] sm:$0xff] }
 0x136   : > { %935 = vrot.lane.b32.xlu0 %v6560_v5, %s5677_s15  ;;  %v6922_v45 = vpop.permute.xlu1 %813 }
 0x137   : > { %10536 = vst [vmem:[#allocation48_spill] sm:$0xff] %v6922_v45  ;;  %4869 = vmatmul.mubr.bf16.gmra.mrb[48].mxu0 %v2212_v52  ;;  %v10210_v52 = vrot.slane %v10509_v40, 7 }
 0x138   : > { %1025 = vrot.lane.b32.xlu1 %v6519_v61, %s5676_s29  ;;  %4872 = vmatprep.mubr.bf16.mxu0 %v2213_v1  ;;  %v2206_v1 = vmul.f32 %v6472_v35, %v6472_v35  ;;  %v10541_v35 = vrot.slane %v6406_v2, 7 }
 0x13a   : > { %939 = vrot.lane.b32.xlu0 %v6569_v20, %s5677_s15  ;;  %v6936_v30 = vpop.permute.xlu1 %815 }
 0x13b   : > { %10537 = vst [vmem:[#allocation43_spill] sm:$0xff] %v6936_v30  ;;  %v10546_v30 = vrot.slane %v10509_v40, 1 }
 0x13c   : > { %1029 = vrot.lane.b32.xlu1 %v6525_v59, %s5676_s29  ;;  %v1226_v59 = vmul.f32 2.0, %v10478_v6 }
 0x13d   : > { %v7001_v45 = vsel %vm520_vm0, %v10546_v30, %v10211_v39  ;;  %v7019_v39 = vld [vmem:[%s5969_s9] sm:$0xff] }
 0x13e   : > { %943 = vrot.lane.b32.xlu0 %v6575_v32, %s5677_s15  ;;  %v6944_v13 = vpop.permute.xlu1 %817 }
 0x13f   : > { %10538 = vst [vmem:[#allocation49_spill] sm:$0xff] %v6944_v13  ;;  %4873 = vmatmul.mubr.bf16.gmra.mrb[52].mxu0 %v2214_v56  ;;  %v10540_v56 = vrot.slane %v6406_v2, 1  ;;  %v10543_v13 = vrot.slane %v10499_v12, 7 }
 0x140   : > { %1033 = vrot.lane.b32.xlu1 %v6529_v55, %s5676_s29  ;;  %4876 = vmatprep.mubr.bf16.mxu0 %v2215_v3  ;;  %v6971_v3 = vsel %vm648_vm1, %v10542_v16, %v10541_v35  ;;  %v2216_v16 = vpack.c.bf16 %v2206_v1, %v2205_v51  ;;  %v1238_v1 = vadd.f32 %v1222_v63, %v6635_v41  ;;  %v7024_v63 = vld [vmem:[%s5969_s9 + $0x8] sm:$0xff] }
 0x141   : > { %v6963_v38 = vsel %vm520_vm0, %v10540_v56, %v10539_v58  ;;  %v6981_v58 = vsel %vm648_vm1, %v10543_v13, %v10210_v52  ;;  %v2217_v52 = vpack.c.bf16 %v2208_v46, %v2207_v9  ;;  %v10548_v9 = vld [vmem:[#allocation75_spill] sm:$0xff]  ;;  %v2219_v41 = vmul.f32 %v7019_v39, %v7019_v39 }
 0x142   : > { %v6985_v56 = vsub.f32 %v6971_v3, %v6963_v38  ;;  %947 = vrot.lane.b32.xlu0 %v6579_v33, %s5677_s15  ;;  %v6989_v35 = vpop.permute.xlu1 %819  ;;  %v1236_v13 = vadd.f32 %v1220_v60, %v6981_v58  ;;  %v2209_v60 = vmul.f32 %v6549_v47, %v6549_v47  ;;  %v2210_v46 = vmul.f32 %v10548_v9, %v10548_v9 }
 0x143   : > { %10545 = vst [vmem:[#allocation51_spill] sm:$0xff] %v6989_v35  ;;  %v1224_v35 = vmul.f32 2.0, %v10475_v29 }
 0x144   : > { %10544 = vst [vmem:[#allocation50_spill] sm:$0xff] %v6985_v56  ;;  %1037 = vrot.lane.b32.xlu1 %v6543_v31, %s5676_s29  ;;  %v7016_v30 = vadd.f32 %v1236_v13, %v7001_v45  ;;  %v10551_v13 = vld [vmem:[#allocation45_spill] sm:$0xff]  ;;  %v10562_v56 = vld [vmem:[#allocation63_spill] sm:$0xff] }
 0x145   : > { %v1240_v31 = vadd.f32 %v1224_v35, %v10551_v13  ;;  %v1228_v13 = vmul.f32 2.0, %v6486_v15 }
 0x146   : > { %951 = vrot.lane.b32.xlu0 %v6592_v21, %s5677_s15  ;;  %v7005_v51 = vpop.permute.xlu1 %821 }
 0x147   : > { %10547 = vst [vmem:[#allocation53_spill] sm:$0xff] %v7005_v51  ;;  %4877 = vmatmul.mubr.bf16.gmra.mrb[56].mxu0 %v2216_v16  ;;  %v2220_v16 = vmul.f32 %v7024_v63, %v7024_v63  ;;  %v10549_v51 = vld [vmem:[#allocation36_spill] sm:$0xff]  ;;  %v1244_v47 = vadd.f32 %v1228_v13, %v10562_v56  ;;  %v10568_v56 = vld [vmem:[#allocation37_spill] sm:$0xff] }
 0x148   : > { %1041 = vrot.lane.b32.xlu1 %v6546_v26, %s5676_s29  ;;  %4880 = vmatprep.mubr.bf16.mxu0 %v2217_v52  ;;  %v2218_v26 = vpack.c.bf16 %v2210_v46, %v2209_v60  ;;  %v10552_v52 = vld [vmem:[#allocation42_spill] sm:$0xff]  ;;  %v7047_v60 = vld [vmem:[%s5969_s9 + $0x10] sm:$0xff]  ;;  %v2225_v13 = vmul.f32 %v10568_v56, %v10568_v56 }
 0x149   : > { %v7036_v55 = vadd.f32 %v1238_v1, %v10552_v52  ;;  %v2235_v61 = vpack.c.bf16 %v2220_v16, %v2219_v41  ;;  %v2221_v35 = vmul.f32 %v7047_v60, %v7047_v60  ;;  %v10557_v46 = vld [vmem:[#allocation23_spill] sm:$0xff]  ;;  %v10558_v41 = vld [vmem:[#allocation21_spill] sm:$0xff] }
 0x14a   : > { %955 = vrot.lane.b32.xlu0 %v10549_v51, %s5677_s15  ;;  %v7030_v7 = vpop.permute.xlu1 %823  ;;  %v2222_v1 = vmul.f32 %v10557_v46, %v10557_v46  ;;  %v1242_v16 = vadd.f32 %v1226_v59, %v10558_v41  ;;  %v1230_v41 = vmul.f32 2.0, %v6511_v62 }
 0x14b   : > { %10550 = vst [vmem:[#allocation54_spill] sm:$0xff] %v7030_v7  ;;  %v7044_v7 = vadd.f32 %v1240_v31, %v10555_v49  ;;  %v10560_v49 = vld [vmem:[#allocation30_spill] sm:$0xff] }
 0x14c   : > { %1285 = vrot.lane.b32.xlu1 %v7016_v30, %s5676_s29  ;;  %v2224_v52 = vmul.f32 %v10560_v49, %v10560_v49  ;;  %v2236_v46 = vpack.c.bf16 %v2222_v1, %v2221_v35  ;;  %v10566_v35 = vld [vmem:[#allocation44_spill] sm:$0xff] }
 0x14d   : > { %10556 = vst [vmem:[#allocation42_spill] sm:$0xff] %v7044_v7  ;;  %v7077_v1 = vadd.f32 %v1244_v47, %v10566_v35  ;;  %v7096_v35 = vld [vmem:[%s5969_s9 + $0x48] sm:$0xff] }
 0x14e   : > { %959 = vrot.lane.b32.xlu0 %v10553_v25, %s5677_s15  ;;  %v7041_v48 = vpop.permute.xlu1 %827  ;;  %v2228_v56 = vmul.f32 %v7096_v35, %v7096_v35 }
 0x14f   : > { %10554 = vst [vmem:[#allocation45_spill] sm:$0xff] %v7041_v48  ;;  %4881 = vmatmul.mubr.bf16.gmra.mrb[60].mxu0 %v2218_v26  ;;  %v10559_v26 = vld [vmem:[#allocation27_spill] sm:$0xff]  ;;  %10567 = vst [vmem:[#allocation21_spill] sm:$0xff] %v7077_v1 }
 0x150   : > { %1289 = vrot.lane.b32.xlu1 %v7036_v55, %s5676_s29  ;;  %4884 = vmatprep.mubr.bf16.mxu0 %v2235_v61  ;;  %v2223_v31 = vmul.f32 %v10559_v26, %v10559_v26  ;;  %v10563_v61 = vld [vmem:[#allocation60_spill] sm:$0xff] }
 0x151   : > { %v7069_v59 = vadd.f32 %v1242_v16, %v10563_v61  ;;  %v1232_v61 = vmul.f32 2.0, %v6555_v14 }
 0x152   : > { %1011 = vrot.lane.b32.xlu0 %v10534_v22, %s5676_s29  ;;  %v7063_v48 = vpop.permute.xlu1 %831  ;;  %v2237_v26 = vpack.c.bf16 %v2224_v52, %v2223_v31  ;;  %v10569_v31 = vld [vmem:[#allocation65_spill] sm:$0xff] }
 0x153   : > { %10561 = vst [vmem:[#allocation41_spill] sm:$0xff] %v7063_v48  ;;  %10564 = vst [vmem:[#allocation22_spill] sm:$0xff] %v7069_v59  ;;  %v7082_v48 = vld [vmem:[%s5969_s9 + $0x38] sm:$0xff]  ;;  %v1246_v52 = vadd.f32 %v1230_v41, %v10569_v31  ;;  %v10572_v41 = vld [vmem:[#allocation25_spill] sm:$0xff] }
 0x154   : > { %1293 = vrot.lane.b32.xlu1 %v7044_v7, %s5676_s29  ;;  %v2226_v16 = vmul.f32 %v7082_v48, %v7082_v48  ;;  %v10573_v31 = vld [vmem:[#allocation64_spill] sm:$0xff] }
 0x155   : > { %v7108_v22 = vadd.f32 %v1246_v52, %v10573_v31 }
 0x156   : > { %1015 = vrot.lane.b32.xlu0 %v6560_v5, %s5676_s29  ;;  %v7074_v49 = vpop.permute.xlu1 %835  ;;  %v2238_v5 = vpack.c.bf16 %v2226_v16, %v2225_v13  ;;  %v10577_v13 = vld [vmem:[#allocation61_spill] sm:$0xff] }
 0x157   : > { %10565 = vst [vmem:[#allocation23_spill] sm:$0xff] %v7074_v49  ;;  %4885 = vmatmul.mubr.bf16.gmra.mrb[64].mxu0 %v2236_v46  ;;  %v7091_v46 = vld [vmem:[%s5969_s9 + $0x40] sm:$0xff]  ;;  %10574 = vst [vmem:[#allocation63_spill] sm:$0xff] %v7108_v22 }
 0x158   : > { %1297 = vrot.lane.b32.xlu1 %v7069_v59, %s5676_s29  ;;  %4888 = vmatprep.mubr.bf16.mxu0 %v2237_v26  ;;  %10570 = vst [vmem:[#allocation27_spill] sm:$0xff] %v7091_v46  ;;  %v2227_v47 = vmul.f32 %v7091_v46, %v7091_v46  ;;  %v1248_v26 = vadd.f32 %v1232_v61, %v10572_v41  ;;  %v1234_v59 = vmul.f32 2.0, %v6587_v28  ;;  %v7111_v46 = vld [vmem:[#allocation8] sm:$0xff]   ;;  %v7122_v61 = vld [vmem:[%s5969_s9 + $0x50] sm:$0xff]  ;;  %v7127_v41 = vld [vmem:[%s5969_s9 + $0x58] sm:$0xff] }
 0x159   : > { %10575 = vst [vmem:[#allocation60_spill] sm:$0xff] %v7111_v46  ;;  %4964 = vmatprep.mubr.bf16.mxu1 %v7111_v46  ;;  %v2229_v52 = vmul.f32 %v7122_v61, %v7122_v61 }
 0x15a   : > { %1019 = vrot.lane.b32.xlu0 %v6569_v20, %s5676_s29  ;;  %v7102_v49 = vpop.permute.xlu1 %839  ;;  %v2239_v7 = vpack.c.bf16 %v2228_v56, %v2227_v47  ;;  %v7119_v16 = vadd.f32 %v1248_v26, %v10577_v13  ;;  %v2230_v47 = vmul.f32 %v7127_v41, %v7127_v41  ;;  %v10579_v56 = vld [vmem:[#allocation55_spill] sm:$0xff]  ;;  %v10581_v13 = vld [vmem:[#allocation33_spill] sm:$0xff] }
 0x15b   : > { %10571 = vst [vmem:[#allocation30_spill] sm:$0xff] %v7102_v49  ;;  %v1250_v31 = vadd.f32 %v1234_v59, %v10579_v56  ;;  %v2232_v49 = vmul.f32 %v10581_v13, %v10581_v13  ;;  %v10586_v59 = vrot.slane %v6587_v28, 7 }
 0x15c   : > { %1301 = vrot.lane.b32.xlu1 %v7077_v1, %s5676_s29  ;;  %10578 = vst [vmem:[#allocation37_spill] sm:$0xff] %v7119_v16  ;;  %v10594_v1 = vrot.slane %v10469_v27, 7 }
 0x15e   : > { %1023 = vrot.lane.b32.xlu0 %v6575_v32, %s5676_s29  ;;  %v7115_v20 = vpop.permute.xlu1 %865  ;;  %v2240_v32 = vpack.c.bf16 %v2230_v47, %v2229_v52  ;;  %v1219_v52 = vmul.f32 2.0, %v10499_v12 }
 0x15f   : > { %10576 = vst [vmem:[#allocation44_spill] sm:$0xff] %v7115_v20  ;;  %4889 = vmatmul.mubr.bf16.gmra.mrb[68].mxu0 %v2238_v5  ;;  %v10580_v5 = vld [vmem:[#allocation32_spill] sm:$0xff] }
 0x160   : > { %1305 = vrot.lane.b32.xlu1 %v7108_v22, %s5676_s29  ;;  %4892 = vmatprep.mubr.bf16.mxu0 %v2239_v7  ;;  %v2231_v26 = vmul.f32 %v10580_v5, %v10580_v5  ;;  %v10583_v22 = vld [vmem:[#allocation66_spill] sm:$0xff]  ;;  %v10585_v7 = vrot.slane %v10499_v12, 7 }
 0x161   : > { %v7145_v46 = vadd.f32 %v1250_v31, %v10583_v22  ;;  %v10589_v31 = vld [vmem:[#allocation39_spill] sm:$0xff] }
 0x162   : > { %1027 = vrot.lane.b32.xlu0 %v6579_v33, %s5676_s29  ;;  %v7140_v20 = vpop.permute.xlu1 %869  ;;  %v1202_v56 = vsel %vm648_vm1, %v10586_v59, %v10585_v7  ;;  %v2241_v5 = vpack.c.bf16 %v2232_v49, %v2231_v26  ;;  %v2243_v49 = vmul.f32 %v10499_v12, %v10499_v12  ;;  %v7173_v26 = vpop.permute.xlu0 %809 }
 0x163   : > { %10582 = vst [vmem:[#allocation65_spill] sm:$0xff] %v7140_v20  ;;  %10584 = vst [vmem:[#allocation25_spill] sm:$0xff] %v7145_v46  ;;  %v1203_v22 = vsel %vm681_vm2, %v1202_v56, 0.0  ;;  %v7163_v20 = vld [vmem:[%s5969_s9 + $0x78] sm:$0xff] }
 0x164   : > { %1309 = vrot.lane.b32.xlu1 %v7119_v16, %s5676_s29  ;;  %v2233_v16 = vmul.f32 %v10589_v31, %v10589_v31  ;;  %v2234_v7 = vmul.f32 %v7163_v20, %v7163_v20  ;;  %10590 = vst [vmem:[#allocation61_spill] sm:$0xff] %v7173_v26  ;;  %v1235_v56 = vadd.f32 %v1219_v52, %v1203_v22  ;;  %v1221_v31 = vmul.f32 2.0, %v10469_v27 }
 0x166   : > { %1031 = vrot.lane.b32.xlu0 %v6592_v21, %s5676_s29  ;;  %v7155_v13 = vpop.permute.xlu1 %873  ;;  %v10593_v21 = vrot.slane %v10499_v12, 1  ;;  %v2242_v26 = vpack.c.bf16 %v2234_v7, %v2233_v16  ;;  %v10237_v12 = vrot.slane %v10526_v42, 1  ;;  %v10597_v16 = vrot.slane %v10466_v10, 1 }
 0x167   : > { %10587 = vst [vmem:[#allocation64_spill] sm:$0xff] %v7155_v13  ;;  %4893 = vmatmul.mubr.bf16.gmra.mrb[72].mxu0 %v2240_v32  ;;  %v2244_v32 = vmul.f32 %v10509_v40, %v10509_v40  ;;  %v1635_v13 = vrot.slane %v10526_v42, 7  ;;  %v10598_v7 = vrot.slane %v10469_v27, 1  ;;  %v7448_v42 = vld [vmem:[%s5982_s13 + $0x48] sm:$0xff] }
 0x168   : > { %1313 = vrot.lane.b32.xlu1 %v7145_v46, %s5676_s29  ;;  %4896 = vmatprep.mubr.bf16.mxu0 %v2241_v5  ;;  %v10592_v46 = vrot.slane %v10509_v40, 1  ;;  %v7198_v5 = vsub.f32 %v6981_v58, %v7001_v45  ;;  %v7213_v58 = vpop.permute.xlu0 %825 }
 0x16a   : > { %1035 = vrot.lane.b32.xlu0 %v10549_v51, %s5676_s29  ;;  %v7177_v59 = vpop.permute.xlu1 %877  ;;  %v1153_v33 = vsel %vm520_vm0, %v10593_v21, %v10592_v46  ;;  %v10595_v51 = vrot.slane %v10509_v40, 7  ;;  %v1588_v21 = vrot.slane %v10527_v4, 1 }
 0x16b   : > { %10591 = vst [vmem:[#allocation55_spill] sm:$0xff] %v7177_v59  ;;  %v2259_v59 = vpack.c.bf16 %v2244_v32, %v2243_v49  ;;  %v7206_v40 = vadd.f32 %v1235_v56, %v1153_v33  ;;  %v1151_v49 = vsel %vm520_vm0, %v10598_v7, %v10597_v16  ;;  %v2245_v32 = vmul.f32 %v10469_v27, %v10469_v27 }
 0x16c   : > { %v1200_v52 = vsel %vm648_vm1, %v10595_v51, %v10594_v1  ;;  %1333 = vrot.lane.b32.xlu1 %v7016_v30, %s5677_s15  ;;  %v1223_v1 = vmul.f32 2.0, %v6406_v2  ;;  %v10596_v30 = vrot.slane %v10548_v9, 7  ;;  %v2246_v56 = vmul.f32 %v10466_v10, %v10466_v10 }
 0x16d   : > { %v1237_v51 = vadd.f32 %v1221_v31, %v1200_v52  ;;  %v7227_v31 = vsub.f32 %v1203_v22, %v1153_v33  ;;  %v7237_v27 = vsel %vm520_vm0, %v10237_v12, %v1588_v21  ;;  %v10238_v7 = vrot.slane %v10527_v4, 7 }
 0x16e   : > { %1039 = vrot.lane.b32.xlu0 %v10553_v25, %s5676_s29  ;;  %v7204_v46 = vpop.permute.xlu1 %881  ;;  %v1666_v45 = vsel %vm648_vm1, %v10596_v30, %v1635_v13  ;;  %v2248_v30 = vmul.f32 %v10475_v29, %v10475_v29  ;;  %v1225_v29 = vmul.f32 2.0, %v10477_v19  ;;  %v7296_v12 = vsub.f32 %v1200_v52, %v1151_v49 }
 0x16f   : > { %4897 = vmatmul.mubr.bf16.gmra.mrb[76].mxu0 %v2242_v26  ;;  %10599 = vst [vmem:[#allocation32_spill] sm:$0xff] %v7227_v31  ;;  %v2247_v26 = vmul.f32 %v6406_v2, %v6406_v2  ;;  %v7241_v10 = vsel %vm681_vm2, %v1666_v45, 0.0  ;;  %v1253_v22 = vadd.f32 %v1237_v51, %v1151_v49  ;;  %v1239_v2 = vadd.f32 %v1223_v1, %v6971_v3  ;;  %v7255_v45 = vpop.permute.xlu0 %829 }
 0x170   : > { %1397 = vrot.lane.b32.xlu1 %v7198_v5, %s5677_s15  ;;  %4900 = vmatprep.mubr.bf16.mxu0 %v2259_v59  ;;  %v2260_v59 = vpack.c.bf16 %v2246_v56, %v2245_v32  ;;  %v7253_v16 = vsub.f32 %v7241_v10, %v7237_v27  ;;  %v1241_v1 = vadd.f32 %v1225_v29, %v6808_v36  ;;  %v1227_v32 = vmul.f32 2.0, %v6475_v50 }
 0x171   : > { %v2261_v47 = vpack.c.bf16 %v2248_v30, %v2247_v26  ;;  %v7262_v3 = vadd.f32 %v1239_v2, %v6963_v38  ;;  %v2249_v56 = vmul.f32 %v10477_v19, %v10477_v19  ;;  %v2250_v26 = vmul.f32 %v10478_v6, %v10478_v6  ;;  %10600 = vst [vmem:[#allocation33_spill] sm:$0xff] %v7296_v12 }
 0x172   : > { %1283 = vrot.lane.b32.xlu0 %v7206_v40, %s5676_s29  ;;  %v7245_v33 = vpop.permute.xlu1 %885  ;;  %v1684_v30 = vmul.f32 2.0, %v10527_v4  ;;  %v2251_v38 = vmul.f32 %v6475_v50, %v6475_v50  ;;  %v2252_v36 = vmul.f32 %v6486_v15, %v6486_v15  ;;  %v1589_v2 = vrot.slane %v10530_v23, 1 }
 0x173   : > { %v7282_v19 = vsel %vm648_vm1, %v1635_v13, %v10238_v7  ;;  %v7289_v29 = vadd.f32 %v1241_v1, %v6800_v57  ;;  %v1243_v50 = vadd.f32 %v1227_v32, %v6826_v37  ;;  %v1229_v15 = vmul.f32 2.0, %v6498_v24 }
 0x174   : > { %1475 = vrot.lane.b32.xlu1 %v7227_v31, %s5676_s29  ;;  %v1700_v13 = vadd.f32 %v1684_v30, %v7282_v19  ;;  %v2263_v7 = vpack.c.bf16 %v2252_v36, %v2251_v38  ;;  %v7303_v57 = vsel %vm520_vm0, %v1588_v21, %v1589_v2  ;;  %v1231_v49 = vmul.f32 2.0, %v6534_v0 }
 0x175   : > { %v7310_v1 = vadd.f32 %v1243_v50, %v6820_v11  ;;  %v1245_v52 = vadd.f32 %v1229_v15, %v6842_v34  ;;  %v2254_v21 = vmul.f32 %v6511_v62, %v6511_v62  ;;  %v2255_v11 = vmul.f32 %v6534_v0, %v6534_v0  ;;  %v7353_v15 = vld [vmem:[%s5982_s13] sm:$0xff] }
 0x176   : > { %1287 = vrot.lane.b32.xlu0 %v1253_v22, %s5676_s29  ;;  %v7259_v51 = vpop.permute.xlu1 %889  ;;  %v1716_v32 = vadd.f32 %v1700_v13, %v7303_v57  ;;  %v2256_v34 = vmul.f32 %v6555_v14, %v6555_v14  ;;  %v2258_v50 = vmul.f32 %v6587_v28, %v6587_v28  ;;  %v7363_v13 = vld [vmem:[%s5982_s13 + $0x10] sm:$0xff] }
 0x177   : > { %4901 = vmatmul.mubr.bf16.gmra.mrb[80].mxu0 %v2260_v59  ;;  %v7293_v59 = vpop.permute.xlu0 %833  ;;  %v7332_v62 = vadd.f32 %v1245_v52, %v6838_v54 }
 0x178   : > { %1859 = vrot.lane.b32.xlu1 %v7253_v16, %s5677_s15  ;;  %4904 = vmatprep.mubr.bf16.mxu0 %v2261_v47  ;;  %v2262_v47 = vpack.c.bf16 %v2250_v26, %v2249_v56  ;;  %v1247_v26 = vadd.f32 %v1231_v49, %v6860_v17  ;;  %v2265_v14 = vpack.c.bf16 %v2256_v34, %v2255_v11 }
 0x179   : > { %10601 = vst [vmem:[#allocation66_spill] sm:$0xff] %v7332_v62  ;;  %v2257_v17 = vmul.f32 %v6582_v8, %v6582_v8 }
 0x17a   : > { %1291 = vrot.lane.b32.xlu0 %v7262_v3, %s5676_s29  ;;  %v7286_v6 = vpop.permute.xlu1 %893  ;;  %v7342_v38 = vadd.f32 %v1247_v26, %v6856_v43  ;;  %v2267_v43 = vmul.f32 %v7353_v15, %v7019_v39  ;;  %v1685_v39 = vmul.f32 2.0, %v7363_v13  ;;  %v2269_v26 = vmul.f32 %v7363_v13, %v7047_v60 }
 0x17b   : > { %v7325_v56 = vpop.permute.xlu0 %837  ;;  %v2266_v49 = vpack.c.bf16 %v2258_v50, %v2257_v17  ;;  %v5395_v50 = vld [vmem:[%s5969_s9 + $0x28] sm:$0xff] }
 0x17c   : > { %1335 = vrot.lane.b32.xlu1 %v1253_v22, %s5677_s15  ;;  %v2253_v22 = vmul.f32 %v6498_v24, %v6498_v24  ;;  %10602 = vst [vmem:[#allocation20_spill] sm:$0xff] %v7342_v38 }
 0x17e   : > { %1295 = vrot.lane.b32.xlu0 %v7289_v29, %s5676_s29  ;;  %v7307_v37 = vpop.permute.xlu1 %933  ;;  %v2264_v0 = vpack.c.bf16 %v2254_v21, %v2253_v22  ;;  %v7379_v21 = vld [vmem:[%s5982_s13 + $0x18] sm:$0xff] }
 0x17f   : > { %4905 = vmatmul.mubr.bf16.gmra.mrb[84].mxu0 %v2262_v47  ;;  %v7345_v36 = vpop.permute.xlu0 %863  ;;  %v7358_v47 = vld [vmem:[%s5982_s13 + $0x8] sm:$0xff]  ;;  %v1638_v23 = vrot.slane %v7379_v21, 7 }
 0x180   : > { %1479 = vrot.lane.b32.xlu1 %v7296_v12, %s5676_s29  ;;  %4908 = vmatprep.mubr.bf16.mxu0 %v2263_v7  ;;  %v1233_v7 = vmul.f32 2.0, %v6582_v8  ;;  %v1637_v8 = vrot.slane %v7363_v13, 7 }
 0x182   : > { %1299 = vrot.lane.b32.xlu0 %v7310_v1, %s5676_s29  ;;  %v7329_v24 = vpop.permute.xlu1 %937  ;;  %v1249_v54 = vadd.f32 %v1233_v7, %v6876_v53  ;;  %v2268_v53 = vmul.f32 %v7358_v47, %v7024_v63  ;;  %v5392_v7 = vld [vmem:[%s5969_s9 + $0x18] sm:$0xff] }
 0x184   : > { %1749 = vrot.lane.b32.xlu1 %v1716_v32, %s5676_s29  ;;  %v7371_v52 = vadd.f32 %v1249_v54, %v6872_v18  ;;  %v2283_v63 = vpack.c.bf16 %v2268_v53, %v2267_v43  ;;  %v10604_v18 = vrot.slane %v10527_v4, 7  ;;  %v5393_v4 = vld [vmem:[%s5969_s9 + $0x20] sm:$0xff]  ;;  %v7403_v43 = vld [vmem:[%s5982_s13 + $0x28] sm:$0xff] }
 0x185   : > { %v7398_v54 = vld [vmem:[%s5982_s13 + $0x20] sm:$0xff]  ;;  %v2272_v60 = vmul.f32 %v7403_v43, %v5395_v50 }
 0x186   : > { %1303 = vrot.lane.b32.xlu0 %v7332_v62, %s5676_s29  ;;  %v7339_v30 = vpop.permute.xlu1 %941  ;;  %10603 = vst [vmem:[#allocation39_spill] sm:$0xff] %v7371_v52  ;;  %v1664_v11 = vsel %vm648_vm1, %v10604_v18, %v1637_v8  ;;  %v2271_v17 = vmul.f32 %v7398_v54, %v5393_v4 }
 0x187   : > { %4909 = vmatmul.mubr.bf16.gmra.mrb[88].mxu0 %v2264_v0  ;;  %v2270_v0 = vmul.f32 %v5392_v7, %v7379_v21 }
 0x188   : > { %1797 = vrot.lane.b32.xlu1 %v1716_v32, %s5677_s15  ;;  %4912 = vmatprep.mubr.bf16.mxu0 %v2265_v14  ;;  %v1590_v32 = vrot.slane %v7379_v21, 1  ;;  %v1701_v14 = vadd.f32 %v1685_v39, %v1664_v11  ;;  %v2285_v7 = vpack.c.bf16 %v2272_v60, %v2271_v17  ;;  %v1686_v60 = vmul.f32 2.0, %v7379_v21 }
 0x189   : > { %v2284_v39 = vpack.c.bf16 %v2270_v0, %v2269_v26  ;;  %v7429_v26 = vld [vmem:[%s5982_s13 + $0x30] sm:$0xff] }
 0x18a   : > { %1307 = vrot.lane.b32.xlu0 %v7342_v38, %s5676_s29  ;;  %v7368_v28 = vpop.permute.xlu1 %945 }
 0x18c   : > { %1939 = vrot.lane.b32.xlu1 %v7253_v16, %s5676_s29 }
 0x18d   : > { %v7376_v22 = vpop.xlane.xlu0 %493 }
 0x18e   : > { %1311 = vrot.lane.b32.xlu0 %v7371_v52, %s5676_s29  ;;  %v7388_v34 = vpop.permute.xlu1 %949  ;;  %v7443_v52 = vld [vmem:[%s5982_s13 + $0x40] sm:$0xff] }
 0x18f   : > { %10605 = vst [vmem:[#allocation81_spill] sm:$0xff] %v7388_v34  ;;  %4913 = vmatmul.mubr.bf16.gmra.mrb[92].mxu0 %v2266_v49 }
 0x190   : > { %1337 = vrot.lane.b32.xlu1 %v7036_v55, %s5677_s15  ;;  %4916 = vmatprep.mubr.bf16.mxu0 %v2283_v63  ;;  %v1615_v55 = vsel %vm520_vm0, %v1589_v2, %v1590_v32  ;;  %v10607_v63 = vld [vmem:[#allocation34_spill] sm:$0xff] }
 0x191   : > { %v7406_v53 = vpop.permute.xlu0 %867  ;;  %v7418_v18 = vadd.f32 %v1701_v14, %v1615_v55  ;;  %v7433_v14 = vld [vmem:[%s5982_s13 + $0x38] sm:$0xff]  ;;  %v7439_v50 = vsub.f32 %v1664_v11, %v1615_v55  ;;  %v7457_v11 = vsel %vm648_vm1, %v1637_v8, %v1638_v23 }
 0x192   : > { %1331 = vrot.lane.b32.xlu0 %v7206_v40, %s5677_s15  ;;  %v7414_v49 = vpop.permute.xlu1 %953  ;;  %v5397_v40 = vld [vmem:[%s5969_s9 + $0x30] sm:$0xff]  ;;  %v2274_v17 = vmul.f32 %v7433_v14, %v7082_v48  ;;  %v1591_v48 = vrot.slane %v7398_v54, 1 }
 0x193   : > { %10606 = vst [vmem:[#allocation82_spill] sm:$0xff] %v7414_v49  ;;  %v2273_v0 = vmul.f32 %v7429_v26, %v5397_v40  ;;  %10609 = vst [vmem:[#allocation84_spill] sm:$0xff] %v7439_v50  ;;  %v2276_v40 = vmul.f32 %v7448_v42, %v7096_v35  ;;  %v1702_v35 = vadd.f32 %v1686_v60, %v7457_v11  ;;  %v7505_v49 = vld [vmem:[%s5982_s13 + $0x68] sm:$0xff] }
 0x194   : > { %1481 = vrot.lane.b32.xlu1 %v10607_v63, %s5676_s29  ;;  %v7470_v8 = vsel %vm520_vm0, %v1590_v32, %v1591_v48  ;;  %v7484_v32 = vld [vmem:[%s5982_s13 + $0x50] sm:$0xff] }
 0x195   : > { %v7420_v4 = vpop.permute.xlu0 %871  ;;  %v2277_v60 = vmul.f32 %v7484_v32, %v7122_v61 }
 0x196   : > { %1395 = vrot.lane.b32.xlu0 %v7227_v31, %s5677_s15  ;;  %v7425_v2 = vpop.permute.xlu1 %957 }
 0x197   : > { %10608 = vst [vmem:[#allocation83_spill] sm:$0xff] %v7425_v2  ;;  %4917 = vmatmul.mubr.bf16.gmra.mrb[96].mxu0 %v2284_v39  ;;  %v10610_v39 = vld [vmem:[#allocation27_spill] sm:$0xff]  ;;  %v5406_v2 = vld [vmem:[%s5969_s9 + $0x68] sm:$0xff] }
 0x198   : > { %1799 = vrot.lane.b32.xlu1 %v7418_v18, %s5677_s15  ;;  %4920 = vmatprep.mubr.bf16.mxu0 %v2285_v7  ;;  %v2275_v38 = vmul.f32 %v7443_v52, %v10610_v39  ;;  %v2286_v7 = vpack.c.bf16 %v2274_v17, %v2273_v0  ;;  %v1683_v17 = vmul.f32 2.0, %v7353_v15  ;;  %v2280_v61 = vmul.f32 %v7505_v49, %v5406_v2 }
 0x199   : > { %v7452_v62 = vpop.permute.xlu0 %875 }
 0x19a   : > { %10611 = vst [vmem:[#allocation27_spill] sm:$0xff] %v7452_v62  ;;  %1399 = vrot.lane.b32.xlu0 %v7296_v12, %s5677_s15  ;;  %v7461_v55 = vpop.permute.xlu1 %961  ;;  %v2287_v39 = vpack.c.bf16 %v2276_v40, %v2275_v38  ;;  %v7480_v38 = vsub.f32 %v7282_v19, %v7303_v57  ;;  %v7489_v40 = vld [vmem:[%s5982_s13 + $0x58] sm:$0xff]  ;;  %v10616_v12 = vld [vmem:[#allocation46_spill] sm:$0xff]  ;;  %v5404_v19 = vld [vmem:[%s5969_s9 + $0x60] sm:$0xff]  ;;  %v1699_v2 = vadd.f32 %v1683_v17, %v7241_v10 }
 0x19b   : > { %10612 = vst [vmem:[#allocation85_spill] sm:$0xff] %v7461_v55  ;;  %v2278_v55 = vmul.f32 %v7489_v40, %v7127_v41  ;;  %v7500_v57 = vld [vmem:[%s5982_s13 + $0x60] sm:$0xff]  ;;  %v10618_v41 = vrot.slane %v7403_v43, 1  ;;  %v5408_v10 = vld [vmem:[%s5969_s9 + $0x70] sm:$0xff]  ;;  %s5591_s9 = scalar_lea.vmem %s10021_s3, 128 }
 0x19c   : > { %1943 = vrot.lane.b32.xlu1 %v7439_v50, %s5676_s29  ;;  %10615 = vst [vmem:[#allocation88_spill] sm:$0xff] %v7480_v38  ;;  %p5592_p3 = scmp.ne.s32.totalorder %s10021_s3, %s5591_s9 }
 0x19d   : > { %v7466_v31 = vpop.permute.xlu0 %879  ;;  %v2288_v34 = vpack.c.bf16 %v2278_v55, %v2277_v60  ;;  %v10624_v55 = vld [vmem:[#allocation74_spill] sm:$0xff]  ;;  %v2282_v60 = vmul.f32 %v7163_v20, %v10548_v9 }
 0x19e   : > { %10613 = vst [vmem:[#allocation86_spill] sm:$0xff] %v7466_v31  ;;  %1477 = vrot.lane.b32.xlu0 %v7198_v5, %s5676_s29  ;;  %v7476_v0 = vpop.permute.xlu1 %1013  ;;  %v7496_v31 = vadd.f32 %v1702_v35, %v7470_v8  ;;  %v1613_v35 = vsel %vm520_vm0, %v1591_v48, %v10618_v41  ;;  %v2281_v17 = vmul.f32 %v5408_v10, %v10624_v55  ;;  %p5593_p0 = pnand %p5592_p3, %p11141_p7 }
 0x19f   : > { %10614 = vst [vmem:[#allocation87_spill] sm:$0xff] %v7476_v0  ;;  %4921 = vmatmul.mubr.bf16.gmra.mrb[100].mxu0 %v2286_v7  ;;  %v2279_v7 = vmul.f32 %v7500_v57, %v5404_v19 }
 0x1a0   : > { %1405 = vrot.lane.b32.xlu1 %v10616_v12, %s5677_s15  ;;  %4924 = vmatprep.mubr.bf16.mxu0 %v2287_v39  ;;  %v10619_v39 = vrot.slane %v7398_v54, 7  ;;  %v2290_v10 = vpack.c.bf16 %v2282_v60, %v2281_v17  ;;  %v5412_v60 = vld [vmem:[%s5976_s28 + $0x18] sm:$0xff]  ;;  %p5594_p6 = pneg %p5593_p0 }
 0x1a1   : > { %v7508_v62 = vpop.permute.xlu0 %883  ;;  %v2289_v48 = vpack.c.bf16 %v2280_v61, %v2279_v7  ;;  %v1687_v7 = vmul.f32 2.0, %v7398_v54 }
 0x1a2   : > { %10617 = vst [vmem:[#allocation89_spill] sm:$0xff] %v7508_v62  ;;  %v1662_v0 = vsel %vm648_vm1, %v1638_v23, %v10619_v39  ;;  %1861 = vrot.lane.b32.xlu0 %v7480_v38, %s5677_s15  ;;  %v7520_v19 = vpop.permute.xlu1 %1017  ;;  %v1715_v39 = vadd.f32 %v1699_v2, %v7237_v27 }
 0x1a3   : > { %10620 = vst [vmem:[#allocation90_spill] sm:$0xff] %v7520_v19  ;;  %v7525_v62 = vsub.f32 %v1662_v0, %v1613_v35 }
 0x1a4   : > { %1753 = vrot.lane.b32.xlu1 %v7496_v31, %s5676_s29 }
 0x1a5   : > { %10621 = vst [vmem:[#allocation91_spill] sm:$0xff] %v7525_v62  ;;  %v7527_v41 = vpop.permute.xlu0 %887 }
 0x1a6   : > { %10622 = vst [vmem:[#allocation92_spill] sm:$0xff] %v7527_v41  ;;  %1401 = vrot.lane.b32.xlu0 %v10607_v63, %s5677_s15  ;;  %v7531_v23 = vpop.permute.xlu1 %1021  ;;  %v5409_v41 = vld [vmem:[%s5976_s28] sm:$0xff] }
 0x1a7   : > { %10623 = vst [vmem:[#allocation93_spill] sm:$0xff] %v7531_v23  ;;  %4925 = vmatmul.mubr.bf16.gmra.mrb[104].mxu0 %v2288_v34  ;;  %v2291_v63 = vmul.f32 %v5409_v41, %v7353_v15  ;;  %v5410_v23 = vld [vmem:[%s5976_s28 + $0x8] sm:$0xff] }
 0x1a8   : > { %1867 = vrot.lane.b32.xlu1 %v7525_v62, %s5677_s15  ;;  %4928 = vmatprep.mubr.bf16.mxu0 %v2289_v48  ;;  %v2292_v27 = vmul.f32 %v5410_v23, %v7358_v47  ;;  %v10627_v48 = vld [vmem:[#allocation42_spill] sm:$0xff] }
 0x1a9   : > { %v7541_v61 = vpop.permute.xlu0 %891 }
 0x1aa   : > { %10625 = vst [vmem:[#allocation74_spill] sm:$0xff] %v7541_v61  ;;  %1747 = vrot.lane.b32.xlu0 %v1715_v39, %s5676_s29  ;;  %v7548_v34 = vpop.permute.xlu1 %1025  ;;  %v4822_v20 = vpop.f32.mrb[0].mxu0  ;;  %v1703_v61 = vadd.f32 %v1687_v7, %v1662_v0  ;;  %v2307_v19 = vpack.c.bf16 %v2292_v27, %v2291_v63  ;;  %v5413_v7 = vld [vmem:[%s5976_s28 + $0x20] sm:$0xff] }
 0x1ab   : > { %10626 = vst [vmem:[#allocation94_spill] sm:$0xff] %v7548_v34  ;;  %v2397_v2 = vpop.f32.mrb[1].mxu0  ;;  %v5411_v34 = vld [vmem:[%s5976_s28 + $0x10] sm:$0xff]  ;;  %v2295_v27 = vmul.f32 %v5413_v7, %v7398_v54 }
 0x1ac   : > { %1341 = vrot.lane.b32.xlu1 %v10627_v48, %s5677_s15  ;;  %v4823_v55 = vpop.f32.mrb[2].mxu0  ;;  %v2293_v17 = vmul.f32 %v5411_v34, %v7363_v13  ;;  %v2294_v48 = vmul.f32 %v5412_v60, %v7379_v21  ;;  %v7563_v0 = vadd.f32 %v1703_v61, %v1613_v35  ;;  %v10633_v60 = vrot.slane %v7398_v54, 7 }
 0x1ad   : > { %v7552_v9 = vpop.permute.xlu0 %931  ;;  %v2909_v15 = vpack.c.bf16 %v4823_v55, %v4822_v20  ;;  %v2400_v41 = vpop.f32.mrb[3].mxu0  ;;  %v5414_v20 = vld [vmem:[%s5976_s28 + $0x28] sm:$0xff] }
 0x1ae   : > { %10628 = vst [vmem:[#allocation42_spill] sm:$0xff] %v7552_v9  ;;  %1795 = vrot.lane.b32.xlu0 %v1715_v39, %s5677_s15  ;;  %v7555_v47 = vpop.permute.xlu1 %1029  ;;  %v2908_v23 = vpack.c.bf16 %v2400_v41, %v2397_v2  ;;  %v1640_v39 = vrot.slane %v7403_v43, 7  ;;  %v2296_v13 = vmul.f32 %v5414_v20, %v7403_v43  ;;  %v2308_v61 = vpack.c.bf16 %v2294_v48, %v2293_v17 }
 0x1af   : > { %10629 = vst [vmem:[#allocation95_spill] sm:$0xff] %v7555_v47  ;;  %4929 = vmatmul.mubr.bf16.gmra.mrb[108].mxu0 %v2290_v10  ;;  %v1593_v2 = vrot.slane %v7429_v26, 1  ;;  %v1688_v10 = vmul.f32 2.0, %v7403_v43 }
 0x1b0   : > { %1485 = vrot.lane.b32.xlu1 %v10616_v12, %s5676_s29  ;;  %4948 = vmatprep.subr.bf16.mxu1 %v2908_v23  ;;  %v7586_v7 = vsel %vm648_vm1, %v10633_v60, %v1640_v39  ;;  %v2309_v17 = vpack.c.bf16 %v2296_v13, %v2295_v27  ;;  %v10635_v27 = vrot.slane %v7403_v43, 1 }
 0x1b1   : > { %v7565_v63 = vpop.permute.xlu0 %935  ;;  %4949 = vmatpush3.bf16.msra.mxu1 %v2908_v23  ;;  %4932 = vmatprep.mubr.bf16.mxu0 %v2307_v19 }
 0x1b2   : > { %10630 = vst [vmem:[#allocation96_spill] sm:$0xff] %v7565_v63  ;;  %1863 = vrot.lane.b32.xlu0 %v7439_v50, %s5677_s15  ;;  %v7574_v21 = vpop.permute.xlu1 %1033  ;;  %v4826_v34 = vpop.f32.mrb[4].mxu0  ;;  %4950 = vmatprep.subr.bf16.mxu1 %v2909_v15  ;;  %v7602_v13 = vsel %vm520_vm0, %v10635_v27, %v1593_v2  ;;  %v7673_v63 = vld [vmem:[%s5982_s13 + $0x70] sm:$0xff] }
 0x1b3   : > { %10631 = vst [vmem:[#allocation97_spill] sm:$0xff] %v7574_v21  ;;  %v2413_v35 = vpop.f32.mrb[5].mxu0  ;;  %v5415_v21 = vld [vmem:[%s5976_s28 + $0x30] sm:$0xff]  ;;  %10650 = vst [vmem:[#allocation110_spill] sm:$0xff] %v7673_v63 }
 0x1b4   : > { %1803 = vrot.lane.b32.xlu1 %v7563_v0, %s5677_s15  ;;  %v4827_v19 = vpop.f32.mrb[6].mxu0 }
 0x1b5   : > { %v7580_v55 = vpop.permute.xlu0 %939  ;;  %v2911_v41 = vpack.c.bf16 %v4827_v19, %v4826_v34  ;;  %v2416_v23 = vpop.f32.mrb[7].mxu0  ;;  %4951 = vmatpush3.bf16.msra.mxu1 %v2909_v15  ;;  %v2297_v34 = vmul.f32 %v5415_v21, %v7429_v26  ;;  %v5416_v15 = vld [vmem:[%s5976_s28 + $0x38] sm:$0xff] }
 0x1b6   : > { %10632 = vst [vmem:[#allocation98_spill] sm:$0xff] %v7580_v55  ;;  %1941 = vrot.lane.b32.xlu0 %v7480_v38, %s5676_s29  ;;  %v7590_v48 = vpop.permute.xlu1 %1037  ;;  %v2910_v20 = vpack.c.bf16 %v2416_v23, %v2413_v35  ;;  %v2298_v54 = vmul.f32 %v5416_v15, %v7433_v14  ;;  %v1704_v35 = vadd.f32 %v1688_v10, %v7586_v7  ;;  %v5417_v23 = vld [vmem:[%s5976_s28 + $0x40] sm:$0xff]  ;;  %v5418_v15 = vld [vmem:[%s5976_s28 + $0x48] sm:$0xff] }
 0x1b7   : > { %10634 = vst [vmem:[#allocation99_spill] sm:$0xff] %v7590_v48  ;;  %4933 = vmatmul.mubr.bf16.gmra.mrb[112].mxu0 %v2308_v61  ;;  %v2299_v60 = vmul.f32 %v5417_v23, %v7443_v52  ;;  %v2300_v43 = vmul.f32 %v5418_v15, %v7448_v42  ;;  %v10637_v48 = vld [vmem:[#allocation50_spill] sm:$0xff] }
 0x1b8   : > { %1947 = vrot.lane.b32.xlu1 %v7525_v62, %s5676_s29  ;;  %4952 = vmatprep.subr.bf16.mxu1 %v2910_v20  ;;  %v7620_v23 = vadd.f32 %v1704_v35, %v7602_v13  ;;  %v7678_v62 = vld [vmem:[%s5982_s13 + $0x78] sm:$0xff] }
 0x1b9   : > { %v7605_v61 = vpop.permute.xlu0 %943  ;;  %4953 = vmatpush3.bf16.msra.mxu1 %v2910_v20  ;;  %4936 = vmatprep.mubr.bf16.mxu0 %v2309_v17  ;;  %v2310_v20 = vpack.c.bf16 %v2298_v54, %v2297_v34  ;;  %v10639_v17 = vld [vmem:[#allocation58_spill] sm:$0xff]  ;;  %v10642_v34 = vrot.slane %v7429_v26, 7  ;;  %v2311_v50 = vpack.c.bf16 %v2300_v43, %v2299_v60  ;;  %v495_v43 = vrot.slane %v7376_v22, 4  ;;  %10651 = vst [vmem:[#allocation111_spill] sm:$0xff] %v7678_v62 }
 0x1ba   : > { %10636 = vst [vmem:[#allocation100_spill] sm:$0xff] %v7605_v61  ;;  %1403 = vrot.lane.b32.xlu0 %v10637_v48, %s5677_s15  ;;  %v7615_v27 = vpop.permute.xlu1 %1041  ;;  %v4830_v10 = vpop.f32.mrb[8].mxu0  ;;  %4954 = vmatprep.subr.bf16.mxu1 %v2911_v41 }
 0x1bb   : > { %10638 = vst [vmem:[#allocation101_spill] sm:$0xff] %v7615_v27  ;;  %v2429_v47 = vpop.f32.mrb[9].mxu0  ;;  %v10641_v27 = vrot.slane %v7433_v14, 1  ;;  %v1660_v54 = vsel %vm648_vm1, %v1640_v39, %v10642_v34 }
 0x1bc   : > { %1409 = vrot.lane.b32.xlu1 %v10639_v17, %s5677_s15  ;;  %v4831_v19 = vpop.f32.mrb[10].mxu0 }
 0x1bd   : > { %v7622_v21 = vpop.permute.xlu0 %947  ;;  %v2913_v15 = vpack.c.bf16 %v4831_v19, %v4830_v10  ;;  %v2432_v61 = vpop.f32.mrb[11].mxu0  ;;  %4955 = vmatpush3.bf16.msra.mxu1 %v2911_v41  ;;  %v7628_v55 = vsel %vm520_vm0, %v1593_v2, %v10641_v27  ;;  %v7640_v41 = vsub.f32 %v7457_v11, %v7470_v8  ;;  %v5419_v2 = vld [vmem:[%s5976_s28 + $0x50] sm:$0xff]  ;;  %v5420_v10 = vld [vmem:[%s5976_s28 + $0x58] sm:$0xff]  ;;  %v5421_v11 = vld [vmem:[%s5976_s28 + $0x60] sm:$0xff] }
 0x1be   : > { %10640 = vst [vmem:[#allocation102_spill] sm:$0xff] %v7622_v21  ;;  %1751 = vrot.lane.b32.xlu0 %v7418_v18, %s5676_s29  ;;  %v7636_v35 = vpop.permute.xlu1 %1285  ;;  %v2912_v19 = vpack.c.bf16 %v2432_v61, %v2429_v47  ;;  %v2301_v27 = vmul.f32 %v5419_v2, %v7484_v32  ;;  %v2302_v39 = vmul.f32 %v5420_v10, %v7489_v40  ;;  %v5422_v47 = vld [vmem:[%s5976_s28 + $0x68] sm:$0xff]  ;;  %v1689_v10 = vmul.f32 2.0, %v7429_v26 }
 0x1bf   : > { %10643 = vst [vmem:[#allocation103_spill] sm:$0xff] %v7636_v35  ;;  %10644 = vst [vmem:[#allocation104_spill] sm:$0xff] %v7640_v41  ;;  %4937 = vmatmul.mubr.bf16.gmra.mrb[116].mxu0 %v2310_v20  ;;  %v7649_v18 = vsub.f32 %v1660_v54, %v7628_v55  ;;  %v2303_v8 = vmul.f32 %v5421_v11, %v7500_v57  ;;  %v2304_v61 = vmul.f32 %v5422_v47, %v7505_v49  ;;  %v5424_v35 = vld [vmem:[%s5976_s28 + $0x70] sm:$0xff] }
 0x1c0   : > { %1757 = vrot.lane.b32.xlu1 %v7620_v23, %s5676_s29  ;;  %4956 = vmatprep.subr.bf16.mxu1 %v2912_v19  ;;  %v2305_v9 = vmul.f32 %v5424_v35, %v7673_v63 }
 0x1c1   : > { %10645 = vst [vmem:[#allocation105_spill] sm:$0xff] %v7649_v18  ;;  %v7651_v60 = vpop.permute.xlu0 %951  ;;  %4957 = vmatpush3.bf16.msra.mxu1 %v2912_v19  ;;  %4940 = vmatprep.mubr.bf16.mxu0 %v2311_v50  ;;  %v2312_v19 = vpack.c.bf16 %v2302_v39, %v2301_v27  ;;  %v2313_v21 = vpack.c.bf16 %v2304_v61, %v2303_v8  ;;  %v10652_v8 = vld [vmem:[#allocation22_spill] sm:$0xff] }
 0x1c2   : > { %10646 = vst [vmem:[#allocation106_spill] sm:$0xff] %v7651_v60  ;;  %1865 = vrot.lane.b32.xlu0 %v7640_v41, %s5677_s15  ;;  %v7660_v20 = vpop.permute.xlu1 %1289  ;;  %v4834_v34 = vpop.f32.mrb[12].mxu0  ;;  %4958 = vmatprep.subr.bf16.mxu1 %v2913_v15 }
 0x1c3   : > { %10647 = vst [vmem:[#allocation107_spill] sm:$0xff] %v7660_v20  ;;  %v2445_v2 = vpop.f32.mrb[13].mxu0  ;;  %v496_v20 = vadd.f32 %v495_v43, %v7376_v22  ;;  %v1705_v22 = vadd.f32 %v1689_v10, %v1660_v54 }
 0x1c4   : > { %1871 = vrot.lane.b32.xlu1 %v7649_v18, %s5677_s15  ;;  %v4835_v50 = vpop.f32.mrb[14].mxu0 }
 0x1c5   : > { %v7665_v11 = vpop.permute.xlu0 %955  ;;  %v2915_v47 = vpack.c.bf16 %v4835_v50, %v4834_v34  ;;  %v2448_v60 = vpop.f32.mrb[15].mxu0  ;;  %4959 = vmatpush3.bf16.msra.mxu1 %v2913_v15  ;;  %v5426_v34 = vld [vmem:[%s5976_s28 + $0x78] sm:$0xff]  ;;  %v497_v61 = vrot.slane %v496_v20, 2  ;;  %v7693_v54 = vadd.f32 %v1705_v22, %v7628_v55  ;;  %v7695_v50 = vld [vmem:[#allocation8 + $0x8] sm:$0xff]   ;;  %s5597_s28 = scalar_lea.vmem %s5596_s7, 256 }
 0x1c6   : > { %10648 = vst [vmem:[#allocation108_spill] sm:$0xff] %v7665_v11  ;;  %1339 = vrot.lane.b32.xlu0 %v7262_v3, %s5677_s15  ;;  %v7670_v27 = vpop.permute.xlu1 %1293  ;;  %v2914_v39 = vpack.c.bf16 %v2448_v60, %v2445_v2  ;;  %v2306_v15 = vmul.f32 %v5426_v34, %v7678_v62  ;;  %10655 = vst [vmem:[#allocation113_spill] sm:$0xff] %v7695_v50  ;;  %v10664_v11 = vrot.slane %v7433_v14, 1  ;;  %v10680_v62 = vlaneseq  ;;  %p5599_p9 = scmp.lt.s32.totalorder %s5597_s28, %s5591_s9 }
 0x1c7   : > { %10649 = vst [vmem:[#allocation109_spill] sm:$0xff] %v7670_v27  ;;  %4941 = vmatmul.mubr.bf16.gmra.mrb[120].mxu0 %v2312_v19  ;;  %v10693_v27 = vld [vmem:[#allocation68_spill] sm:$0xff] }
 0x1c8   : > { %1345 = vrot.lane.b32.xlu1 %v10652_v8, %s5677_s15  ;;  %4960 = vmatprep.subr.bf16.mxu1 %v2914_v39  ;;  %v2314_v2 = vpack.c.bf16 %v2306_v15, %v2305_v9  ;;  %v7699_v8 = vld [vmem:[#allocation8 + $0x10] sm:$0xff]   ;;  %p5600_p10 = por %p5599_p9, %p5598_p2 }
 0x1c9   : > { %v7684_v3 = vpop.permute.xlu0 %959  ;;  %4961 = vmatpush3.bf16.msra.mxu1 %v2914_v39  ;;  %4944 = vmatprep.mubr.bf16.mxu0 %v2313_v21  ;;  %v498_v21 = vadd.f32 %v497_v61, %v496_v20  ;;  %10657 = vst [vmem:[#allocation115_spill] sm:$0xff] %v7699_v8  ;;  %v1690_v20 = vmul.f32 2.0, %v7433_v14 }
 0x1ca   : > { %10653 = vst [vmem:[#allocation22_spill] sm:$0xff] %v7684_v3  ;;  %1483 = vrot.lane.b32.xlu0 %v10637_v48, %s5676_s29  ;;  %v7688_v60 = vpop.permute.xlu1 %1297  ;;  %v4838_v35 = vpop.f32.mrb[16].mxu0  ;;  %4962 = vmatprep.subr.bf16.mxu1 %v2915_v47  ;;  %v1642_v3 = vrot.slane %v7433_v14, 7  ;;  %p5601_p1 = pnand %p5600_p10, %p5594_p6 }
 0x1cb   : > { %10654 = vst [vmem:[#allocation112_spill] sm:$0xff] %v7688_v60  ;;  %v2461_v43 = vpop.f32.mrb[17].mxu0  ;;  %v499_v55 = vrot.slane %v498_v21, 1  ;;  %v10666_v60 = vld [vmem:[#allocation56_spill] sm:$0xff] }
 0x1cc   : > { %1489 = vrot.lane.b32.xlu1 %v10639_v17, %s5676_s29  ;;  %v4839_v19 = vpop.f32.mrb[18].mxu0 }
 0x1cd   : > { %v7697_v10 = vpop.permute.xlu0 %1011  ;;  %v2917_v39 = vpack.c.bf16 %v4839_v19, %v4838_v35  ;;  %v2464_v34 = vpop.f32.mrb[19].mxu0  ;;  %4963 = vmatpush3.bf16.msra.mxu1 %v2915_v47  ;;  %v500_v47 = vadd.f32 %v499_v55, %v498_v21  ;;  %v10660_v35 = vrot.slane %v7429_v26, 7 }
 0x1ce   : > { %10656 = vst [vmem:[#allocation114_spill] sm:$0xff] %v7697_v10  ;;  %1801 = vrot.lane.b32.xlu0 %v7496_v31, %s5677_s15  ;;  %v7704_v9 = vpop.permute.xlu1 %1301  ;;  %v2916_v15 = vpack.c.bf16 %v2464_v34, %v2461_v43  ;;  %v1595_v31 = vrot.slane %v7443_v52, 1  ;;  %v7726_v34 = vld [vmem:[#allocation8 + $0x18] sm:$0xff]   ;;  %v7806_v10 = vand.u32 127, %v10680_v62 }
 0x1cf   : > { %10658 = vst [vmem:[#allocation116_spill] sm:$0xff] %v7704_v9  ;;  %4945 = vmatmul.mubr.bf16.gmra.mrb[124].mxu0 %v2314_v2  ;;  %v7718_v61 = vsel %vm648_vm1, %v10660_v35, %v1642_v3  ;;  %5204 = vpush %v500_v47  ;;  %v10251_v47 = vrot.slane %v7448_v42, 1 }
 0x1d0   : > { %1807 = vrot.lane.b32.xlu1 %v7693_v54, %s5677_s15  ;;  %4965 = vmatmul.mubr.bf16.vlgmr.msra.gmra.mrb[0].mxu1 %v7695_v50  ;;  %10662 = vst [vmem:[#allocation119_spill] sm:$0xff] %v7726_v34  ;;  %v1706_v26 = vadd.f32 %v1690_v20, %v7718_v61  ;;  %10681 = vst [vmem:[#allocation132_spill] sm:$0xff] %v7806_v10 }
 0x1d1   : > { %v7710_v22 = vpop.permute.xlu0 %1015  ;;  %4980 = vmatprep.subr.bf16.mxu1 %v2916_v15  ;;  %4968 = vmatprep.mubr.bf16.mxu1 %v7699_v8 }
 0x1d2   : > { %10659 = vst [vmem:[#allocation117_spill] sm:$0xff] %v7710_v22  ;;  %1945 = vrot.lane.b32.xlu0 %v7640_v41, %s5676_s29  ;;  %v7722_v43 = vpop.permute.xlu1 %1305  ;;  %4981 = vmatpush3.bf16.msra.mxu1 %v2916_v15  ;;  %v4842_v2 = vpop.f32.mrb[20].mxu0  ;;  %v7735_v15 = vsel %vm520_vm0, %v10664_v11, %v1595_v31  ;;  %v7739_v41 = vld [vmem:[#allocation8 + $0x20] sm:$0xff]  }
 0x1d3   : > { %10661 = vst [vmem:[#allocation118_spill] sm:$0xff] %v7722_v43  ;;  %4982 = vmatprep.subr.bf16.mxu1 %v2917_v39  ;;  %v2477_v19 = vpop.f32.mrb[21].mxu0  ;;  %v10252_v43 = vrot.slane %v7443_v52, 7  ;;  %10665 = vst [vmem:[#allocation121_spill] sm:$0xff] %v7739_v41  ;;  %v7749_v14 = vadd.f32 %v1706_v26, %v7735_v15 }
 0x1d4   : > { %1951 = vrot.lane.b32.xlu1 %v7649_v18, %s5676_s29  ;;  %v4843_v21 = vpop.f32.mrb[22].mxu0 }
 0x1d5   : > { %v7729_v55 = vpop.permute.xlu0 %1019  ;;  %v2919_v35 = vpack.c.bf16 %v4843_v21, %v4842_v2  ;;  %v2480_v9 = vpop.f32.mrb[23].mxu0  ;;  %v10668_v2 = vld [vmem:[#allocation57_spill] sm:$0xff]  ;;  %v1609_v21 = vsel %vm520_vm0, %v1595_v31, %v10251_v47 }
 0x1d6   : > { %10663 = vst [vmem:[#allocation120_spill] sm:$0xff] %v7729_v55  ;;  %1407 = vrot.lane.b32.xlu0 %v10666_v60, %s5677_s15  ;;  %v7743_v20 = vpop.permute.xlu1 %1309  ;;  %v2918_v18 = vpack.c.bf16 %v2480_v9, %v2477_v19  ;;  %4983 = vmatpush3.bf16.msra.mxu1 %v2917_v39  ;;  %v1658_v39 = vsel %vm648_vm1, %v1642_v3, %v10252_v43  ;;  %v7774_v43 = vld [vmem:[#allocation8 + $0x28] sm:$0xff]  }
 0x1d7   : > { %10667 = vst [vmem:[#allocation122_spill] sm:$0xff] %v7743_v20  ;;  %v7768_v19 = vsub.f32 %v7586_v7, %v7602_v13  ;;  %v7772_v3 = vsub.f32 %v1658_v39, %v1609_v21 }
 0x1d8   : > { %1413 = vrot.lane.b32.xlu1 %v10668_v2, %s5677_s15  ;;  %4969 = vmatmul.mubr.bf16.gmra.mrb[4].mxu1 %v7726_v34 }
 0x1d9   : > { %v7751_v11 = vpop.permute.xlu0 %1023  ;;  %4984 = vmatprep.subr.bf16.mxu1 %v2918_v18  ;;  %4972 = vmatprep.mubr.bf16.mxu1 %v7739_v41  ;;  %10671 = vst [vmem:[#allocation125_spill] sm:$0xff] %v7768_v19  ;;  %10672 = vst [vmem:[#allocation126_spill] sm:$0xff] %v7772_v3 }
 0x1da   : > { %10669 = vst [vmem:[#allocation123_spill] sm:$0xff] %v7751_v11  ;;  %1755 = vrot.lane.b32.xlu0 %v7563_v0, %s5676_s29  ;;  %v7764_v9 = vpop.permute.xlu1 %1313  ;;  %4985 = vmatpush3.bf16.msra.mxu1 %v2918_v18  ;;  %v4846_v26 = vpop.f32.mrb[24].mxu0  ;;  %v7778_v11 = vld [vmem:[#allocation8 + $0x30] sm:$0xff]   ;;  %v1691_v18 = vmul.f32 2.0, %v7443_v52 }
 0x1db   : > { %10670 = vst [vmem:[#allocation124_spill] sm:$0xff] %v7764_v9  ;;  %4986 = vmatprep.subr.bf16.mxu1 %v2919_v35  ;;  %v2493_v31 = vpop.f32.mrb[25].mxu0 }
 0x1dc   : > { %1761 = vrot.lane.b32.xlu1 %v7749_v14, %s5676_s29  ;;  %v4847_v47 = vpop.f32.mrb[26].mxu0  ;;  %v1707_v55 = vadd.f32 %v1691_v18, %v1658_v39 }
 0x1dd   : > { %v7776_v20 = vpop.permute.xlu0 %1027  ;;  %v2921_v0 = vpack.c.bf16 %v4847_v47, %v4846_v26  ;;  %v2496_v9 = vpop.f32.mrb[27].mxu0  ;;  %v10677_v26 = vld [vmem:[#allocation21_spill] sm:$0xff] }
 0x1de   : > { %10673 = vst [vmem:[#allocation127_spill] sm:$0xff] %v7776_v20  ;;  %1869 = vrot.lane.b32.xlu0 %v7768_v19, %s5677_s15  ;;  %v7782_v7 = vpop.permute.xlu1 %1333  ;;  %v2920_v13 = vpack.c.bf16 %v2496_v9, %v2493_v31  ;;  %4987 = vmatpush3.bf16.msra.mxu1 %v2919_v35  ;;  %v7797_v20 = vld [vmem:[#allocation8 + $0x38] sm:$0xff]   ;;  %v7811_v39 = vadd.f32 %v1707_v55, %v1609_v21  ;;  %v7825_v55 = vadd.s32 4294967295, %v7806_v10 }
 0x1df   : > { %10674 = vst [vmem:[#allocation128_spill] sm:$0xff] %v7782_v7  ;;  %v10706_v7 = vld [vmem:[#allocation29_spill] sm:$0xff] }
 0x1e0   : > { %1875 = vrot.lane.b32.xlu1 %v7772_v3, %s5677_s15  ;;  %4973 = vmatmul.mubr.bf16.gmra.mrb[8].mxu1 %v7774_v43  ;;  %10682 = vst [vmem:[#allocation133_spill] sm:$0xff] %v7811_v39  ;;  %vm896_vm5 = vcmp.ge.s32.totalorder %v7825_v55, 0 }
 0x1e1   : > { %v7788_v48 = vpop.permute.xlu0 %1031  ;;  %4988 = vmatprep.subr.bf16.mxu1 %v2920_v13  ;;  %4976 = vmatprep.mubr.bf16.mxu1 %v7778_v11 }
 0x1e2   : > { %10675 = vst [vmem:[#allocation129_spill] sm:$0xff] %v7788_v48  ;;  %1343 = vrot.lane.b32.xlu0 %v7289_v29, %s5677_s15  ;;  %v7793_v47 = vpop.permute.xlu1 %1397  ;;  %4989 = vmatpush3.bf16.msra.mxu1 %v2920_v13  ;;  %v4850_v9 = vpop.f32.mrb[28].mxu0 }
 0x1e3   : > { %10676 = vst [vmem:[#allocation130_spill] sm:$0xff] %v7793_v47  ;;  %4990 = vmatprep.subr.bf16.mxu1 %v2921_v0  ;;  %v2509_v35 = vpop.f32.mrb[29].mxu0 }
 0x1e4   : > { %1349 = vrot.lane.b32.xlu1 %v10677_v26, %s5677_s15  ;;  %v4851_v31 = vpop.f32.mrb[30].mxu0 }
 0x1e5   : > { %v7799_v48 = vpop.permute.xlu0 %1035  ;;  %v2923_v17 = vpack.c.bf16 %v4851_v31, %v4850_v9  ;;  %v2512_v22 = vpop.f32.mrb[31].mxu0  ;;  %v10684_v9 = vld [vmem:[#allocation60_spill] sm:$0xff]  ;;  %v1692_v31 = vmul.f32 2.0, %v7448_v42 }
 0x1e6   : > { %10678 = vst [vmem:[#allocation21_spill] sm:$0xff] %v7799_v48  ;;  %1487 = vrot.lane.b32.xlu0 %v10666_v60, %s5676_s29  ;;  %v7803_v29 = vpop.permute.xlu1 %1475  ;;  %v2922_v13 = vpack.c.bf16 %v2512_v22, %v2509_v35  ;;  %4991 = vmatpush3.bf16.msra.mxu1 %v2921_v0  ;;  %v7822_v0 = vadd.s32 1, %v7806_v10  ;;  %v10688_v60 = vrot.slane %v7443_v52, 7 }
 0x1e7   : > { %10679 = vst [vmem:[#allocation131_spill] sm:$0xff] %v7803_v29  ;;  %v10702_v29 = vld [vmem:[#allocation73_spill] sm:$0xff] }
 0x1e8   : > { %1493 = vrot.lane.b32.xlu1 %v10668_v2, %s5676_s29  ;;  %4977 = vmatmul.mubr.bf16.gmra.mrb[12].mxu1 %v7797_v20  ;;  %vm845_vm4 = vcmp.lt.s32.totalorder %v7822_v0, 128 }
 0x1e9   : > { %v7813_v18 = vpop.permute.xlu0 %1039  ;;  %4992 = vmatprep.subr.bf16.mxu1 %v2922_v13  ;;  %4996 = vmatprep.mubr.bf16.mxu1 %v10684_v9 }
 0x1ea   : > { %10683 = vst [vmem:[#allocation134_spill] sm:$0xff] %v7813_v18  ;;  %1805 = vrot.lane.b32.xlu0 %v7620_v23, %s5677_s15  ;;  %v7819_v22 = vpop.permute.xlu1 %1859  ;;  %4993 = vmatpush3.bf16.msra.mxu1 %v2922_v13  ;;  %v4854_v62 = vpop.f32.mrb[32].mxu0  ;;  %v1597_v13 = vrot.slane %v7484_v32, 1  ;;  %v10687_v18 = vrot.slane %v7448_v42, 7 }
 0x1eb   : > { %10685 = vst [vmem:[#allocation60_spill] sm:$0xff] %v7819_v22  ;;  %4994 = vmatprep.subr.bf16.mxu1 %v2923_v17  ;;  %v2525_v21 = vpop.f32.mrb[33].mxu0  ;;  %v10692_v22 = vld [vmem:[#allocation67_spill] sm:$0xff] }
 0x1ec   : > { %1811 = vrot.lane.b32.xlu1 %v7811_v39, %s5677_s15  ;;  %v4855_v35 = vpop.f32.mrb[34].mxu0  ;;  %v7839_v10 = vsel %vm648_vm1, %v10688_v60, %v10687_v18  ;;  %v7851_v52 = vmul.f32 2.0, %v10692_v22  ;;  %v7854_v60 = vmul.f32 2.0, %v10693_v27  ;;  %v10694_v18 = vld [vmem:[#allocation69_spill] sm:$0xff]  ;;  %v10697_v22 = vrot.slane %v7448_v42, 1 }
 0x1ed   : > { %v7830_v9 = vpop.permute.xlu0 %1283  ;;  %v2925_v23 = vpack.c.bf16 %v4855_v35, %v4854_v62  ;;  %v2528_v26 = vpop.f32.mrb[35].mxu0  ;;  %10689 = vst [vmem:[#allocation136_spill] sm:$0xff] %v7839_v10  ;;  %v10691_v62 = vld [vmem:[#allocation26_spill] sm:$0xff]  ;;  %v7857_v63 = vmul.f32 2.0, %v10694_v18 }
 0x1ee   : > { %10686 = vst [vmem:[#allocation135_spill] sm:$0xff] %v7830_v9  ;;  %1949 = vrot.lane.b32.xlu0 %v7768_v19, %s5676_s29  ;;  %v7843_v48 = vpop.permute.xlu1 %1335  ;;  %v2924_v2 = vpack.c.bf16 %v2528_v26, %v2525_v21  ;;  %4995 = vmatpush3.bf16.msra.mxu1 %v2923_v17  ;;  %v7848_v35 = vmul.f32 2.0, %v10691_v62  ;;  %v1708_v17 = vadd.f32 %v1692_v31, %v7839_v10  ;;  %v10695_v26 = vld [vmem:[#allocation70_spill] sm:$0xff]  ;;  %v10700_v31 = vld [vmem:[#allocation72_spill] sm:$0xff] }
 0x1ef   : > { %10690 = vst [vmem:[#allocation137_spill] sm:$0xff] %v7843_v48  ;;  %v7863_v21 = vmul.f32 2.0, %v10695_v26  ;;  %v7872_v27 = vsel %vm520_vm0, %v10697_v22, %v1597_v13  ;;  %v7880_v26 = vmul.f32 2.0, %v10700_v31  ;;  %v10704_v9 = vld [vmem:[#allocation28_spill] sm:$0xff]  ;;  %v10708_v19 = vld [vmem:[#allocation38_spill] sm:$0xff]  ;;  %v10709_v31 = vld [vmem:[#allocation61_spill] sm:$0xff] }
 0x1f0   : > { %1955 = vrot.lane.b32.xlu1 %v7772_v3, %s5676_s29  ;;  %5012 = vmatprep.subr.bf16.mxu1 %v2924_v2  ;;  %10698 = vst [vmem:[#allocation67_spill] sm:$0xff] %v7872_v27  ;;  %v10699_v3 = vld [vmem:[#allocation71_spill] sm:$0xff]  ;;  %v7886_v47 = vmul.f32 2.0, %v10704_v9 }
 0x1f1   : > { %v7865_v62 = vpop.permute.xlu0 %1287  ;;  %4997 = vmatmul.mubr.bf16.vlgmr.msra.gmra.mrb[16].mxu1 %v7695_v50  ;;  %v7877_v48 = vmul.f32 2.0, %v10699_v3  ;;  %10701 = vst [vmem:[#allocation68_spill] sm:$0xff] %v7880_v26  ;;  %v7895_v3 = vsel %vm845_vm4, %v10708_v19, 0.0  ;;  %v10716_v50 = vld [vmem:[#allocation78_spill] sm:$0xff] }
 0x1f2   : > { %10696 = vst [vmem:[#allocation26_spill] sm:$0xff] %v7865_v62  ;;  %v7883_v62 = vmul.f32 2.0, %v10702_v29  ;;  %10705 = vst [vmem:[#allocation70_spill] sm:$0xff] %v7886_v47  ;;  %1411 = vrot.lane.b32.xlu0 %v10706_v7, %s5677_s15  ;;  %v7890_v22 = vpop.permute.xlu1 %1479  ;;  %5013 = vmatpush3.bf16.msra.mxu1 %v2924_v2  ;;  %v4858_v18 = vpop.f32.mrb[36].mxu0  ;;  %v7900_v29 = vsel %vm845_vm4, %v10709_v31, 0.0  ;;  %v10712_v47 = vld [vmem:[#allocation77_spill] sm:$0xff] }
 0x1f3   : > { %10707 = vst [vmem:[#allocation71_spill] sm:$0xff] %v7890_v22  ;;  %v7906_v39 = vmul.f32 2.0, %v10712_v47  ;;  %5014 = vmatprep.subr.bf16.mxu1 %v2925_v23  ;;  %v2541_v22 = vpop.f32.mrb[37].mxu0  ;;  %5000 = vmatprep.mubr.bf16.mxu1 %v7699_v8  ;;  %v10714_v2 = vld [vmem:[#allocation48_spill] sm:$0xff]  ;;  %v7917_v31 = vsel %vm845_vm4, %v7213_v58, 0.0  ;;  %v10720_v8 = vld [vmem:[#allocation43_spill] sm:$0xff] }
 0x1f4   : > { %10703 = vst [vmem:[#allocation69_spill] sm:$0xff] %v7883_v62  ;;  %v10710_v62 = vld [vmem:[#allocation76_spill] sm:$0xff]  ;;  %v7912_v19 = vsel %vm845_vm4, %v10714_v2, 0.0  ;;  %10715 = vst [vmem:[#allocation28_spill] sm:$0xff] %v7917_v31  ;;  %v7930_v2 = vsel %vm845_vm4, %v10720_v8, 0.0  ;;  %v10722_v31 = vrot.slane %v7489_v40, 1 }
 0x1f5   : > { %v7903_v9 = vmul.f32 2.0, %v10710_v62  ;;  %10713 = vst [vmem:[#allocation73_spill] sm:$0xff] %v7906_v39  ;;  %v7920_v62 = vmul.f32 2.0, %v10716_v50  ;;  %v10718_v47 = vld [vmem:[#allocation24_spill] sm:$0xff]  ;;  %v4859_v39 = vpop.f32.mrb[38].mxu0  ;;  %v7932_v12 = vpop.permute.xlu0 %1291  ;;  %v899_v8 = vsel %vm896_vm5, %v7345_v36, 0.0 }
 0x1f6   : > { %1417 = vrot.lane.b32.xlu1 %v10718_v47, %s5677_s15  ;;  %10721 = vst [vmem:[#allocation76_spill] sm:$0xff] %v7932_v12  ;;  %v2927_v38 = vpack.c.bf16 %v4859_v39, %v4858_v18  ;;  %v2544_v58 = vpop.f32.mrb[39].mxu0  ;;  %v7938_v50 = vsel %vm520_vm0, %v1597_v13, %v10722_v31  ;;  %v10725_v39 = vld [vmem:[#allocation79_spill] sm:$0xff]  ;;  %1759 = vrot.lane.b32.xlu0 %v7693_v54, %s5676_s29  ;;  %v7956_v13 = vpop.permute.xlu1 %1749  ;;  %v7970_v36 = vsel %vm845_vm4, %v7255_v45, 0.0  ;;  %v7975_v54 = vsel %vm845_vm4, %v7293_v59, 0.0 }
 0x1f7   : > { %10711 = vst [vmem:[#allocation72_spill] sm:$0xff] %v7903_v9  ;;  %10717 = vst [vmem:[#allocation38_spill] sm:$0xff] %v7920_v62  ;;  %v7925_v9 = vadd.f32 %v1708_v17, %v7872_v27  ;;  %v10723_v62 = vrot.slane %v7484_v32, 7  ;;  %v10724_v17 = vrot.slane %v7448_v42, 7  ;;  %v7952_v18 = vmul.f32 2.0, %v10725_v39  ;;  %5015 = vmatpush3.bf16.msra.mxu1 %v2925_v23  ;;  %v10732_v39 = vld [vmem:[#allocation35_spill] sm:$0xff] }
 0x1f8   : > { %10727 = vst [vmem:[#allocation48_spill] sm:$0xff] %v7956_v13  ;;  %v7960_v31 = vsub.f32 %v7718_v61, %v7735_v15  ;;  %v2926_v42 = vpack.c.bf16 %v2544_v58, %v2541_v22  ;;  %10730 = vst [vmem:[#allocation43_spill] sm:$0xff] %v7970_v36  ;;  %v7978_v61 = vmul.f32 2.0, %v10732_v39  ;;  %v10734_v15 = vld [vmem:[#allocation51_spill] sm:$0xff]  ;;  %v10735_v22 = vld [vmem:[#allocation44_spill] sm:$0xff]  ;;  %v915_v36 = vsub.f32 %v7900_v29, %v899_v8 }
 0x1f9   : > { %10719 = vst [vmem:[#allocation61_spill] sm:$0xff] %v7925_v9  ;;  %v7946_v10 = vsel %vm648_vm1, %v10724_v17, %v10723_v62  ;;  %10726 = vst [vmem:[#allocation77_spill] sm:$0xff] %v7952_v18  ;;  %v10729_v62 = vld [vmem:[#allocation49_spill] sm:$0xff]  ;;  %v852_v23 = vsel %vm845_vm4, %v10734_v15, 0.0  ;;  %v900_v58 = vsel %vm896_vm5, %v10735_v22, 0.0  ;;  %v10738_v39 = vld [vmem:[#allocation54_spill] sm:$0xff]  ;;  %v8005_v12 = vpop.permute.xlu0 %1295  ;;  %5001 = vmatmul.mubr.bf16.gmra.mrb[20].mxu1 %v7726_v34 }
 0x1fa   : > { %10728 = vst [vmem:[#allocation78_spill] sm:$0xff] %v7960_v31  ;;  %v7965_v17 = vsel %vm845_vm4, %v10729_v62, 0.0  ;;  %10731 = vst [vmem:[#allocation79_spill] sm:$0xff] %v7975_v54  ;;  %v10736_v62 = vld [vmem:[#allocation65_spill] sm:$0xff]  ;;  %1765 = vrot.lane.b32.xlu1 %v7925_v9, %s5676_s29  ;;  %5016 = vmatprep.subr.bf16.mxu1 %v2926_v42  ;;  %v7993_v59 = vsub.f32 %v7946_v10, %v7938_v50  ;;  %v854_v15 = vsel %vm845_vm4, %v10738_v39, 0.0  ;;  %v10743_v9 = vld [vmem:[#allocation55_spill] sm:$0xff]  ;;  %v8022_v8 = vpop.permute.xlu1 %1797 }
 0x1fb   : > { %10733 = vst [vmem:[#allocation49_spill] sm:$0xff] %v7978_v61  ;;  %v902_v45 = vsel %vm896_vm5, %v10736_v62, 0.0  ;;  %v10739_v54 = vld [vmem:[#allocation45_spill] sm:$0xff]  ;;  %v10740_v61 = vld [vmem:[#allocation64_spill] sm:$0xff]  ;;  %10741 = vst [vmem:[#allocation51_spill] sm:$0xff] %v8005_v12  ;;  %v906_v39 = vsel %vm896_vm5, %v10743_v9, 0.0  ;;  %1873 = vrot.lane.b32.xlu0 %v7960_v31, %s5677_s15  ;;  %5017 = vmatpush3.bf16.msra.mxu1 %v2926_v42  ;;  %v916_v9 = vsub.f32 %v7895_v3, %v900_v58 }
 0x1fc   : > { %10737 = vst [vmem:[#allocation35_spill] sm:$0xff] %v7993_v59  ;;  %v856_v22 = vsel %vm845_vm4, %v10739_v54, 0.0  ;;  %v904_v62 = vsel %vm896_vm5, %v10740_v61, 0.0  ;;  %v10742_v18 = vld [vmem:[#allocation41_spill] sm:$0xff]  ;;  %v908_v54 = vsel %vm896_vm5, %v7204_v46, 0.0  ;;  %v910_v29 = vsel %vm896_vm5, %v7245_v33, 0.0  ;;  %5018 = vmatprep.subr.bf16.mxu1 %v2927_v38  ;;  %5004 = vmatprep.mubr.bf16.mxu1 %v7739_v41 }
 0x1fd   : > { %v858_v13 = vsel %vm845_vm4, %v10742_v18, 0.0  ;;  %10744 = vst [vmem:[#allocation44_spill] sm:$0xff] %v8022_v8  ;;  %v4862_v61 = vpop.f32.mrb[40].mxu0  ;;  %v10745_v18 = vld [vmem:[#allocation23_spill] sm:$0xff]  ;;  %v918_v34 = vsub.f32 %v7930_v2, %v902_v45  ;;  %v912_v46 = vsel %vm896_vm5, %v7259_v51, 0.0  ;;  %v920_v27 = vsub.f32 %v852_v23, %v904_v62  ;;  %v10747_v8 = vld [vmem:[#allocation36_spill] sm:$0xff]  ;;  %v8044_v26 = vpop.permute.xlu0 %1299 }
 0x1fe   : > { %v860_v12 = vsel %vm845_vm4, %v10745_v18, 0.0  ;;  %v2557_v33 = vpop.f32.mrb[41].mxu0  ;;  %v8036_v42 = vsel %vm845_vm4, %v7325_v56, 0.0  ;;  %v8039_v18 = vmul.f32 2.0, %v10747_v8  ;;  %1879 = vrot.lane.b32.xlu1 %v7993_v59, %s5677_s15  ;;  %v1693_v2 = vmul.f32 2.0, %v7484_v32  ;;  %10749 = vst [vmem:[#allocation45_spill] sm:$0xff] %v8044_v26 }
 0x1ff   : > { %10746 = vst [vmem:[#allocation65_spill] sm:$0xff] %v8036_v42  ;;  %v4863_v3 = vpop.f32.mrb[42].mxu0  ;;  %v922_v51 = vsub.f32 %v854_v15, %v906_v39  ;;  %v924_v58 = vsub.f32 %v856_v22, %v908_v54  ;;  %v926_v45 = vsub.f32 %v858_v13, %v910_v29  ;;  %v10750_v41 = vld [vmem:[#allocation53_spill] sm:$0xff]  ;;  %v928_v8 = vsub.f32 %v860_v12, %v912_v46  ;;  %v10751_v13 = vld [vmem:[#allocation30_spill] sm:$0xff] }
 0x200   : > { %10748 = vst [vmem:[#allocation54_spill] sm:$0xff] %v8039_v18  ;;  %v2929_v23 = vpack.c.bf16 %v4863_v3, %v4862_v61  ;;  %v2560_v62 = vpop.f32.mrb[43].mxu0  ;;  %v8049_v56 = vsel %vm845_vm4, %v10750_v41, 0.0  ;;  %v8051_v42 = vand.u32 2147483647, %v915_v36  ;;  %1347 = vrot.lane.b32.xlu0 %v7310_v1, %s5677_s15  ;;  %v8055_v18 = vpop.permute.xlu1 %1939  ;;  %5019 = vmatpush3.bf16.msra.mxu1 %v2927_v38  ;;  %v8060_v22 = vsel %vm845_vm4, %v10751_v13, 0.0  ;;  %s5205_s27 = spop %5204 }
 0x201   : > { %v2928_v15 = vpack.c.bf16 %v2560_v62, %v2557_v33  ;;  %10752 = vst [vmem:[#allocation64_spill] sm:$0xff] %v8060_v22  ;;  %v8062_v39 = vand.u32 2147483647, %v916_v9  ;;  %v8064_v54 = vand.u32 2147483647, %v918_v34  ;;  %v8067_v12 = vmul.f32 2.0, %v10553_v25  ;;  %v8086_v61 = vpop.permute.xlu0 %1303  ;;  %5005 = vmatmul.mubr.bf16.gmra.mrb[24].mxu1 %v7774_v43 }
 0x202   : > { %v8069_v41 = vand.u32 2147483647, %v920_v27  ;;  %v964_v1 = vsel %vm896_vm5, %v7307_v37, 0.0  ;;  %v966_v38 = vsel %vm896_vm5, %v7329_v24, 0.0  ;;  %v10754_v36 = vld [vmem:[#allocation63_spill] sm:$0xff]  ;;  %v1709_v34 = vadd.f32 %v1693_v2, %v7946_v10  ;;  %10758 = vst [vmem:[#allocation53_spill] sm:$0xff] %v8086_v61  ;;  %5008 = vmatprep.mubr.bf16.mxu1 %v7778_v11 }
 0x203   : > { %10753 = vst [vmem:[#allocation41_spill] sm:$0xff] %v8067_v12  ;;  %1353 = vrot.lane.b32.xlu1 %v10754_v36, %s5677_s15  ;;  %5020 = vmatprep.subr.bf16.mxu1 %v2928_v15  ;;  %v8080_v29 = vand.u32 2147483647, %v922_v51  ;;  %v8082_v25 = vand.u32 2147483647, %v924_v58  ;;  %v901_v24 = vsel %vm896_vm5, %v7406_v53, 0.0  ;;  %v996_v53 = vadd.f32 %v7848_v35, %v964_v1 }
 0x204   : > { %v8084_v27 = vand.u32 2147483647, %v926_v45  ;;  %v8089_v37 = vand.u32 2147483647, %v928_v8  ;;  %v8095_v9 = vmul.f32 2.0, %v7198_v5  ;;  %v8098_v10 = vmul.f32 2.0, %v7253_v16  ;;  %1491 = vrot.lane.b32.xlu0 %v10706_v7, %s5676_s29  ;;  %v8102_v46 = vpop.permute.xlu1 %1337  ;;  %5021 = vmatpush3.bf16.msra.mxu1 %v2928_v15 }
 0x205   : > { %10755 = vst [vmem:[#allocation55_spill] sm:$0xff] %v8080_v29  ;;  %10756 = vst [vmem:[#allocation23_spill] sm:$0xff] %v8082_v25  ;;  %v4866_v33 = vpop.f32.mrb[44].mxu0  ;;  %v8107_v3 = vsel %vm896_vm5, %v7286_v6, 0.0  ;;  %v998_v5 = vadd.f32 %v7851_v52, %v966_v38  ;;  %v968_v16 = vsel %vm896_vm5, %v7339_v30, 0.0  ;;  %5022 = vmatprep.subr.bf16.mxu1 %v2929_v23  ;;  %v903_v51 = vsel %vm896_vm5, %v7420_v4, 0.0 }
 0x206   : > { %10757 = vst [vmem:[#allocation36_spill] sm:$0xff] %v8084_v27  ;;  %10759 = vst [vmem:[#allocation30_spill] sm:$0xff] %v8089_v37  ;;  %v2573_v2 = vpop.f32.mrb[45].mxu0  ;;  %v970_v6 = vsel %vm896_vm5, %v7368_v28, 0.0  ;;  %v8124_v52 = vadd.f32 %v1709_v34, %v7938_v50  ;;  %v1646_v30 = vrot.slane %v7489_v40, 7  ;;  %v917_v58 = vsub.f32 %v7912_v19, %v901_v24  ;;  %v10761_v45 = vld [vmem:[#allocation81_spill] sm:$0xff]  ;;  %v8134_v28 = vpop.permute.xlu0 %1307 }
 0x207   : > { %10760 = vst [vmem:[#allocation63_spill] sm:$0xff] %v8107_v3  ;;  %1497 = vrot.lane.b32.xlu1 %v10718_v47, %s5676_s29  ;;  %v4867_v35 = vpop.f32.mrb[46].mxu0  ;;  %v972_v62 = vsel %vm896_vm5, %v10761_v45, 0.0  ;;  %v10762_v4 = vld [vmem:[#allocation87_spill] sm:$0xff]  ;;  %10763 = vst [vmem:[#allocation81_spill] sm:$0xff] %v8134_v28  ;;  %v10765_v38 = vld [vmem:[#allocation82_spill] sm:$0xff] }
 0x208   : > { %v1044_v8 = vsel %vm845_vm4, %v10762_v4, 0.0  ;;  %v2931_v15 = vpack.c.bf16 %v4867_v35, %v4866_v33  ;;  %v2576_v13 = vpop.f32.mrb[47].mxu0  ;;  %v10764_v1 = vld [vmem:[#allocation27_spill] sm:$0xff]  ;;  %v974_v19 = vsel %vm896_vm5, %v10765_v38, 0.0  ;;  %v10766_v36 = vld [vmem:[#allocation90_spill] sm:$0xff]  ;;  %1809 = vrot.lane.b32.xlu0 %v7749_v14, %s5677_s15  ;;  %v8147_v24 = vpop.permute.xlu1 %1481  ;;  %5023 = vmatpush3.bf16.msra.mxu1 %v2929_v23  ;;  %v919_v33 = vsub.f32 %v7965_v17, %v903_v51  ;;  %v10782_v26 = vld [vmem:[#allocation93_spill] sm:$0xff] }
 0x209   : > { %v905_v50 = vsel %vm896_vm5, %v10764_v1, 0.0  ;;  %v1046_v34 = vsel %vm845_vm4, %v10766_v36, 0.0  ;;  %v2930_v45 = vpack.c.bf16 %v2576_v13, %v2573_v2  ;;  %v10767_v35 = vld [vmem:[#allocation83_spill] sm:$0xff]  ;;  %v1599_v1 = vrot.slane %v7500_v57, 1  ;;  %5009 = vmatmul.mubr.bf16.gmra.mrb[28].mxu1 %v7797_v20  ;;  %v10772_v2 = vld [vmem:[#allocation32_spill] sm:$0xff]  ;;  %v10796_v3 = vld [vmem:[#allocation94_spill] sm:$0xff] }
 0x20a   : > { %v976_v4 = vsel %vm896_vm5, %v10767_v35, 0.0  ;;  %v1694_v38 = vmul.f32 2.0, %v7489_v40  ;;  %v1060_v28 = vadd.f32 %v1044_v8, %v996_v53  ;;  %v10768_v14 = vrot.slane %v7484_v32, 7  ;;  %v8170_v36 = vpop.permute.xlu0 %1311  ;;  %v10797_v12 = vld [vmem:[#allocation113_spill] sm:$0xff]  ;;  %v10800_v27 = vld [vmem:[#allocation103_spill] sm:$0xff] }
 0x20b   : > { %1815 = vrot.lane.b32.xlu1 %v8124_v52, %s5677_s15  ;;  %5024 = vmatprep.subr.bf16.mxu1 %v2930_v45  ;;  %v10277_v17 = vrot.slane %v7505_v49, 1  ;;  %v1000_v51 = vadd.f32 %v7854_v60, %v968_v16  ;;  %v8167_v13 = vadd.f32 %v7857_v63, %v970_v6  ;;  %v921_v53 = vsub.f32 %v8049_v56, %v905_v50  ;;  %v4870_v56 = vpop.f32.mrb[48].mxu0  ;;  %v10774_v16 = vld [vmem:[#allocation68_spill] sm:$0xff] }
 0x20c   : > { %v8161_v23 = vsel %vm648_vm1, %v10768_v14, %v1646_v30  ;;  %v1062_v8 = vadd.f32 %v1046_v34, %v998_v5  ;;  %10769 = vst [vmem:[#allocation87_spill] sm:$0xff] %v8170_v36  ;;  %v8173_v32 = vand.u32 2147483647, %v917_v58  ;;  %v8176_v35 = vadd.f32 %v7863_v21, %v972_v62  ;;  %1953 = vrot.lane.b32.xlu0 %v7960_v31, %s5676_s29  ;;  %v8184_v63 = vpop.permute.xlu1 %1799  ;;  %v2589_v21 = vpop.f32.mrb[49].mxu0  ;;  %v8191_v58 = vld [vmem:[#allocation8] sm:$0xff]  }
 0x20d   : > { %v8179_v14 = vadd.f32 %v7877_v48, %v974_v19  ;;  %v1443_v60 = vmul.f32 2.0, %v10772_v2  ;;  %10773 = vst [vmem:[#allocation90_spill] sm:$0xff] %v8184_v63  ;;  %5025 = vmatpush3.bf16.msra.mxu1 %v2930_v45  ;;  %v8186_v5 = vand.u32 2147483647, %v919_v33  ;;  %v8189_v6 = vadd.f32 %v10774_v16, %v976_v4  ;;  %5028 = vmatprep.mubr.bf16.mxu1 %v8191_v58  ;;  %v10777_v19 = vld [vmem:[#allocation86_spill] sm:$0xff]  ;;  %v4871_v33 = vpop.f32.mrb[50].mxu0 }
 0x20e   : > { %10770 = vst [vmem:[#allocation27_spill] sm:$0xff] %v8176_v35  ;;  %5026 = vmatprep.subr.bf16.mxu1 %v2931_v15  ;;  %v10776_v48 = vrot.slane %v7489_v40, 1  ;;  %v1710_v50 = vadd.f32 %v1694_v38, %v8161_v23  ;;  %v8204_v34 = vsel %vm896_vm5, %v10777_v19, 0.0  ;;  %v1092_v45 = vand.u32 2147483647, %v1060_v28  ;;  %v10781_v28 = vld [vmem:[#allocation33_spill] sm:$0xff] }
 0x20f   : > { %10771 = vst [vmem:[#allocation82_spill] sm:$0xff] %v8179_v14  ;;  %10775 = vst [vmem:[#allocation83_spill] sm:$0xff] %v8189_v6  ;;  %1959 = vrot.lane.b32.xlu1 %v7993_v59, %s5676_s29  ;;  %v8212_v40 = vsel %vm520_vm0, %v1599_v1, %v10277_v17  ;;  %v10779_v4 = vrot.slane %v7500_v57, 7  ;;  %v8218_v2 = vand.u32 2147483647, %v921_v53  ;;  %v8221_v19 = vmul.f32 2.0, %v10781_v28 }
 0x210   : > { %v8198_v62 = vsel %vm520_vm0, %v10776_v48, %v1599_v1  ;;  %10778 = vst [vmem:[#allocation32_spill] sm:$0xff] %v8204_v34  ;;  %v1094_v16 = vand.u32 2147483647, %v1062_v8  ;;  %v1332_v48 = vpop.permute.xlu0 %1331  ;;  %v2933_v36 = vpack.c.bf16 %v4871_v33, %v4870_v56  ;;  %v2592_v61 = vpop.f32.mrb[51].mxu0  ;;  %v1048_v31 = vsel %vm845_vm4, %v10782_v26, 0.0  ;;  %v10783_v1 = vld [vmem:[#allocation40_spill] sm:$0xff] }
 0x211   : > { %v1654_v38 = vsel %vm648_vm1, %v1646_v30, %v10779_v4  ;;  %10780 = vst [vmem:[#allocation68_spill] sm:$0xff] %v8218_v2  ;;  %1415 = vrot.lane.b32.xlu0 %v10783_v1, %s5677_s15  ;;  %v8228_v17 = vpop.permute.xlu1 %1943  ;;  %v2932_v59 = vpack.c.bf16 %v2592_v61, %v2589_v21  ;;  %5027 = vmatpush3.bf16.msra.mxu1 %v2931_v15  ;;  %v10784_v30 = vld [vmem:[#allocation67_spill] sm:$0xff]  ;;  %v10785_v53 = vld [vmem:[#allocation136_spill] sm:$0xff]  ;;  %v1695_v4 = vmul.f32 2.0, %v7500_v57  ;;  %v10788_v28 = vld [vmem:[#allocation89_spill] sm:$0xff] }
 0x212   : > { %v8232_v8 = vsub.f32 %v10785_v53, %v10784_v30  ;;  %v8240_v26 = vsel %vm896_vm5, %v10788_v28, 0.0  ;;  %v8243_v7 = vadd.f32 %v1710_v50, %v8198_v62  ;;  %v8246_v61 = vsub.f32 %v1654_v38, %v8212_v40  ;;  %v10792_v21 = vld [vmem:[#allocation62_spill] sm:$0xff]  ;;  %v10793_v30 = vld [vmem:[#allocation88_spill] sm:$0xff]  ;;  %v10809_v35 = vld [vmem:[#allocation137_spill] sm:$0xff] }
 0x213   : > { %10789 = vst [vmem:[#allocation33_spill] sm:$0xff] %v8240_v26  ;;  %v8249_v15 = vadd.f32 %v1092_v45, %v8062_v39  ;;  %1421 = vrot.lane.b32.xlu1 %v10792_v21, %s5677_s15  ;;  %v8254_v53 = vmul.f32 2.0, %v10793_v30  ;;  %v10794_v33 = vld [vmem:[#allocation46_spill] sm:$0xff]  ;;  %5044 = vmatprep.subr.bf16.mxu1 %v2932_v59  ;;  %v8261_v50 = vadd.f32 %v1094_v16, %v8064_v54  ;;  %v1050_v39 = vsel %vm845_vm4, %v10796_v3, 0.0  ;;  %v10798_v30 = vld [vmem:[#allocation91_spill] sm:$0xff] }
 0x214   : > { %10786 = vst [vmem:[#allocation86_spill] sm:$0xff] %v8232_v8  ;;  %10790 = vst [vmem:[#allocation93_spill] sm:$0xff] %v8243_v7  ;;  %v1448_v47 = vmul.f32 2.0, %v10794_v33  ;;  %v10795_v28 = vld [vmem:[#allocation34_spill] sm:$0xff]  ;;  %v8263_v22 = vadd.f32 %v1048_v31, %v1000_v51  ;;  %v1396_v45 = vpop.permute.xlu0 %1395  ;;  %5029 = vmatmul.mubr.bf16.vlgmr.msra.gmra.mrb[32].mxu1 %v10797_v12  ;;  %v8270_v6 = vmul.f32 2.0, %v10798_v30  ;;  %v1316_v54 = vsel %vm845_vm4, %v10800_v27, 0.0 }
 0x215   : > { %10791 = vst [vmem:[#allocation67_spill] sm:$0xff] %v8246_v61  ;;  %v8258_v37 = vmul.f32 2.0, %v10795_v28  ;;  %v10799_v33 = vld [vmem:[#allocation42_spill] sm:$0xff]  ;;  %v1427_v31 = vsel %vm896_vm5, %v1396_v45, 0.0  ;;  %v10801_v51 = vld [vmem:[#allocation133_spill] sm:$0xff]  ;;  %v1406_v3 = vpop.permute.xlu1 %1405  ;;  %5045 = vmatpush3.bf16.msra.mxu1 %v2932_v59  ;;  %v4874_v12 = vpop.f32.mrb[52].mxu0  ;;  %v1711_v16 = vadd.f32 %v1695_v4, %v1654_v38 }
 0x216   : > { %v963_v28 = vsel %vm896_vm5, %v10799_v33, 0.0  ;;  %1763 = vrot.lane.b32.xlu0 %v10801_v51, %s5676_s29  ;;  %v10802_v30 = vld [vmem:[#allocation128_spill] sm:$0xff]  ;;  %v10803_v14 = vld [vmem:[#allocation130_spill] sm:$0xff]  ;;  %v1459_v29 = vadd.f32 %v1443_v60, %v1427_v31  ;;  %v1432_v27 = vsel %vm896_vm5, %v1406_v3, 0.0  ;;  %5046 = vmatprep.subr.bf16.mxu1 %v2933_v36  ;;  %v2605_v45 = vpop.f32.mrb[53].mxu0  ;;  %v10804_v26 = vld [vmem:[#allocation115_spill] sm:$0xff] }
 0x217   : > { %v1364_v25 = vsel %vm896_vm5, %v10802_v30, 0.0  ;;  %v1428_v33 = vsel %vm896_vm5, %v10803_v14, 0.0  ;;  %5032 = vmatprep.mubr.bf16.mxu1 %v10804_v26  ;;  %v10805_v51 = vld [vmem:[#allocation135_spill] sm:$0xff]  ;;  %v1363_v30 = vsel %vm896_vm5, %v1332_v48, 0.0  ;;  %v8299_v14 = vadd.f32 %v1448_v47, %v1432_v27  ;;  %1769 = vrot.lane.b32.xlu1 %v8243_v7, %s5676_s29  ;;  %v4875_v60 = vpop.f32.mrb[54].mxu0  ;;  %v10807_v31 = vld [vmem:[#allocation96_spill] sm:$0xff] }
 0x218   : > { %v1315_v59 = vsel %vm845_vm4, %v10805_v51, 0.0  ;;  %v10806_v38 = vld [vmem:[#allocation131_spill] sm:$0xff]  ;;  %v965_v26 = vsel %vm896_vm5, %v10807_v31, 0.0  ;;  %v10808_v3 = vld [vmem:[#allocation26_spill] sm:$0xff]  ;;  %v1400_v34 = vpop.permute.xlu0 %1399  ;;  %v2935_v48 = vpack.c.bf16 %v4875_v60, %v4874_v12  ;;  %v2608_v47 = vpop.f32.mrb[55].mxu0  ;;  %v1380_v27 = vsub.f32 %v1316_v54, %v1364_v25 }
 0x219   : > { %v1507_v4 = vsel %vm845_vm4, %v10806_v38, 0.0  ;;  %v1317_v51 = vsel %vm845_vm4, %v10808_v3, 0.0  ;;  %v1365_v38 = vsel %vm896_vm5, %v10809_v35, 0.0  ;;  %v10810_v56 = vld [vmem:[#allocation71_spill] sm:$0xff]  ;;  %v1429_v31 = vsel %vm896_vm5, %v1400_v34, 0.0  ;;  %v8319_v3 = vpop.permute.xlu1 %1753  ;;  %5047 = vmatpush3.bf16.msra.mxu1 %v2933_v36  ;;  %v8330_v34 = vld [vmem:[%s5982_s13 + $0x68] sm:$0xff] }
 0x21a   : > { %v1509_v2 = vsel %vm845_vm4, %v10810_v56, 0.0  ;;  %1877 = vrot.lane.b32.xlu0 %v8232_v8, %s5677_s15  ;;  %10811 = vst [vmem:[#allocation136_spill] sm:$0xff] %v8319_v3  ;;  %v2934_v7 = vpack.c.bf16 %v2608_v47, %v2605_v45  ;;  %v1460_v35 = vadd.f32 %v8095_v9, %v1428_v33  ;;  %v1379_v12 = vsub.f32 %v1315_v59, %v1363_v30  ;;  %v10812_v45 = vld [vmem:[#allocation70_spill] sm:$0xff]  ;;  %v10813_v33 = vld [vmem:[#allocation72_spill] sm:$0xff] }
 0x21b   : > { %v1523_v60 = vadd.f32 %v1507_v4, %v1459_v29  ;;  %v1461_v25 = vadd.f32 %v8221_v19, %v1429_v31  ;;  %v8325_v56 = vadd.f32 %v1050_v39, %v8167_v13  ;;  %v1381_v63 = vsub.f32 %v1317_v51, %v1365_v38  ;;  %1883 = vrot.lane.b32.xlu1 %v8246_v61, %s5677_s15  ;;  %v10814_v4 = vld [vmem:[#allocation119_spill] sm:$0xff]  ;;  %v10815_v51 = vld [vmem:[#allocation66_spill] sm:$0xff]  ;;  %v10825_v3 = vld [vmem:[#allocation60_spill] sm:$0xff] }
 0x21c   : > { %5048 = vmatprep.subr.bf16.mxu1 %v2934_v7  ;;  %v10283_v36 = vrot.slane %v8330_v34, 7  ;;  %v995_v9 = vadd.f32 %v10812_v45, %v963_v28  ;;  %v8335_v29 = vadd.f32 %v10813_v33, %v965_v26  ;;  %v1478_v59 = vpop.permute.xlu0 %1477  ;;  %5033 = vmatmul.mubr.bf16.gmra.mrb[36].mxu1 %v10814_v4  ;;  %v8339_v13 = vadd.f32 %v1711_v16, %v8212_v40  ;;  %v4878_v28 = vpop.f32.mrb[56].mxu0  ;;  %v10816_v47 = vld [vmem:[#allocation110_spill] sm:$0xff]  ;;  %v10818_v33 = vld [vmem:[#allocation109_spill] sm:$0xff] }
 0x21d   : > { %v1525_v19 = vadd.f32 %v1509_v2, %v1461_v25  ;;  %v1540_v39 = vand.u32 2147483647, %v1380_v27  ;;  %v1508_v30 = vsel %vm845_vm4, %v1478_v59, 0.0  ;;  %v1868_v38 = vpop.permute.xlu1 %1867  ;;  %5049 = vmatpush3.bf16.msra.mxu1 %v2934_v7  ;;  %v1696_v2 = vmul.f32 2.0, %v8330_v34  ;;  %v2621_v16 = vpop.f32.mrb[57].mxu0  ;;  %v10817_v27 = vld [vmem:[#allocation121_spill] sm:$0xff] }
 0x21e   : > { %1351 = vrot.lane.b32.xlu0 %v10815_v51, %s5677_s15  ;;  %v1539_v31 = vand.u32 2147483647, %v1379_v12  ;;  %v1555_v25 = vand.u32 2147483647, %v1523_v60  ;;  %v1524_v45 = vadd.f32 %v1508_v30, %v1460_v35  ;;  %v1895_v40 = vsel %vm896_vm5, %v1868_v38, 0.0  ;;  %5050 = vmatprep.subr.bf16.mxu1 %v2935_v48  ;;  %v10819_v51 = vld [vmem:[#allocation37_spill] sm:$0xff] }
 0x21f   : > { %5036 = vmatprep.mubr.bf16.mxu1 %v10817_v27  ;;  %v1320_v59 = vsel %vm845_vm4, %v10818_v33, 0.0  ;;  %v1541_v7 = vand.u32 2147483647, %v1381_v63  ;;  %v8354_v4 = vadd.f32 %v8270_v6, %v1895_v40  ;;  %1357 = vrot.lane.b32.xlu1 %v10819_v51, %s5677_s15  ;;  %v4879_v12 = vpop.f32.mrb[58].mxu0  ;;  %v10820_v35 = vrot.slane %v7500_v57, 7  ;;  %v10821_v30 = vld [vmem:[#allocation114_spill] sm:$0xff] }
 0x220   : > { %v1043_v38 = vsel %vm845_vm4, %v10821_v30, 0.0  ;;  %v1557_v63 = vand.u32 2147483647, %v1525_v19  ;;  %v1556_v27 = vand.u32 2147483647, %v1524_v45  ;;  %v8369_v6 = vpop.permute.xlu0 %1861  ;;  %v2937_v40 = vpack.c.bf16 %v4879_v12, %v4878_v28  ;;  %v2624_v33 = vpop.f32.mrb[59].mxu0 }
 0x221   : > { %v8364_v60 = vsel %vm648_vm1, %v10820_v35, %v10283_v36  ;;  %v10822_v51 = vld [vmem:[#allocation107_spill] sm:$0xff]  ;;  %v1366_v57 = vsel %vm896_vm5, %v8102_v46, 0.0  ;;  %v1342_v35 = vpop.permute.xlu1 %1341  ;;  %v2936_v36 = vpack.c.bf16 %v2624_v33, %v2621_v16  ;;  %5051 = vmatpush3.bf16.msra.mxu1 %v2935_v48  ;;  %v10823_v19 = vld [vmem:[#allocation84_spill] sm:$0xff]  ;;  %v10824_v30 = vld [vmem:[#allocation98_spill] sm:$0xff]  ;;  %v8385_v12 = vadd.f32 %v1555_v25, %v1539_v31 }
 0x222   : > { %v1318_v54 = vsel %vm845_vm4, %v10822_v51, 0.0  ;;  %1495 = vrot.lane.b32.xlu0 %v10783_v1, %s5676_s29  ;;  %v8380_v45 = vmul.f32 2.0, %v10823_v19  ;;  %v967_v28 = vsel %vm896_vm5, %v10824_v30, 0.0  ;;  %v8387_v51 = vadd.f32 %v1556_v27, %v1540_v39  ;;  %v10865_v44 = vld [vmem:[#allocation93_spill] sm:$0xff] }
 0x223   : > { %v1368_v46 = vsel %vm896_vm5, %v1342_v35, 0.0  ;;  %v1059_v26 = vadd.f32 %v1043_v38, %v995_v9  ;;  %v1891_v16 = vsel %vm896_vm5, %v10825_v3, 0.0  ;;  %1501 = vrot.lane.b32.xlu1 %v10792_v21, %s5676_s29  ;;  %5052 = vmatprep.subr.bf16.mxu1 %v2936_v36  ;;  %v1712_v33 = vadd.f32 %v1696_v2, %v8364_v60 }
 0x224   : > { %v1384_v48 = vsub.f32 %v1320_v59, %v1368_v46  ;;  %v1382_v19 = vsub.f32 %v1318_v54, %v1366_v57  ;;  %v8397_v31 = vadd.f32 %v1557_v63, %v1541_v7  ;;  %v2147_v39 = vadd.f32 %v8387_v51, %v8385_v12  ;;  %v1402_v25 = vpop.permute.xlu0 %1401  ;;  %5037 = vmatmul.mubr.bf16.gmra.mrb[40].mxu1 %v7774_v43  ;;  %v10828_v7 = vld [vmem:[#allocation61_spill] sm:$0xff]  ;;  %v4882_v43 = vpop.f32.mrb[60].mxu0  ;;  %v10829_v63 = vld [vmem:[#allocation111_spill] sm:$0xff] }
 0x225   : > { %v10826_v9 = vrot.slane %v10816_v47, 1  ;;  %v10827_v3 = vrot.slane %v7505_v49, 1  ;;  %v1510_v54 = vsel %vm845_vm4, %v8147_v24, 0.0  ;;  %v1430_v2 = vsel %vm896_vm5, %v1402_v25, 0.0  ;;  %v1486_v38 = vpop.permute.xlu1 %1485  ;;  %5053 = vmatpush3.bf16.msra.mxu1 %v2936_v36  ;;  %v2637_v46 = vpop.f32.mrb[61].mxu0  ;;  %5040 = vmatprep.mubr.bf16.mxu1 %v7778_v11 }
 0x226   : > { %1813 = vrot.lane.b32.xlu0 %v10828_v7, %s5677_s15  ;;  %v10285_v27 = vrot.slane %v10829_v63, 1  ;;  %v10284_v49 = vrot.slane %v10816_v47, 7  ;;  %v1923_v57 = vadd.f32 %v8098_v10, %v1891_v16  ;;  %v2148_v35 = vadd.f32 %v2147_v39, %v8397_v31  ;;  %5054 = vmatprep.subr.bf16.mxu1 %v2937_v40  ;;  %v4883_v10 = vpop.f32.mrb[62].mxu0 }
 0x227   : > { %v8408_v59 = vsel %vm520_vm0, %v10827_v3, %v10826_v9  ;;  %v1462_v30 = vadd.f32 %v8258_v37, %v1430_v2  ;;  %v1512_v24 = vsel %vm845_vm4, %v1486_v38, 0.0  ;;  %v1091_v25 = vand.u32 2147483647, %v1059_v26  ;;  %1819 = vrot.lane.b32.xlu1 %v8339_v13, %s5677_s15  ;;  %v10830_v37 = vld [vmem:[#allocation117_spill] sm:$0xff]  ;;  %v2640_v26 = vpop.f32.mrb[63].mxu0 }
 0x228   : > { %v1971_v36 = vsel %vm845_vm4, %v8055_v18, 0.0  ;;  %v1544_v9 = vand.u32 2147483647, %v1384_v48  ;;  %v1528_v3 = vadd.f32 %v1512_v24, %v8299_v14  ;;  %v1045_v16 = vsel %vm845_vm4, %v10830_v37, 0.0  ;;  %v1748_v7 = vpop.permute.xlu0 %1747 }
 0x229   : > { %v1542_v39 = vand.u32 2147483647, %v1382_v19  ;;  %v1526_v2 = vadd.f32 %v1510_v54, %v1462_v30  ;;  %v2939_v11 = vpack.c.bf16 %v4883_v10, %v4882_v43  ;;  %v8436_v18 = vpop.permute.xlu1 %1803  ;;  %v2938_v14 = vpack.c.bf16 %v2640_v26, %v2637_v46  ;;  %5055 = vmatpush3.bf16.msra.mxu1 %v2937_v40  ;;  %v10833_v43 = vld [vmem:[#allocation73_spill] sm:$0xff] }
 0x22a   : > { %v1560_v38 = vand.u32 2147483647, %v1528_v3  ;;  %1957 = vrot.lane.b32.xlu0 %v8232_v8, %s5676_s29  ;;  %v10831_v48 = vrot.slane %v10816_v47, 1  ;;  %v10832_v19 = vrot.slane %v8330_v34, 7  ;;  %v999_v30 = vadd.f32 %v10833_v43, %v967_v28  ;;  %v10897_v8 = vld [vmem:[#allocation126_spill] sm:$0xff] }
 0x22b   : > { %v1987_v46 = vadd.f32 %v1971_v36, %v1923_v57  ;;  %v1558_v40 = vand.u32 2147483647, %v1526_v2  ;;  %v8457_v3 = vsub.f32 %v8161_v23, %v8198_v62  ;;  %v1107_v10 = vadd.f32 %v1091_v25, %v8051_v42  ;;  %1963 = vrot.lane.b32.xlu1 %v8246_v61, %s5676_s29  ;;  %5056 = vmatprep.subr.bf16.mxu1 %v2938_v14  ;;  %v10836_v36 = vld [vmem:[#allocation44_spill] sm:$0xff]  ;;  %v10838_v2 = vld [vmem:[#allocation58_spill] sm:$0xff] }
 0x22c   : > { %v8444_v24 = vsel %vm520_vm0, %v10831_v48, %v10285_v27  ;;  %v8452_v54 = vsel %vm648_vm1, %v10832_v19, %v10284_v49  ;;  %v1061_v37 = vadd.f32 %v1045_v16, %v8335_v29  ;;  %v1779_v26 = vsel %vm845_vm4, %v1748_v7, 0.0  ;;  %v1796_v57 = vpop.permute.xlu0 %1795  ;;  %5041 = vmatmul.mubr.bf16.gmra.mrb[44].mxu1 %v7797_v20  ;;  %v10835_v29 = vld [vmem:[#allocation48_spill] sm:$0xff] }
 0x22d   : > { %10834 = vst [vmem:[#allocation89_spill] sm:$0xff] %v8457_v3  ;;  %v8463_v34 = vadd.f32 %v1560_v38, %v1544_v9  ;;  %v8467_v28 = vadd.f32 %v1558_v40, %v1542_v39  ;;  %v8471_v23 = vadd.f32 %v1712_v33, %v8408_v59  ;;  %v8475_v42 = vsub.f32 %v8452_v54, %v8444_v24  ;;  %v10837_v33 = vld [vmem:[#allocation52_spill] sm:$0xff]  ;;  %v1948_v16 = vpop.permute.xlu1 %1947  ;;  %v4886_v39 = vpop.f32.mrb[64].mxu0 }
 0x22e   : > { %v1697_v62 = vmul.f32 2.0, %v10816_v47  ;;  %v1780_v25 = vsel %vm845_vm4, %v10835_v29, 0.0  ;;  %v1828_v9 = vsel %vm896_vm5, %v10836_v36, 0.0  ;;  %v1827_v20 = vsel %vm896_vm5, %v1796_v57, 0.0  ;;  %1419 = vrot.lane.b32.xlu0 %v10837_v33, %s5677_s15  ;;  %5057 = vmatpush3.bf16.msra.mxu1 %v2938_v14  ;;  %v2653_v43 = vpop.f32.mrb[65].mxu0 }
 0x22f   : > { %v1450_v7 = vmul.f32 2.0, %v10838_v2  ;;  %v2019_v38 = vand.u32 2147483647, %v1987_v46  ;;  %v1843_v48 = vsub.f32 %v1779_v26, %v1827_v20  ;;  %v1975_v19 = vsel %vm845_vm4, %v1948_v16, 0.0  ;;  %5058 = vmatprep.subr.bf16.mxu1 %v2939_v11  ;;  %5060 = vmatprep.mubr.bf16.mxu1 %v8191_v58  ;;  %v10839_v26 = vld [vmem:[#allocation80_spill] sm:$0xff]  ;;  %v4887_v36 = vpop.f32.mrb[66].mxu0 }
 0x230   : > { %v8493_v40 = vadd.f32 %v2148_v35, %v8467_v28  ;;  %v2123_v57 = vadd.f32 %v8249_v15, %v1107_v10  ;;  %v1093_v29 = vand.u32 2147483647, %v1061_v37  ;;  %v1892_v14 = vsel %vm896_vm5, %v8369_v6, 0.0  ;;  %1425 = vrot.lane.b32.xlu1 %v10839_v26, %s5677_s15  ;;  %v10840_v20 = vld [vmem:[#allocation120_spill] sm:$0xff]  ;;  %v1864_v49 = vpop.permute.xlu0 %1863  ;;  %v2656_v37 = vpop.f32.mrb[67].mxu0 }
 0x231   : > { %v8500_v46 = vadd.f32 %v1975_v19, %v8354_v4  ;;  %v1047_v16 = vsel %vm845_vm4, %v10840_v20, 0.0  ;;  %v1844_v35 = vsub.f32 %v1780_v25, %v1828_v9  ;;  %v2003_v2 = vand.u32 2147483647, %v1843_v48  ;;  %v1410_v61 = vpop.permute.xlu1 %1409 }
 0x232   : > { %v2941_v27 = vpack.c.bf16 %v4887_v36, %v4886_v39  ;;  %v1973_v6 = vsel %vm845_vm4, %v8228_v17, 0.0  ;;  %v2051_v4 = vmax.f32 %v1107_v10, %v8385_v12  ;;  %v1893_v19 = vsel %vm896_vm5, %v1864_v49, 0.0  ;;  %1767 = vrot.lane.b32.xlu0 %v8124_v52, %s5676_s29  ;;  %5059 = vmatpush3.bf16.msra.mxu1 %v2939_v11  ;;  %v10841_v17 = vld [vmem:[#allocation100_spill] sm:$0xff]  ;;  %v10844_v36 = vld [vmem:[#allocation47_spill] sm:$0xff] }
 0x233   : > { %v2940_v21 = vpack.c.bf16 %v2656_v37, %v2653_v43  ;;  %v1924_v25 = vadd.f32 %v8254_v53, %v1892_v14  ;;  %v2035_v9 = vadd.f32 %v2019_v38, %v2003_v2  ;;  %v1925_v39 = vadd.f32 %v8380_v45, %v1893_v19  ;;  %v8538_v43 = vld [vmem:[#allocation8 + $0x8] sm:$0xff]   ;;  %v4890_v14 = vpop.f32.mrb[68].mxu0 }
 0x234   : > { %v1434_v48 = vsel %vm896_vm5, %v1410_v61, 0.0  ;;  %v969_v12 = vsel %vm896_vm5, %v10841_v17, 0.0  ;;  %v8523_v49 = vadd.f32 %v1093_v29, %v8173_v32  ;;  %v1063_v10 = vadd.f32 %v1047_v16, %v999_v30  ;;  %1773 = vrot.lane.b32.xlu1 %v8471_v23, %s5676_s29  ;;  %v1942_v38 = vpop.permute.xlu0 %1941  ;;  %v10847_v16 = vld [vmem:[#allocation38_spill] sm:$0xff] }
 0x235   : > { %v8525_v52 = vadd.f32 %v1450_v7, %v1434_v48  ;;  %5076 = vmatprep.subr.bf16.mxu1 %v2940_v21  ;;  %v10842_v53 = vand.u32 2147483647, %v8263_v22  ;;  %v8534_v61 = vsub.f32 %v2035_v9, %v2051_v4  ;;  %v8536_v11 = vadd.f32 %v1973_v6, %v1925_v39  ;;  %5061 = vmatmul.mubr.bf16.vlgmr.msra.gmra.mrb[48].mxu1 %v8538_v43  ;;  %v10843_v7 = vld [vmem:[#allocation95_spill] sm:$0xff]  ;;  %v10848_v4 = vld [vmem:[#allocation50_spill] sm:$0xff]  ;;  %v2669_v9 = vpop.f32.mrb[69].mxu0 }
 0x236   : > { %v1713_v32 = vadd.f32 %v1697_v62, %v8452_v54  ;;  %v8546_v29 = vsel %vm845_vm4, %v10843_v7, 0.0  ;;  %v1972_v22 = vsel %vm845_vm4, %v1942_v38, 0.0  ;;  %1881 = vrot.lane.b32.xlu0 %v8457_v3, %s5677_s15  ;;  %5077 = vmatpush3.bf16.msra.mxu1 %v2940_v21  ;;  %v10845_v20 = vrot.slane %v10844_v36, 1  ;;  %v8562_v39 = vld [vmem:[#allocation8 + $0x10] sm:$0xff]   ;;  %v10849_v21 = vld [vmem:[#allocation102_spill] sm:$0xff] }
 0x237   : > { %v8532_v45 = vadd.f32 %v10842_v53, %v8069_v41  ;;  %v8552_v41 = vpop.permute.xlu1 %1757  ;;  %v10846_v54 = vrot.slane %v10829_v63, 1  ;;  %v1001_v2 = vadd.f32 %v10847_v16, %v969_v12  ;;  %v2004_v37 = vand.u32 2147483647, %v1844_v35  ;;  %5078 = vmatprep.subr.bf16.mxu1 %v2941_v27  ;;  %5064 = vmatprep.mubr.bf16.mxu1 %v8562_v39  ;;  %v10850_v35 = vld [vmem:[#allocation105_spill] sm:$0xff]  ;;  %v4891_v12 = vpop.f32.mrb[70].mxu0 }
 0x238   : > { %v1988_v6 = vadd.f32 %v1972_v22, %v1924_v25  ;;  %v1447_v19 = vmul.f32 2.0, %v10848_v4  ;;  %v971_v48 = vsel %vm896_vm5, %v10849_v21, 0.0  ;;  %v2124_v63 = vadd.f32 %v2123_v57, %v8523_v49  ;;  %1887 = vrot.lane.b32.xlu1 %v8475_v42, %s5677_s15  ;;  %v1404_v38 = vpop.permute.xlu0 %1403  ;;  %v2672_v22 = vpop.f32.mrb[71].mxu0  ;;  %v10852_v57 = vld [vmem:[#allocation123_spill] sm:$0xff]  ;;  %v5431_v21 = vld [vmem:[%s5982_s13 + $0x78] sm:$0xff] }
 0x239   : > { %v1618_v62 = vsel %vm520_vm0, %v10846_v54, %v10845_v20  ;;  %v1095_v17 = vand.u32 2147483647, %v1063_v10  ;;  %v1913_v25 = vmul.f32 2.0, %v10850_v35  ;;  %v8572_v7 = vpack.c.bf16 %v4891_v12, %v4890_v14 }
 0x23a   : > { %v2020_v53 = vand.u32 2147483647, %v1988_v6  ;;  %v8575_v36 = vadd.f32 %v1713_v32, %v8444_v24  ;;  %v8579_v54 = vsel %vm599_vm3, %v1618_v62, 0.0  ;;  %v1049_v10 = vsel %vm845_vm4, %v10852_v57, 0.0  ;;  %v10853_v6 = vld [vmem:[#allocation20_spill] sm:$0xff]  ;;  %5079 = vmatpush3.bf16.msra.mxu1 %v2941_v27  ;;  %v10854_v57 = vld [vmem:[#allocation90_spill] sm:$0xff] }
 0x23b   : > { %v1431_v16 = vsel %vm896_vm5, %v1404_v38, 0.0  ;;  %1355 = vrot.lane.b32.xlu0 %v10853_v6, %s5677_s15  ;;  %v1872_v14 = vpop.permute.xlu1 %1871  ;;  %v2942_v4 = vpack.c.bf16 %v2672_v22, %v2669_v9  ;;  %v1698_v24 = vmul.f32 2.0, %v5431_v21  ;;  %v2052_v32 = vmax.f32 %v8249_v15, %v8387_v51  ;;  %v10855_v22 = vld [vmem:[#allocation25_spill] sm:$0xff]  ;;  %v10856_v15 = vld [vmem:[#allocation112_spill] sm:$0xff] }
 0x23c   : > { %v2036_v62 = vadd.f32 %v2020_v53, %v2004_v37  ;;  %v8591_v35 = vadd.f32 %v1447_v19, %v1431_v16  ;;  %v1897_v12 = vsel %vm896_vm5, %v1872_v14, 0.0  ;;  %v2125_v20 = vadd.f32 %v2124_v63, %v8261_v50  ;;  %1361 = vrot.lane.b32.xlu1 %v10855_v22, %s5677_s15  ;;  %v1752_v63 = vpop.permute.xlu0 %1751  ;;  %v8609_v53 = vld [vmem:[#allocation8 + $0x18] sm:$0xff]   ;;  %v10860_v6 = vld [vmem:[#allocation77_spill] sm:$0xff] }
 0x23d   : > { %v8597_v38 = vadd.f32 %v1095_v17, %v8186_v5  ;;  %v1829_v27 = vsel %vm896_vm5, %v10854_v57, 0.0  ;;  %v8602_v9 = vadd.f32 %v1913_v25, %v1897_v12  ;;  %5080 = vmatprep.subr.bf16.mxu1 %v2942_v4  ;;  %v1322_v51 = vsel %vm845_vm4, %v10856_v15, 0.0  ;;  %5065 = vmatmul.mubr.bf16.gmra.mrb[52].mxu1 %v8609_v53  ;;  %v10857_v5 = vld [vmem:[#allocation75_spill] sm:$0xff]  ;;  %v4894_v12 = vpop.f32.mrb[72].mxu0  ;;  %v8629_v15 = vld [vmem:[#allocation8 + $0x20] sm:$0xff]  }
 0x23e   : > { %v1065_v37 = vadd.f32 %v1049_v10, %v1001_v2  ;;  %v2068_v19 = vsub.f32 %v2036_v62, %v2052_v32  ;;  %v10858_v17 = vrot.slane %v10857_v5, 7  ;;  %v10859_v25 = vrot.slane %v10816_v47, 7  ;;  %v10861_v10 = vld [vmem:[#allocation104_spill] sm:$0xff]  ;;  %5081 = vmatpush3.bf16.msra.mxu1 %v2942_v4  ;;  %5068 = vmatprep.mubr.bf16.mxu1 %v8629_v15 }
 0x23f   : > { %v1003_v14 = vadd.f32 %v10860_v6, %v971_v48  ;;  %v2083_v21 = vand.u32 2147483647, %v8534_v61  ;;  %v1781_v2 = vsel %vm845_vm4, %v1752_v63, 0.0  ;;  %v1910_v32 = vmul.f32 2.0, %v10861_v10  ;;  %1499 = vrot.lane.b32.xlu0 %v10837_v33, %s5676_s29  ;;  %v1346_v62 = vpop.permute.xlu1 %1345  ;;  %5082 = vmatprep.subr.bf16.mxu1 %v8572_v7  ;;  %v2685_v61 = vpop.f32.mrb[73].mxu0  ;;  %v10880_v33 = vld [vmem:[#allocation129_spill] sm:$0xff] }
 0x240   : > { %v1651_v16 = vsel %vm648_vm1, %v10859_v25, %v10858_v17  ;;  %v2021_v47 = vand.u32 2147483647, %v8536_v11  ;;  %v2084_v57 = vand.u32 2147483647, %v2068_v19  ;;  %v1845_v22 = vsub.f32 %v1781_v2, %v1829_v27  ;;  %1775 = vrot.lane.b32.xlu1 %v8575_v36, %s5676_s29  ;;  %v4895_v4 = vpop.f32.mrb[74].mxu0  ;;  %v1866_v6 = vpop.permute.xlu0 %1865 }
 0x241   : > { %v1370_v48 = vsel %vm896_vm5, %v1346_v62, 0.0  ;;  %v2126_v63 = vadd.f32 %v2125_v20, %v8597_v38  ;;  %v8636_v11 = vsub.f32 %v1651_v16, %v8579_v54  ;;  %v1714_v27 = vadd.f32 %v1698_v24, %v1651_v16  ;;  %v2688_v10 = vpop.f32.mrb[75].mxu0  ;;  %v10863_v62 = vld [vmem:[#allocation106_spill] sm:$0xff]  ;;  %v10864_v20 = vld [vmem:[#allocation127_spill] sm:$0xff] }
 0x242   : > { %v1386_v5 = vsub.f32 %v1322_v51, %v1370_v48  ;;  %v1097_v19 = vand.u32 2147483647, %v1065_v37  ;;  %v2099_v17 = vadd.f32 %v2084_v57, %v2083_v21  ;;  %v2005_v25 = vand.u32 2147483647, %v1845_v22  ;;  %5083 = vmatpush3.bf16.msra.mxu1 %v8572_v7  ;;  %v10866_v22 = vld [vmem:[#allocation76_spill] sm:$0xff] }
 0x243   : > { %10862 = vst [vmem:[#allocation88_spill] sm:$0xff] %v8636_v11  ;;  %v2945_v2 = vpack.c.bf16 %v4895_v4, %v4894_v12  ;;  %v973_v30 = vsel %vm896_vm5, %v10863_v62, 0.0  ;;  %v1051_v51 = vsel %vm845_vm4, %v10864_v20, 0.0  ;;  %v1894_v48 = vsel %vm896_vm5, %v1866_v6, 0.0  ;;  %1817 = vrot.lane.b32.xlu0 %v10865_v44, %s5677_s15  ;;  %v1490_v24 = vpop.permute.xlu1 %1489 }
 0x244   : > { %v2944_v37 = vpack.c.bf16 %v2688_v10, %v2685_v61  ;;  %v2053_v16 = vmax.f32 %v8523_v49, %v8397_v31  ;;  %v2037_v21 = vadd.f32 %v2021_v47, %v2005_v25  ;;  %v8651_v12 = vadd.f32 %v1910_v32, %v1894_v48  ;;  %1889 = vrot.lane.b32.xlu1 %v8636_v11, %s5677_s15  ;;  %v10867_v49 = vld [vmem:[#allocation68_spill] sm:$0xff]  ;;  %v1340_v25 = vpop.permute.xlu0 %1339  ;;  %v8668_v10 = vld [vmem:[#allocation8 + $0x28] sm:$0xff]   ;;  %v10871_v48 = vld [vmem:[#allocation27_spill] sm:$0xff] }
 0x245   : > { %v1514_v57 = vsel %vm845_vm4, %v1490_v24, 0.0  ;;  %v1319_v4 = vsel %vm845_vm4, %v10866_v22, 0.0  ;;  %v1546_v6 = vand.u32 2147483647, %v1386_v5  ;;  %v8662_v7 = vadd.f32 %v1714_v27, %v8579_v54  ;;  %5069 = vmatmul.mubr.bf16.gmra.mrb[56].mxu1 %v8668_v10  ;;  %v10869_v5 = vld [vmem:[#allocation32_spill] sm:$0xff]  ;;  %v10873_v24 = vld [vmem:[#allocation43_spill] sm:$0xff] }
 0x246   : > { %v1530_v44 = vadd.f32 %v1514_v57, %v8525_v52  ;;  %5084 = vmatprep.subr.bf16.mxu1 %v2944_v37  ;;  %v2127_v31 = vadd.f32 %v2126_v63, %v8532_v45  ;;  %v8666_v32 = vadd.f32 %v1097_v19, %v10867_v49  ;;  %v1067_v47 = vadd.f32 %v1051_v51, %v1003_v14  ;;  %v10868_v52 = vld [vmem:[#allocation28_spill] sm:$0xff]  ;;  %v4898_v19 = vpop.f32.mrb[76].mxu0  ;;  %v10872_v51 = vld [vmem:[#allocation33_spill] sm:$0xff] }
 0x247   : > { %v2069_v61 = vsub.f32 %v2037_v21, %v2053_v16  ;;  %v10870_v62 = vsub.f32 %v10868_v52, %v10869_v5  ;;  %v8676_v54 = vadd.f32 %v8546_v29, %v10871_v48  ;;  %v1367_v63 = vsel %vm896_vm5, %v1340_v25, 0.0  ;;  %1961 = vrot.lane.b32.xlu0 %v8457_v3, %s5676_s29  ;;  %v8682_v14 = vpop.permute.xlu1 %1807  ;;  %5085 = vmatpush3.bf16.msra.mxu1 %v2944_v37  ;;  %v10874_v21 = vld [vmem:[#allocation92_spill] sm:$0xff]  ;;  %v2701_v49 = vpop.f32.mrb[77].mxu0  ;;  %v10875_v25 = vld [vmem:[#allocation55_spill] sm:$0xff]  ;;  %v10878_v5 = vld [vmem:[#allocation97_spill] sm:$0xff] }
 0x248   : > { %v1562_v27 = vand.u32 2147483647, %v1530_v44  ;;  %v925_v16 = vsub.f32 %v10873_v24, %v10872_v51  ;;  %v8689_v57 = vsel %vm896_vm5, %v10874_v21, 0.0  ;;  %v1383_v22 = vsub.f32 %v1319_v4, %v1367_v63  ;;  %5086 = vmatprep.subr.bf16.mxu1 %v2945_v2  ;;  %v8691_v44 = vld [vmem:[#allocation8 + $0x30] sm:$0xff]   ;;  %v10879_v48 = vld [vmem:[#allocation49_spill] sm:$0xff]  ;;  %1777 = vrot.lane.b32.xlu1 %v8662_v7, %s5676_s29  ;;  %v4899_v4 = vpop.f32.mrb[78].mxu0 }
 0x249   : > { %v1083_v20 = vand.u32 2147483647, %v10870_v62  ;;  %v2085_v29 = vand.u32 2147483647, %v2069_v61  ;;  %5072 = vmatprep.mubr.bf16.mxu1 %v8691_v44  ;;  %v10876_v37 = vand.u32 2147483647, %v8325_v56  ;;  %v1005_v51 = vadd.f32 %v10879_v48, %v973_v30  ;;  %v1484_v56 = vpop.permute.xlu0 %1483 }
 0x24a   : > { %v1054_v62 = vsel %vm845_vm4, %v10878_v5, 0.0  ;;  %v8703_v24 = vadd.f32 %v1562_v27, %v1546_v6  ;;  %v2128_v61 = vadd.f32 %v2127_v31, %v8666_v32  ;;  %v1099_v63 = vand.u32 2147483647, %v1067_v47  ;;  %v10881_v27 = vld [vmem:[#allocation31_spill] sm:$0xff]  ;;  %v10883_v48 = vld [vmem:[#allocation108_spill] sm:$0xff] }
 0x24b   : > { %v8697_v52 = vadd.f32 %v10876_v37, %v10875_v25  ;;  %v8708_v21 = vadd.f32 %v2099_v17, %v2085_v29  ;;  %v2947_v25 = vpack.c.bf16 %v4899_v4, %v4898_v19  ;;  %v2704_v37 = vpop.f32.mrb[79].mxu0  ;;  %v1100_v3 = vand.u32 2147483647, %v8676_v54  ;;  %1423 = vrot.lane.b32.xlu0 %v10881_v27, %s5677_s15  ;;  %v1952_v5 = vpop.permute.xlu1 %1951  ;;  %5087 = vmatpush3.bf16.msra.mxu1 %v2945_v2  ;;  %v10882_v17 = vld [vmem:[#allocation82_spill] sm:$0xff]  ;;  %v10884_v4 = vld [vmem:[#allocation136_spill] sm:$0xff]  ;;  %v10885_v2 = vld [vmem:[#allocation57_spill] sm:$0xff] }
 0x24c   : > { %v1053_v30 = vsel %vm845_vm4, %v10880_v33, 0.0  ;;  %v1511_v6 = vsel %vm845_vm4, %v1484_v56, 0.0  ;;  %v2946_v31 = vpack.c.bf16 %v2704_v37, %v2701_v49  ;;  %v8719_v47 = vadd.f32 %v1054_v62, %v10882_v17  ;;  %1969 = vrot.lane.b32.xlu1 %v8636_v11, %s5676_s29  ;;  %v8739_v17 = vld [vmem:[#allocation8 + $0x38] sm:$0xff]  }
 0x24d   : > { %10877 = vst [vmem:[#allocation46_spill] sm:$0xff] %v8697_v52  ;;  %v1543_v19 = vand.u32 2147483647, %v1383_v22  ;;  %v1527_v29 = vadd.f32 %v1511_v6, %v8591_v35  ;;  %v1977_v54 = vsel %vm845_vm4, %v1952_v5, 0.0  ;;  %v975_v33 = vsel %vm896_vm5, %v10883_v48, 0.0  ;;  %v1802_v5 = vpop.permute.xlu0 %1801  ;;  %5073 = vmatmul.mubr.bf16.gmra.mrb[60].mxu1 %v8739_v17 }
 0x24e   : > { %v1782_v56 = vsel %vm845_vm4, %v10884_v4, 0.0  ;;  %v8731_v49 = vadd.f32 %v1977_v54, %v8602_v9  ;;  %v1452_v22 = vmul.f32 2.0, %v10885_v2  ;;  %5088 = vmatprep.subr.bf16.mxu1 %v2946_v31  ;;  %v2129_v35 = vadd.f32 %v2128_v61, %v8697_v52  ;;  %v10887_v9 = vld [vmem:[#allocation79_spill] sm:$0xff]  ;;  %5092 = vmatprep.mubr.bf16.mxu1 %v8191_v58 }
 0x24f   : > { %v8737_v62 = vadd.f32 %v1099_v63, %v1083_v20  ;;  %v1069_v37 = vadd.f32 %v1053_v30, %v1005_v51  ;;  %v1559_v6 = vand.u32 2147483647, %v1527_v29  ;;  %v1085_v48 = vand.u32 2147483647, %v925_v16  ;;  %1771 = vrot.lane.b32.xlu0 %v8339_v13, %s5676_s29  ;;  %v1414_v61 = vpop.permute.xlu1 %1413  ;;  %5089 = vmatpush3.bf16.msra.mxu1 %v2946_v31  ;;  %v4902_v51 = vpop.f32.mrb[80].mxu0  ;;  %v10888_v63 = vld [vmem:[#allocation74_spill] sm:$0xff] }
 0x250   : > { %v927_v54 = vsub.f32 %v10887_v9, %v8689_v57  ;;  %v1830_v4 = vsel %vm896_vm5, %v1802_v5, 0.0  ;;  %v8750_v20 = vsub.f32 %v8364_v60, %v8408_v59  ;;  %v8755_v16 = vsel %vm896_vm5, %v10888_v63, 0.0  ;;  %5090 = vmatprep.subr.bf16.mxu1 %v2947_v25  ;;  %v2717_v13 = vpop.f32.mrb[81].mxu0  ;;  %v10889_v2 = vld [vmem:[#allocation23_spill] sm:$0xff]  ;;  %v10891_v31 = vld [vmem:[#allocation54_spill] sm:$0xff] }
 0x251   : > { %10886 = vst [vmem:[#allocation34_spill] sm:$0xff] %v8737_v62  ;;  %v8757_v30 = vadd.f32 %v1559_v6, %v1543_v19  ;;  %v1846_v57 = vsub.f32 %v1782_v56, %v1830_v4  ;;  %v1436_v29 = vsel %vm896_vm5, %v1414_v61, 0.0  ;;  %v8763_v60 = vadd.f32 %v1100_v3, %v10889_v2  ;;  %v4903_v63 = vpop.f32.mrb[82].mxu0  ;;  %v1946_v4 = vpop.permute.xlu0 %1945  ;;  %v10892_v58 = vld [vmem:[#allocation99_spill] sm:$0xff]  ;;  %v10893_v2 = vld [vmem:[#allocation21_spill] sm:$0xff] }
 0x252   : > { %v1102_v59 = vand.u32 2147483647, %v8719_v47  ;;  %v1007_v5 = vadd.f32 %v10891_v31, %v975_v33  ;;  %v8767_v9 = vadd.f32 %v1452_v22, %v1436_v29  ;;  %v2130_v19 = vadd.f32 %v2129_v35, %v8737_v62  ;;  %v2720_v11 = vpop.f32.mrb[83].mxu0  ;;  %v10901_v52 = vld [vmem:[#allocation83_spill] sm:$0xff] }
 0x253   : > { %10890 = vst [vmem:[#allocation94_spill] sm:$0xff] %v8763_v60  ;;  %v1101_v56 = vand.u32 2147483647, %v1069_v37  ;;  %v2150_v6 = vadd.f32 %v8493_v40, %v8757_v30  ;;  %v2949_v61 = vpack.c.bf16 %v4903_v63, %v4902_v51  ;;  %v1056_v3 = vsel %vm845_vm4, %v10892_v58, 0.0  ;;  %1885 = vrot.lane.b32.xlu0 %v8750_v20, %s5677_s15  ;;  %v8782_v22 = vpop.permute.xlu1 %1761  ;;  %5091 = vmatpush3.bf16.msra.mxu1 %v2947_v25  ;;  %v10894_v51 = vld [vmem:[#allocation56_spill] sm:$0xff]  ;;  %v10895_v58 = vld [vmem:[#allocation85_spill] sm:$0xff] }
 0x254   : > { %v1055_v47 = vsel %vm845_vm4, %v10893_v2, 0.0  ;;  %v1974_v33 = vsel %vm845_vm4, %v1946_v4, 0.0  ;;  %v2948_v40 = vpack.c.bf16 %v2720_v11, %v2717_v13  ;;  %v2006_v35 = vand.u32 2147483647, %v1846_v57  ;;  %v10896_v2 = vld [vmem:[#allocation22_spill] sm:$0xff] }
 0x255   : > { %v1990_v37 = vadd.f32 %v1974_v33, %v8651_v12  ;;  %v1449_v29 = vmul.f32 2.0, %v10894_v51  ;;  %v8787_v31 = vadd.f32 %v2150_v6, %v8463_v34  ;;  %v1087_v63 = vand.u32 2147483647, %v927_v54  ;;  %v1408_v6 = vpop.permute.xlu0 %1407  ;;  %v10899_v54 = vld [vmem:[#allocation65_spill] sm:$0xff]  ;;  %v10900_v51 = vld [vmem:[#allocation36_spill] sm:$0xff] }
 0x256   : > { %v978_v4 = vsel %vm896_vm5, %v10895_v58, 0.0  ;;  %v977_v62 = vsel %vm896_vm5, %v10896_v2, 0.0  ;;  %v1915_v11 = vmul.f32 2.0, %v10897_v8  ;;  %5108 = vmatprep.subr.bf16.mxu1 %v2948_v40  ;;  %v2131_v25 = vadd.f32 %v2130_v19, %v8763_v60  ;;  %5093 = vmatmul.mubr.bf16.vlgmr.msra.gmra.mrb[64].mxu1 %v8538_v43  ;;  %v10902_v19 = vld [vmem:[#allocation39_spill] sm:$0xff] }
 0x257   : > { %v8797_v12 = vadd.f32 %v1101_v56, %v1085_v48  ;;  %v1071_v57 = vadd.f32 %v1055_v47, %v1007_v5  ;;  %v2022_v13 = vand.u32 2147483647, %v1990_v37  ;;  %v929_v33 = vsub.f32 %v10899_v54, %v8755_v16  ;;  %1359 = vrot.lane.b32.xlu0 %v10902_v19, %s5677_s15  ;;  %v1876_v48 = vpop.permute.xlu1 %1875  ;;  %5109 = vmatpush3.bf16.msra.mxu1 %v2948_v40  ;;  %v4906_v5 = vpop.f32.mrb[84].mxu0 }
 0x258   : > { %v8803_v58 = vadd.f32 %v1102_v59, %v10900_v51  ;;  %v1072_v2 = vadd.f32 %v1056_v3, %v10901_v52  ;;  %v1433_v8 = vsel %vm896_vm5, %v1408_v6, 0.0  ;;  %v2054_v56 = vmax.f32 %v8261_v50, %v8467_v28  ;;  %5110 = vmatprep.subr.bf16.mxu1 %v2949_v61  ;;  %v2733_v52 = vpop.f32.mrb[85].mxu0  ;;  %5096 = vmatprep.mubr.bf16.mxu1 %v8562_v39  ;;  %v10903_v59 = vld [vmem:[#allocation41_spill] sm:$0xff]  ;;  %v10904_v6 = vld [vmem:[#allocation116_spill] sm:$0xff] }
 0x259   : > { %10898 = vst [vmem:[#allocation113_spill] sm:$0xff] %v8797_v12  ;;  %v2038_v47 = vadd.f32 %v2022_v13, %v2006_v35  ;;  %v8812_v37 = vadd.f32 %v1449_v29, %v1433_v8  ;;  %v1899_v16 = vsel %vm896_vm5, %v1876_v48, 0.0  ;;  %v1009_v3 = vadd.f32 %v10903_v59, %v977_v62  ;;  %v4907_v35 = vpop.f32.mrb[86].mxu0  ;;  %v1756_v51 = vpop.permute.xlu0 %1755  ;;  %v10905_v48 = vld [vmem:[#allocation134_spill] sm:$0xff] }
 0x25a   : > { %v1324_v40 = vsel %vm845_vm4, %v10904_v6, 0.0  ;;  %v1831_v50 = vsel %vm896_vm5, %v8436_v18, 0.0  ;;  %v8824_v28 = vadd.f32 %v1915_v11, %v1899_v16  ;;  %v2132_v29 = vadd.f32 %v2131_v25, %v8797_v12  ;;  %v2736_v19 = vpop.f32.mrb[87].mxu0  ;;  %v10906_v6 = vld [vmem:[#allocation125_spill] sm:$0xff]  ;;  %v10908_v16 = vld [vmem:[#allocation64_spill] sm:$0xff] }
 0x25b   : > { %v1103_v13 = vand.u32 2147483647, %v1071_v57  ;;  %v2070_v54 = vsub.f32 %v2038_v47, %v2054_v56  ;;  %v2951_v8 = vpack.c.bf16 %v4907_v35, %v4906_v5  ;;  %v1057_v62 = vsel %vm845_vm4, %v10905_v48, 0.0  ;;  %1503 = vrot.lane.b32.xlu0 %v10881_v27, %s5676_s29  ;;  %v1350_v18 = vpop.permute.xlu1 %1349  ;;  %5111 = vmatpush3.bf16.msra.mxu1 %v2949_v61  ;;  %v10907_v47 = vld [vmem:[#allocation63_spill] sm:$0xff]  ;;  %v10909_v48 = vld [vmem:[#allocation69_spill] sm:$0xff] }
 0x25c   : > { %v1783_v59 = vsel %vm845_vm4, %v1756_v51, 0.0  ;;  %v1912_v60 = vmul.f32 2.0, %v10906_v6  ;;  %v2950_v11 = vpack.c.bf16 %v2736_v19, %v2733_v52  ;;  %v2023_v25 = vand.u32 2147483647, %v8500_v46 }
 0x25d   : > { %v2086_v57 = vand.u32 2147483647, %v2070_v54  ;;  %v1847_v5 = vsub.f32 %v1783_v59, %v1831_v50  ;;  %v1372_v56 = vsel %vm896_vm5, %v1350_v18, 0.0  ;;  %v930_v35 = vsub.f32 %v10908_v16, %v10907_v47  ;;  %v1870_v52 = vpop.permute.xlu0 %1869  ;;  %v10910_v54 = vld [vmem:[#allocation101_spill] sm:$0xff] }
 0x25e   : > { %v1010_v51 = vadd.f32 %v10909_v48, %v978_v4  ;;  %v1104_v12 = vand.u32 2147483647, %v1072_v2  ;;  %v1388_v6 = vsub.f32 %v1324_v40, %v1372_v56  ;;  %5112 = vmatprep.subr.bf16.mxu1 %v2950_v11  ;;  %v2133_v27 = vadd.f32 %v2132_v29, %v8803_v58  ;;  %5097 = vmatmul.mubr.bf16.gmra.mrb[68].mxu1 %v8609_v53  ;;  %v4910_v2 = vpop.f32.mrb[88].mxu0 }
 0x25f   : > { %v8842_v1 = vadd.f32 %v1103_v13, %v1087_v63  ;;  %v2101_v61 = vadd.f32 %v8708_v21, %v2086_v57  ;;  %v2007_v46 = vand.u32 2147483647, %v1847_v5  ;;  %v1089_v50 = vand.u32 2147483647, %v929_v33  ;;  %1821 = vrot.lane.b32.xlu0 %v8471_v23, %s5677_s15  ;;  %v1494_v63 = vpop.permute.xlu1 %1493  ;;  %5113 = vmatpush3.bf16.msra.mxu1 %v2950_v11  ;;  %v10911_v13 = vld [vmem:[#allocation30_spill] sm:$0xff]  ;;  %v10912_v23 = vld [vmem:[#allocation51_spill] sm:$0xff] }
 0x260   : > { %v1058_v19 = vsel %vm845_vm4, %v10910_v54, 0.0  ;;  %v1073_v59 = vadd.f32 %v1057_v62, %v1009_v3  ;;  %v1896_v4 = vsel %vm896_vm5, %v1870_v52, 0.0  ;;  %v2055_v21 = vmax.f32 %v8597_v38, %v8757_v30  ;;  %5114 = vmatprep.subr.bf16.mxu1 %v2951_v8  ;;  %v2749_v3 = vpop.f32.mrb[89].mxu0  ;;  %5100 = vmatprep.mubr.bf16.mxu1 %v8629_v15 }
 0x261   : > { %v2039_v40 = vadd.f32 %v2023_v25, %v2007_v46  ;;  %v8855_v29 = vadd.f32 %v1912_v60, %v1896_v4  ;;  %v1516_v33 = vsel %vm845_vm4, %v1494_v63, 0.0  ;;  %v8861_v62 = vadd.f32 %v1104_v12, %v10911_v13  ;;  %v4911_v30 = vpop.f32.mrb[90].mxu0  ;;  %v1344_v5 = vpop.permute.xlu0 %1343  ;;  %v10913_v13 = vld [vmem:[#allocation24_spill] sm:$0xff] }
 0x262   : > { %v1321_v18 = vsel %vm845_vm4, %v10912_v23, 0.0  ;;  %v1548_v11 = vand.u32 2147483647, %v1388_v6  ;;  %v1532_v38 = vadd.f32 %v1516_v33, %v8767_v9  ;;  %v1074_v60 = vadd.f32 %v1058_v19, %v1010_v51  ;;  %v2752_v47 = vpop.f32.mrb[91].mxu0 }
 0x263   : > { %v2134_v25 = vadd.f32 %v2133_v27, %v8842_v1  ;;  %v2071_v57 = vsub.f32 %v2039_v40, %v2055_v21  ;;  %v2953_v56 = vpack.c.bf16 %v4911_v30, %v4910_v2  ;;  %v1105_v16 = vand.u32 2147483647, %v1073_v59  ;;  %1965 = vrot.lane.b32.xlu0 %v8750_v20, %s5676_s29  ;;  %v8872_v46 = vpop.permute.xlu1 %1811  ;;  %5115 = vmatpush3.bf16.msra.mxu1 %v2951_v8  ;;  %v4914_v2 = vpop.f32.mrb[92].mxu0 }
 0x264   : > { %v1369_v12 = vsel %vm896_vm5, %v1344_v5, 0.0  ;;  %v1564_v48 = vand.u32 2147483647, %v1532_v38  ;;  %v2952_v6 = vpack.c.bf16 %v2752_v47, %v2749_v3  ;;  %v1090_v27 = vand.u32 2147483647, %v930_v35 }
 0x265   : > { %v2087_v9 = vand.u32 2147483647, %v2071_v57  ;;  %v1385_v51 = vsub.f32 %v1321_v18, %v1369_v12  ;;  %v1488_v19 = vpop.permute.xlu0 %1487  ;;  %v1106_v59 = vand.u32 2147483647, %v1074_v60  ;;  %v8879_v4 = vadd.f32 %v1105_v16, %v1089_v50  ;;  %v2765_v50 = vpop.f32.mrb[93].mxu0 }
 0x266   : > { %v8874_v52 = vadd.f32 %v1564_v48, %v1548_v11  ;;  %5116 = vmatprep.subr.bf16.mxu1 %v2952_v6  ;;  %5101 = vmatmul.mubr.bf16.gmra.mrb[72].mxu1 %v8668_v10  ;;  %v1513_v63 = vsel %vm845_vm4, %v1488_v19, 0.0  ;;  %v2135_v21 = vadd.f32 %v2134_v25, %v8861_v62  ;;  %v1784_v33 = vsel %vm845_vm4, %v8552_v41, 0.0  ;;  %v4915_v18 = vpop.f32.mrb[94].mxu0 }
 0x267   : > { %v8876_v54 = vadd.f32 %v2101_v61, %v2087_v9  ;;  %1505 = vrot.lane.b32.xlu0 %v10839_v26, %s5676_s29  ;;  %v1956_v8 = vpop.permute.xlu1 %1955  ;;  %5117 = vmatpush3.bf16.msra.mxu1 %v2952_v6  ;;  %v1545_v35 = vand.u32 2147483647, %v1385_v51  ;;  %v1529_v61 = vadd.f32 %v1513_v63, %v8812_v37  ;;  %v1454_v23 = vmul.f32 2.0, %v10913_v13  ;;  %v2768_v30 = vpop.f32.mrb[95].mxu0 }
 0x268   : > { %v1979_v40 = vsel %vm845_vm4, %v1956_v8, 0.0  ;;  %5118 = vmatprep.subr.bf16.mxu1 %v2953_v56  ;;  %5104 = vmatprep.mubr.bf16.mxu1 %v8691_v44  ;;  %v2955_v37 = vpack.c.bf16 %v4915_v18, %v4914_v2  ;;  %v8897_v60 = vadd.f32 %v1106_v59, %v1090_v27  ;;  %v2954_v41 = vpack.c.bf16 %v2768_v30, %v2765_v50  ;;  %v10914_v59 = vld [vmem:[#allocation29_spill] sm:$0xff] }
 0x269   : > { %v8894_v3 = vadd.f32 %v1979_v40, %v8824_v28  ;;  %v1561_v11 = vand.u32 2147483647, %v1529_v61  ;;  %v1806_v38 = vpop.permute.xlu0 %1805  ;;  %v2136_v28 = vadd.f32 %v2135_v21, %v8879_v4  ;;  %v8925_v2 = vld [vmem:[#allocation8] sm:$0xff]   ;;  %v10915_v21 = vld [vmem:[#allocation35_spill] sm:$0xff] }
 0x26a   : > { %v1832_v25 = vsel %vm896_vm5, %v1806_v38, 0.0  ;;  %v4918_v51 = vpop.f32.mrb[96].mxu0 }
 0x26b   : > { %1823 = vrot.lane.b32.xlu0 %v8575_v36, %s5677_s15  ;;  %v1418_v57 = vpop.permute.xlu1 %1417  ;;  %5119 = vmatpush3.bf16.msra.mxu1 %v2953_v56  ;;  %v8904_v5 = vadd.f32 %v1561_v11, %v1545_v35  ;;  %v1848_v47 = vsub.f32 %v1784_v33, %v1832_v25  ;;  %v2137_v9 = vadd.f32 %v2136_v28, %v8897_v60  ;;  %v2781_v63 = vpop.f32.mrb[97].mxu0  ;;  %v1917_v35 = vmul.f32 2.0, %v10915_v21 }
 0x26c   : > { %v1438_v16 = vsel %vm896_vm5, %v1418_v57, 0.0  ;;  %5120 = vmatprep.subr.bf16.mxu1 %v2954_v41  ;;  %v4919_v61 = vpop.f32.mrb[98].mxu0  ;;  %v2056_v11 = vmax.f32 %v8532_v45, %v8463_v34  ;;  %v1833_v57 = vsel %vm896_vm5, %v8682_v14, 0.0  ;;  %v2025_v45 = vand.u32 2147483647, %v8731_v49 }
 0x26d   : > { %v8908_v12 = vadd.f32 %v1454_v23, %v1438_v16  ;;  %v2152_v48 = vadd.f32 %v8787_v31, %v8904_v5  ;;  %v1950_v6 = vpop.permute.xlu0 %1949  ;;  %v2008_v27 = vand.u32 2147483647, %v1848_v47  ;;  %v1451_v31 = vmul.f32 2.0, %v10914_v59  ;;  %v2784_v13 = vpop.f32.mrb[99].mxu0 }
 0x26e   : > { %5105 = vmatmul.mubr.bf16.gmra.mrb[76].mxu1 %v8739_v17  ;;  %v1976_v36 = vsel %vm845_vm4, %v1950_v6, 0.0  ;;  %v2957_v33 = vpack.c.bf16 %v4919_v61, %v4918_v51  ;;  %v2956_v18 = vpack.c.bf16 %v2784_v13, %v2781_v63  ;;  %v2057_v49 = vmax.f32 %v8666_v32, %v8904_v5 }
 0x26f   : > { %1967 = vrot.lane.b32.xlu0 %v8475_v42, %s5676_s29  ;;  %v8917_v56 = vpop.permute.xlu1 %1765  ;;  %5121 = vmatpush3.bf16.msra.mxu1 %v2954_v41  ;;  %v1992_v19 = vadd.f32 %v1976_v36, %v8855_v29  ;;  %v8923_v8 = vadd.f32 %v2152_v48, %v8703_v24  ;;  %v10916_v48 = vld [vmem:[#allocation78_spill] sm:$0xff] }
 0x270   : > { %5122 = vmatprep.subr.bf16.mxu1 %v2955_v37  ;;  %5124 = vmatprep.mubr.bf16.mxu1 %v8925_v2  ;;  %v1914_v14 = vmul.f32 2.0, %v10916_v48 }
 0x271   : > { %2138 = vadd.xlane.f32.xlu1 %v2137_v9  ;;  %v2024_v40 = vand.u32 2147483647, %v1992_v19  ;;  %v1412_v50 = vpop.permute.xlu0 %1411 }
 0x272   : > { %v1435_v29 = vsel %vm896_vm5, %v1412_v50, 0.0  ;;  %v4922_v34 = vpop.f32.mrb[100].mxu0 }
 0x273   : > { %1825 = vrot.lane.b32.xlu0 %v8662_v7, %s5677_s15  ;;  %v1880_v23 = vpop.permute.xlu1 %1879  ;;  %5123 = vmatpush3.bf16.msra.mxu1 %v2955_v37  ;;  %v2040_v38 = vadd.f32 %v2024_v40, %v2008_v27  ;;  %v1467_v30 = vadd.f32 %v1451_v31, %v1435_v29  ;;  %v2797_v6 = vpop.f32.mrb[101].mxu0  ;;  %v10917_v40 = vld [vmem:[#allocation45_spill] sm:$0xff] }
 0x274   : > { %v1901_v25 = vsel %vm896_vm5, %v1880_v23, 0.0  ;;  %5140 = vmatprep.subr.bf16.mxu1 %v2956_v18  ;;  %v4923_v36 = vpop.f32.mrb[102].mxu0 }
 0x275   : > { %v8940_v41 = vadd.f32 %v1917_v35, %v1901_v25  ;;  %v2072_v28 = vsub.f32 %v2040_v38, %v2056_v11  ;;  %v1760_v7 = vpop.permute.xlu0 %1759  ;;  %v2959_v19 = vpack.c.bf16 %v4923_v36, %v4922_v34  ;;  %v2800_v59 = vpop.f32.mrb[103].mxu0 }
 0x276   : > { %5125 = vmatmul.mubr.bf16.vlgmr.msra.gmra.mrb[80].mxu1 %v8538_v43  ;;  %v1785_v37 = vsel %vm845_vm4, %v1760_v7, 0.0  ;;  %v2958_v21 = vpack.c.bf16 %v2800_v59, %v2797_v6 }
 0x277   : > { %5141 = vmatpush3.bf16.msra.mxu1 %v2956_v18  ;;  %5128 = vmatprep.mubr.bf16.mxu1 %v8562_v39  ;;  %v2088_v47 = vand.u32 2147483647, %v2072_v28  ;;  %v1849_v16 = vsub.f32 %v1785_v37, %v1833_v57  ;;  %v8951_v63 = vpop.permute.xlu1 %1353 }
 0x278   : > { %5142 = vmatprep.subr.bf16.mxu1 %v2957_v33 }
 0x279   : > { %v2103_v9 = vadd.f32 %v8876_v54, %v2088_v47  ;;  %v2009_v51 = vand.u32 2147483647, %v1849_v16  ;;  %v1874_v27 = vpop.permute.xlu0 %1873  ;;  %v1323_v54 = vsel %vm845_vm4, %v10917_v40, 0.0  ;;  %v1786_v47 = vsel %vm845_vm4, %v8782_v22, 0.0 }
 0x27a   : > { %v1898_v31 = vsel %vm896_vm5, %v1874_v27, 0.0  ;;  %v4926_v23 = vpop.f32.mrb[104].mxu0 }
 0x27b   : > { %5143 = vmatpush3.bf16.msra.mxu1 %v2957_v33  ;;  %v2041_v35 = vadd.f32 %v2025_v45, %v2009_v51  ;;  %v1930_v61 = vadd.f32 %v1914_v14, %v1898_v31  ;;  %v2813_v5 = vpop.f32.mrb[105].mxu0  ;;  %v8962_v18 = vpop.permute.xlu1 %1497 }
 0x27c   : > { %5144 = vmatprep.subr.bf16.mxu1 %v2958_v21  ;;  %v4927_v11 = vpop.f32.mrb[106].mxu0 }
 0x27d   : > { %v2073_v50 = vsub.f32 %v2041_v35, %v2057_v49  ;;  %v1348_v13 = vpop.permute.xlu0 %1347  ;;  %v2961_v57 = vpack.c.bf16 %v4927_v11, %v4926_v23  ;;  %v2816_v28 = vpop.f32.mrb[107].mxu0 }
 0x27e   : > { %5129 = vmatmul.mubr.bf16.gmra.mrb[84].mxu1 %v8609_v53  ;;  %v1371_v29 = vsel %vm896_vm5, %v1348_v13, 0.0  ;;  %v2960_v37 = vpack.c.bf16 %v2816_v28, %v2813_v5  ;;  %v1835_v28 = vsel %vm896_vm5, %v8872_v46, 0.0 }
 0x27f   : > { %5145 = vmatpush3.bf16.msra.mxu1 %v2958_v21  ;;  %5132 = vmatprep.mubr.bf16.mxu1 %v8629_v15  ;;  %v2089_v33 = vand.u32 2147483647, %v2073_v50  ;;  %v1387_v32 = vsub.f32 %v1323_v54, %v1371_v29  ;;  %v8974_v6 = vpop.permute.xlu1 %1815  ;;  %v10918_v54 = vld [vmem:[#allocation40_spill] sm:$0xff] }
 0x280   : > { %5146 = vmatprep.subr.bf16.mxu1 %v2959_v19  ;;  %v1453_v50 = vmul.f32 2.0, %v10918_v54  ;;  %v10922_v54 = vld [vmem:[#allocation53_spill] sm:$0xff] }
 0x281   : > { %v8964_v38 = vadd.f32 %v2103_v9, %v2089_v33  ;;  %v1492_v25 = vpop.permute.xlu0 %1491  ;;  %v1547_v34 = vand.u32 2147483647, %v1387_v32 }
 0x282   : > { %v1515_v7 = vsel %vm845_vm4, %v1492_v25, 0.0  ;;  %v4930_v36 = vpop.f32.mrb[108].mxu0 }
 0x283   : > { %5147 = vmatpush3.bf16.msra.mxu1 %v2959_v19  ;;  %v1531_v45 = vadd.f32 %v1515_v7, %v1467_v30  ;;  %v2829_v51 = vpop.f32.mrb[109].mxu0  ;;  %v8987_v29 = vpop.permute.xlu1 %1959 }
 0x284   : > { %5148 = vmatprep.subr.bf16.mxu1 %v2960_v37  ;;  %v4931_v22 = vpop.f32.mrb[110].mxu0 }
 0x285   : > { %v1563_v16 = vand.u32 2147483647, %v1531_v45  ;;  %v1810_v48 = vpop.permute.xlu0 %1809  ;;  %v2963_v59 = vpack.c.bf16 %v4931_v22, %v4930_v36  ;;  %v2832_v31 = vpop.f32.mrb[111].mxu0 }
 0x286   : > { %5133 = vmatmul.mubr.bf16.gmra.mrb[88].mxu1 %v8668_v10  ;;  %v1834_v14 = vsel %vm896_vm5, %v1810_v48, 0.0  ;;  %v2962_v49 = vpack.c.bf16 %v2832_v31, %v2829_v51  ;;  %v10920_v51 = vld [vmem:[#allocation86_spill] sm:$0xff] }
 0x287   : > { %5149 = vmatpush3.bf16.msra.mxu1 %v2960_v37  ;;  %5136 = vmatprep.mubr.bf16.mxu1 %v8691_v44  ;;  %v8977_v9 = vadd.f32 %v1563_v16, %v1547_v34  ;;  %v1850_v30 = vsub.f32 %v1786_v47, %v1834_v14  ;;  %v9000_v48 = vpop.permute.xlu1 %1421  ;;  %v1916_v22 = vmul.f32 2.0, %v10920_v51 }
 0x288   : > { %5150 = vmatprep.subr.bf16.mxu1 %v2961_v57 }
 0x289   : > { %v2154_v27 = vadd.f32 %v8923_v8, %v8977_v9  ;;  %v1954_v19 = vpop.permute.xlu0 %1953  ;;  %v2010_v35 = vand.u32 2147483647, %v1850_v30 }
 0x28a   : > { %v1978_v21 = vsel %vm845_vm4, %v1954_v19, 0.0  ;;  %v4934_v32 = vpop.f32.mrb[112].mxu0 }
 0x28b   : > { %5151 = vmatpush3.bf16.msra.mxu1 %v2961_v57  ;;  %v1994_v40 = vadd.f32 %v1978_v21, %v1930_v61  ;;  %v8985_v13 = vadd.f32 %v2154_v27, %v8874_v52  ;;  %v10919_v61 = vld [vmem:[#allocation46_spill] sm:$0xff]  ;;  %v2845_v57 = vpop.f32.mrb[113].mxu0 }
 0x28c   : > { %5152 = vmatprep.subr.bf16.mxu1 %v2962_v49  ;;  %v2058_v5 = vmax.f32 %v10919_v61, %v8703_v24  ;;  %v4935_v7 = vpop.f32.mrb[114].mxu0  ;;  %v2027_v24 = vand.u32 2147483647, %v8894_v3  ;;  %v10921_v3 = vld [vmem:[#allocation34_spill] sm:$0xff] }
 0x28d   : > { %v2026_v23 = vand.u32 2147483647, %v1994_v40  ;;  %v1416_v8 = vpop.permute.xlu0 %1415  ;;  %v2965_v45 = vpack.c.bf16 %v4935_v7, %v4934_v32  ;;  %v2848_v47 = vpop.f32.mrb[115].mxu0 }
 0x28e   : > { %5137 = vmatmul.mubr.bf16.gmra.mrb[92].mxu1 %v8739_v17  ;;  %v1437_v33 = vsel %vm896_vm5, %v1416_v8, 0.0  ;;  %v2964_v14 = vpack.c.bf16 %v2848_v47, %v2845_v57 }
 0x28f   : > { %5153 = vmatpush3.bf16.msra.mxu1 %v2962_v49  ;;  %5156 = vmatprep.mubr.bf16.mxu1 %v8925_v2  ;;  %v2042_v11 = vadd.f32 %v2026_v23, %v2010_v35  ;;  %v1469_v25 = vadd.f32 %v1453_v50, %v1437_v33  ;;  %v9014_v50 = vpop.permute.xlu1 %1769  ;;  %v10923_v23 = vld [vmem:[#allocation118_spill] sm:$0xff] }
 0x290   : > { %5154 = vmatprep.subr.bf16.mxu1 %v2963_v59  ;;  %v1326_v8 = vsel %vm845_vm4, %v10923_v23, 0.0 }
 0x291   : > { %v2074_v37 = vsub.f32 %v2042_v11, %v2058_v5  ;;  %v1764_v34 = vpop.permute.xlu0 %1763  ;;  %v1518_v5 = vsel %vm845_vm4, %v8962_v18, 0.0 }
 0x292   : > { %v1787_v16 = vsel %vm845_vm4, %v1764_v34, 0.0  ;;  %v4938_v21 = vpop.f32.mrb[116].mxu0  ;;  %v1534_v34 = vadd.f32 %v1518_v5, %v8908_v12  ;;  %v1788_v12 = vsel %vm845_vm4, %v8917_v56, 0.0 }
 0x293   : > { %5155 = vmatpush3.bf16.msra.mxu1 %v2963_v59  ;;  %v2090_v36 = vand.u32 2147483647, %v2074_v37  ;;  %v1851_v30 = vsub.f32 %v1787_v16, %v1835_v28  ;;  %v2059_v59 = vmax.f32 %v10921_v3, %v8977_v9  ;;  %v2861_v40 = vpop.f32.mrb[117].mxu0  ;;  %v9031_v16 = vpop.permute.xlu1 %1883 }
 0x294   : > { %5172 = vmatprep.subr.bf16.mxu1 %v2964_v14 }
 0x295   : > { %v2105_v46 = vadd.f32 %v8964_v38, %v2090_v36  ;;  %v2011_v27 = vand.u32 2147483647, %v1851_v30  ;;  %v1878_v19 = vpop.permute.xlu0 %1877  ;;  %v1325_v38 = vsel %vm845_vm4, %v10922_v54, 0.0 }
 0x296   : > { %5157 = vmatmul.mubr.bf16.vlgmr.msra.gmra.mrb[96].mxu1 %v8538_v43  ;;  %v1900_v31 = vsel %vm896_vm5, %v1878_v19, 0.0  ;;  %v4939_v43 = vpop.f32.mrb[118].mxu0 }
 0x297   : > { %5173 = vmatpush3.bf16.msra.mxu1 %v2964_v14  ;;  %5160 = vmatprep.mubr.bf16.mxu1 %v8562_v39  ;;  %v2043_v49 = vadd.f32 %v2027_v24, %v2011_v27  ;;  %v1932_v35 = vadd.f32 %v1916_v22, %v1900_v31  ;;  %v1374_v39 = vsel %vm896_vm5, %v8951_v63, 0.0  ;;  %v2967_v32 = vpack.c.bf16 %v4939_v43, %v4938_v21  ;;  %v2864_v61 = vpop.f32.mrb[119].mxu0  ;;  %v9043_v3 = vpop.permute.xlu1 %1357 }
 0x298   : > { %5174 = vmatprep.subr.bf16.mxu1 %v2965_v45  ;;  %v2966_v57 = vpack.c.bf16 %v2864_v61, %v2861_v40  ;;  %v1390_v37 = vsub.f32 %v1326_v8, %v1374_v39 }
 0x299   : > { %v2075_v9 = vsub.f32 %v2043_v49, %v2059_v59  ;;  %v1352_v33 = vpop.permute.xlu0 %1351 }
 0x29a   : > { %v1373_v11 = vsel %vm896_vm5, %v1352_v33, 0.0  ;;  %v4942_v14 = vpop.f32.mrb[120].mxu0  ;;  %v1550_v30 = vand.u32 2147483647, %v1390_v37 }
 0x29b   : > { %5175 = vmatpush3.bf16.msra.mxu1 %v2965_v45  ;;  %v2091_v28 = vand.u32 2147483647, %v2075_v9  ;;  %v1389_v7 = vsub.f32 %v1325_v38, %v1373_v11  ;;  %v2877_v36 = vpop.f32.mrb[121].mxu0  ;;  %v1502_v5 = vpop.permute.xlu1 %1501 }
 0x29c   : > { %5176 = vmatprep.subr.bf16.mxu1 %v2966_v57  ;;  %v4943_v51 = vpop.f32.mrb[122].mxu0 }
 0x29d   : > { %v9028_v63 = vadd.f32 %v2105_v46, %v2091_v28  ;;  %v1496_v47 = vpop.permute.xlu0 %1495  ;;  %v1549_v45 = vand.u32 2147483647, %v1389_v7  ;;  %v2969_v27 = vpack.c.bf16 %v4943_v51, %v4942_v14  ;;  %v2880_v19 = vpop.f32.mrb[123].mxu0 }
 0x29e   : > { %5161 = vmatmul.mubr.bf16.gmra.mrb[100].mxu1 %v8609_v53  ;;  %v1517_v18 = vsel %vm845_vm4, %v1496_v47, 0.0  ;;  %v1566_v53 = vand.u32 2147483647, %v1534_v34  ;;  %v2968_v21 = vpack.c.bf16 %v2880_v19, %v2877_v36 }
 0x29f   : > { %5177 = vmatpush3.bf16.msra.mxu1 %v2966_v57  ;;  %5164 = vmatprep.mubr.bf16.mxu1 %v8629_v15  ;;  %v1533_v24 = vadd.f32 %v1517_v18, %v1469_v25  ;;  %v10924_v57 = vld [vmem:[#allocation94_spill] sm:$0xff] }
 0x2a0   : > { %5178 = vmatprep.subr.bf16.mxu1 %v2967_v32  ;;  %v9045_v59 = vadd.f32 %v1566_v53, %v1550_v30  ;;  %v2060_v28 = vmax.f32 %v10924_v57, %v8874_v52 }
 0x2a1   : > { %v1565_v22 = vand.u32 2147483647, %v1533_v24  ;;  %v1814_v46 = vpop.permute.xlu0 %1813 }
 0x2a2   : > { %v1836_v31 = vsel %vm896_vm5, %v1814_v46, 0.0  ;;  %v4946_v54 = vpop.f32.mrb[124].mxu0 }
 0x2a3   : > { %5179 = vmatpush3.bf16.msra.mxu1 %v2967_v32  ;;  %v9041_v15 = vadd.f32 %v1565_v22, %v1549_v45  ;;  %v1852_v25 = vsub.f32 %v1788_v12, %v1836_v31  ;;  %v2893_v23 = vpop.f32.mrb[125].mxu0  ;;  %v9053_v8 = vpop.f32.mrb[0].mxu1  ;;  %v10925_v12 = vld [vmem:[#allocation62_spill] sm:$0xff]  ;;  %v10927_v31 = vld [vmem:[#allocation52_spill] sm:$0xff] }
 0x2a4   : > { %5180 = vmatprep.subr.bf16.mxu1 %v2968_v21  ;;  %v9061_v9 = vpop.f32.mrb[1].mxu1  ;;  %v9076_v45 = vpop.permute.xlu1 %1819  ;;  %v1456_v30 = vmul.f32 2.0, %v10925_v12 }
 0x2a5   : > { %v2156_v56 = vadd.f32 %v8985_v13, %v9041_v15  ;;  %v1958_v49 = vpop.permute.xlu0 %1957  ;;  %v2012_v38 = vand.u32 2147483647, %v1852_v25  ;;  %v4947_v13 = vpop.f32.mrb[126].mxu0 }
 0x2a6   : > { %5165 = vmatmul.mubr.bf16.gmra.mrb[104].mxu1 %v8668_v10  ;;  %v1980_v40 = vsel %vm845_vm4, %v1958_v49, 0.0  ;;  %v1981_v10 = vsel %vm845_vm4, %v8987_v29, 0.0  ;;  %v2971_v61 = vpack.c.bf16 %v4947_v13, %v4946_v54  ;;  %v9063_v11 = vpop.f32.mrb[2].mxu1  ;;  %v1837_v29 = vsel %vm896_vm5, %v8974_v6, 0.0 }
 0x2a7   : > { %5181 = vmatpush3.bf16.msra.mxu1 %v2968_v21  ;;  %5168 = vmatprep.mubr.bf16.mxu1 %v8691_v44  ;;  %v1996_v43 = vadd.f32 %v1980_v40, %v1932_v35  ;;  %v9056_v39 = vadd.f32 %v2156_v56, %v9045_v59  ;;  %v2896_v44 = vpop.f32.mrb[127].mxu0  ;;  %v1997_v7 = vadd.f32 %v1981_v10, %v8940_v41  ;;  %v9068_v34 = vpop.f32.mrb[3].mxu1  ;;  %v1455_v21 = vmul.f32 2.0, %v10927_v31  ;;  %v10928_v56 = vld [vmem:[#allocation81_spill] sm:$0xff]  ;;  %v5440_v31 = vld [vmem:[#allocation8 + $0x18] sm:$0xff]  }
 0x2a8   : > { %5182 = vmatprep.subr.bf16.mxu1 %v2969_v27  ;;  %v2970_v35 = vpack.c.bf16 %v2896_v44, %v2893_v23  ;;  %v1964_v40 = vpop.permute.xlu1 %1963  ;;  %v10929_v23 = vld [vmem:[#allocation122_spill] sm:$0xff]  ;;  %v1376_v10 = vsel %vm896_vm5, %v9043_v3, 0.0  ;;  %v1520_v13 = vsel %vm845_vm4, %v1502_v5, 0.0 }
 0x2a9   : > { %v2028_v33 = vand.u32 2147483647, %v1996_v43  ;;  %v1420_v32 = vpop.permute.xlu0 %1419  ;;  %v2029_v52 = vand.u32 2147483647, %v1997_v7  ;;  %v5438_v43 = vld [vmem:[#allocation8 + $0x8] sm:$0xff]  }
 0x2aa   : > { %v1439_v49 = vsel %vm896_vm5, %v1420_v32, 0.0  ;;  %v5439_v32 = vld [vmem:[#allocation8 + $0x10] sm:$0xff]  }
 0x2ab   : > { %5183 = vmatpush3.bf16.msra.mxu1 %v2969_v27  ;;  %v2044_v37 = vadd.f32 %v2028_v33, %v2012_v38  ;;  %v9079_v36 = vpop.f32.mrb[4].mxu1  ;;  %v10926_v27 = vld [vmem:[#allocation113_spill] sm:$0xff] }
 0x2ac   : > { %5184 = vmatprep.subr.bf16.mxu1 %v2970_v35  ;;  %v9081_v6 = vpop.f32.mrb[5].mxu1  ;;  %v2061_v19 = vmax.f32 %v10926_v27, %v9041_v15  ;;  %v1328_v15 = vsel %vm845_vm4, %v10929_v23, 0.0 }
 0x2ad   : > { %v2076_v47 = vsub.f32 %v2044_v37, %v2060_v28  ;;  %v1768_v18 = vpop.permute.xlu0 %1767  ;;  %v9085_v22 = vpop.f32.mrb[6].mxu1  ;;  %v1392_v7 = vsub.f32 %v1328_v15, %v1376_v10 }
 0x2ae   : > { %5169 = vmatmul.mubr.bf16.gmra.mrb[108].mxu1 %v8739_v17  ;;  %v1789_v14 = vsel %vm845_vm4, %v1768_v18, 0.0  ;;  %v9090_v46 = vpop.f32.mrb[7].mxu1  ;;  %v9120_v18 = vpop.permute.xlu1 %1425 }
 0x2af   : > { %5185 = vmatpush3.bf16.msra.mxu1 %v2970_v35  ;;  %5188 = vmatprep.mubr.bf16.mxu1 %v8925_v2  ;;  %v2092_v41 = vand.u32 2147483647, %v2076_v47  ;;  %v1853_v24 = vsub.f32 %v1789_v14, %v1837_v29  ;;  %v1440_v2 = vsel %vm896_vm5, %v9000_v48, 0.0 }
 0x2b0   : > { %5186 = vmatprep.subr.bf16.mxu1 %v2971_v61  ;;  %v1472_v54 = vadd.f32 %v1456_v30, %v1440_v2  ;;  %v1790_v30 = vsel %vm845_vm4, %v9014_v50, 0.0 }
 0x2b1   : > { %v2107_v17 = vadd.f32 %v9028_v63, %v2092_v41  ;;  %v2013_v51 = vand.u32 2147483647, %v1853_v24  ;;  %v1882_v53 = vpop.permute.xlu0 %1881  ;;  %v1327_v63 = vsel %vm845_vm4, %v10928_v56, 0.0  ;;  %v10931_v56 = vld [vmem:[#allocation67_spill] sm:$0xff] }
 0x2b2   : > { %v1536_v37 = vadd.f32 %v1520_v13, %v1472_v54 }
 0x2b3   : > { %5187 = vmatpush3.bf16.msra.mxu1 %v2971_v61  ;;  %v2045_v25 = vadd.f32 %v2029_v52, %v2013_v51  ;;  %v1471_v61 = vadd.f32 %v1455_v21, %v1439_v49  ;;  %v9110_v57 = vpop.f32.mrb[8].mxu1  ;;  %v10930_v52 = vld [vmem:[#allocation89_spill] sm:$0xff]  ;;  %v1552_v51 = vand.u32 2147483647, %v1392_v7  ;;  %v1983_v7 = vsel %vm845_vm4, %v1964_v40, 0.0 }
 0x2b4   : > { %v9112_v28 = vpop.f32.mrb[9].mxu1  ;;  %v1918_v41 = vmul.f32 2.0, %v10930_v52  ;;  %v1568_v2 = vand.u32 2147483647, %v1536_v37  ;;  %v5443_v52 = vld [vmem:[#allocation8 + $0x30] sm:$0xff]   ;;  %v9168_v40 = vmul.f32 %v9053_v8, %v9053_v8 }
 0x2b5   : > { %v2077_v38 = vsub.f32 %v2045_v25, %v2061_v19  ;;  %v1356_v48 = vpop.permute.xlu0 %1355  ;;  %v9116_v47 = vpop.f32.mrb[10].mxu1  ;;  %v5441_v25 = vld [vmem:[#allocation8 + $0x20] sm:$0xff]  }
 0x2b6   : > { %5189 = vmatmul.mubr.bf16.vlgmr.msra.gmra.mrb[112].mxu1 %v5438_v43  ;;  %v1375_v33 = vsel %vm896_vm5, %v1356_v48, 0.0  ;;  %v9122_v14 = vpop.f32.mrb[11].mxu1  ;;  %v9140_v48 = vpop.permute.xlu1 %1773  ;;  %v9144_v23 = vadd.f32 %v1568_v2, %v1552_v51 }
 0x2b7   : > { %5192 = vmatprep.mubr.bf16.mxu1 %v5439_v32  ;;  %v2093_v44 = vand.u32 2147483647, %v2077_v38  ;;  %v1391_v35 = vsub.f32 %v1327_v63, %v1375_v33  ;;  %v1919_v63 = vmul.f32 2.0, %v10931_v56 }
 0x2b9   : > { %v9114_v29 = vadd.f32 %v2107_v17, %v2093_v44  ;;  %v1500_v3 = vpop.permute.xlu0 %1499  ;;  %v1551_v24 = vand.u32 2147483647, %v1391_v35  ;;  %v1902_v17 = vsel %vm896_vm5, %v1882_v53, 0.0  ;;  %v1903_v53 = vsel %vm896_vm5, %v9031_v16, 0.0 }
 0x2ba   : > { %v1519_v5 = vsel %vm845_vm4, %v1500_v3, 0.0  ;;  %v1934_v49 = vadd.f32 %v1918_v41, %v1902_v17  ;;  %v2062_v41 = vmax.f32 %v8803_v58, %v9045_v59  ;;  %v9177_v58 = vmul.f32 %v9061_v9, %v9061_v9 }
 0x2bb   : > { %v1535_v12 = vadd.f32 %v1519_v5, %v1471_v61  ;;  %v9135_v38 = vpop.f32.mrb[12].mxu1  ;;  %v1935_v61 = vadd.f32 %v1919_v63, %v1903_v53  ;;  %v9159_v5 = vpop.permute.xlu1 %1887 }
 0x2bc   : > { %v9142_v43 = vpop.f32.mrb[13].mxu1 }
 0x2bd   : > { %v1567_v27 = vand.u32 2147483647, %v1535_v12  ;;  %v1818_v19 = vpop.permute.xlu0 %1817  ;;  %v9148_v13 = vpop.f32.mrb[14].mxu1 }
 0x2be   : > { %5193 = vmatmul.mubr.bf16.gmra.mrb[116].mxu1 %v5440_v31  ;;  %v1838_v21 = vsel %vm896_vm5, %v1818_v19, 0.0  ;;  %v9152_v32 = vpop.f32.mrb[15].mxu1 }
 0x2bf   : > { %5196 = vmatprep.mubr.bf16.mxu1 %v5441_v25  ;;  %v9133_v54 = vadd.f32 %v1567_v27, %v1551_v24  ;;  %v1854_v50 = vsub.f32 %v1790_v30, %v1838_v21  ;;  %v1999_v24 = vadd.f32 %v1983_v7, %v1935_v61  ;;  %v1839_v30 = vsel %vm896_vm5, %v9076_v45, 0.0 }
 0x2c1   : > { %v2158_v15 = vadd.f32 %v9056_v39, %v9133_v54  ;;  %v1962_v10 = vpop.permute.xlu0 %1961  ;;  %v2014_v44 = vand.u32 2147483647, %v1854_v50  ;;  %v5442_v39 = vld [vmem:[#allocation8 + $0x28] sm:$0xff]   ;;  %v2031_v56 = vand.u32 2147483647, %v1999_v24 }
 0x2c2   : > { %v1982_v33 = vsel %vm845_vm4, %v1962_v10, 0.0 }
 0x2c3   : > { %v1998_v16 = vadd.f32 %v1982_v33, %v1934_v49  ;;  %v9155_v35 = vadd.f32 %v2158_v15, %v9144_v23  ;;  %v9190_v15 = vpop.permute.xlu1 %1361 }
 0x2c4   : > { %v4998_v17 = vpop.f32.mrb[16].mxu1 }
 0x2c5   : > { %v2030_v37 = vand.u32 2147483647, %v1998_v16  ;;  %v1424_v3 = vpop.permute.xlu0 %1423  ;;  %v9170_v27 = vmul.f32 %v4998_v17, %v4998_v17  ;;  %v9173_v19 = vmul.f32 %v4998_v17, %v9053_v8  ;;  %v3151_v31 = vpop.f32.mrb[17].mxu1 }
 0x2c6   : > { %5197 = vmatmul.mubr.bf16.gmra.mrb[120].mxu1 %v5442_v39  ;;  %v9181_v45 = vmul.f32 %v3151_v31, %v3151_v31  ;;  %v9184_v21 = vmul.f32 %v3151_v31, %v9061_v9  ;;  %v4999_v25 = vpop.f32.mrb[18].mxu1  ;;  %v5444_v39 = vld [vmem:[#allocation8 + $0x38] sm:$0xff]  }
 0x2c7   : > { %5200 = vmatprep.mubr.bf16.mxu1 %v5443_v52  ;;  %v2046_v12 = vadd.f32 %v2030_v37, %v2014_v44  ;;  %10932 = vst [vmem:[#allocation91_spill] sm:$0xff] %v9170_v27  ;;  %10933 = vst [vmem:[#allocation42_spill] sm:$0xff] %v9173_v19  ;;  %v9188_v50 = vadd.f32 %v9170_v27, %v9168_v40  ;;  %v3154_v53 = vpop.f32.mrb[19].mxu1  ;;  %v9196_v33 = vmul.f32 %v4999_v25, %v4999_v25 }
 0x2c8   : > { %10934 = vst [vmem:[#allocation103_spill] sm:$0xff] %v9181_v45  ;;  %10935 = vst [vmem:[#allocation133_spill] sm:$0xff] %v9184_v21  ;;  %v9194_v10 = vadd.f32 %v9181_v45, %v9177_v58  ;;  %v9199_v61 = vmul.f32 %v4999_v25, %v9063_v11  ;;  %v9203_v44 = vmul.f32 %v9063_v11, %v9063_v11 }
 0x2c9   : > { %v2078_v51 = vsub.f32 %v2046_v12, %v2062_v41  ;;  %v1772_v2 = vpop.permute.xlu0 %1771  ;;  %10936 = vst [vmem:[#allocation128_spill] sm:$0xff] %v9188_v50  ;;  %10938 = vst [vmem:[#allocation115_spill] sm:$0xff] %v9196_v33  ;;  %v9208_v52 = vmul.f32 %v9068_v34, %v9068_v34  ;;  %v10940_v41 = vld [vmem:[#allocation31_spill] sm:$0xff]  ;;  %v2063_v12 = vmax.f32 %v8842_v1, %v9133_v54 }
 0x2ca   : > { %v1791_v59 = vsel %vm845_vm4, %v1772_v2, 0.0  ;;  %10937 = vst [vmem:[#allocation130_spill] sm:$0xff] %v9194_v10  ;;  %10939 = vst [vmem:[#allocation135_spill] sm:$0xff] %v9199_v61  ;;  %v1457_v24 = vmul.f32 2.0, %v10940_v41  ;;  %v9215_v17 = vadd.f32 %v9196_v33, %v9203_v44  ;;  %v9222_v2 = vmul.f32 %v3154_v53, %v9068_v34 }
 0x2cb   : > { %v2094_v63 = vand.u32 2147483647, %v2078_v51  ;;  %v1855_v49 = vsub.f32 %v1791_v59, %v1839_v30  ;;  %v9217_v51 = vmul.f32 %v3154_v53, %v3154_v53  ;;  %v9224_v59 = vpop.permute.xlu1 %1775  ;;  %v9228_v25 = vmul.f32 %v9079_v36, %v9079_v36 }
 0x2cc   : > { %10941 = vst [vmem:[#allocation131_spill] sm:$0xff] %v9215_v17  ;;  %10943 = vst [vmem:[#allocation26_spill] sm:$0xff] %v9222_v2  ;;  %v5002_v31 = vpop.f32.mrb[20].mxu1  ;;  %v1458_v17 = vmul.f32 2.0, %v10839_v26  ;;  %v9398_v33 = vmul.f32 %v9142_v43, %v9142_v43 }
 0x2cd   : > { %v2109_v16 = vadd.f32 %v9114_v29, %v2094_v63  ;;  %v2015_v7 = vand.u32 2147483647, %v1855_v49  ;;  %v1886_v37 = vpop.permute.xlu0 %1885  ;;  %10942 = vst [vmem:[#allocation96_spill] sm:$0xff] %v9217_v51  ;;  %v1441_v29 = vsel %vm896_vm5, %v1424_v3, 0.0  ;;  %v9234_v63 = vmul.f32 %v5002_v31, %v5002_v31  ;;  %v3167_v49 = vpop.f32.mrb[21].mxu1 }
 0x2ce   : > { %5201 = vmatmul.mubr.bf16.gmra.mrb[124].mxu1 %v5444_v39  ;;  %v9238_v3 = vmul.f32 %v9081_v6, %v9081_v6  ;;  %v9241_v53 = vmul.f32 %v5002_v31, %v9079_v36  ;;  %v5003_v39 = vpop.f32.mrb[22].mxu1  ;;  %v1473_v41 = vadd.f32 %v1457_v24, %v1441_v29  ;;  %v9252_v21 = vmul.f32 %v3167_v49, %v9081_v6 }
 0x2cf   : > { %v2047_v30 = vadd.f32 %v2031_v56, %v2015_v7  ;;  %v9232_v56 = vadd.f32 %v9217_v51, %v9208_v52  ;;  %10945 = vst [vmem:[#allocation71_spill] sm:$0xff] %v9234_v63  ;;  %v9243_v7 = vmul.f32 %v3167_v49, %v3167_v49  ;;  %v9249_v2 = vadd.f32 %v9234_v63, %v9228_v25  ;;  %v3170_v61 = vpop.f32.mrb[23].mxu1 }
 0x2d0   : > { %10946 = vst [vmem:[#allocation70_spill] sm:$0xff] %v9241_v53  ;;  %10949 = vst [vmem:[#allocation66_spill] sm:$0xff] %v9252_v21  ;;  %v10951_v53 = vld [vmem:[#allocation87_spill] sm:$0xff]  ;;  %v9263_v29 = vmul.f32 %v9085_v22, %v9085_v22  ;;  %v9267_v19 = vmul.f32 %v5003_v39, %v5003_v39  ;;  %v9271_v49 = vmul.f32 %v9090_v46, %v9090_v46  ;;  %v1920_v21 = vmul.f32 2.0, %v8750_v20 }
 0x2d1   : > { %v2079_v1 = vsub.f32 %v2047_v30, %v2063_v12  ;;  %v1360_v54 = vpop.permute.xlu0 %1359  ;;  %10944 = vst [vmem:[#allocation137_spill] sm:$0xff] %v9232_v56  ;;  %10947 = vst [vmem:[#allocation72_spill] sm:$0xff] %v9243_v7  ;;  %v9256_v31 = vadd.f32 %v9243_v7, %v9238_v3  ;;  %v1329_v24 = vsel %vm845_vm4, %v10951_v53, 0.0  ;;  %v1890_v53 = vpop.permute.xlu1 %1889  ;;  %v9277_v63 = vmul.f32 %v5003_v39, %v9085_v22 }
 0x2d2   : > { %v1377_v30 = vsel %vm896_vm5, %v1360_v54, 0.0  ;;  %10948 = vst [vmem:[#allocation119_spill] sm:$0xff] %v9249_v2  ;;  %10952 = vst [vmem:[#allocation121_spill] sm:$0xff] %v9267_v19  ;;  %v1792_v56 = vsel %vm845_vm4, %v9140_v48, 0.0  ;;  %v1904_v20 = vsel %vm896_vm5, %v1886_v37, 0.0 }
 0x2d3   : > { %v2095_v12 = vand.u32 2147483647, %v2079_v1  ;;  %10950 = vst [vmem:[#allocation110_spill] sm:$0xff] %v9256_v31  ;;  %v1393_v31 = vsub.f32 %v1329_v24, %v1377_v30  ;;  %10953 = vst [vmem:[#allocation109_spill] sm:$0xff] %v9277_v63  ;;  %v9291_v30 = vmul.f32 %v3170_v61, %v9090_v46  ;;  %v9300_v24 = vmul.f32 %v9110_v57, %v9110_v57 }
 0x2d4   : > { %v1936_v10 = vadd.f32 %v1920_v21, %v1904_v20  ;;  %v10963_v21 = vld [vmem:[#allocation88_spill] sm:$0xff] }
 0x2d5   : > { %v9265_v1 = vadd.f32 %v2109_v16, %v2095_v12  ;;  %v1504_v54 = vpop.permute.xlu0 %1503  ;;  %v9281_v16 = vadd.f32 %v9267_v19, %v9263_v29  ;;  %v9283_v12 = vmul.f32 %v3170_v61, %v3170_v61  ;;  %10956 = vst [vmem:[#allocation107_spill] sm:$0xff] %v9291_v30 }
 0x2d6   : > { %v1521_v2 = vsel %vm845_vm4, %v1504_v54, 0.0 }
 0x2d7   : > { %v1537_v7 = vadd.f32 %v1521_v2, %v1473_v41  ;;  %10954 = vst [vmem:[#allocation37_spill] sm:$0xff] %v9281_v16  ;;  %10955 = vst [vmem:[#allocation114_spill] sm:$0xff] %v9283_v12  ;;  %v5006_v2 = vpop.f32.mrb[24].mxu1  ;;  %v10957_v41 = vld [vmem:[#allocation124_spill] sm:$0xff]  ;;  %v9304_v48 = vadd.f32 %v9283_v12, %v9271_v49  ;;  %v1553_v16 = vand.u32 2147483647, %v1393_v31 }
 0x2d8   : > { %v9296_v39 = vsel %vm845_vm4, %v10957_v41, 0.0  ;;  %v3183_v37 = vpop.f32.mrb[25].mxu1  ;;  %v9308_v30 = vmul.f32 %v5006_v2, %v5006_v2  ;;  %v9311_v41 = vmul.f32 %v5006_v2, %v9110_v57 }
 0x2d9   : > { %v1569_v54 = vand.u32 2147483647, %v1537_v7  ;;  %v1822_v63 = vpop.permute.xlu0 %1821  ;;  %10958 = vst [vmem:[#allocation84_spill] sm:$0xff] %v9304_v48  ;;  %v5007_v19 = vpop.f32.mrb[26].mxu1  ;;  %v1921_v7 = vmul.f32 2.0, %v8475_v42  ;;  %v9317_v48 = vmul.f32 %v9112_v28, %v9112_v28  ;;  %v9325_v2 = vmul.f32 %v3183_v37, %v3183_v37 }
 0x2da   : > { %v1840_v61 = vsel %vm896_vm5, %v1822_v63, 0.0  ;;  %10959 = vst [vmem:[#allocation98_spill] sm:$0xff] %v9308_v30  ;;  %10960 = vst [vmem:[#allocation60_spill] sm:$0xff] %v9311_v41  ;;  %v3186_v51 = vpop.f32.mrb[27].mxu1  ;;  %v9323_v63 = vadd.f32 %v9308_v30, %v9300_v24  ;;  %v9327_v41 = vpop.permute.xlu1 %1777  ;;  %v9331_v42 = vmul.f32 %v9116_v47, %v9116_v47  ;;  %v9335_v20 = vmul.f32 %v3183_v37, %v9112_v28 }
 0x2db   : > { %v1856_v50 = vsub.f32 %v1792_v56, %v1840_v61  ;;  %v9319_v31 = vadd.f32 %v1569_v54, %v1553_v16  ;;  %10962 = vst [vmem:[#allocation111_spill] sm:$0xff] %v9325_v2  ;;  %v1922_v56 = vmul.f32 2.0, %v10963_v21  ;;  %v9337_v16 = vmul.f32 %v5007_v19, %v5007_v19 }
 0x2dc   : > { %10961 = vst [vmem:[#allocation61_spill] sm:$0xff] %v9323_v63  ;;  %10964 = vst [vmem:[#allocation117_spill] sm:$0xff] %v9335_v20  ;;  %v2064_v54 = vmax.f32 %v8861_v62, %v9144_v23  ;;  %v1442_v61 = vsel %vm896_vm5, %v9120_v18, 0.0  ;;  %v9348_v30 = vadd.f32 %v9325_v2, %v9317_v48  ;;  %v9351_v37 = vmul.f32 %v5007_v19, %v9116_v47 }
 0x2dd   : > { %v1966_v26 = vpop.permute.xlu0 %1965  ;;  %10965 = vst [vmem:[#allocation73_spill] sm:$0xff] %v9337_v16  ;;  %v2016_v21 = vand.u32 2147483647, %v1856_v50  ;;  %v9355_v20 = vadd.f32 %v9337_v16, %v9331_v42  ;;  %v9359_v62 = vmul.f32 %v9122_v14, %v9122_v14  ;;  %v9361_v18 = vmul.f32 %v3186_v51, %v3186_v51 }
 0x2de   : > { %v1984_v63 = vsel %vm845_vm4, %v1966_v26, 0.0  ;;  %10966 = vst [vmem:[#allocation48_spill] sm:$0xff] %v9348_v30  ;;  %10967 = vst [vmem:[#allocation44_spill] sm:$0xff] %v9351_v37  ;;  %v9364_v23 = vmul.f32 %v3186_v51, %v9122_v14  ;;  %v5010_v26 = vpop.f32.mrb[28].mxu1  ;;  %v9368_v50 = vadd.f32 %v9155_v35, %v9319_v31  ;;  %v1474_v19 = vadd.f32 %v1458_v17, %v1442_v61 }
 0x2df   : > { %v2000_v12 = vadd.f32 %v1984_v63, %v1936_v10  ;;  %10968 = vst [vmem:[#allocation58_spill] sm:$0xff] %v9355_v20  ;;  %10969 = vst [vmem:[#allocation80_spill] sm:$0xff] %v9361_v18  ;;  %v1906_v37 = vsel %vm896_vm5, %v1890_v53, 0.0  ;;  %v9372_v20 = vmul.f32 %v5010_v26, %v5010_v26  ;;  %v3199_v30 = vpop.f32.mrb[29].mxu1  ;;  %v1905_v16 = vsel %vm896_vm5, %v9159_v5, 0.0  ;;  %v1970_v53 = vpop.permute.xlu1 %1969 }
 0x2e0   : > { %10970 = vst [vmem:[#allocation120_spill] sm:$0xff] %v9364_v23  ;;  %v1378_v51 = vsel %vm896_vm5, %v9190_v15, 0.0  ;;  %v9382_v35 = vmul.f32 %v9135_v38, %v9135_v38  ;;  %v9386_v17 = vadd.f32 %v9361_v18, %v9359_v62  ;;  %v1793_v23 = vsel %vm845_vm4, %v9224_v59, 0.0 }
 0x2e1   : > { %v2032_v10 = vand.u32 2147483647, %v2000_v12  ;;  %v1506_v63 = vpop.permute.xlu0 %1505  ;;  %10971 = vst [vmem:[#allocation100_spill] sm:$0xff] %v9372_v20  ;;  %v5011_v12 = vpop.f32.mrb[30].mxu1  ;;  %v9394_v15 = vmul.f32 %v5010_v26, %v9135_v38  ;;  %v1938_v18 = vadd.f32 %v1922_v56, %v1906_v37  ;;  %v9408_v59 = vmul.f32 %v9148_v13, %v9148_v13 }
 0x2e2   : > { %10972 = vst [vmem:[#allocation95_spill] sm:$0xff] %v9386_v17  ;;  %v1522_v5 = vsel %vm845_vm4, %v1506_v63, 0.0  ;;  %v3202_v2 = vpop.f32.mrb[31].mxu1  ;;  %v9402_v17 = vadd.f32 %v9372_v20, %v9382_v35  ;;  %v1986_v26 = vsel %vm845_vm4, %v1970_v53, 0.0  ;;  %v1937_v20 = vadd.f32 %v1921_v7, %v1905_v16 }
 0x2e3   : > { %v2048_v61 = vadd.f32 %v2032_v10, %v2016_v21  ;;  %10973 = vst [vmem:[#allocation47_spill] sm:$0xff] %v9394_v15  ;;  %v9404_v21 = vmul.f32 %v3199_v30, %v3199_v30  ;;  %v9413_v15 = vmul.f32 %v3199_v30, %v9142_v43  ;;  %v1538_v45 = vadd.f32 %v1522_v5, %v1474_v19 }
 0x2e4   : > { %10974 = vst [vmem:[#allocation38_spill] sm:$0xff] %v9402_v17  ;;  %v9421_v17 = vmul.f32 %v5011_v12, %v5011_v12  ;;  %v9433_v53 = vmul.f32 %v9152_v32, %v9152_v32  ;;  %v9438_v7 = vmul.f32 %v3202_v2, %v9152_v32  ;;  %v2065_v0 = vmax.f32 %v8879_v4, %v9319_v31 }
 0x2e5   : > { %v2080_v10 = vsub.f32 %v2048_v61, %v2064_v54  ;;  %v1824_v63 = vpop.permute.xlu0 %1823  ;;  %10975 = vst [vmem:[#allocation50_spill] sm:$0xff] %v9413_v15  ;;  %v9419_v37 = vadd.f32 %v9404_v21, %v9398_v33  ;;  %v1394_v54 = vsub.f32 %v9296_v39, %v1378_v51  ;;  %v9425_v61 = vmul.f32 %v5011_v12, %v9148_v13 }
 0x2e6   : > { %v1841_v56 = vsel %vm896_vm5, %v1824_v63, 0.0  ;;  %v9429_v30 = vadd.f32 %v9421_v17, %v9408_v59  ;;  %v2002_v63 = vadd.f32 %v1986_v26, %v1938_v18  ;;  %v9435_v15 = vmul.f32 %v3202_v2, %v3202_v2  ;;  %10978 = vst [vmem:[#allocation59_spill] sm:$0xff] %v9438_v7 }
 0x2e7   : > { %v1857_v27 = vsub.f32 %v1793_v23, %v1841_v56  ;;  %10976 = vst [vmem:[#allocation102_spill] sm:$0xff] %v9425_v61  ;;  %v5030_v19 = vpop.f32.mrb[32].mxu1  ;;  %v1570_v16 = vand.u32 2147483647, %v1538_v45  ;;  %v1794_v18 = vsel %vm845_vm4, %v9327_v41, 0.0 }
 0x2e8   : > { %10977 = vst [vmem:[#allocation105_spill] sm:$0xff] %v9429_v30  ;;  %v3248_v39 = vpop.f32.mrb[33].mxu1  ;;  %v9444_v56 = vadd.f32 %v9435_v15, %v9433_v53  ;;  %v9446_v61 = vmul.f32 %v5030_v19, %v5030_v19  ;;  %v9452_v2 = vmul.f32 %v5030_v19, %v9053_v8  ;;  %v2096_v41 = vand.u32 2147483647, %v2080_v10 }
 0x2e9   : > { %v1968_v5 = vpop.permute.xlu0 %1967  ;;  %v2017_v51 = vand.u32 2147483647, %v1857_v27  ;;  %v5031_v30 = vpop.f32.mrb[34].mxu1  ;;  %v9454_v45 = vmul.f32 %v3248_v39, %v3248_v39  ;;  %v9457_v26 = vmul.f32 %v3248_v39, %v9061_v9 }
 0x2ea   : > { %v1985_v23 = vsel %vm845_vm4, %v1968_v5, 0.0  ;;  %10979 = vst [vmem:[#allocation123_spill] sm:$0xff] %v9444_v56  ;;  %10980 = vst [vmem:[#allocation20_spill] sm:$0xff] %v9452_v2  ;;  %v3251_v27 = vpop.f32.mrb[35].mxu1  ;;  %v9461_v56 = vadd.f32 %v9446_v61, %v9168_v40 }
 0x2eb   : > { %v2001_v12 = vadd.f32 %v1985_v23, %v1937_v20  ;;  %10981 = vst [vmem:[#allocation90_spill] sm:$0xff] %v9457_v26  ;;  %v1554_v20 = vand.u32 2147483647, %v1394_v54  ;;  %v2034_v23 = vand.u32 2147483647, %v2002_v63  ;;  %v9469_v9 = vadd.f32 %v9454_v45, %v9177_v58 }
 0x2ec   : > { %v9471_v63 = vmul.f32 %v5031_v30, %v5031_v30  ;;  %v9480_v55 = vmul.f32 %v3251_v27, %v3251_v27  ;;  %v9483_v10 = vmul.f32 %v3251_v27, %v9068_v34 }
 0x2ed   : > { %v2033_v5 = vand.u32 2147483647, %v2001_v12  ;;  %v1826_v7 = vpop.permute.xlu0 %1825  ;;  %v1586_v19 = vadd.f32 %v1570_v16, %v1554_v20  ;;  %v9474_v12 = vmul.f32 %v5031_v30, %v9063_v11 }
 0x2ee   : > { %v1842_v8 = vsel %vm896_vm5, %v1826_v7, 0.0  ;;  %v9478_v4 = vadd.f32 %v9471_v63, %v9203_v44  ;;  %10983 = vst [vmem:[#allocation112_spill] sm:$0xff] %v9483_v10  ;;  %v2111_v7 = vadd.f32 %v9265_v1, %v2096_v41  ;;  %v9491_v20 = vadd.f32 %v9480_v55, %v9208_v52 }
 0x2ef   : > { %v2049_v54 = vadd.f32 %v2033_v5, %v2017_v51  ;;  %v1858_v39 = vsub.f32 %v1794_v18, %v1842_v8  ;;  %10982 = vst [vmem:[#allocation25_spill] sm:$0xff] %v9474_v12  ;;  %v5034_v31 = vpop.f32.mrb[36].mxu1  ;;  %v2066_v11 = vmax.f32 %v8897_v60, %v1586_v19  ;;  %v2161_v8 = vadd.f32 %v9368_v50, %v1586_v19  ;;  %v11011_v12 = vld [vmem:[#allocation128_spill] sm:$0xff] }
 0x2f0   : > { %v9486_v16 = vmul.f32 %v5034_v31, %v5034_v31  ;;  %v3264_v51 = vpop.f32.mrb[37].mxu1 }
 0x2f1   : > { %v2081_v26 = vsub.f32 %v2049_v54, %v2065_v0  ;;  %v2018_v2 = vand.u32 2147483647, %v1858_v39  ;;  %v5035_v5 = vpop.f32.mrb[38].mxu1  ;;  %v9494_v0 = vmul.f32 %v5034_v31, %v9079_v36  ;;  %v9501_v60 = vmul.f32 %v3264_v51, %v3264_v51 }
 0x2f2   : > { %v9498_v34 = vadd.f32 %v9486_v16, %v9228_v25  ;;  %v3267_v1 = vpop.f32.mrb[39].mxu1  ;;  %v9509_v36 = vmul.f32 %v5035_v5, %v9085_v22 }
 0x2f3   : > { %v2097_v30 = vand.u32 2147483647, %v2081_v26  ;;  %v2050_v18 = vadd.f32 %v2034_v23, %v2018_v2  ;;  %10984 = vst [vmem:[#allocation75_spill] sm:$0xff] %v9494_v0  ;;  %v9504_v26 = vmul.f32 %v3264_v51, %v9081_v6  ;;  %v9506_v23 = vmul.f32 %v5035_v5, %v5035_v5 }
 0x2f4   : > { %10986 = vst [vmem:[#allocation104_spill] sm:$0xff] %v9509_v36  ;;  %v9513_v54 = vadd.f32 %v9501_v60, %v9238_v3  ;;  %v9515_v39 = vmul.f32 %v3267_v1, %v3267_v1  ;;  %v9518_v31 = vmul.f32 %v3267_v1, %v9090_v46 }
 0x2f5   : > { %v2082_v27 = vsub.f32 %v2050_v18, %v2066_v11  ;;  %v2112_v41 = vadd.f32 %v2111_v7, %v2097_v30  ;;  %10985 = vst [vmem:[#allocation77_spill] sm:$0xff] %v9504_v26  ;;  %v9522_v6 = vadd.f32 %v9506_v23, %v9263_v29 }
 0x2f6   : > { %10987 = vst [vmem:[#allocation106_spill] sm:$0xff] %v9518_v31  ;;  %v9526_v22 = vadd.f32 %v9515_v39, %v9271_v49 }
 0x2f7   : > { %v2098_v2 = vand.u32 2147483647, %v2082_v27  ;;  %v5038_v50 = vpop.f32.mrb[40].mxu1 }
 0x2f8   : > { %v3280_v7 = vpop.f32.mrb[41].mxu1  ;;  %v9528_v51 = vmul.f32 %v5038_v50, %v5038_v50  ;;  %v9531_v30 = vmul.f32 %v5038_v50, %v9110_v57 }
 0x2f9   : > { %v2113_v19 = vadd.f32 %v2112_v41, %v2098_v2  ;;  %v5039_v11 = vpop.f32.mrb[42].mxu1  ;;  %v9537_v18 = vmul.f32 %v3280_v7, %v3280_v7  ;;  %v9540_v1 = vmul.f32 %v3280_v7, %v9112_v28 }
 0x2fa   : > { %10988 = vst [vmem:[#allocation127_spill] sm:$0xff] %v9531_v30  ;;  %v9535_v46 = vadd.f32 %v9528_v51, %v9300_v24  ;;  %v3283_v5 = vpop.f32.mrb[43].mxu1  ;;  %v9542_v27 = vmul.f32 %v5039_v11, %v5039_v11  ;;  %v9545_v41 = vmul.f32 %v5039_v11, %v9116_v47 }
 0x2fb   : > { %2114 = vadd.xlane.f32.xlu0 %v2113_v19  ;;  %10989 = vst [vmem:[#allocation93_spill] sm:$0xff] %v9540_v1  ;;  %v9549_v2 = vadd.f32 %v9537_v18, %v9317_v48  ;;  %v9551_v57 = vmul.f32 %v3283_v5, %v3283_v5  ;;  %v9558_v19 = vmul.f32 %v3283_v5, %v9122_v14 }
 0x2fc   : > { %10990 = vst [vmem:[#allocation76_spill] sm:$0xff] %v9545_v41  ;;  %v9555_v50 = vadd.f32 %v9542_v27, %v9331_v42 }
 0x2fd   : > { %10991 = vst [vmem:[#allocation68_spill] sm:$0xff] %v9549_v2  ;;  %10993 = vst [vmem:[#allocation32_spill] sm:$0xff] %v9558_v19  ;;  %v9562_v28 = vadd.f32 %v9551_v57, %v9359_v62 }
 0x2fe   : > { %10992 = vst [vmem:[#allocation28_spill] sm:$0xff] %v9555_v50 }
 0x2ff   : > { %2162 = vadd.xlane.f32.xlu0 %v2161_v8  ;;  %10994 = vst [vmem:[#allocation27_spill] sm:$0xff] %v9562_v28  ;;  %v5042_v47 = vpop.f32.mrb[44].mxu1 }
 0x300   : > { %v9564_v7 = vmul.f32 %v5042_v47, %v5042_v47  ;;  %v9567_v11 = vmul.f32 %v5042_v47, %v9135_v38  ;;  %v3296_v41 = vpop.f32.mrb[45].mxu1 }
 0x301   : > { %v9573_v1 = vmul.f32 %v3296_v41, %v3296_v41  ;;  %v9576_v14 = vmul.f32 %v3296_v41, %v9142_v43  ;;  %v5043_v5 = vpop.f32.mrb[46].mxu1 }
 0x302   : > { %10995 = vst [vmem:[#allocation33_spill] sm:$0xff] %v9564_v7  ;;  %10996 = vst [vmem:[#allocation43_spill] sm:$0xff] %v9567_v11  ;;  %v9571_v8 = vadd.f32 %v9564_v7, %v9382_v35  ;;  %v9578_v19 = vmul.f32 %v5043_v5, %v5043_v5  ;;  %v9581_v30 = vmul.f32 %v5043_v5, %v9148_v13  ;;  %v3299_v31 = vpop.f32.mrb[47].mxu1 }
 0x303   : > { %10998 = vst [vmem:[#allocation55_spill] sm:$0xff] %v9573_v1  ;;  %10999 = vst [vmem:[#allocation97_spill] sm:$0xff] %v9576_v14  ;;  %v9585_v38 = vadd.f32 %v9573_v1, %v9398_v33  ;;  %v9587_v47 = vmul.f32 %v3299_v31, %v3299_v31  ;;  %v9594_v43 = vmul.f32 %v3299_v31, %v9152_v32  ;;  %v11012_v1 = vld [vmem:[#allocation130_spill] sm:$0xff] }
 0x304   : > { %10997 = vst [vmem:[#allocation92_spill] sm:$0xff] %v9571_v8  ;;  %11000 = vst [vmem:[#allocation49_spill] sm:$0xff] %v9578_v19  ;;  %v9591_v11 = vadd.f32 %v9578_v19, %v9408_v59  ;;  %v11008_v8 = vld [vmem:[#allocation103_spill] sm:$0xff]  ;;  %v3990_v19 = vadd.f32 0.0001, %v11011_v12 }
 0x305   : > { %11001 = vst [vmem:[#allocation129_spill] sm:$0xff] %v9581_v30  ;;  %11002 = vst [vmem:[#allocation82_spill] sm:$0xff] %v9585_v38  ;;  %v9598_v41 = vadd.f32 %v9587_v47, %v9433_v53  ;;  %v11007_v38 = vld [vmem:[#allocation91_spill] sm:$0xff] }
 0x306   : > { %11003 = vst [vmem:[#allocation108_spill] sm:$0xff] %v9587_v47  ;;  %11004 = vst [vmem:[#allocation136_spill] sm:$0xff] %v9591_v11  ;;  %v11009_v47 = vld [vmem:[#allocation115_spill] sm:$0xff] }
 0x307   : > { %11005 = vst [vmem:[#allocation57_spill] sm:$0xff] %v9594_v43  ;;  %11006 = vst [vmem:[#allocation79_spill] sm:$0xff] %v9598_v41 }
 0x308   : > { %v5062_v13 = vpop.f32.mrb[48].mxu1 }
 0x309   : > { %v9601_v5 = vsub.f32 %v5062_v13, %v9168_v40  ;;  %v3345_v30 = vpop.f32.mrb[49].mxu1 }
 0x30a   : > { %v9604_v14 = vsub.f32 %v3345_v30, %v9177_v58  ;;  %v5063_v36 = vpop.f32.mrb[50].mxu1 }
 0x30b   : > { %v9607_v26 = vsub.f32 %v5063_v36, %v9203_v44  ;;  %v3348_v11 = vpop.f32.mrb[51].mxu1 }
 0x30c   : > { %v9610_v32 = vsub.f32 %v3348_v11, %v9208_v52 }
 0x310   : > { %v5066_v31 = vpop.f32.mrb[52].mxu1 }
 0x311   : > { %v9613_v43 = vsub.f32 %v5066_v31, %v9228_v25  ;;  %v3361_v41 = vpop.f32.mrb[53].mxu1 }
 0x312   : > { %v9616_v40 = vsub.f32 %v3361_v41, %v9238_v3  ;;  %v5067_v13 = vpop.f32.mrb[54].mxu1 }
 0x313   : > { %v9619_v58 = vsub.f32 %v5067_v13, %v9263_v29  ;;  %v3364_v30 = vpop.f32.mrb[55].mxu1 }
 0x314   : > { %v9622_v44 = vsub.f32 %v3364_v30, %v9271_v49 }
 0x318   : > { %v5070_v36 = vpop.f32.mrb[56].mxu1 }
 0x319   : > { %v9625_v52 = vsub.f32 %v5070_v36, %v9300_v24  ;;  %v3377_v11 = vpop.f32.mrb[57].mxu1 }
 0x31a   : > { %v9628_v25 = vsub.f32 %v3377_v11, %v9317_v48  ;;  %v5071_v31 = vpop.f32.mrb[58].mxu1 }
 0x31b   : > { %v9631_v3 = vsub.f32 %v5071_v31, %v9331_v42  ;;  %v3380_v41 = vpop.f32.mrb[59].mxu1 }
 0x31c   : > { %v9634_v29 = vsub.f32 %v3380_v41, %v9359_v62 }
 0x320   : > { %v5074_v13 = vpop.f32.mrb[60].mxu1 }
 0x321   : > { %v9637_v49 = vsub.f32 %v5074_v13, %v9382_v35  ;;  %v3393_v30 = vpop.f32.mrb[61].mxu1 }
 0x322   : > { %v9640_v24 = vsub.f32 %v3393_v30, %v9398_v33  ;;  %v5075_v36 = vpop.f32.mrb[62].mxu1 }
 0x323   : > { %v9643_v48 = vsub.f32 %v5075_v36, %v9408_v59  ;;  %v3396_v11 = vpop.f32.mrb[63].mxu1  ;;  %v11010_v59 = vld [vmem:[#allocation96_spill] sm:$0xff] }
 0x324   : > { %v9646_v42 = vsub.f32 %v3396_v11, %v9433_v53 }
 0x329   : > { %v5094_v31 = vpop.f32.mrb[64].mxu1 }
 0x32a   : > { %v3846_v62 = vsub.f32 %v5094_v31, %v11007_v38  ;;  %v3442_v41 = vpop.f32.mrb[65].mxu1  ;;  %v3988_v38 = vadd.f32 0.0001, %v11012_v1 }
 0x32b   : > { %v3844_v0 = vsub.f32 %v3442_v41, %v11008_v8  ;;  %v5095_v35 = vpop.f32.mrb[66].mxu1  ;;  %v11013_v41 = vld [vmem:[#allocation131_spill] sm:$0xff] }
 0x32c   : > { %v4006_v13 = vadd.f32 %v3846_v62, %v9601_v5  ;;  %v3847_v33 = vsub.f32 %v5095_v35, %v11009_v47  ;;  %v3445_v30 = vpop.f32.mrb[67].mxu1  ;;  %v3991_v7 = vadd.f32 0.0001, %v11013_v41  ;;  %v11015_v35 = vld [vmem:[#allocation137_spill] sm:$0xff] }
 0x32d   : > { %v4004_v10 = vadd.f32 %v3844_v0, %v9604_v14  ;;  %v3845_v36 = vsub.f32 %v3445_v30, %v11010_v59  ;;  %v3989_v28 = vadd.f32 0.0001, %v11015_v35  ;;  %v11023_v35 = vld [vmem:[#allocation119_spill] sm:$0xff] }
 0x32e   : > { %v4022_v53 = vadd.f32 0.0009, %v4006_v13  ;;  %v4007_v11 = vadd.f32 %v3847_v33, %v9607_v26  ;;  %v11018_v13 = vld [vmem:[#allocation71_spill] sm:$0xff] }
 0x32f   : > { %v4020_v31 = vadd.f32 0.0009, %v4004_v10  ;;  %v4005_v8 = vadd.f32 %v3845_v36, %v9610_v32  ;;  %v11020_v10 = vld [vmem:[#allocation72_spill] sm:$0xff] }
 0x330   : > { %v9659_v62 = vmul.f32 %v4022_v53, %v3990_v19  ;;  %v4023_v47 = vadd.f32 0.0009, %v4007_v11  ;;  %v11021_v53 = vld [vmem:[#allocation121_spill] sm:$0xff] }
 0x331   : > { %v9662_v0 = vmul.f32 %v4020_v31, %v3988_v38  ;;  %v4021_v30 = vadd.f32 0.0009, %v4005_v8  ;;  %v5098_v59 = vpop.f32.mrb[68].mxu1  ;;  %v11022_v31 = vld [vmem:[#allocation114_spill] sm:$0xff] }
 0x332   : > { %11014 = vst [vmem:[#allocation74_spill] sm:$0xff] %v9659_v62  ;;  %v9664_v12 = vmul.f32 %v4023_v47, %v3991_v7  ;;  %v3850_v33 = vsub.f32 %v5098_v59, %v11018_v13  ;;  %v3458_v50 = vpop.f32.mrb[69].mxu1  ;;  %v3994_v7 = vadd.f32 0.0001, %v11023_v35  ;;  %v11024_v13 = vld [vmem:[#allocation110_spill] sm:$0xff] }
 0x333   : > { %11016 = vst [vmem:[#allocation23_spill] sm:$0xff] %v9662_v0  ;;  %v9667_v1 = vmul.f32 %v4021_v30, %v3989_v28  ;;  %v3848_v36 = vsub.f32 %v3458_v50, %v11020_v10  ;;  %v5099_v2 = vpop.f32.mrb[70].mxu1  ;;  %v3992_v28 = vadd.f32 0.0001, %v11024_v13  ;;  %v11025_v10 = vld [vmem:[#allocation37_spill] sm:$0xff] }
 0x334   : > { %11017 = vst [vmem:[#allocation54_spill] sm:$0xff] %v9664_v12  ;;  %v4010_v19 = vadd.f32 %v3850_v33, %v9613_v43  ;;  %v3851_v11 = vsub.f32 %v5099_v2, %v11021_v53  ;;  %v3461_v41 = vpop.f32.mrb[71].mxu1  ;;  %v11026_v53 = vld [vmem:[#allocation84_spill] sm:$0xff] }
 0x335   : > { %11019 = vst [vmem:[#allocation99_spill] sm:$0xff] %v9667_v1  ;;  %v4008_v38 = vadd.f32 %v3848_v36, %v9616_v40  ;;  %v3849_v8 = vsub.f32 %v3461_v41, %v11022_v31  ;;  %v3995_v1 = vadd.f32 0.0001, %v11025_v10  ;;  %v3993_v12 = vadd.f32 0.0001, %v11026_v53  ;;  %v11034_v53 = vld [vmem:[#allocation61_spill] sm:$0xff] }
 0x336   : > { %v4026_v47 = vadd.f32 0.0009, %v4010_v19  ;;  %v4011_v59 = vadd.f32 %v3851_v11, %v9619_v58  ;;  %v11029_v19 = vld [vmem:[#allocation98_spill] sm:$0xff] }
 0x337   : > { %v4024_v30 = vadd.f32 0.0009, %v4008_v38  ;;  %v4009_v50 = vadd.f32 %v3849_v8, %v9622_v44  ;;  %v11031_v38 = vld [vmem:[#allocation111_spill] sm:$0xff] }
 0x338   : > { %v9679_v33 = vmul.f32 %v4026_v47, %v3994_v7  ;;  %v4027_v2 = vadd.f32 0.0009, %v4011_v59  ;;  %v11032_v47 = vld [vmem:[#allocation73_spill] sm:$0xff] }
 0x339   : > { %v9682_v36 = vmul.f32 %v4024_v30, %v3992_v28  ;;  %v4025_v41 = vadd.f32 0.0009, %v4009_v50  ;;  %v5102_v31 = vpop.f32.mrb[72].mxu1  ;;  %v11033_v30 = vld [vmem:[#allocation80_spill] sm:$0xff] }
 0x33a   : > { %v9684_v35 = vmul.f32 %v4027_v2, %v3995_v1  ;;  %v3854_v11 = vsub.f32 %v5102_v31, %v11029_v19  ;;  %v3474_v0 = vpop.f32.mrb[73].mxu1  ;;  %v3998_v1 = vadd.f32 0.0001, %v11034_v53  ;;  %v11035_v19 = vld [vmem:[#allocation48_spill] sm:$0xff] }
 0x33b   : > { %11027 = vst [vmem:[#allocation21_spill] sm:$0xff] %v9682_v36  ;;  %v9687_v13 = vmul.f32 %v4025_v41, %v3993_v12  ;;  %v3852_v8 = vsub.f32 %v3474_v0, %v11031_v38  ;;  %v5103_v62 = vpop.f32.mrb[74].mxu1  ;;  %v3996_v12 = vadd.f32 0.0001, %v11035_v19  ;;  %v11036_v38 = vld [vmem:[#allocation58_spill] sm:$0xff] }
 0x33c   : > { %11028 = vst [vmem:[#allocation56_spill] sm:$0xff] %v9684_v35  ;;  %v4014_v7 = vadd.f32 %v3854_v11, %v9625_v52  ;;  %v3855_v59 = vsub.f32 %v5103_v62, %v11032_v47  ;;  %v3477_v10 = vpop.f32.mrb[75].mxu1  ;;  %v11037_v47 = vld [vmem:[#allocation95_spill] sm:$0xff] }
 0x33d   : > { %11030 = vst [vmem:[#allocation85_spill] sm:$0xff] %v9687_v13  ;;  %v4012_v28 = vadd.f32 %v3852_v8, %v9628_v25  ;;  %v3853_v50 = vsub.f32 %v3477_v10, %v11033_v30  ;;  %v3999_v13 = vadd.f32 0.0001, %v11036_v38  ;;  %v3997_v35 = vadd.f32 0.0001, %v11037_v47 }
 0x33e   : > { %v4030_v2 = vadd.f32 0.0009, %v4014_v7  ;;  %v4015_v31 = vadd.f32 %v3855_v59, %v9631_v3  ;;  %v11038_v7 = vld [vmem:[#allocation100_spill] sm:$0xff] }
 0x33f   : > { %v4028_v41 = vadd.f32 0.0009, %v4012_v28  ;;  %v4013_v0 = vadd.f32 %v3853_v50, %v9634_v29 }
 0x340   : > { %v9699_v11 = vmul.f32 %v4030_v2, %v3998_v1  ;;  %v4031_v62 = vadd.f32 0.0009, %v4015_v31 }
 0x341   : > { %v9702_v8 = vmul.f32 %v4028_v41, %v3996_v12  ;;  %v4029_v10 = vadd.f32 0.0009, %v4013_v0  ;;  %v5106_v30 = vpop.f32.mrb[76].mxu1  ;;  %v11039_v0 = vld [vmem:[#allocation38_spill] sm:$0xff] }
 0x342   : > { %v9704_v53 = vmul.f32 %v4031_v62, %v3999_v13  ;;  %v3858_v59 = vsub.f32 %v5106_v30, %v11038_v7  ;;  %v3490_v36 = vpop.f32.mrb[77].mxu1  ;;  %v4002_v13 = vadd.f32 0.0001, %v11039_v0  ;;  %v11041_v7 = vld [vmem:[#allocation123_spill] sm:$0xff]  ;;  %v11045_v0 = vld [vmem:[#allocation42_spill] sm:$0xff] }
 0x343   : > { %v9707_v19 = vmul.f32 %v4029_v10, %v3997_v35  ;;  %v3856_v28 = vsub.f32 %v3490_v36, %v9404_v21  ;;  %v5107_v50 = vpop.f32.mrb[78].mxu1  ;;  %v4000_v35 = vadd.f32 0.0001, %v9419_v37  ;;  %v11040_v36 = vld [vmem:[#allocation105_spill] sm:$0xff] }
 0x344   : > { %v4018_v1 = vadd.f32 %v3858_v59, %v9637_v49  ;;  %v3859_v2 = vsub.f32 %v5107_v50, %v9421_v17  ;;  %v3493_v31 = vpop.f32.mrb[79].mxu1  ;;  %v4003_v10 = vadd.f32 0.0001, %v11040_v36  ;;  %v4001_v59 = vadd.f32 0.0001, %v11041_v7  ;;  %v11047_v36 = vld [vmem:[#allocation135_spill] sm:$0xff] }
 0x345   : > { %v4016_v12 = vadd.f32 %v3856_v28, %v9640_v24  ;;  %v3857_v41 = vsub.f32 %v3493_v31, %v9435_v15  ;;  %v11048_v7 = vld [vmem:[#allocation26_spill] sm:$0xff] }
 0x346   : > { %v4034_v38 = vadd.f32 0.0009, %v4018_v1  ;;  %v4019_v62 = vadd.f32 %v3859_v2, %v9643_v48 }
 0x347   : > { %v4032_v47 = vadd.f32 0.0009, %v4016_v12  ;;  %v4017_v21 = vadd.f32 %v3857_v41, %v9646_v42 }
 0x348   : > { %v9719_v30 = vmul.f32 %v4034_v38, %v4002_v13  ;;  %v4035_v17 = vadd.f32 0.0009, %v4019_v62  ;;  %v3894_v13 = vmul.f32 2.0, %v11045_v0 }
 0x349   : > { %v9722_v28 = vmul.f32 %v4032_v47, %v4000_v35  ;;  %v4033_v15 = vadd.f32 0.0009, %v4017_v21  ;;  %v5126_v50 = vpop.f32.mrb[80].mxu1  ;;  %v11046_v47 = vld [vmem:[#allocation133_spill] sm:$0xff] }
 0x34a   : > { %v9724_v31 = vmul.f32 %v4035_v17, %v4003_v10  ;;  %v4126_v1 = vsub.f32 %v5126_v50, %v9446_v61  ;;  %v3539_v2 = vpop.f32.mrb[81].mxu1  ;;  %v3892_v21 = vmul.f32 2.0, %v11046_v47  ;;  %v3895_v10 = vmul.f32 2.0, %v11047_v36 }
 0x34b   : > { %11042 = vst [vmem:[#allocation22_spill] sm:$0xff] %v9722_v28  ;;  %v9727_v37 = vmul.f32 %v4033_v15, %v4001_v59  ;;  %v4124_v12 = vsub.f32 %v3539_v2, %v9454_v45  ;;  %v5127_v41 = vpop.f32.mrb[82].mxu1  ;;  %v3893_v59 = vmul.f32 2.0, %v11048_v7  ;;  %v4270_v45 = vadd.f32 0.0001, %v9461_v56  ;;  %v11049_v2 = vld [vmem:[#allocation70_spill] sm:$0xff] }
 0x34c   : > { %11043 = vst [vmem:[#allocation126_spill] sm:$0xff] %v9724_v31  ;;  %v4286_v38 = vadd.f32 %v4126_v1, %v9601_v5  ;;  %v4127_v62 = vsub.f32 %v5127_v41, %v9471_v63  ;;  %v3542_v35 = vpop.f32.mrb[83].mxu1  ;;  %v3898_v5 = vmul.f32 2.0, %v11049_v2  ;;  %v4268_v63 = vadd.f32 0.0001, %v9469_v9 }
 0x34d   : > { %11044 = vst [vmem:[#allocation65_spill] sm:$0xff] %v9727_v37  ;;  %v4284_v17 = vadd.f32 %v4124_v12, %v9604_v14  ;;  %v4125_v61 = vsub.f32 %v3542_v35, %v9480_v55  ;;  %v11050_v37 = vld [vmem:[#allocation66_spill] sm:$0xff]  ;;  %v4271_v14 = vadd.f32 0.0001, %v9478_v4  ;;  %v4269_v35 = vadd.f32 0.0001, %v9491_v20 }
 0x34e   : > { %v4302_v15 = vadd.f32 0.0009, %v4286_v38  ;;  %v4287_v50 = vadd.f32 %v4127_v62, %v9607_v26  ;;  %v3896_v31 = vmul.f32 2.0, %v11050_v37  ;;  %v9750_v62 = vadd.f32 0.0001, %v3894_v13 }
 0x34f   : > { %v4300_v1 = vadd.f32 0.0009, %v4284_v17  ;;  %v4285_v41 = vadd.f32 %v4125_v61, %v9610_v32  ;;  %v9752_v28 = vadd.f32 0.0001, %v3892_v21  ;;  %v9757_v61 = vadd.f32 0.0001, %v3895_v10 }
 0x350   : > { %v9745_v12 = vmul.f32 %v4302_v15, %v4270_v45  ;;  %v4303_v55 = vadd.f32 0.0009, %v4287_v50  ;;  %v9759_v4 = vadd.f32 0.0001, %v3893_v59  ;;  %v9764_v50 = vadd.f32 0.0001, %v3898_v5 }
 0x351   : > { %v9748_v56 = vmul.f32 %v4300_v1, %v4268_v63  ;;  %v4301_v38 = vadd.f32 0.0009, %v4285_v41  ;;  %v5130_v26 = vpop.f32.mrb[84].mxu1  ;;  %v9766_v13 = vadd.f32 0.0001, %v3896_v31  ;;  %v11054_v10 = vld [vmem:[#allocation107_spill] sm:$0xff] }
 0x352   : > { %v9754_v9 = vmul.f32 %v4303_v55, %v4271_v14  ;;  %v4130_v32 = vsub.f32 %v5130_v26, %v9486_v16  ;;  %v3555_v17 = vpop.f32.mrb[85].mxu1  ;;  %v11053_v16 = vld [vmem:[#allocation109_spill] sm:$0xff]  ;;  %v3897_v14 = vmul.f32 2.0, %v11054_v10  ;;  %v4274_v5 = vadd.f32 0.0001, %v9498_v34 }
 0x353   : > { %v9761_v45 = vmul.f32 %v4301_v38, %v4269_v35  ;;  %v4128_v20 = vsub.f32 %v3555_v17, %v9501_v60  ;;  %v5131_v15 = vpop.f32.mrb[86].mxu1  ;;  %v3899_v41 = vmul.f32 2.0, %v11053_v16  ;;  %v11055_v35 = vld [vmem:[#allocation60_spill] sm:$0xff]  ;;  %v11056_v26 = vld [vmem:[#allocation117_spill] sm:$0xff] }
 0x354   : > { %11051 = vst [vmem:[#allocation36_spill] sm:$0xff] %v9754_v9  ;;  %v4290_v21 = vadd.f32 %v4130_v32, %v9613_v43  ;;  %v4131_v63 = vsub.f32 %v5131_v15, %v9506_v23  ;;  %v3558_v1 = vpop.f32.mrb[87].mxu1  ;;  %v3902_v60 = vmul.f32 2.0, %v11055_v35  ;;  %v3900_v43 = vmul.f32 2.0, %v11056_v26  ;;  %v11057_v15 = vld [vmem:[#allocation44_spill] sm:$0xff] }
 0x355   : > { %11052 = vst [vmem:[#allocation83_spill] sm:$0xff] %v9761_v45  ;;  %v4288_v59 = vadd.f32 %v4128_v20, %v9616_v40  ;;  %v4129_v55 = vsub.f32 %v3558_v1, %v9515_v39  ;;  %v4272_v23 = vadd.f32 0.0001, %v9513_v54  ;;  %v3903_v45 = vmul.f32 2.0, %v11057_v15 }
 0x356   : > { %v4306_v38 = vadd.f32 0.0009, %v4290_v21  ;;  %v4291_v31 = vadd.f32 %v4131_v63, %v9619_v58  ;;  %v4275_v40 = vadd.f32 0.0001, %v9522_v6  ;;  %v4273_v1 = vadd.f32 0.0001, %v9526_v22 }
 0x357   : > { %v4304_v32 = vadd.f32 0.0009, %v4288_v59  ;;  %v4289_v17 = vadd.f32 %v4129_v55, %v9622_v44  ;;  %v9787_v63 = vadd.f32 0.0001, %v3899_v41  ;;  %v9789_v9 = vadd.f32 0.0001, %v3897_v14 }
 0x358   : > { %v9782_v20 = vmul.f32 %v4306_v38, %v4274_v5  ;;  %v4307_v39 = vadd.f32 0.0009, %v4291_v31  ;;  %v9794_v55 = vadd.f32 0.0001, %v3902_v60  ;;  %v9796_v6 = vadd.f32 0.0001, %v3900_v43 }
 0x359   : > { %v9785_v34 = vmul.f32 %v4304_v32, %v4272_v23  ;;  %v4305_v21 = vadd.f32 0.0009, %v4289_v17  ;;  %v5134_v58 = vpop.f32.mrb[88].mxu1  ;;  %v9801_v31 = vadd.f32 0.0001, %v3903_v45  ;;  %v11062_v41 = vld [vmem:[#allocation120_spill] sm:$0xff] }
 0x35a   : > { %11058 = vst [vmem:[#allocation39_spill] sm:$0xff] %v9782_v20  ;;  %v9791_v54 = vmul.f32 %v4307_v39, %v4275_v40  ;;  %v4134_v44 = vsub.f32 %v5134_v58, %v9528_v51  ;;  %v3571_v59 = vpop.f32.mrb[89].mxu1  ;;  %v3901_v23 = vmul.f32 2.0, %v11062_v41  ;;  %v11063_v51 = vld [vmem:[#allocation47_spill] sm:$0xff]  ;;  %v11064_v60 = vld [vmem:[#allocation50_spill] sm:$0xff]  ;;  %v11068_v20 = vld [vmem:[#allocation28_spill] sm:$0xff] }
 0x35b   : > { %11059 = vst [vmem:[#allocation41_spill] sm:$0xff] %v9785_v34  ;;  %v9798_v5 = vmul.f32 %v4305_v21, %v4273_v1  ;;  %v4132_v22 = vsub.f32 %v3571_v59, %v9537_v18  ;;  %v5135_v38 = vpop.f32.mrb[90].mxu1  ;;  %v3906_v40 = vmul.f32 2.0, %v11063_v51  ;;  %v3904_v39 = vmul.f32 2.0, %v11064_v60  ;;  %v11065_v21 = vld [vmem:[#allocation102_spill] sm:$0xff] }
 0x35c   : > { %11060 = vst [vmem:[#allocation116_spill] sm:$0xff] %v9791_v54  ;;  %v4294_v14 = vadd.f32 %v4134_v44, %v9625_v52  ;;  %v4135_v32 = vsub.f32 %v5135_v38, %v9542_v27  ;;  %v3574_v17 = vpop.f32.mrb[91].mxu1  ;;  %v3907_v18 = vmul.f32 2.0, %v11065_v21  ;;  %v4278_v45 = vadd.f32 0.0001, %v9535_v46  ;;  %v11067_v44 = vld [vmem:[#allocation68_spill] sm:$0xff] }
 0x35d   : > { %11061 = vst [vmem:[#allocation134_spill] sm:$0xff] %v9798_v5  ;;  %v4292_v43 = vadd.f32 %v4132_v22, %v9628_v25  ;;  %v4133_v1 = vsub.f32 %v3574_v17, %v9551_v57  ;;  %v11066_v5 = vld [vmem:[#allocation59_spill] sm:$0xff]  ;;  %v4276_v27 = vadd.f32 0.0001, %v11067_v44  ;;  %v9816_v34 = vadd.f32 0.0001, %v3901_v23 }
 0x35e   : > { %v4310_v58 = vadd.f32 0.0009, %v4294_v14  ;;  %v4295_v59 = vadd.f32 %v4135_v32, %v9631_v3  ;;  %v3905_v52 = vmul.f32 2.0, %v11066_v5  ;;  %v4279_v25 = vadd.f32 0.0001, %v11068_v20  ;;  %v11070_v17 = vld [vmem:[#allocation27_spill] sm:$0xff] }
 0x35f   : > { %v4308_v38 = vadd.f32 0.0009, %v4292_v43  ;;  %v4293_v54 = vadd.f32 %v4133_v1, %v9634_v29  ;;  %v4277_v21 = vadd.f32 0.0001, %v11070_v17  ;;  %v9824_v32 = vadd.f32 0.0001, %v3906_v40 }
 0x360   : > { %v9819_v22 = vmul.f32 %v4310_v58, %v4278_v45  ;;  %v4311_v57 = vadd.f32 0.0009, %v4295_v59  ;;  %v9826_v5 = vadd.f32 0.0001, %v3904_v39  ;;  %v11073_v29 = vld [vmem:[#allocation33_spill] sm:$0xff]  ;;  %v11077_v58 = vld [vmem:[#allocation55_spill] sm:$0xff] }
 0x361   : > { %v9822_v46 = vmul.f32 %v4308_v38, %v4276_v27  ;;  %v4309_v14 = vadd.f32 0.0009, %v4293_v54  ;;  %v5138_v3 = vpop.f32.mrb[92].mxu1  ;;  %v9831_v44 = vadd.f32 0.0001, %v3907_v18  ;;  %v11078_v54 = vld [vmem:[#allocation20_spill] sm:$0xff] }
 0x362   : > { %11069 = vst [vmem:[#allocation125_spill] sm:$0xff] %v9819_v22  ;;  %v9828_v43 = vmul.f32 %v4311_v57, %v4279_v25  ;;  %v4138_v23 = vsub.f32 %v5138_v3, %v11073_v29  ;;  %v3587_v1 = vpop.f32.mrb[93].mxu1  ;;  %v9833_v20 = vadd.f32 0.0001, %v3905_v52  ;;  %v4174_v38 = vmul.f32 2.0, %v11078_v54  ;;  %v11079_v40 = vld [vmem:[#allocation90_spill] sm:$0xff] }
 0x363   : > { %11071 = vst [vmem:[#allocation63_spill] sm:$0xff] %v9822_v46  ;;  %11074 = vst [vmem:[#allocation69_spill] sm:$0xff] %v9831_v44  ;;  %v9835_v45 = vmul.f32 %v4309_v14, %v4277_v21  ;;  %v4136_v59 = vsub.f32 %v3587_v1, %v11077_v58  ;;  %v5139_v27 = vpop.f32.mrb[94].mxu1  ;;  %v4172_v17 = vmul.f32 2.0, %v11079_v40  ;;  %v11080_v25 = vld [vmem:[#allocation49_spill] sm:$0xff]  ;;  %v11082_v18 = vld [vmem:[#allocation112_spill] sm:$0xff] }
 0x364   : > { %11072 = vst [vmem:[#allocation64_spill] sm:$0xff] %v9828_v43  ;;  %11075 = vst [vmem:[#allocation101_spill] sm:$0xff] %v9833_v20  ;;  %v4298_v39 = vadd.f32 %v4138_v23, %v9637_v49  ;;  %v4139_v57 = vsub.f32 %v5139_v27, %v11080_v25  ;;  %v3590_v43 = vpop.f32.mrb[95].mxu1  ;;  %v11081_v3 = vld [vmem:[#allocation25_spill] sm:$0xff]  ;;  %v4173_v46 = vmul.f32 2.0, %v11082_v18  ;;  %v11083_v21 = vld [vmem:[#allocation108_spill] sm:$0xff] }
 0x365   : > { %11076 = vst [vmem:[#allocation30_spill] sm:$0xff] %v9835_v45  ;;  %v4175_v29 = vmul.f32 2.0, %v11081_v3  ;;  %v4296_v52 = vadd.f32 %v4136_v59, %v9640_v24  ;;  %v4137_v14 = vsub.f32 %v3590_v43, %v11083_v21  ;;  %v11084_v45 = vld [vmem:[#allocation75_spill] sm:$0xff]  ;;  %v11085_v58 = vld [vmem:[#allocation92_spill] sm:$0xff]  ;;  %v11086_v54 = vld [vmem:[#allocation82_spill] sm:$0xff]  ;;  %v2139_v59 = vpop.xlane.xlu1 %2138 }
 0x366   : > { %v4178_v1 = vmul.f32 2.0, %v11084_v45  ;;  %v4282_v22 = vadd.f32 0.0001, %v11085_v58  ;;  %v4314_v20 = vadd.f32 0.0009, %v4298_v39  ;;  %v4299_v40 = vadd.f32 %v4139_v57, %v9643_v48  ;;  %v11087_v23 = vld [vmem:[#allocation74_spill] sm:$0xff] }
 0x367   : > { %v4280_v49 = vadd.f32 0.0001, %v11086_v54  ;;  %5315 = vrcp.f32 %v11087_v23  ;;  %v4312_v27 = vadd.f32 0.0009, %v4296_v52  ;;  %v4297_v25 = vadd.f32 %v4137_v14, %v9646_v42  ;;  %v11088_v3 = vld [vmem:[#allocation136_spill] sm:$0xff]  ;;  %v11089_v44 = vld [vmem:[#allocation23_spill] sm:$0xff] }
 0x368   : > { %v4283_v18 = vadd.f32 0.0001, %v11088_v3  ;;  %5317 = vrcp.f32 %v11089_v44  ;;  %v9854_v24 = vmul.f32 %v4314_v20, %v4282_v22  ;;  %v4315_v43 = vadd.f32 0.0009, %v4299_v40  ;;  %v11091_v21 = vld [vmem:[#allocation79_spill] sm:$0xff]  ;;  %v11092_v39 = vld [vmem:[#allocation54_spill] sm:$0xff] }
 0x369   : > { %v4281_v58 = vadd.f32 0.0001, %v11091_v21  ;;  %5319 = vrcp.f32 %v11092_v39  ;;  %v9858_v48 = vmul.f32 %v4312_v27, %v4280_v49  ;;  %v4313_v54 = vadd.f32 0.0009, %v4297_v25  ;;  %v5158_v57 = vpop.f32.mrb[96].mxu1  ;;  %v11094_v52 = vld [vmem:[#allocation99_spill] sm:$0xff] }
 0x36a   : > { %11090 = vst [vmem:[#allocation51_spill] sm:$0xff] %v9854_v24  ;;  %v9860_v23 = vadd.f32 0.0001, %v4174_v38  ;;  %5321 = vrcp.f32 %v11094_v52  ;;  %v9863_v42 = vmul.f32 %v4315_v43, %v4283_v18  ;;  %v3878_v44 = vsub.f32 %v5158_v57, %v11045_v0  ;;  %v3636_v22 = vpop.f32.mrb[97].mxu1  ;;  %v11096_v40 = vld [vmem:[#allocation77_spill] sm:$0xff]  ;;  %v11098_v52 = vld [vmem:[#allocation104_spill] sm:$0xff] }
 0x36b   : > { %11093 = vst [vmem:[#allocation24_spill] sm:$0xff] %v9858_v48  ;;  %v9866_v20 = vadd.f32 0.0001, %v4172_v17  ;;  %v4176_v3 = vmul.f32 2.0, %v11096_v40  ;;  %v9869_v14 = vmul.f32 %v4313_v54, %v4281_v58  ;;  %v3876_v49 = vsub.f32 %v3636_v22, %v11046_v47  ;;  %v5159_v27 = vpop.f32.mrb[98].mxu1  ;;  %v11099_v54 = vld [vmem:[#allocation106_spill] sm:$0xff] }
 0x36c   : > { %11095 = vst [vmem:[#allocation29_spill] sm:$0xff] %v9863_v42  ;;  %v9872_v25 = vadd.f32 0.0001, %v4175_v29  ;;  %v2140_v38 = vrot.slane %v2139_v59, 4  ;;  %v3926_v21 = vmul.f32 2.0, %v3878_v44  ;;  %v3879_v39 = vsub.f32 %v5159_v27, %v11047_v36  ;;  %v3639_v18 = vpop.f32.mrb[99].mxu1 }
 0x36d   : > { %11097 = vst [vmem:[#allocation35_spill] sm:$0xff] %v9869_v14  ;;  %v9875_v43 = vadd.f32 0.0001, %v4173_v46  ;;  %v9877_v0 = vadd.f32 0.0001, %v4178_v1  ;;  %v3924_v17 = vmul.f32 2.0, %v3876_v49  ;;  %v3877_v57 = vsub.f32 %v3639_v18, %v11048_v7 }
 0x36e   : > { %v4179_v58 = vmul.f32 2.0, %v11098_v52  ;;  %v4177_v14 = vmul.f32 2.0, %v11099_v54  ;;  %v3942_v47 = vadd.f32 0.0009, %v3926_v21  ;;  %v3927_v22 = vmul.f32 2.0, %v3879_v39  ;;  %v11101_v46 = vld [vmem:[#allocation21_spill] sm:$0xff] }
 0x36f   : > { %v9882_v29 = vadd.f32 0.0001, %v4176_v3  ;;  %5323 = vrcp.f32 %v9679_v33  ;;  %v3940_v44 = vadd.f32 0.0009, %v3924_v17  ;;  %v3925_v36 = vmul.f32 2.0, %v3877_v57  ;;  %v11102_v7 = vld [vmem:[#allocation127_spill] sm:$0xff] }
 0x370   : > { %v2141_v27 = vadd.f32 %v2140_v38, %v2139_v59  ;;  %5325 = vrcp.f32 %v11101_v46  ;;  %v3958_v1 = vmul.f32 %v3942_v47, %v9750_v62  ;;  %v3943_v49 = vadd.f32 0.0009, %v3927_v22  ;;  %v11103_v48 = vld [vmem:[#allocation56_spill] sm:$0xff] }
 0x371   : > { %11100 = vst [vmem:[#allocation78_spill] sm:$0xff] %v9882_v29  ;;  %v5316_v42 = vpop.eup %5315  ;;  %v4182_v18 = vmul.f32 2.0, %v11102_v7  ;;  %5327 = vrcp.f32 %v11103_v48  ;;  %v3956_v21 = vmul.f32 %v3940_v44, %v9752_v28  ;;  %v3941_v39 = vadd.f32 0.0009, %v3925_v36  ;;  %v5162_v3 = vpop.f32.mrb[100].mxu1  ;;  %v11104_v29 = vld [vmem:[#allocation85_spill] sm:$0xff] }
 0x372   : > { %v5318_v24 = vpop.eup %5317  ;;  %5329 = vrcp.f32 %v11104_v29  ;;  %v4070_v33 = vmul.f32 %v5316_v42, %v3958_v1  ;;  %v3959_v59 = vmul.f32 %v3943_v49, %v9757_v61  ;;  %v3882_v38 = vsub.f32 %v5162_v3, %v11049_v2  ;;  %v3652_v17 = vpop.f32.mrb[101].mxu1 }
 0x373   : > { %v5320_v62 = vpop.eup %5319  ;;  %v9893_v57 = vadd.f32 0.0001, %v4179_v58  ;;  %v4068_v47 = vmul.f32 %v5318_v24, %v3956_v21  ;;  %v3957_v22 = vmul.f32 %v3941_v39, %v9759_v4  ;;  %v3880_v48 = vsub.f32 %v3652_v17, %v11050_v37  ;;  %v5163_v28 = vpop.f32.mrb[102].mxu1  ;;  %v11105_v24 = vld [vmem:[#allocation93_spill] sm:$0xff] }
 0x374   : > { %v5322_v44 = vpop.eup %5321  ;;  %v2142_v36 = vrot.slane %v2141_v27, 2  ;;  %v4071_v46 = vmul.f32 %v5320_v62, %v3959_v59  ;;  %v3930_v7 = vmul.f32 2.0, %v3882_v38  ;;  %v3883_v42 = vsub.f32 %v5163_v28, %v11053_v16  ;;  %v3655_v29 = vpop.f32.mrb[103].mxu1 }
 0x375   : > { %v9898_v61 = vadd.f32 0.0001, %v4177_v14  ;;  %v4069_v2 = vmul.f32 %v5322_v44, %v3957_v22  ;;  %v3928_v1 = vmul.f32 2.0, %v3880_v48  ;;  %v3881_v58 = vsub.f32 %v3655_v29, %v11054_v10 }
 0x376   : > { %v9901_v49 = vadd.f32 0.0001, %v4182_v18  ;;  %v9904_v4 = vmul.f32 2.0, %v11105_v24  ;;  %v3946_v37 = vadd.f32 0.0009, %v3930_v7  ;;  %v3931_v21 = vmul.f32 2.0, %v3883_v42 }
 0x377   : > { %5331 = vrcp.f32 %v9699_v11  ;;  %v4084_v39 = vadd.f32 %v4069_v2, %v4068_v47  ;;  %v3944_v3 = vadd.f32 0.0009, %v3928_v1  ;;  %v3929_v59 = vmul.f32 2.0, %v3881_v58  ;;  %v11106_v58 = vld [vmem:[#allocation76_spill] sm:$0xff] }
 0x378   : > { %5333 = vrcp.f32 %v9702_v8  ;;  %v3962_v16 = vmul.f32 %v3946_v37, %v9764_v50  ;;  %v3947_v14 = vadd.f32 0.0009, %v3931_v21  ;;  %v9909_v38 = vadd.f32 %v2142_v36, %v2141_v27  ;;  %v11108_v21 = vld [vmem:[#allocation126_spill] sm:$0xff] }
 0x379   : > { %v5324_v10 = vpop.eup %5323  ;;  %5335 = vrcp.f32 %v9704_v53  ;;  %v4085_v18 = vadd.f32 %v4084_v39, %v4070_v33  ;;  %v3960_v17 = vmul.f32 %v3944_v3, %v9766_v13  ;;  %v3945_v7 = vadd.f32 0.0009, %v3929_v59  ;;  %v5166_v62 = vpop.f32.mrb[104].mxu1  ;;  %v11109_v59 = vld [vmem:[#allocation65_spill] sm:$0xff] }
 0x37a   : > { %v5326_v22 = vpop.eup %5325  ;;  %5337 = vrcp.f32 %v9707_v19  ;;  %v4074_v11 = vmul.f32 %v5324_v10, %v3962_v16  ;;  %v3963_v47 = vmul.f32 %v3947_v14, %v9787_v63  ;;  %v3886_v8 = vsub.f32 %v5166_v62, %v11055_v35  ;;  %v3668_v50 = vpop.f32.mrb[105].mxu1 }
 0x37b   : > { %v5328_v48 = vpop.eup %5327  ;;  %v4072_v27 = vmul.f32 %v5326_v22, %v3960_v17  ;;  %v4086_v28 = vadd.f32 %v4085_v18, %v4071_v46  ;;  %v3961_v44 = vmul.f32 %v3945_v7, %v9789_v9  ;;  %v3884_v53 = vsub.f32 %v3668_v50, %v11056_v26  ;;  %v5167_v33 = vpop.f32.mrb[106].mxu1  ;;  %v11107_v9 = vld [vmem:[#allocation22_spill] sm:$0xff] }
 0x37c   : > { %v5330_v13 = vpop.eup %5329  ;;  %5339 = vrcp.f32 %v9719_v30  ;;  %v4075_v36 = vmul.f32 %v5328_v48, %v3963_v47  ;;  %v3934_v42 = vmul.f32 2.0, %v3886_v8  ;;  %v3887_v19 = vsub.f32 %v5167_v33, %v11057_v15  ;;  %v3671_v29 = vpop.f32.mrb[107].mxu1 }
 0x37d   : > { %v4087_v63 = vadd.f32 %v4086_v28, %v4072_v27  ;;  %v4073_v2 = vmul.f32 %v5330_v13, %v3961_v44  ;;  %v3932_v35 = vmul.f32 2.0, %v3884_v53  ;;  %v3885_v1 = vsub.f32 %v3671_v29, %v11062_v41  ;;  %v11110_v44 = vld [vmem:[#allocation36_spill] sm:$0xff]  ;;  %v11112_v29 = vld [vmem:[#allocation59_spill] sm:$0xff] }
 0x37e   : > { %v9922_v46 = vmul.f32 2.0, %v11106_v58  ;;  %5341 = vrcp.f32 %v11107_v9  ;;  %v3950_v26 = vadd.f32 0.0009, %v3934_v42  ;;  %v3935_v37 = vmul.f32 2.0, %v3887_v19 }
 0x37f   : > { %5343 = vrcp.f32 %v11108_v21  ;;  %v4088_v30 = vadd.f32 %v4087_v63, %v4073_v2  ;;  %v3948_v39 = vadd.f32 0.0009, %v3932_v35  ;;  %v3933_v3 = vmul.f32 2.0, %v3885_v1  ;;  %v11114_v1 = vld [vmem:[#allocation39_spill] sm:$0xff] }
 0x380   : > { %5345 = vrcp.f32 %v11109_v59  ;;  %v3966_v15 = vmul.f32 %v3950_v26, %v9794_v55  ;;  %v3951_v16 = vadd.f32 0.0009, %v3935_v37  ;;  %v2144_v14 = vrot.slane %v9909_v38, 1 }
 0x381   : > { %v5332_v41 = vpop.eup %5331  ;;  %5347 = vrcp.f32 %v9745_v12  ;;  %v4089_v10 = vadd.f32 %v4088_v30, %v4074_v11  ;;  %v3964_v18 = vmul.f32 %v3948_v39, %v9796_v6  ;;  %v3949_v17 = vadd.f32 0.0009, %v3933_v3  ;;  %v5170_v7 = vpop.f32.mrb[108].mxu1  ;;  %v11115_v30 = vld [vmem:[#allocation41_spill] sm:$0xff] }
 0x382   : > { %v5334_v62 = vpop.eup %5333  ;;  %5349 = vrcp.f32 %v9748_v56  ;;  %v4078_v22 = vmul.f32 %v5332_v41, %v3966_v15  ;;  %v3967_v47 = vmul.f32 %v3951_v16, %v9801_v31  ;;  %v3890_v8 = vsub.f32 %v5170_v7, %v11063_v51  ;;  %v3684_v55 = vpop.f32.mrb[109].mxu1  ;;  %v11111_v56 = vld [vmem:[#allocation102_spill] sm:$0xff]  ;;  %v11116_v15 = vld [vmem:[#allocation116_spill] sm:$0xff] }
 0x383   : > { %v5336_v50 = vpop.eup %5335  ;;  %v4076_v48 = vmul.f32 %v5334_v62, %v3964_v18  ;;  %v4090_v27 = vadd.f32 %v4089_v10, %v4075_v36  ;;  %v3965_v28 = vmul.f32 %v3949_v17, %v9816_v34  ;;  %v3888_v12 = vsub.f32 %v3684_v55, %v11064_v60  ;;  %v5171_v11 = vpop.f32.mrb[110].mxu1  ;;  %v11113_v34 = vld [vmem:[#allocation83_spill] sm:$0xff] }
 0x384   : > { %v5338_v6 = vpop.eup %5337  ;;  %5351 = vrcp.f32 %v11110_v44  ;;  %v4079_v53 = vmul.f32 %v5336_v50, %v3967_v47  ;;  %v3938_v33 = vmul.f32 2.0, %v3890_v8  ;;  %v3891_v13 = vsub.f32 %v5171_v11, %v11111_v56  ;;  %v3687_v42 = vpop.f32.mrb[111].mxu1  ;;  %v11117_v8 = vld [vmem:[#allocation69_spill] sm:$0xff]  ;;  %v11118_v50 = vld [vmem:[#allocation20_spill] sm:$0xff]  ;;  %v11120_v11 = vld [vmem:[#allocation90_spill] sm:$0xff] }
 0x385   : > { %v4091_v31 = vadd.f32 %v4090_v27, %v4076_v48  ;;  %v4077_v19 = vmul.f32 %v5338_v6, %v3965_v28  ;;  %v3936_v51 = vmul.f32 2.0, %v3888_v12  ;;  %v3889_v63 = vsub.f32 %v3687_v42, %v11112_v29  ;;  %v11119_v28 = vld [vmem:[#allocation101_spill] sm:$0xff] }
 0x386   : > { %v5340_v2 = vpop.eup %5339  ;;  %v9940_v36 = vadd.f32 0.0001, %v9904_v4  ;;  %5353 = vrcp.f32 %v11113_v34  ;;  %v3954_v60 = vadd.f32 0.0009, %v3938_v33  ;;  %v3939_v35 = vmul.f32 2.0, %v3891_v13  ;;  %v11121_v13 = vld [vmem:[#allocation25_spill] sm:$0xff] }
 0x387   : > { %5355 = vrcp.f32 %v11114_v1  ;;  %v4092_v9 = vadd.f32 %v4091_v31, %v4077_v19  ;;  %v3952_v26 = vadd.f32 0.0009, %v3936_v51  ;;  %v3937_v37 = vmul.f32 2.0, %v3889_v63 }
 0x388   : > { %v5342_v21 = vpop.eup %5341  ;;  %5357 = vrcp.f32 %v11115_v30  ;;  %v3970_v39 = vmul.f32 %v3954_v60, %v9824_v32  ;;  %v3955_v3 = vadd.f32 0.0009, %v3939_v35  ;;  %v9947_v59 = vadd.f32 %v2144_v14, %v9909_v38  ;;  %v2115_v16 = vpop.xlane.xlu0 %2114 }
 0x389   : > { %v5344_v4 = vpop.eup %5343  ;;  %5359 = vrcp.f32 %v11116_v15  ;;  %v4093_v41 = vadd.f32 %v4092_v9, %v4078_v22  ;;  %v3968_v10 = vmul.f32 %v3952_v26, %v9826_v5  ;;  %v3953_v18 = vadd.f32 0.0009, %v3937_v37  ;;  %v5190_v17 = vpop.f32.mrb[112].mxu1  ;;  %v11123_v26 = vld [vmem:[#allocation134_spill] sm:$0xff] }
 0x38a   : > { %v5346_v7 = vpop.eup %5345  ;;  %v2116_v62 = vrot.slane %v2115_v16, 4  ;;  %v4082_v47 = vmul.f32 %v5340_v2, %v3970_v39  ;;  %v3971_v55 = vmul.f32 %v3955_v3, %v11117_v8  ;;  %v4158_v32 = vsub.f32 %v5190_v17, %v11118_v50  ;;  %v3733_v48 = vpop.f32.mrb[113].mxu1  ;;  %v11122_v2 = vld [vmem:[#allocation112_spill] sm:$0xff] }
 0x38b   : > { %v5348_v27 = vpop.eup %5347  ;;  %v4080_v38 = vmul.f32 %v5342_v21, %v3968_v10  ;;  %v4094_v14 = vadd.f32 %v4093_v41, %v4079_v53  ;;  %v3969_v12 = vmul.f32 %v3953_v18, %v11119_v28  ;;  %v4156_v6 = vsub.f32 %v3733_v48, %v11120_v11  ;;  %v5191_v22 = vpop.f32.mrb[114].mxu1  ;;  %v11124_v10 = vld [vmem:[#allocation125_spill] sm:$0xff] }
 0x38c   : > { %v5350_v44 = vpop.eup %5349  ;;  %v2117_v5 = vadd.f32 %v2116_v62, %v2115_v16  ;;  %v4083_v33 = vmul.f32 %v5344_v4, %v3971_v55  ;;  %v4206_v56 = vmul.f32 2.0, %v4158_v32  ;;  %v4159_v42 = vsub.f32 %v5191_v22, %v11121_v13  ;;  %v3736_v31 = vpop.f32.mrb[115].mxu1 }
 0x38d   : > { %v2163_v19 = vpop.xlane.xlu0 %2162  ;;  %v4095_v51 = vadd.f32 %v4094_v14, %v4080_v38  ;;  %v4081_v29 = vmul.f32 %v5346_v7, %v3969_v12  ;;  %v4204_v63 = vmul.f32 2.0, %v4156_v6  ;;  %v4157_v34 = vsub.f32 %v3736_v31, %v11122_v2  ;;  %v11125_v31 = vld [vmem:[#allocation63_spill] sm:$0xff]  ;;  %v11127_v2 = vld [vmem:[#allocation64_spill] sm:$0xff] }
 0x38e   : > { %v5352_v60 = vpop.eup %5351  ;;  %v2118_v53 = vrot.slane %v2117_v5, 2  ;;  %v2164_v35 = vrot.slane %v2163_v19, 4  ;;  %v4222_v1 = vadd.f32 0.0009, %v4206_v56  ;;  %v4207_v9 = vmul.f32 2.0, %v4159_v42 }
 0x38f   : > { %5361 = vrcp.f32 %v11123_v26  ;;  %v4096_v37 = vadd.f32 %v4095_v51, %v4081_v29  ;;  %v4220_v21 = vadd.f32 0.0009, %v4204_v63  ;;  %v4205_v30 = vmul.f32 2.0, %v4157_v34  ;;  %v11126_v63 = vld [vmem:[#allocation32_spill] sm:$0xff] }
 0x390   : > { %v5354_v39 = vpop.eup %5353  ;;  %v2165_v3 = vadd.f32 %v2164_v35, %v2163_v19  ;;  %v2119_v4 = vadd.f32 %v2118_v53, %v2117_v5  ;;  %v4238_v15 = vmul.f32 %v4222_v1, %v9860_v23  ;;  %v4223_v16 = vadd.f32 0.0009, %v4207_v9  ;;  %v11128_v1 = vld [vmem:[#allocation78_spill] sm:$0xff] }
 0x391   : > { %v5356_v41 = vpop.eup %5355  ;;  %5363 = vrcp.f32 %v11124_v10  ;;  %v4236_v18 = vmul.f32 %v4220_v21, %v9866_v20  ;;  %v4221_v17 = vadd.f32 0.0009, %v4205_v30  ;;  %v5194_v7 = vpop.f32.mrb[116].mxu1  ;;  %v4097_v62 = vadd.f32 %v4096_v37, %v4082_v47  ;;  %v11129_v37 = vld [vmem:[#allocation30_spill] sm:$0xff]  ;;  %v11130_v30 = vld [vmem:[#allocation127_spill] sm:$0xff] }
 0x392   : > { %v5358_v8 = vpop.eup %5357  ;;  %v2166_v55 = vrot.slane %v2165_v3, 2  ;;  %v2120_v50 = vrot.slane %v2119_v4, 1  ;;  %v4350_v32 = vmul.f32 %v5348_v27, %v4238_v15  ;;  %v4239_v48 = vmul.f32 %v4223_v16, %v9872_v25  ;;  %v3749_v38 = vpop.f32.mrb[117].mxu1 }
 0x393   : > { %v5360_v14 = vpop.eup %5359  ;;  %v4348_v28 = vmul.f32 %v5350_v44, %v4236_v18  ;;  %v4237_v23 = vmul.f32 %v4221_v17, %v9875_v43  ;;  %v4162_v12 = vsub.f32 %v5194_v7, %v11084_v45  ;;  %v4160_v11 = vsub.f32 %v3749_v38, %v11096_v40  ;;  %v5195_v6 = vpop.f32.mrb[118].mxu1  ;;  %v11131_v38 = vld [vmem:[#allocation51_spill] sm:$0xff] }
 0x394   : > { %v2121_v20 = vadd.f32 %v2120_v50, %v2119_v4  ;;  %v2167_v22 = vadd.f32 %v2166_v55, %v2165_v3  ;;  %v4351_v5 = vmul.f32 %v5352_v60, %v4239_v48  ;;  %v4163_v47 = vsub.f32 %v5195_v6, %v11098_v52  ;;  %v3752_v56 = vpop.f32.mrb[119].mxu1  ;;  %v11134_v6 = vld [vmem:[#allocation29_spill] sm:$0xff] }
 0x395   : > { %v4349_v13 = vmul.f32 %v5354_v39, %v4237_v23  ;;  %v4210_v27 = vmul.f32 2.0, %v4162_v12  ;;  %v4208_v42 = vmul.f32 2.0, %v4160_v11  ;;  %v4161_v25 = vsub.f32 %v3752_v56, %v11099_v54  ;;  %v11132_v23 = vld [vmem:[#allocation43_spill] sm:$0xff]  ;;  %v11133_v12 = vld [vmem:[#allocation24_spill] sm:$0xff] }
 0x396   : > { %5365 = vrcp.f32 %v11125_v31  ;;  %5206 = vpush %v2121_v20  ;;  %v2168_v43 = vrot.slane %v2167_v22, 1  ;;  %v4211_v44 = vmul.f32 2.0, %v4163_v47  ;;  %v4098_v45 = vadd.f32 %v4097_v62, %v4083_v33  ;;  %v11136_v56 = vld [vmem:[#allocation35_spill] sm:$0xff] }
 0x397   : > { %5208 = vpush %v9947_v59  ;;  %v4364_v40 = vadd.f32 %v4349_v13, %v4348_v28  ;;  %v4226_v19 = vadd.f32 0.0009, %v4210_v27  ;;  %v4224_v51 = vadd.f32 0.0009, %v4208_v42  ;;  %v4209_v29 = vmul.f32 2.0, %v4161_v25 }
 0x398   : > { %v4181_v52 = vmul.f32 2.0, %v11126_v63  ;;  %5367 = vrcp.f32 %v11127_v2  ;;  %v2169_v34 = vadd.f32 %v2168_v43, %v2167_v22  ;;  %v4227_v60 = vadd.f32 0.0009, %v4211_v44  ;;  %4099 = vadd.xlane.f32.xlu0 %v4098_v45 }
 0x399   : > { %v5362_v54 = vpop.eup %5361  ;;  %v4365_v53 = vadd.f32 %v4364_v40, %v4350_v32  ;;  %v4242_v35 = vmul.f32 %v4226_v19, %v9877_v0  ;;  %v4240_v9 = vmul.f32 %v4224_v51, %v11128_v1  ;;  %v4225_v33 = vadd.f32 0.0009, %v4209_v29  ;;  %v5198_v26 = vpop.f32.mrb[120].mxu1  ;;  %v11137_v19 = vld [vmem:[#allocation129_spill] sm:$0xff] }
 0x39a   : > { %v4199_v59 = vadd.f32 0.0001, %v9922_v46  ;;  %5369 = vrcp.f32 %v11129_v37  ;;  %5210 = vpush %v2169_v34  ;;  %v4243_v21 = vmul.f32 %v4227_v60, %v9893_v57  ;;  %v4166_v39 = vsub.f32 %v5198_v26, %v11130_v30  ;;  %v3765_v3 = vpop.f32.mrb[121].mxu1  ;;  %v11138_v1 = vld [vmem:[#allocation57_spill] sm:$0xff] }
 0x39b   : > { %v5364_v4 = vpop.eup %5363  ;;  %v4354_v15 = vmul.f32 %v5356_v41, %v4242_v35  ;;  %v4352_v16 = vmul.f32 %v5358_v8, %v4240_v9  ;;  %v4366_v10 = vadd.f32 %v4365_v53, %v4351_v5  ;;  %v4241_v0 = vmul.f32 %v4225_v33, %v9898_v61  ;;  %v5199_v18 = vpop.f32.mrb[122].mxu1  ;;  %v11135_v5 = vld [vmem:[#allocation97_spill] sm:$0xff] }
 0x39c   : > { %v4355_v17 = vmul.f32 %v5360_v14, %v4243_v21  ;;  %v4214_v7 = vmul.f32 2.0, %v4166_v39  ;;  %v4164_v62 = vsub.f32 %v3765_v3, %v11105_v24  ;;  %v4167_v46 = vsub.f32 %v5199_v18, %v11106_v58  ;;  %v3768_v55 = vpop.f32.mrb[123].mxu1 }
 0x39d   : > { %v4197_v50 = vadd.f32 0.0001, %v4181_v52  ;;  %v4367_v32 = vadd.f32 %v4366_v10, %v4352_v16  ;;  %v4353_v57 = vmul.f32 %v5362_v54, %v4241_v0  ;;  %v4165_v48 = vsub.f32 %v3768_v55, %v11126_v63 }
 0x39e   : > { %5371 = vrcp.f32 %v11131_v38  ;;  %v4230_v41 = vadd.f32 0.0009, %v4214_v7  ;;  %v4212_v8 = vmul.f32 2.0, %v4164_v62  ;;  %v4215_v28 = vmul.f32 2.0, %v4167_v46 }
 0x39f   : > { %v4186_v61 = vmul.f32 2.0, %v11132_v23  ;;  %5373 = vrcp.f32 %v11133_v12  ;;  %v4368_v14 = vadd.f32 %v4367_v32, %v4353_v57  ;;  %v4213_v11 = vmul.f32 2.0, %v4165_v48 }
 0x3a0   : > { %v5366_v24 = vpop.eup %5365  ;;  %5375 = vrcp.f32 %v11134_v6  ;;  %v4246_v58 = vmul.f32 %v4230_v41, %v9901_v49  ;;  %v4228_v20 = vadd.f32 0.0009, %v4212_v8  ;;  %v4231_v22 = vadd.f32 0.0009, %v4215_v28 }
 0x3a1   : > { %v4184_v47 = vmul.f32 2.0, %v11135_v5  ;;  %5377 = vrcp.f32 %v11136_v56  ;;  %v4369_v13 = vadd.f32 %v4368_v14, %v4354_v15  ;;  %v4229_v27 = vadd.f32 0.0009, %v4213_v11  ;;  %v5202_v42 = vpop.f32.mrb[124].mxu1 }
 0x3a2   : > { %v5368_v25 = vpop.eup %5367  ;;  %v4358_v31 = vmul.f32 %v5364_v4, %v4246_v58  ;;  %v4244_v43 = vmul.f32 %v4228_v20, %v9940_v36  ;;  %v4247_v44 = vmul.f32 %v4231_v22, %v4199_v59  ;;  %v4170_v45 = vsub.f32 %v5202_v42, %v11132_v23  ;;  %v3781_v40 = vpop.f32.mrb[125].mxu1 }
 0x3a3   : > { %v4187_v51 = vmul.f32 2.0, %v11137_v19  ;;  %v4370_v49 = vadd.f32 %v4369_v13, %v4355_v17  ;;  %v4245_v29 = vmul.f32 %v4229_v27, %v4197_v50  ;;  %v4168_v63 = vsub.f32 %v3781_v40, %v11135_v5  ;;  %v5203_v52 = vpop.f32.mrb[126].mxu1 }
 0x3a4   : > { %v5370_v2 = vpop.eup %5369  ;;  %v4356_v34 = vmul.f32 %v5366_v24, %v4244_v43  ;;  %v4359_v60 = vmul.f32 %v5368_v25, %v4247_v44  ;;  %v4218_v54 = vmul.f32 2.0, %v4170_v45  ;;  %v4171_v53 = vsub.f32 %v5203_v52, %v11137_v19  ;;  %v3784_v35 = vpop.f32.mrb[127].mxu1  ;;  %v11139_v44 = vld [vmem:[#allocation19_spill] sm:$0xff]  ;;  %v11140_v45 = vld [vmem:[#allocation132_spill] sm:$0xff] }
 0x3a5   : > { %v4185_v36 = vmul.f32 2.0, %v11138_v1  ;;  %v4357_v9 = vmul.f32 %v5370_v2, %v4245_v29  ;;  %v4216_v33 = vmul.f32 2.0, %v4168_v63  ;;  %v4169_v26 = vsub.f32 %v3784_v35, %v11138_v1 }
 0x3a6   : > { %v4202_v59 = vadd.f32 0.0001, %v4186_v61  ;;  %v4371_v37 = vadd.f32 %v4370_v49, %v4356_v34  ;;  %v4234_v21 = vadd.f32 0.0009, %v4218_v54  ;;  %v4219_v30 = vmul.f32 2.0, %v4171_v53 }
 0x3a7   : > { %v4200_v39 = vadd.f32 0.0001, %v4184_v47  ;;  %v4232_v3 = vadd.f32 0.0009, %v4216_v33  ;;  %v4217_v4 = vmul.f32 2.0, %v4169_v26  ;;  %vm4388_vm6 = vcmp.eq.s32.totalorder %v11139_v44, 0 }
 0x3a8   : > { %v5372_v15 = vpop.eup %5371  ;;  %v4203_v16 = vadd.f32 0.0001, %v4187_v51  ;;  %v4372_v10 = vadd.f32 %v4371_v37, %v4357_v9  ;;  %v4250_v0 = vmul.f32 %v4234_v21, %v4202_v59  ;;  %v4235_v18 = vadd.f32 0.0009, %v4219_v30 }
 0x3a9   : > { %v5374_v17 = vpop.eup %5373  ;;  %v4201_v7 = vadd.f32 0.0001, %v4185_v36  ;;  %v4248_v62 = vmul.f32 %v4232_v3, %v4200_v39  ;;  %v4233_v46 = vadd.f32 0.0009, %v4217_v4  ;;  %vm4389_vm7 = vcmp.eq.s32.totalorder %v11140_v45, 0 }
 0x3aa   : > { %v5376_v55 = vpop.eup %5375  ;;  %v4373_v50 = vadd.f32 %v4372_v10, %v4358_v31  ;;  %v4362_v32 = vmul.f32 %v5372_v15, %v4250_v0  ;;  %v4251_v57 = vmul.f32 %v4235_v18, %v4203_v16  ;;  %vm4393_vm8 = vcmp.eq.s32.totalorder %v11140_v45, 1  ;;  %vm4390_vm9 = vmand %vm4388_vm6, %vm4389_vm7 }
 0x3ab   : > { %v5378_v48 = vpop.eup %5377  ;;  %v4360_v38 = vmul.f32 %v5374_v17, %v4248_v62  ;;  %v4249_v41 = vmul.f32 %v4233_v46, %v4201_v7  ;;  %v4391_v40 = vstv %s5205_s27  ;;  %vm4394_vm10 = vmand %vm4388_vm6, %vm4393_vm8  ;;  %vm4397_vm11 = vcmp.eq.s32.totalorder %v11140_v45, 2 }
 0x3ac   : > { %v4374_v8 = vadd.f32 %v4373_v50, %v4359_v60  ;;  %v4363_v28 = vmul.f32 %v5376_v55, %v4251_v57  ;;  %vm4401_vm12 = vcmp.eq.s32.totalorder %v11140_v45, 3  ;;  %v4392_v51 = vsel %vm4390_vm9, %v4391_v40, 0.0  ;;  %vm4398_vm14 = vmand %vm4388_vm6, %vm4397_vm11 }
 0x3ad   : > { %v4361_v23 = vmul.f32 %v5378_v48, %v4249_v41  ;;  %vm4405_vm13 = vcmp.eq.s32.totalorder %v11140_v45, 4  ;;  %vm4409_vm15 = vcmp.eq.s32.totalorder %v11140_v45, 5  ;;  %vm4402_vm0 = vmand %vm4388_vm6, %vm4401_vm12 }
 0x3ae   : > { %v4375_v61 = vadd.f32 %v4374_v8, %v4360_v38  ;;  %vm4406_vm1 = vmand %vm4388_vm6, %vm4405_vm13 }
 0x3af   : > { %vm4410_vm2 = vmand %vm4388_vm6, %vm4409_vm15 }
 0x3b0   : > { %v4376_v12 = vadd.f32 %v4375_v61, %v4361_v23 }
 0x3b2   : > { %v4377_v14 = vadd.f32 %v4376_v12, %v4362_v32 }
 0x3b4   : > { %v4378_v11 = vadd.f32 %v4377_v14, %v4363_v28 }
 0x3b6   : > { %4379 = vadd.xlane.f32.xlu1 %v4378_v11 }
 0x3c7   : > { %s5207_s14 = spop %5206 }
 0x3c8   : > { %v4395_v19 = vstv %s5207_s14  ;;  %s5209_s26 = spop %5208 }
 0x3c9   : > { %v4396_v49 = vsel %vm4394_vm10, %v4395_v19, %v4392_v51  ;;  %v4399_v29 = vstv %s5209_s26 }
 0x3ca   : > { %v4400_v2 = vsel %vm4398_vm14, %v4399_v29, %v4396_v49 }
 0x3cb   : > { %s5211_s23 = spop %5210 }
 0x3cc   : > { %v4403_v63 = vstv %s5211_s23 }
 0x3cd   : > { %v4404_v34 = vsel %vm4402_vm0, %v4403_v63, %v4400_v2 }
 0x425   : > { %v4100_v24 = vpop.xlane.xlu0 %4099 }
 0x426   : > { %v4101_v6 = vrot.slane %v4100_v24, 4 }
 0x428   : > { %v4102_v58 = vadd.f32 %v4101_v6, %v4100_v24 }
 0x42a   : > { %v4103_v20 = vrot.slane %v4102_v58, 2 }
 0x42c   : > { %v4104_v22 = vadd.f32 %v4103_v20, %v4102_v58 }
 0x42e   : > { %v4105_v5 = vrot.slane %v4104_v22, 1 }
 0x430   : > { %v4106_v47 = vadd.f32 %v4105_v5, %v4104_v22 }
 0x432   : > { %5212 = vpush %v4106_v47 }
 0x443   : > { %v4380_v56 = vpop.xlane.xlu1 %4379 }
 0x444   : > { %v4381_v13 = vrot.slane %v4380_v56, 4 }
 0x446   : > { %v4382_v27 = vadd.f32 %v4381_v13, %v4380_v56 }
 0x448   : > { %v4383_v42 = vrot.slane %v4382_v27, 2 }
 0x44a   : > { %v4384_v25 = vadd.f32 %v4383_v42, %v4382_v27 }
 0x44c   : > { %v4385_v31 = vrot.slane %v4384_v25, 1 }
 0x44e   : > { %v4386_v43 = vadd.f32 %v4385_v31, %v4384_v25 }
 0x450   : > { %5214 = vpush %v4386_v43 }
 0x463   : > { %s5213_s11 = spop %5212 }
 0x464   : > { %v4407_v52 = vstv %s5213_s11 }
 0x465   : > { %v4408_v60 = vsel %vm4406_vm1, %v4407_v52, %v4404_v34 }
 0x481   : > { %s5215_s25 = spop %5214 }
 0x482   : > { %v4411_v54 = vstv %s5215_s25 }
 0x483   : > { %v4412_v53 = vsel %vm4410_vm2, %v4411_v54, %v4408_v60 }
 0x484   : > { %4413 = vst [vmem:[%s348_s12] sm:$0xff] %v4412_v53 }
 0x485   : > { %5604 = shalt.err (!%p5601_p1)
}
 0x486   : > { %s5605_s8 = scalar_lea.hbm %s10019_s24, 128  ;;  %s5609_s15 = scalar_lea.hbm %s10068_s5, 256 }
 0x487   : > { %p5606_p5 = scmp.ne.s32.totalorder %s10019_s24, %s5605_s8  ;;  %p5610_p4 = scmp.lt.u32.totalorder %s10019_s24, %s10068_s5 }
 0x488   : > { %p5611_p8 = scmp.lt.u32.totalorder %s5609_s15, %s5605_s8  ;;  %p5613_p3 = scmp.lt.u32.totalorder %s5605_s8, %s10019_s24 }
 0x489   : > { %p5607_p11 = pnand %p5606_p5, %p11141_p7 }
 0x48a   : > { %p5612_p13 = por %p5611_p8, %p5610_p4 }
 0x48b   : > { %p5608_p12 = pneg %p5607_p11 }
 0x48c   : > { %p5614_p0 = por %p5613_p3, %p5612_p13 }
 0x48e   : > { %p5615_p6 = pnand %p5614_p0, %p5608_p12 }
 0x490   : > { %5618 = shalt.err (!%p5615_p6)
}
 0x491   : > { %5230 = dma.vmem_to_hbm [thread:$0]  (%p11141_p7), %s10021_s3, 128, %s10019_s24, %s4415_s22  }
 0x492 PF: > { %s11142_s10 = sld [smem:[#allocation16_spill]]  ;;  %s4440_s26 = sand.u32 1, %s5653_s18  }
 0x493   : > { %p11143_p2 = scmp.ne.s32.totalorder %s10356_s6, 0  ;;  %s4441_s23 = scalar_lea.sflag [#allocation4], %s4440_s26 }
 0x498   : > { %p11144_p9 = scmp.ge.s32.totalorder %s11142_s10, 2 }
 0x49a   : > { %p5250_p10 = pnand %p11144_p9, %p11143_p2 }
 0x49c   : > { %5648 = dma.done.wait (!%p5250_p10), %s4441_s23, 128  }
 0x49d   : > { %5650 = vsyncadd (!%p5250_p10), %s4441_s23, 4294967168  ;;  %s11145_s21 = sld [smem:[#allocation17_spill]]  ;;  %s11146_s11 = sld [smem:[#allocation18_spill]] }
 0x49e   : > { %s11147_s18 = smov %s5657_s19  ;;  %s11148_s19 = smov %s5661_s20 }
 0x4a3   : > { %p22_p1 = scmp.ge.s32.totalorder %s11145_s21, 4   ;;  %s11149_s20 = smov %s11146_s11 }
 0x4a5   :  { %24 = sbr.rel (!%p22_p1) target bundleno = 11 (0xb), region = 117 }
 0x4ac   :  { %4446 = vsyncpa [#allocation3], 1 }
 0x4ad   :  { %4448 = vsyncpa [#allocation3 + $0x1], 1 }
 0x4ae   :  { %4449 = vsyncpa [#allocation6], 1 }
 0x4af   :  { %4451 = vsyncpa [#allocation6 + $0x1], 1 }
 0x4b0   :  { %4452 = vsyncpa [#allocation9], 1 }
 0x4b1   :  { %4453 = vsyncpa [#allocation4], 1 }
 0x4b2   :  { %4455 = vsyncpa [#allocation4 + $0x1], 1 }

</bundles_post_ra>
